<compile_context>
chip_gen: v7x
topology: tpu7x:2x2x1
jax: 0.10.0
libtpu: 0.0.40
codegen_flags: <defaults>
</compile_context>

<pallas_src>
import functools

import numpy as np
import jax
import jax.numpy as jnp
from jax.experimental import pallas as pl
from jax.experimental.pallas import tpu as pltpu

BN_EPS = 1e-5


# ----------------------------- Pallas kernels -----------------------------

def _matmul_bn_kernel(w_ref, x_ref, scale_ref, bias_ref, o_ref, *, relu):
    # fused: (W @ X) * scale + bias [+ ReLU]; output (N, tm), spatial axis on lanes.
    acc = jnp.dot(w_ref[...], x_ref[...], preferred_element_type=jnp.float32)
    y = acc * scale_ref[...] + bias_ref[...]
    if relu:
        y = jnp.maximum(y, 0.0)
    o_ref[...] = y.astype(o_ref.dtype)


def _matmul_bn_add_relu_kernel(w_ref, x_ref, scale_ref, bias_ref, res_ref, o_ref):
    # fused bottleneck tail: relu((W @ X) * scale + bias + residual)
    acc = jnp.dot(w_ref[...], x_ref[...], preferred_element_type=jnp.float32)
    y = acc * scale_ref[...] + bias_ref[...] + res_ref[...]
    o_ref[...] = jnp.maximum(y, 0.0).astype(o_ref.dtype)


def _matmul_bn_rowmask_kernel(w_ref, x_ref, scale_ref, bias_ref, mask_ref, o_ref):
    # fused 1x1 pair (conv1 with ReLU + downsample without): ReLU only where mask > 0.
    acc = jnp.dot(w_ref[...], x_ref[...], preferred_element_type=jnp.float32)
    y = acc * scale_ref[...] + bias_ref[...]
    o_ref[...] = jnp.where(mask_ref[...] > 0.5, jnp.maximum(y, 0.0), y).astype(o_ref.dtype)


def _max9_kernel(w_ref, o_ref):
    # w_ref: (9, R, L) -- 9 shifted/strided 3x3 windows, lane-dense packed.
    m = w_ref[0]
    for i in range(1, 9):
        m = jnp.maximum(m, w_ref[i])
    o_ref[...] = m


def _pcb_avgpool_kernel(x_ref, o_ref, *, inv_denom):
    # x_ref: (C*B, part, s*W); mean over the last axis (one PCB stripe per row).
    o_ref[...] = (jnp.sum(x_ref[...], axis=-1) * inv_denom).astype(o_ref.dtype)


# ----------------------------- Pallas wrappers -----------------------------

def matmul_bn(x2d, wt, scale, bias, *, relu=False, residual=None, relu_mask=None):
    """y = act((wt @ x2d) * scale + bias [+ residual]) on the MXU.

    wt: (N, K), x2d: (K, M), scale/bias/relu_mask: (N, 1), residual: (N, M) -> out (N, M).
    The large M axis sits on lanes -> lane-dense stores for all the small-N layers.
    """
    N, K = wt.shape
    M = x2d.shape[1]
    tm = 1024 if (M > 1024 and M % 1024 == 0) else M
    grid = (M // tm,)

    in_specs = [
        pl.BlockSpec((N, K), lambda i: (0, 0)),
        pl.BlockSpec((K, tm), lambda i: (0, i)),
        pl.BlockSpec((N, 1), lambda i: (0, 0)),
        pl.BlockSpec((N, 1), lambda i: (0, 0)),
    ]
    args = [wt, x2d, scale, bias]
    if residual is not None:
        in_specs.append(pl.BlockSpec((N, tm), lambda i: (0, i)))
        args.append(residual)
        kernel = _matmul_bn_add_relu_kernel
    elif relu_mask is not None:
        in_specs.append(pl.BlockSpec((N, 1), lambda i: (0, 0)))
        args.append(relu_mask)
        kernel = _matmul_bn_rowmask_kernel
    else:
        kernel = functools.partial(_matmul_bn_kernel, relu=relu)

    return pl.pallas_call(
        kernel,
        out_shape=jax.ShapeDtypeStruct((N, M), jnp.float32),
        grid=grid,
        in_specs=in_specs,
        out_specs=pl.BlockSpec((N, tm), lambda i: (0, i)),
        compiler_params=pltpu.CompilerParams(dimension_semantics=("parallel",)),
    )(*args)


def maxpool_3x3_s2(x):
    """nn.MaxPool2d(kernel_size=3, stride=2, padding=1); x is (C, B, H, W)."""
    C, B, H, W = x.shape
    pad = 1
    Ho = (H + 2 * pad - 3) // 2 + 1
    Wo = (W + 2 * pad - 3) // 2 + 1
    neg = jnp.finfo(x.dtype).min
    xp = jnp.pad(x, ((0, 0), (0, 0), (pad, pad), (pad, pad)), constant_values=neg)
    wins = [xp[:, :, dy:dy + 2 * Ho:2, dx:dx + 2 * Wo:2]
            for dy in range(3) for dx in range(3)]
    # pack (C*B) rows x (Ho*Wo) dense lanes -- glue is pure data movement (tiny tensor).
    wins = jnp.stack(wins, axis=0).reshape(9, C * B, Ho * Wo)
    out = pl.pallas_call(
        _max9_kernel,
        out_shape=jax.ShapeDtypeStruct((C * B, Ho * Wo), x.dtype),
    )(wins)
    return out.reshape(C, B, Ho, Wo)


def pcb_avgpool(x, part=4):
    """AdaptiveAvgPool2d((part, 1)) + view(B, C, part); x is (C, B, H, W)."""
    C, B, H, W = x.shape
    assert H % part == 0
    s = H // part
    x3 = x.reshape(C * B, part, s * W)
    y = pl.pallas_call(
        functools.partial(_pcb_avgpool_kernel, inv_denom=1.0 / float(s * W)),
        out_shape=jax.ShapeDtypeStruct((C * B, part), jnp.float32),
    )(x3)
    return jnp.transpose(y.reshape(C, B, part), (1, 0, 2))   # -> (B, C, part)


# ----------------------------- conv / block glue -----------------------------

def _im2col_t(x, k, stride, pad):
    """x: (C, B, H, W) -> patches (k*k*C, B*Ho*Wo), K-order = (kh, kw, cin)."""
    C, B, H, W = x.shape
    Ho = (H + 2 * pad - k) // stride + 1
    Wo = (W + 2 * pad - k) // stride + 1
    xp = jnp.pad(x, ((0, 0), (0, 0), (pad, pad), (pad, pad)))
    cols = [xp[:, :, dy:dy + stride * Ho:stride, dx:dx + stride * Wo:stride]
            for dy in range(k) for dx in range(k)]
    patches = jnp.concatenate(cols, axis=0)          # (k*k*C, B, Ho, Wo)
    # TODO(synk): taps could be folded into a reduction grid axis to avoid the k*k HBM
    # duplication; kept as glue here since activations are tiny at these shapes.
    return patches.reshape(k * k * C, B * Ho * Wo), (B, Ho, Wo)


def conv_bn(x, p, *, stride=1, relu=True, residual=None):
    """Conv2d(kxk, pad=k//2, bias=False) + folded BatchNorm (+ReLU / +residual-ReLU)."""
    k = p['ksize']
    cout = p['wt'].shape[0]
    if k == 1:
        if stride > 1:
            x = x[:, :, ::stride, ::stride]
        C, B, H, W = x.shape
        x2d = x.reshape(C, B * H * W)
        shape = (B, H, W)
    else:
        x2d, shape = _im2col_t(x, k, stride, k // 2)
    res2d = residual.reshape(cout, -1) if residual is not None else None
    y2d = matmul_bn(x2d, p['wt'], p['scale'], p['bias'], relu=relu, residual=res2d)
    B, Ho, Wo = shape
    return y2d.reshape(cout, B, Ho, Wo)


def fused_1x1_pair(x, p_relu, p_plain):
    """One matmul for [conv1 (ReLU) ; downsample (no ReLU)], both 1x1 stride 1."""
    C, B, H, W = x.shape
    x2d = x.reshape(C, B * H * W)
    na = p_relu['wt'].shape[0]
    nb = p_plain['wt'].shape[0]
    wt = jnp.concatenate([p_relu['wt'], p_plain['wt']], axis=0)
    scale = jnp.concatenate([p_relu['scale'], p_plain['scale']], axis=0)
    bias = jnp.concatenate([p_relu['bias'], p_plain['bias']], axis=0)
    mask = jnp.concatenate([jnp.ones((na, 1), jnp.float32),
                            jnp.zeros((nb, 1), jnp.float32)], axis=0)
    y2d = matmul_bn(x2d, wt, scale, bias, relu_mask=mask)
    ya = y2d[:na].reshape(na, B, H, W)
    yb = y2d[na:].reshape(nb, B, H, W)
    return ya, yb


def bottleneck(x, p, stride):
    if stride == 1:
        out, ident = fused_1x1_pair(x, p['conv1'], p['down'])
    else:
        out = conv_bn(x, p['conv1'], stride=1, relu=True)
        ident = conv_bn(x, p['down'], stride=stride, relu=False)
    out = conv_bn(out, p['conv2'], stride=stride, relu=True)
    # conv3 + bn + residual-add + relu fused in one Pallas kernel
    out = conv_bn(out, p['conv3'], stride=1, relu=False, residual=ident)
    return out


# ----------------------------- parameters -----------------------------

def make_conv_bn_params(key, cin, cout, k):
    kw, kg, kb, km, kv = jax.random.split(key, 5)
    w = jax.random.normal(kw, (cout, cin, k, k), jnp.float32) / np.sqrt(cin * k * k)
    # PyTorch (Cout, Cin, kh, kw) -> (Cout, kh*kw*Cin), K-order = (kh, kw, cin)
    wt = jnp.transpose(w, (0, 2, 3, 1)).reshape(cout, k * k * cin)
    gamma = 1.0 + 0.1 * jax.random.normal(kg, (cout,), jnp.float32)
    beta = 0.1 * jax.random.normal(kb, (cout,), jnp.float32)
    mean = 0.1 * jax.random.normal(km, (cout,), jnp.float32)
    var = 1.0 + 0.1 * jax.random.uniform(kv, (cout,), jnp.float32)
    scale = gamma / jnp.sqrt(var + BN_EPS)
    bias = beta - mean * scale
    return {'ksize': k, 'wt': wt,
            'scale': scale.reshape(cout, 1), 'bias': bias.reshape(cout, 1)}


def init_pcb_params(key):
    keys = jax.random.split(key, 17)
    params = {'conv1': make_conv_bn_params(keys[0], 3, 8, 7)}

    def layer(kidx, cin, mid, cout):
        return {
            'conv1': make_conv_bn_params(keys[kidx + 0], cin, mid, 1),
            'conv2': make_conv_bn_params(keys[kidx + 1], mid, mid, 3),
            'conv3': make_conv_bn_params(keys[kidx + 2], mid, cout, 1),
            'down':  make_conv_bn_params(keys[kidx + 3], cin, cout, 1),
        }

    params['layer1'] = layer(1, 8, 4, 16)
    params['layer2'] = layer(5, 16, 8, 32)
    params['layer3'] = layer(9, 32, 16, 64)
    params['layer4'] = layer(13, 64, 32, 128)
    return params


# ----------------------------- PCB_test forward -----------------------------

def pcb_test_forward(params, x_nchw):
    x = jnp.transpose(x_nchw, (1, 0, 2, 3))                # NCHW -> (C, B, H, W)
    x = conv_bn(x, params['conv1'], stride=2, relu=True)   # conv1 + bn1 + relu
    x = maxpool_3x3_s2(x)                                   # maxpool
    x = bottleneck(x, params['layer1'], stride=1)           # layer1
    x = bottleneck(x, params['layer2'], stride=2)           # layer2
    x = bottleneck(x, params['layer3'], stride=2)           # layer3
    # PCB_test forces layer4[0].conv2.stride = downsample stride = (1, 1)
    x = bottleneck(x, params['layer4'], stride=1)           # layer4 (no downsampling)
    y = pcb_avgpool(x, part=4)                              # AdaptiveAvgPool2d((4,1)) + view
    return y                                                # (B, C, 4)


if __name__ == "__main__":
    key = jax.random.PRNGKey(0)
    pkey, xkey = jax.random.split(key)
    params = init_pcb_params(pkey)
    x = jax.random.normal(xkey, (2, 3, 64, 64), jnp.float32)   # NCHW like PyTorch
    # params are closed over (not traced) so static ints like 'ksize' stay Python ints.
    fwd = jax.jit(functools.partial(pcb_test_forward, params))
    y = jax.block_until_ready(fwd(x))
    assert y.shape == (2, 128, 4), y.shape
    assert bool(jnp.all(jnp.isfinite(y)))
    print("KERNEL_OK")
</pallas_src>

<mosaic_0001>
module attributes {stable_mosaic.version = 11 : i64} {
  func.func @_matmul_bn_kernel(%arg0: i32, %arg1: memref<8x147xf32, #tpu.memory_space<vmem>>, %arg2: memref<147x1024xf32, #tpu.memory_space<vmem>>, %arg3: memref<8x1xf32, #tpu.memory_space<vmem>>, %arg4: memref<8x1xf32, #tpu.memory_space<vmem>>, %arg5: memref<8x1024xf32, #tpu.memory_space<vmem>>) attributes {dimension_semantics = [#tpu.dimension_semantics<parallel>], iteration_bounds = array<i64: 2>, scalar_prefetch = 0 : i64, scratch_operands = 0 : i64, tpu.core_type = #tpu.core_type<tc>, window_params = [{pipeline_mode = #tpu.pipeline_mode<synchronous>, transform_indices = @transform_0, window_bounds = array<i64: 8, 147>}, {transform_indices = @transform_1, window_bounds = array<i64: 147, 1024>}, {pipeline_mode = #tpu.pipeline_mode<synchronous>, transform_indices = @transform_2, window_bounds = array<i64: 8, 1>}, {pipeline_mode = #tpu.pipeline_mode<synchronous>, transform_indices = @transform_3, window_bounds = array<i64: 8, 1>}, {transform_indices = @transform_4, window_bounds = array<i64: 8, 1024>}]} {
    %c0 = arith.constant 0 : index
    %c0_0 = arith.constant 0 : index
    %0 = vector.load %arg1[%c0, %c0_0] : memref<8x147xf32, #tpu.memory_space<vmem>>, vector<8x147xf32>
    %c0_1 = arith.constant 0 : index
    %c0_2 = arith.constant 0 : index
    %1 = vector.load %arg2[%c0_1, %c0_2] : memref<147x1024xf32, #tpu.memory_space<vmem>>, vector<147x1024xf32>
    %cst = arith.constant dense<0.000000e+00> : vector<8x1024xf32>
    %2 = tpu.matmul %0, %1, %cst {dimension_numbers = #tpu.dot_dimension_numbers<[1], [0], [0], [1], [0, 0, 1, 1], [], []>} : vector<8x147xf32>, vector<147x1024xf32>, vector<8x1024xf32> -> vector<8x1024xf32>
    %c0_3 = arith.constant 0 : index
    %c0_4 = arith.constant 0 : index
    %3 = vector.load %arg3[%c0_3, %c0_4] : memref<8x1xf32, #tpu.memory_space<vmem>>, vector<8x1xf32>
    %4 = vector.broadcast %3 : vector<8x1xf32> to vector<8x1024xf32>
    %5 = arith.mulf %2, %4 : vector<8x1024xf32>
    %c0_5 = arith.constant 0 : index
    %c0_6 = arith.constant 0 : index
    %6 = vector.load %arg4[%c0_5, %c0_6] : memref<8x1xf32, #tpu.memory_space<vmem>>, vector<8x1xf32>
    %7 = vector.broadcast %6 : vector<8x1xf32> to vector<8x1024xf32>
    %8 = arith.addf %5, %7 : vector<8x1024xf32>
    %cst_7 = arith.constant 0.000000e+00 : f32
    %9 = vector.broadcast %cst_7 : f32 to vector<8x1024xf32>
    %10 = arith.maximumf %8, %9 : vector<8x1024xf32>
    %c0_8 = arith.constant 0 : index
    %c0_9 = arith.constant 0 : index
    %11 = vector.load %arg5[%c0_8, %c0_9] : memref<8x1024xf32, #tpu.memory_space<vmem>>, vector<8x1024xf32>
    tpu.vector_store %arg5[%c0_8, %c0_9], %10 {strides = array<i32>} : memref<8x1024xf32, #tpu.memory_space<vmem>>, vector<8x1024xf32>,
    return
  }
  func.func @transform_0(%arg0: i32) -> (i32, i32) {
    %c0_i32 = arith.constant 0 : i32
    %c0_i32_0 = arith.constant 0 : i32
    %c0_i32_1 = arith.constant 0 : i32
    return %c0_i32, %c0_i32_0 : i32, i32
  }
  func.func @transform_1(%arg0: i32) -> (i32, i32) {
    %c0_i32 = arith.constant 0 : i32
    %c0_i32_0 = arith.constant 0 : i32
    return %c0_i32, %arg0 : i32, i32
  }
  func.func @transform_2(%arg0: i32) -> (i32, i32) {
    %c0_i32 = arith.constant 0 : i32
    %c0_i32_0 = arith.constant 0 : i32
    %c0_i32_1 = arith.constant 0 : i32
    return %c0_i32, %c0_i32_0 : i32, i32
  }
  func.func @transform_3(%arg0: i32) -> (i32, i32) {
    %c0_i32 = arith.constant 0 : i32
    %c0_i32_0 = arith.constant 0 : i32
    %c0_i32_1 = arith.constant 0 : i32
    return %c0_i32, %c0_i32_0 : i32, i32
  }
  func.func @transform_4(%arg0: i32) -> (i32, i32) {
    %c0_i32 = arith.constant 0 : i32
    %c0_i32_0 = arith.constant 0 : i32
    return %c0_i32, %arg0 : i32, i32
  }
}

module attributes {stable_mosaic.version = 11 : i64} {
  func.func @_max9_kernel(%arg0: memref<9x16x256xf32, #tpu.memory_space<vmem>>, %arg1: memref<16x256xf32, #tpu.memory_space<vmem>>) attributes {dimension_semantics = [], scalar_prefetch = 0 : i64, scratch_operands = 0 : i64, tpu.core_type = #tpu.core_type<tc>} {
    %c0 = arith.constant 0 : index
    %c0_0 = arith.constant 0 : index
    %c0_1 = arith.constant 0 : index
    %0 = vector.load %arg0[%c0, %c0_0, %c0_1] : memref<9x16x256xf32, #tpu.memory_space<vmem>>, vector<1x16x256xf32>
    %1 = vector.shape_cast %0 : vector<1x16x256xf32> to vector<16x256xf32>
    %c1 = arith.constant 1 : index
    %c0_2 = arith.constant 0 : index
    %c0_3 = arith.constant 0 : index
    %2 = vector.load %arg0[%c1, %c0_2, %c0_3] : memref<9x16x256xf32, #tpu.memory_space<vmem>>, vector<1x16x256xf32>
    %3 = vector.shape_cast %2 : vector<1x16x256xf32> to vector<16x256xf32>
    %4 = arith.maximumf %1, %3 : vector<16x256xf32>
    %c2 = arith.constant 2 : index
    %c0_4 = arith.constant 0 : index
    %c0_5 = arith.constant 0 : index
    %5 = vector.load %arg0[%c2, %c0_4, %c0_5] : memref<9x16x256xf32, #tpu.memory_space<vmem>>, vector<1x16x256xf32>
    %6 = vector.shape_cast %5 : vector<1x16x256xf32> to vector<16x256xf32>
    %7 = arith.maximumf %4, %6 : vector<16x256xf32>
    %c3 = arith.constant 3 : index
    %c0_6 = arith.constant 0 : index
    %c0_7 = arith.constant 0 : index
    %8 = vector.load %arg0[%c3, %c0_6, %c0_7] : memref<9x16x256xf32, #tpu.memory_space<vmem>>, vector<1x16x256xf32>
    %9 = vector.shape_cast %8 : vector<1x16x256xf32> to vector<16x256xf32>
    %10 = arith.maximumf %7, %9 : vector<16x256xf32>
    %c4 = arith.constant 4 : index
    %c0_8 = arith.constant 0 : index
    %c0_9 = arith.constant 0 : index
    %11 = vector.load %arg0[%c4, %c0_8, %c0_9] : memref<9x16x256xf32, #tpu.memory_space<vmem>>, vector<1x16x256xf32>
    %12 = vector.shape_cast %11 : vector<1x16x256xf32> to vector<16x256xf32>
    %13 = arith.maximumf %10, %12 : vector<16x256xf32>
    %c5 = arith.constant 5 : index
    %c0_10 = arith.constant 0 : index
    %c0_11 = arith.constant 0 : index
    %14 = vector.load %arg0[%c5, %c0_10, %c0_11] : memref<9x16x256xf32, #tpu.memory_space<vmem>>, vector<1x16x256xf32>
    %15 = vector.shape_cast %14 : vector<1x16x256xf32> to vector<16x256xf32>
    %16 = arith.maximumf %13, %15 : vector<16x256xf32>
    %c6 = arith.constant 6 : index
    %c0_12 = arith.constant 0 : index
    %c0_13 = arith.constant 0 : index
    %17 = vector.load %arg0[%c6, %c0_12, %c0_13] : memref<9x16x256xf32, #tpu.memory_space<vmem>>, vector<1x16x256xf32>
    %18 = vector.shape_cast %17 : vector<1x16x256xf32> to vector<16x256xf32>
    %19 = arith.maximumf %16, %18 : vector<16x256xf32>
    %c7 = arith.constant 7 : index
    %c0_14 = arith.constant 0 : index
    %c0_15 = arith.constant 0 : index
    %20 = vector.load %arg0[%c7, %c0_14, %c0_15] : memref<9x16x256xf32, #tpu.memory_space<vmem>>, vector<1x16x256xf32>
    %21 = vector.shape_cast %20 : vector<1x16x256xf32> to vector<16x256xf32>
    %22 = arith.maximumf %19, %21 : vector<16x256xf32>
    %c8 = arith.constant 8 : index
    %c0_16 = arith.constant 0 : index
    %c0_17 = arith.constant 0 : index
    %23 = vector.load %arg0[%c8, %c0_16, %c0_17] : memref<9x16x256xf32, #tpu.memory_space<vmem>>, vector<1x16x256xf32>
    %24 = vector.shape_cast %23 : vector<1x16x256xf32> to vector<16x256xf32>
    %25 = arith.maximumf %22, %24 : vector<16x256xf32>
    %c0_18 = arith.constant 0 : index
    %c0_19 = arith.constant 0 : index
    %26 = vector.load %arg1[%c0_18, %c0_19] : memref<16x256xf32, #tpu.memory_space<vmem>>, vector<16x256xf32>
    tpu.vector_store %arg1[%c0_18, %c0_19], %25 {strides = array<i32>} : memref<16x256xf32, #tpu.memory_space<vmem>>, vector<16x256xf32>,
    return
  }
}

module attributes {stable_mosaic.version = 11 : i64} {
  func.func @_matmul_bn_rowmask_kernel(%arg0: i32, %arg1: memref<20x8xf32, #tpu.memory_space<vmem>>, %arg2: memref<8x512xf32, #tpu.memory_space<vmem>>, %arg3: memref<20x1xf32, #tpu.memory_space<vmem>>, %arg4: memref<20x1xf32, #tpu.memory_space<vmem>>, %arg5: memref<20x1xf32, #tpu.memory_space<vmem>>, %arg6: memref<20x512xf32, #tpu.memory_space<vmem>>) attributes {dimension_semantics = [#tpu.dimension_semantics<parallel>], iteration_bounds = array<i64: 1>, scalar_prefetch = 0 : i64, scratch_operands = 0 : i64, tpu.core_type = #tpu.core_type<tc>, window_params = [{pipeline_mode = #tpu.pipeline_mode<synchronous>, transform_indices = @transform_0, window_bounds = array<i64: 20, 8>}, {transform_indices = @transform_1, window_bounds = array<i64: 8, 512>}, {pipeline_mode = #tpu.pipeline_mode<synchronous>, transform_indices = @transform_2, window_bounds = array<i64: 20, 1>}, {pipeline_mode = #tpu.pipeline_mode<synchronous>, transform_indices = @transform_3, window_bounds = array<i64: 20, 1>}, {pipeline_mode = #tpu.pipeline_mode<synchronous>, transform_indices = @transform_4, window_bounds = array<i64: 20, 1>}, {transform_indices = @transform_5, window_bounds = array<i64: 20, 512>}]} {
    %c0 = arith.constant 0 : index
    %c0_0 = arith.constant 0 : index
    %0 = vector.load %arg1[%c0, %c0_0] : memref<20x8xf32, #tpu.memory_space<vmem>>, vector<20x8xf32>
    %c0_1 = arith.constant 0 : index
    %c0_2 = arith.constant 0 : index
    %1 = vector.load %arg2[%c0_1, %c0_2] : memref<8x512xf32, #tpu.memory_space<vmem>>, vector<8x512xf32>
    %cst = arith.constant dense<0.000000e+00> : vector<20x512xf32>
    %2 = tpu.matmul %0, %1, %cst {dimension_numbers = #tpu.dot_dimension_numbers<[1], [0], [0], [1], [0, 0, 1, 1], [], []>} : vector<20x8xf32>, vector<8x512xf32>, vector<20x512xf32> -> vector<20x512xf32>
    %c0_3 = arith.constant 0 : index
    %c0_4 = arith.constant 0 : index
    %3 = vector.load %arg3[%c0_3, %c0_4] : memref<20x1xf32, #tpu.memory_space<vmem>>, vector<20x1xf32>
    %4 = vector.broadcast %3 : vector<20x1xf32> to vector<20x512xf32>
    %5 = arith.mulf %2, %4 : vector<20x512xf32>
    %c0_5 = arith.constant 0 : index
    %c0_6 = arith.constant 0 : index
    %6 = vector.load %arg4[%c0_5, %c0_6] : memref<20x1xf32, #tpu.memory_space<vmem>>, vector<20x1xf32>
    %7 = vector.broadcast %6 : vector<20x1xf32> to vector<20x512xf32>
    %8 = arith.addf %5, %7 : vector<20x512xf32>
    %c0_7 = arith.constant 0 : index
    %c0_8 = arith.constant 0 : index
    %9 = vector.load %arg5[%c0_7, %c0_8] : memref<20x1xf32, #tpu.memory_space<vmem>>, vector<20x1xf32>
    %cst_9 = arith.constant 5.000000e-01 : f32
    %10 = vector.broadcast %cst_9 : f32 to vector<20x1xf32>
    %11 = arith.cmpf ogt, %9, %10 : vector<20x1xf32>
    %cst_10 = arith.constant 0.000000e+00 : f32
    %12 = vector.broadcast %cst_10 : f32 to vector<20x512xf32>
    %13 = arith.maximumf %8, %12 : vector<20x512xf32>
    %14 = vector.shape_cast %11 : vector<20x1xi1> to vector<20x1xi1>
    %15 = vector.broadcast %14 : vector<20x1xi1> to vector<20x512xi1>
    %16 = arith.select %15, %13, %8 : vector<20x512xi1>, vector<20x512xf32>
    %c0_11 = arith.constant 0 : index
    %c0_12 = arith.constant 0 : index
    %17 = vector.load %arg6[%c0_11, %c0_12] : memref<20x512xf32, #tpu.memory_space<vmem>>, vector<20x512xf32>
    tpu.vector_store %arg6[%c0_11, %c0_12], %16 {strides = array<i32>} : memref<20x512xf32, #tpu.memory_space<vmem>>, vector<20x512xf32>,
    return
  }
  func.func @transform_0(%arg0: i32) -> (i32, i32) {
    %c0_i32 = arith.constant 0 : i32
    %c0_i32_0 = arith.constant 0 : i32
    %c0_i32_1 = arith.constant 0 : i32
    return %c0_i32, %c0_i32_0 : i32, i32
  }
  func.func @transform_1(%arg0: i32) -> (i32, i32) {
    %c0_i32 = arith.constant 0 : i32
    %c0_i32_0 = arith.constant 0 : i32
    return %c0_i32, %arg0 : i32, i32
  }
  func.func @transform_2(%arg0: i32) -> (i32, i32) {
    %c0_i32 = arith.constant 0 : i32
    %c0_i32_0 = arith.constant 0 : i32
    %c0_i32_1 = arith.constant 0 : i32
    return %c0_i32, %c0_i32_0 : i32, i32
  }
  func.func @transform_3(%arg0: i32) -> (i32, i32) {
    %c0_i32 = arith.constant 0 : i32
    %c0_i32_0 = arith.constant 0 : i32
    %c0_i32_1 = arith.constant 0 : i32
    return %c0_i32, %c0_i32_0 : i32, i32
  }
  func.func @transform_4(%arg0: i32) -> (i32, i32) {
    %c0_i32 = arith.constant 0 : i32
    %c0_i32_0 = arith.constant 0 : i32
    %c0_i32_1 = arith.constant 0 : i32
    return %c0_i32, %c0_i32_0 : i32, i32
  }
  func.func @transform_5(%arg0: i32) -> (i32, i32) {
    %c0_i32 = arith.constant 0 : i32
    %c0_i32_0 = arith.constant 0 : i32
    return %c0_i32, %arg0 : i32, i32
  }
}

module attributes {stable_mosaic.version = 11 : i64} {
  func.func @_matmul_bn_kernel(%arg0: i32, %arg1: memref<4x36xf32, #tpu.memory_space<vmem>>, %arg2: memref<36x512xf32, #tpu.memory_space<vmem>>, %arg3: memref<4x1xf32, #tpu.memory_space<vmem>>, %arg4: memref<4x1xf32, #tpu.memory_space<vmem>>, %arg5: memref<4x512xf32, #tpu.memory_space<vmem>>) attributes {dimension_semantics = [#tpu.dimension_semantics<parallel>], iteration_bounds = array<i64: 1>, scalar_prefetch = 0 : i64, scratch_operands = 0 : i64, tpu.core_type = #tpu.core_type<tc>, window_params = [{pipeline_mode = #tpu.pipeline_mode<synchronous>, transform_indices = @transform_0, window_bounds = array<i64: 4, 36>}, {transform_indices = @transform_1, window_bounds = array<i64: 36, 512>}, {pipeline_mode = #tpu.pipeline_mode<synchronous>, transform_indices = @transform_2, window_bounds = array<i64: 4, 1>}, {pipeline_mode = #tpu.pipeline_mode<synchronous>, transform_indices = @transform_3, window_bounds = array<i64: 4, 1>}, {transform_indices = @transform_4, window_bounds = array<i64: 4, 512>}]} {
    %c0 = arith.constant 0 : index
    %c0_0 = arith.constant 0 : index
    %0 = vector.load %arg1[%c0, %c0_0] : memref<4x36xf32, #tpu.memory_space<vmem>>, vector<4x36xf32>
    %c0_1 = arith.constant 0 : index
    %c0_2 = arith.constant 0 : index
    %1 = vector.load %arg2[%c0_1, %c0_2] : memref<36x512xf32, #tpu.memory_space<vmem>>, vector<36x512xf32>
    %cst = arith.constant dense<0.000000e+00> : vector<4x512xf32>
    %2 = tpu.matmul %0, %1, %cst {dimension_numbers = #tpu.dot_dimension_numbers<[1], [0], [0], [1], [0, 0, 1, 1], [], []>} : vector<4x36xf32>, vector<36x512xf32>, vector<4x512xf32> -> vector<4x512xf32>
    %c0_3 = arith.constant 0 : index
    %c0_4 = arith.constant 0 : index
    %3 = vector.load %arg3[%c0_3, %c0_4] : memref<4x1xf32, #tpu.memory_space<vmem>>, vector<4x1xf32>
    %4 = vector.broadcast %3 : vector<4x1xf32> to vector<4x512xf32>
    %5 = arith.mulf %2, %4 : vector<4x512xf32>
    %c0_5 = arith.constant 0 : index
    %c0_6 = arith.constant 0 : index
    %6 = vector.load %arg4[%c0_5, %c0_6] : memref<4x1xf32, #tpu.memory_space<vmem>>, vector<4x1xf32>
    %7 = vector.broadcast %6 : vector<4x1xf32> to vector<4x512xf32>
    %8 = arith.addf %5, %7 : vector<4x512xf32>
    %cst_7 = arith.constant 0.000000e+00 : f32
    %9 = vector.broadcast %cst_7 : f32 to vector<4x512xf32>
    %10 = arith.maximumf %8, %9 : vector<4x512xf32>
    %c0_8 = arith.constant 0 : index
    %c0_9 = arith.constant 0 : index
    %11 = vector.load %arg5[%c0_8, %c0_9] : memref<4x512xf32, #tpu.memory_space<vmem>>, vector<4x512xf32>
    tpu.vector_store %arg5[%c0_8, %c0_9], %10 {strides = array<i32>} : memref<4x512xf32, #tpu.memory_space<vmem>>, vector<4x512xf32>,
    return
  }
  func.func @transform_0(%arg0: i32) -> (i32, i32) {
    %c0_i32 = arith.constant 0 : i32
    %c0_i32_0 = arith.constant 0 : i32
    %c0_i32_1 = arith.constant 0 : i32
    return %c0_i32, %c0_i32_0 : i32, i32
  }
  func.func @transform_1(%arg0: i32) -> (i32, i32) {
    %c0_i32 = arith.constant 0 : i32
    %c0_i32_0 = arith.constant 0 : i32
    return %c0_i32, %arg0 : i32, i32
  }
  func.func @transform_2(%arg0: i32) -> (i32, i32) {
    %c0_i32 = arith.constant 0 : i32
    %c0_i32_0 = arith.constant 0 : i32
    %c0_i32_1 = arith.constant 0 : i32
    return %c0_i32, %c0_i32_0 : i32, i32
  }
  func.func @transform_3(%arg0: i32) -> (i32, i32) {
    %c0_i32 = arith.constant 0 : i32
    %c0_i32_0 = arith.constant 0 : i32
    %c0_i32_1 = arith.constant 0 : i32
    return %c0_i32, %c0_i32_0 : i32, i32
  }
  func.func @transform_4(%arg0: i32) -> (i32, i32) {
    %c0_i32 = arith.constant 0 : i32
    %c0_i32_0 = arith.constant 0 : i32
    return %c0_i32, %arg0 : i32, i32
  }
}

module attributes {stable_mosaic.version = 11 : i64} {
  func.func @_matmul_bn_add_relu_kernel(%arg0: i32, %arg1: memref<16x4xf32, #tpu.memory_space<vmem>>, %arg2: memref<4x512xf32, #tpu.memory_space<vmem>>, %arg3: memref<16x1xf32, #tpu.memory_space<vmem>>, %arg4: memref<16x1xf32, #tpu.memory_space<vmem>>, %arg5: memref<16x512xf32, #tpu.memory_space<vmem>>, %arg6: memref<16x512xf32, #tpu.memory_space<vmem>>) attributes {dimension_semantics = [#tpu.dimension_semantics<parallel>], iteration_bounds = array<i64: 1>, scalar_prefetch = 0 : i64, scratch_operands = 0 : i64, tpu.core_type = #tpu.core_type<tc>, window_params = [{pipeline_mode = #tpu.pipeline_mode<synchronous>, transform_indices = @transform_0, window_bounds = array<i64: 16, 4>}, {transform_indices = @transform_1, window_bounds = array<i64: 4, 512>}, {pipeline_mode = #tpu.pipeline_mode<synchronous>, transform_indices = @transform_2, window_bounds = array<i64: 16, 1>}, {pipeline_mode = #tpu.pipeline_mode<synchronous>, transform_indices = @transform_3, window_bounds = array<i64: 16, 1>}, {transform_indices = @transform_4, window_bounds = array<i64: 16, 512>}, {transform_indices = @transform_5, window_bounds = array<i64: 16, 512>}]} {
    %c0 = arith.constant 0 : index
    %c0_0 = arith.constant 0 : index
    %0 = vector.load %arg1[%c0, %c0_0] : memref<16x4xf32, #tpu.memory_space<vmem>>, vector<16x4xf32>
    %c0_1 = arith.constant 0 : index
    %c0_2 = arith.constant 0 : index
    %1 = vector.load %arg2[%c0_1, %c0_2] : memref<4x512xf32, #tpu.memory_space<vmem>>, vector<4x512xf32>
    %cst = arith.constant dense<0.000000e+00> : vector<16x512xf32>
    %2 = tpu.matmul %0, %1, %cst {dimension_numbers = #tpu.dot_dimension_numbers<[1], [0], [0], [1], [0, 0, 1, 1], [], []>} : vector<16x4xf32>, vector<4x512xf32>, vector<16x512xf32> -> vector<16x512xf32>
    %c0_3 = arith.constant 0 : index
    %c0_4 = arith.constant 0 : index
    %3 = vector.load %arg3[%c0_3, %c0_4] : memref<16x1xf32, #tpu.memory_space<vmem>>, vector<16x1xf32>
    %4 = vector.broadcast %3 : vector<16x1xf32> to vector<16x512xf32>
    %5 = arith.mulf %2, %4 : vector<16x512xf32>
    %c0_5 = arith.constant 0 : index
    %c0_6 = arith.constant 0 : index
    %6 = vector.load %arg4[%c0_5, %c0_6] : memref<16x1xf32, #tpu.memory_space<vmem>>, vector<16x1xf32>
    %7 = vector.broadcast %6 : vector<16x1xf32> to vector<16x512xf32>
    %8 = arith.addf %5, %7 : vector<16x512xf32>
    %c0_7 = arith.constant 0 : index
    %c0_8 = arith.constant 0 : index
    %9 = vector.load %arg5[%c0_7, %c0_8] : memref<16x512xf32, #tpu.memory_space<vmem>>, vector<16x512xf32>
    %10 = arith.addf %8, %9 : vector<16x512xf32>
    %cst_9 = arith.constant 0.000000e+00 : f32
    %11 = vector.broadcast %cst_9 : f32 to vector<16x512xf32>
    %12 = arith.maximumf %10, %11 : vector<16x512xf32>
    %c0_10 = arith.constant 0 : index
    %c0_11 = arith.constant 0 : index
    %13 = vector.load %arg6[%c0_10, %c0_11] : memref<16x512xf32, #tpu.memory_space<vmem>>, vector<16x512xf32>
    tpu.vector_store %arg6[%c0_10, %c0_11], %12 {strides = array<i32>} : memref<16x512xf32, #tpu.memory_space<vmem>>, vector<16x512xf32>,
    return
  }
  func.func @transform_0(%arg0: i32) -> (i32, i32) {
    %c0_i32 = arith.constant 0 : i32
    %c0_i32_0 = arith.constant 0 : i32
    %c0_i32_1 = arith.constant 0 : i32
    return %c0_i32, %c0_i32_0 : i32, i32
  }
  func.func @transform_1(%arg0: i32) -> (i32, i32) {
    %c0_i32 = arith.constant 0 : i32
    %c0_i32_0 = arith.constant 0 : i32
    return %c0_i32, %arg0 : i32, i32
  }
  func.func @transform_2(%arg0: i32) -> (i32, i32) {
    %c0_i32 = arith.constant 0 : i32
    %c0_i32_0 = arith.constant 0 : i32
    %c0_i32_1 = arith.constant 0 : i32
    return %c0_i32, %c0_i32_0 : i32, i32
  }
  func.func @transform_3(%arg0: i32) -> (i32, i32) {
    %c0_i32 = arith.constant 0 : i32
    %c0_i32_0 = arith.constant 0 : i32
    %c0_i32_1 = arith.constant 0 : i32
    return %c0_i32, %c0_i32_0 : i32, i32
  }
  func.func @transform_4(%arg0: i32) -> (i32, i32) {
    %c0_i32 = arith.constant 0 : i32
    %c0_i32_0 = arith.constant 0 : i32
    return %c0_i32, %arg0 : i32, i32
  }
  func.func @transform_5(%arg0: i32) -> (i32, i32) {
    %c0_i32 = arith.constant 0 : i32
    %c0_i32_0 = arith.constant 0 : i32
    return %c0_i32, %arg0 : i32, i32
  }
}

module attributes {stable_mosaic.version = 11 : i64} {
  func.func @_matmul_bn_kernel(%arg0: i32, %arg1: memref<8x16xf32, #tpu.memory_space<vmem>>, %arg2: memref<16x512xf32, #tpu.memory_space<vmem>>, %arg3: memref<8x1xf32, #tpu.memory_space<vmem>>, %arg4: memref<8x1xf32, #tpu.memory_space<vmem>>, %arg5: memref<8x512xf32, #tpu.memory_space<vmem>>) attributes {dimension_semantics = [#tpu.dimension_semantics<parallel>], iteration_bounds = array<i64: 1>, scalar_prefetch = 0 : i64, scratch_operands = 0 : i64, tpu.core_type = #tpu.core_type<tc>, window_params = [{pipeline_mode = #tpu.pipeline_mode<synchronous>, transform_indices = @transform_0, window_bounds = array<i64: 8, 16>}, {transform_indices = @transform_1, window_bounds = array<i64: 16, 512>}, {pipeline_mode = #tpu.pipeline_mode<synchronous>, transform_indices = @transform_2, window_bounds = array<i64: 8, 1>}, {pipeline_mode = #tpu.pipeline_mode<synchronous>, transform_indices = @transform_3, window_bounds = array<i64: 8, 1>}, {transform_indices = @transform_4, window_bounds = array<i64: 8, 512>}]} {
    %c0 = arith.constant 0 : index
    %c0_0 = arith.constant 0 : index
    %0 = vector.load %arg1[%c0, %c0_0] : memref<8x16xf32, #tpu.memory_space<vmem>>, vector<8x16xf32>
    %c0_1 = arith.constant 0 : index
    %c0_2 = arith.constant 0 : index
    %1 = vector.load %arg2[%c0_1, %c0_2] : memref<16x512xf32, #tpu.memory_space<vmem>>, vector<16x512xf32>
    %cst = arith.constant dense<0.000000e+00> : vector<8x512xf32>
    %2 = tpu.matmul %0, %1, %cst {dimension_numbers = #tpu.dot_dimension_numbers<[1], [0], [0], [1], [0, 0, 1, 1], [], []>} : vector<8x16xf32>, vector<16x512xf32>, vector<8x512xf32> -> vector<8x512xf32>
    %c0_3 = arith.constant 0 : index
    %c0_4 = arith.constant 0 : index
    %3 = vector.load %arg3[%c0_3, %c0_4] : memref<8x1xf32, #tpu.memory_space<vmem>>, vector<8x1xf32>
    %4 = vector.broadcast %3 : vector<8x1xf32> to vector<8x512xf32>
    %5 = arith.mulf %2, %4 : vector<8x512xf32>
    %c0_5 = arith.constant 0 : index
    %c0_6 = arith.constant 0 : index
    %6 = vector.load %arg4[%c0_5, %c0_6] : memref<8x1xf32, #tpu.memory_space<vmem>>, vector<8x1xf32>
    %7 = vector.broadcast %6 : vector<8x1xf32> to vector<8x512xf32>
    %8 = arith.addf %5, %7 : vector<8x512xf32>
    %cst_7 = arith.constant 0.000000e+00 : f32
    %9 = vector.broadcast %cst_7 : f32 to vector<8x512xf32>
    %10 = arith.maximumf %8, %9 : vector<8x512xf32>
    %c0_8 = arith.constant 0 : index
    %c0_9 = arith.constant 0 : index
    %11 = vector.load %arg5[%c0_8, %c0_9] : memref<8x512xf32, #tpu.memory_space<vmem>>, vector<8x512xf32>
    tpu.vector_store %arg5[%c0_8, %c0_9], %10 {strides = array<i32>} : memref<8x512xf32, #tpu.memory_space<vmem>>, vector<8x512xf32>,
    return
  }
  func.func @transform_0(%arg0: i32) -> (i32, i32) {
    %c0_i32 = arith.constant 0 : i32
    %c0_i32_0 = arith.constant 0 : i32
    %c0_i32_1 = arith.constant 0 : i32
    return %c0_i32, %c0_i32_0 : i32, i32
  }
  func.func @transform_1(%arg0: i32) -> (i32, i32) {
    %c0_i32 = arith.constant 0 : i32
    %c0_i32_0 = arith.constant 0 : i32
    return %c0_i32, %arg0 : i32, i32
  }
  func.func @transform_2(%arg0: i32) -> (i32, i32) {
    %c0_i32 = arith.constant 0 : i32
    %c0_i32_0 = arith.constant 0 : i32
    %c0_i32_1 = arith.constant 0 : i32
    return %c0_i32, %c0_i32_0 : i32, i32
  }
  func.func @transform_3(%arg0: i32) -> (i32, i32) {
    %c0_i32 = arith.constant 0 : i32
    %c0_i32_0 = arith.constant 0 : i32
    %c0_i32_1 = arith.constant 0 : i32
    return %c0_i32, %c0_i32_0 : i32, i32
  }
  func.func @transform_4(%arg0: i32) -> (i32, i32) {
    %c0_i32 = arith.constant 0 : i32
    %c0_i32_0 = arith.constant 0 : i32
    return %c0_i32, %arg0 : i32, i32
  }
}

module attributes {stable_mosaic.version = 11 : i64} {
  func.func @_matmul_bn_kernel(%arg0: i32, %arg1: memref<32x16xf32, #tpu.memory_space<vmem>>, %arg2: memref<16x128xf32, #tpu.memory_space<vmem>>, %arg3: memref<32x1xf32, #tpu.memory_space<vmem>>, %arg4: memref<32x1xf32, #tpu.memory_space<vmem>>, %arg5: memref<32x128xf32, #tpu.memory_space<vmem>>) attributes {dimension_semantics = [#tpu.dimension_semantics<parallel>], iteration_bounds = array<i64: 1>, scalar_prefetch = 0 : i64, scratch_operands = 0 : i64, tpu.core_type = #tpu.core_type<tc>, window_params = [{pipeline_mode = #tpu.pipeline_mode<synchronous>, transform_indices = @transform_0, window_bounds = array<i64: 32, 16>}, {transform_indices = @transform_1, window_bounds = array<i64: 16, 128>}, {pipeline_mode = #tpu.pipeline_mode<synchronous>, transform_indices = @transform_2, window_bounds = array<i64: 32, 1>}, {pipeline_mode = #tpu.pipeline_mode<synchronous>, transform_indices = @transform_3, window_bounds = array<i64: 32, 1>}, {transform_indices = @transform_4, window_bounds = array<i64: 32, 128>}]} {
    %c0 = arith.constant 0 : index
    %c0_0 = arith.constant 0 : index
    %0 = vector.load %arg1[%c0, %c0_0] : memref<32x16xf32, #tpu.memory_space<vmem>>, vector<32x16xf32>
    %c0_1 = arith.constant 0 : index
    %c0_2 = arith.constant 0 : index
    %1 = vector.load %arg2[%c0_1, %c0_2] : memref<16x128xf32, #tpu.memory_space<vmem>>, vector<16x128xf32>
    %cst = arith.constant dense<0.000000e+00> : vector<32x128xf32>
    %2 = tpu.matmul %0, %1, %cst {dimension_numbers = #tpu.dot_dimension_numbers<[1], [0], [0], [1], [0, 0, 1, 1], [], []>} : vector<32x16xf32>, vector<16x128xf32>, vector<32x128xf32> -> vector<32x128xf32>
    %c0_3 = arith.constant 0 : index
    %c0_4 = arith.constant 0 : index
    %3 = vector.load %arg3[%c0_3, %c0_4] : memref<32x1xf32, #tpu.memory_space<vmem>>, vector<32x1xf32>
    %4 = vector.broadcast %3 : vector<32x1xf32> to vector<32x128xf32>
    %5 = arith.mulf %2, %4 : vector<32x128xf32>
    %c0_5 = arith.constant 0 : index
    %c0_6 = arith.constant 0 : index
    %6 = vector.load %arg4[%c0_5, %c0_6] : memref<32x1xf32, #tpu.memory_space<vmem>>, vector<32x1xf32>
    %7 = vector.broadcast %6 : vector<32x1xf32> to vector<32x128xf32>
    %8 = arith.addf %5, %7 : vector<32x128xf32>
    %c0_7 = arith.constant 0 : index
    %c0_8 = arith.constant 0 : index
    %9 = vector.load %arg5[%c0_7, %c0_8] : memref<32x128xf32, #tpu.memory_space<vmem>>, vector<32x128xf32>
    tpu.vector_store %arg5[%c0_7, %c0_8], %8 {strides = array<i32>} : memref<32x128xf32, #tpu.memory_space<vmem>>, vector<32x128xf32>,
    return
  }
  func.func @transform_0(%arg0: i32) -> (i32, i32) {
    %c0_i32 = arith.constant 0 : i32
    %c0_i32_0 = arith.constant 0 : i32
    %c0_i32_1 = arith.constant 0 : i32
    return %c0_i32, %c0_i32_0 : i32, i32
  }
  func.func @transform_1(%arg0: i32) -> (i32, i32) {
    %c0_i32 = arith.constant 0 : i32
    %c0_i32_0 = arith.constant 0 : i32
    return %c0_i32, %arg0 : i32, i32
  }
  func.func @transform_2(%arg0: i32) -> (i32, i32) {
    %c0_i32 = arith.constant 0 : i32
    %c0_i32_0 = arith.constant 0 : i32
    %c0_i32_1 = arith.constant 0 : i32
    return %c0_i32, %c0_i32_0 : i32, i32
  }
  func.func @transform_3(%arg0: i32) -> (i32, i32) {
    %c0_i32 = arith.constant 0 : i32
    %c0_i32_0 = arith.constant 0 : i32
    %c0_i32_1 = arith.constant 0 : i32
    return %c0_i32, %c0_i32_0 : i32, i32
  }
  func.func @transform_4(%arg0: i32) -> (i32, i32) {
    %c0_i32 = arith.constant 0 : i32
    %c0_i32_0 = arith.constant 0 : i32
    return %c0_i32, %arg0 : i32, i32
  }
}

module attributes {stable_mosaic.version = 11 : i64} {
  func.func @_matmul_bn_kernel(%arg0: i32, %arg1: memref<8x72xf32, #tpu.memory_space<vmem>>, %arg2: memref<72x128xf32, #tpu.memory_space<vmem>>, %arg3: memref<8x1xf32, #tpu.memory_space<vmem>>, %arg4: memref<8x1xf32, #tpu.memory_space<vmem>>, %arg5: memref<8x128xf32, #tpu.memory_space<vmem>>) attributes {dimension_semantics = [#tpu.dimension_semantics<parallel>], iteration_bounds = array<i64: 1>, scalar_prefetch = 0 : i64, scratch_operands = 0 : i64, tpu.core_type = #tpu.core_type<tc>, window_params = [{pipeline_mode = #tpu.pipeline_mode<synchronous>, transform_indices = @transform_0, window_bounds = array<i64: 8, 72>}, {transform_indices = @transform_1, window_bounds = array<i64: 72, 128>}, {pipeline_mode = #tpu.pipeline_mode<synchronous>, transform_indices = @transform_2, window_bounds = array<i64: 8, 1>}, {pipeline_mode = #tpu.pipeline_mode<synchronous>, transform_indices = @transform_3, window_bounds = array<i64: 8, 1>}, {transform_indices = @transform_4, window_bounds = array<i64: 8, 128>}]} {
    %c0 = arith.constant 0 : index
    %c0_0 = arith.constant 0 : index
    %0 = vector.load %arg1[%c0, %c0_0] : memref<8x72xf32, #tpu.memory_space<vmem>>, vector<8x72xf32>
    %c0_1 = arith.constant 0 : index
    %c0_2 = arith.constant 0 : index
    %1 = vector.load %arg2[%c0_1, %c0_2] : memref<72x128xf32, #tpu.memory_space<vmem>>, vector<72x128xf32>
    %cst = arith.constant dense<0.000000e+00> : vector<8x128xf32>
    %2 = tpu.matmul %0, %1, %cst {dimension_numbers = #tpu.dot_dimension_numbers<[1], [0], [0], [1], [0, 0, 1, 1], [], []>} : vector<8x72xf32>, vector<72x128xf32>, vector<8x128xf32> -> vector<8x128xf32>
    %c0_3 = arith.constant 0 : index
    %c0_4 = arith.constant 0 : index
    %3 = vector.load %arg3[%c0_3, %c0_4] : memref<8x1xf32, #tpu.memory_space<vmem>>, vector<8x1xf32>
    %4 = vector.broadcast %3 : vector<8x1xf32> to vector<8x128xf32>
    %5 = arith.mulf %2, %4 : vector<8x128xf32>
    %c0_5 = arith.constant 0 : index
    %c0_6 = arith.constant 0 : index
    %6 = vector.load %arg4[%c0_5, %c0_6] : memref<8x1xf32, #tpu.memory_space<vmem>>, vector<8x1xf32>
    %7 = vector.broadcast %6 : vector<8x1xf32> to vector<8x128xf32>
    %8 = arith.addf %5, %7 : vector<8x128xf32>
    %cst_7 = arith.constant 0.000000e+00 : f32
    %9 = vector.broadcast %cst_7 : f32 to vector<8x128xf32>
    %10 = arith.maximumf %8, %9 : vector<8x128xf32>
    %c0_8 = arith.constant 0 : index
    %c0_9 = arith.constant 0 : index
    %11 = vector.load %arg5[%c0_8, %c0_9] : memref<8x128xf32, #tpu.memory_space<vmem>>, vector<8x128xf32>
    tpu.vector_store %arg5[%c0_8, %c0_9], %10 {strides = array<i32>} : memref<8x128xf32, #tpu.memory_space<vmem>>, vector<8x128xf32>,
    return
  }
  func.func @transform_0(%arg0: i32) -> (i32, i32) {
    %c0_i32 = arith.constant 0 : i32
    %c0_i32_0 = arith.constant 0 : i32
    %c0_i32_1 = arith.constant 0 : i32
    return %c0_i32, %c0_i32_0 : i32, i32
  }
  func.func @transform_1(%arg0: i32) -> (i32, i32) {
    %c0_i32 = arith.constant 0 : i32
    %c0_i32_0 = arith.constant 0 : i32
    return %c0_i32, %arg0 : i32, i32
  }
  func.func @transform_2(%arg0: i32) -> (i32, i32) {
    %c0_i32 = arith.constant 0 : i32
    %c0_i32_0 = arith.constant 0 : i32
    %c0_i32_1 = arith.constant 0 : i32
    return %c0_i32, %c0_i32_0 : i32, i32
  }
  func.func @transform_3(%arg0: i32) -> (i32, i32) {
    %c0_i32 = arith.constant 0 : i32
    %c0_i32_0 = arith.constant 0 : i32
    %c0_i32_1 = arith.constant 0 : i32
    return %c0_i32, %c0_i32_0 : i32, i32
  }
  func.func @transform_4(%arg0: i32) -> (i32, i32) {
    %c0_i32 = arith.constant 0 : i32
    %c0_i32_0 = arith.constant 0 : i32
    return %c0_i32, %arg0 : i32, i32
  }
}

module attributes {stable_mosaic.version = 11 : i64} {
  func.func @_matmul_bn_add_relu_kernel(%arg0: i32, %arg1: memref<32x8xf32, #tpu.memory_space<vmem>>, %arg2: memref<8x128xf32, #tpu.memory_space<vmem>>, %arg3: memref<32x1xf32, #tpu.memory_space<vmem>>, %arg4: memref<32x1xf32, #tpu.memory_space<vmem>>, %arg5: memref<32x128xf32, #tpu.memory_space<vmem>>, %arg6: memref<32x128xf32, #tpu.memory_space<vmem>>) attributes {dimension_semantics = [#tpu.dimension_semantics<parallel>], iteration_bounds = array<i64: 1>, scalar_prefetch = 0 : i64, scratch_operands = 0 : i64, tpu.core_type = #tpu.core_type<tc>, window_params = [{pipeline_mode = #tpu.pipeline_mode<synchronous>, transform_indices = @transform_0, window_bounds = array<i64: 32, 8>}, {transform_indices = @transform_1, window_bounds = array<i64: 8, 128>}, {pipeline_mode = #tpu.pipeline_mode<synchronous>, transform_indices = @transform_2, window_bounds = array<i64: 32, 1>}, {pipeline_mode = #tpu.pipeline_mode<synchronous>, transform_indices = @transform_3, window_bounds = array<i64: 32, 1>}, {transform_indices = @transform_4, window_bounds = array<i64: 32, 128>}, {transform_indices = @transform_5, window_bounds = array<i64: 32, 128>}]} {
    %c0 = arith.constant 0 : index
    %c0_0 = arith.constant 0 : index
    %0 = vector.load %arg1[%c0, %c0_0] : memref<32x8xf32, #tpu.memory_space<vmem>>, vector<32x8xf32>
    %c0_1 = arith.constant 0 : index
    %c0_2 = arith.constant 0 : index
    %1 = vector.load %arg2[%c0_1, %c0_2] : memref<8x128xf32, #tpu.memory_space<vmem>>, vector<8x128xf32>
    %cst = arith.constant dense<0.000000e+00> : vector<32x128xf32>
    %2 = tpu.matmul %0, %1, %cst {dimension_numbers = #tpu.dot_dimension_numbers<[1], [0], [0], [1], [0, 0, 1, 1], [], []>} : vector<32x8xf32>, vector<8x128xf32>, vector<32x128xf32> -> vector<32x128xf32>
    %c0_3 = arith.constant 0 : index
    %c0_4 = arith.constant 0 : index
    %3 = vector.load %arg3[%c0_3, %c0_4] : memref<32x1xf32, #tpu.memory_space<vmem>>, vector<32x1xf32>
    %4 = vector.broadcast %3 : vector<32x1xf32> to vector<32x128xf32>
    %5 = arith.mulf %2, %4 : vector<32x128xf32>
    %c0_5 = arith.constant 0 : index
    %c0_6 = arith.constant 0 : index
    %6 = vector.load %arg4[%c0_5, %c0_6] : memref<32x1xf32, #tpu.memory_space<vmem>>, vector<32x1xf32>
    %7 = vector.broadcast %6 : vector<32x1xf32> to vector<32x128xf32>
    %8 = arith.addf %5, %7 : vector<32x128xf32>
    %c0_7 = arith.constant 0 : index
    %c0_8 = arith.constant 0 : index
    %9 = vector.load %arg5[%c0_7, %c0_8] : memref<32x128xf32, #tpu.memory_space<vmem>>, vector<32x128xf32>
    %10 = arith.addf %8, %9 : vector<32x128xf32>
    %cst_9 = arith.constant 0.000000e+00 : f32
    %11 = vector.broadcast %cst_9 : f32 to vector<32x128xf32>
    %12 = arith.maximumf %10, %11 : vector<32x128xf32>
    %c0_10 = arith.constant 0 : index
    %c0_11 = arith.constant 0 : index
    %13 = vector.load %arg6[%c0_10, %c0_11] : memref<32x128xf32, #tpu.memory_space<vmem>>, vector<32x128xf32>
    tpu.vector_store %arg6[%c0_10, %c0_11], %12 {strides = array<i32>} : memref<32x128xf32, #tpu.memory_space<vmem>>, vector<32x128xf32>,
    return
  }
  func.func @transform_0(%arg0: i32) -> (i32, i32) {
    %c0_i32 = arith.constant 0 : i32
    %c0_i32_0 = arith.constant 0 : i32
    %c0_i32_1 = arith.constant 0 : i32
    return %c0_i32, %c0_i32_0 : i32, i32
  }
  func.func @transform_1(%arg0: i32) -> (i32, i32) {
    %c0_i32 = arith.constant 0 : i32
    %c0_i32_0 = arith.constant 0 : i32
    return %c0_i32, %arg0 : i32, i32
  }
  func.func @transform_2(%arg0: i32) -> (i32, i32) {
    %c0_i32 = arith.constant 0 : i32
    %c0_i32_0 = arith.constant 0 : i32
    %c0_i32_1 = arith.constant 0 : i32
    return %c0_i32, %c0_i32_0 : i32, i32
  }
  func.func @transform_3(%arg0: i32) -> (i32, i32) {
    %c0_i32 = arith.constant 0 : i32
    %c0_i32_0 = arith.constant 0 : i32
    %c0_i32_1 = arith.constant 0 : i32
    return %c0_i32, %c0_i32_0 : i32, i32
  }
  func.func @transform_4(%arg0: i32) -> (i32, i32) {
    %c0_i32 = arith.constant 0 : i32
    %c0_i32_0 = arith.constant 0 : i32
    return %c0_i32, %arg0 : i32, i32
  }
  func.func @transform_5(%arg0: i32) -> (i32, i32) {
    %c0_i32 = arith.constant 0 : i32
    %c0_i32_0 = arith.constant 0 : i32
    return %c0_i32, %arg0 : i32, i32
  }
}

module attributes {stable_mosaic.version = 11 : i64} {
  func.func @_matmul_bn_kernel(%arg0: i32, %arg1: memref<16x32xf32, #tpu.memory_space<vmem>>, %arg2: memref<32x128xf32, #tpu.memory_space<vmem>>, %arg3: memref<16x1xf32, #tpu.memory_space<vmem>>, %arg4: memref<16x1xf32, #tpu.memory_space<vmem>>, %arg5: memref<16x128xf32, #tpu.memory_space<vmem>>) attributes {dimension_semantics = [#tpu.dimension_semantics<parallel>], iteration_bounds = array<i64: 1>, scalar_prefetch = 0 : i64, scratch_operands = 0 : i64, tpu.core_type = #tpu.core_type<tc>, window_params = [{pipeline_mode = #tpu.pipeline_mode<synchronous>, transform_indices = @transform_0, window_bounds = array<i64: 16, 32>}, {transform_indices = @transform_1, window_bounds = array<i64: 32, 128>}, {pipeline_mode = #tpu.pipeline_mode<synchronous>, transform_indices = @transform_2, window_bounds = array<i64: 16, 1>}, {pipeline_mode = #tpu.pipeline_mode<synchronous>, transform_indices = @transform_3, window_bounds = array<i64: 16, 1>}, {transform_indices = @transform_4, window_bounds = array<i64: 16, 128>}]} {
    %c0 = arith.constant 0 : index
    %c0_0 = arith.constant 0 : index
    %0 = vector.load %arg1[%c0, %c0_0] : memref<16x32xf32, #tpu.memory_space<vmem>>, vector<16x32xf32>
    %c0_1 = arith.constant 0 : index
    %c0_2 = arith.constant 0 : index
    %1 = vector.load %arg2[%c0_1, %c0_2] : memref<32x128xf32, #tpu.memory_space<vmem>>, vector<32x128xf32>
    %cst = arith.constant dense<0.000000e+00> : vector<16x128xf32>
    %2 = tpu.matmul %0, %1, %cst {dimension_numbers = #tpu.dot_dimension_numbers<[1], [0], [0], [1], [0, 0, 1, 1], [], []>} : vector<16x32xf32>, vector<32x128xf32>, vector<16x128xf32> -> vector<16x128xf32>
    %c0_3 = arith.constant 0 : index
    %c0_4 = arith.constant 0 : index
    %3 = vector.load %arg3[%c0_3, %c0_4] : memref<16x1xf32, #tpu.memory_space<vmem>>, vector<16x1xf32>
    %4 = vector.broadcast %3 : vector<16x1xf32> to vector<16x128xf32>
    %5 = arith.mulf %2, %4 : vector<16x128xf32>
    %c0_5 = arith.constant 0 : index
    %c0_6 = arith.constant 0 : index
    %6 = vector.load %arg4[%c0_5, %c0_6] : memref<16x1xf32, #tpu.memory_space<vmem>>, vector<16x1xf32>
    %7 = vector.broadcast %6 : vector<16x1xf32> to vector<16x128xf32>
    %8 = arith.addf %5, %7 : vector<16x128xf32>
    %cst_7 = arith.constant 0.000000e+00 : f32
    %9 = vector.broadcast %cst_7 : f32 to vector<16x128xf32>
    %10 = arith.maximumf %8, %9 : vector<16x128xf32>
    %c0_8 = arith.constant 0 : index
    %c0_9 = arith.constant 0 : index
    %11 = vector.load %arg5[%c0_8, %c0_9] : memref<16x128xf32, #tpu.memory_space<vmem>>, vector<16x128xf32>
    tpu.vector_store %arg5[%c0_8, %c0_9], %10 {strides = array<i32>} : memref<16x128xf32, #tpu.memory_space<vmem>>, vector<16x128xf32>,
    return
  }
  func.func @transform_0(%arg0: i32) -> (i32, i32) {
    %c0_i32 = arith.constant 0 : i32
    %c0_i32_0 = arith.constant 0 : i32
    %c0_i32_1 = arith.constant 0 : i32
    return %c0_i32, %c0_i32_0 : i32, i32
  }
  func.func @transform_1(%arg0: i32) -> (i32, i32) {
    %c0_i32 = arith.constant 0 : i32
    %c0_i32_0 = arith.constant 0 : i32
    return %c0_i32, %arg0 : i32, i32
  }
  func.func @transform_2(%arg0: i32) -> (i32, i32) {
    %c0_i32 = arith.constant 0 : i32
    %c0_i32_0 = arith.constant 0 : i32
    %c0_i32_1 = arith.constant 0 : i32
    return %c0_i32, %c0_i32_0 : i32, i32
  }
  func.func @transform_3(%arg0: i32) -> (i32, i32) {
    %c0_i32 = arith.constant 0 : i32
    %c0_i32_0 = arith.constant 0 : i32
    %c0_i32_1 = arith.constant 0 : i32
    return %c0_i32, %c0_i32_0 : i32, i32
  }
  func.func @transform_4(%arg0: i32) -> (i32, i32) {
    %c0_i32 = arith.constant 0 : i32
    %c0_i32_0 = arith.constant 0 : i32
    return %c0_i32, %arg0 : i32, i32
  }
}

module attributes {stable_mosaic.version = 11 : i64} {
  func.func @_matmul_bn_kernel(%arg0: i32, %arg1: memref<64x32xf32, #tpu.memory_space<vmem>>, %arg2: memref<32x32xf32, #tpu.memory_space<vmem>>, %arg3: memref<64x1xf32, #tpu.memory_space<vmem>>, %arg4: memref<64x1xf32, #tpu.memory_space<vmem>>, %arg5: memref<64x32xf32, #tpu.memory_space<vmem>>) attributes {dimension_semantics = [#tpu.dimension_semantics<parallel>], iteration_bounds = array<i64: 1>, scalar_prefetch = 0 : i64, scratch_operands = 0 : i64, tpu.core_type = #tpu.core_type<tc>, window_params = [{pipeline_mode = #tpu.pipeline_mode<synchronous>, transform_indices = @transform_0, window_bounds = array<i64: 64, 32>}, {transform_indices = @transform_1, window_bounds = array<i64: 32, 32>}, {pipeline_mode = #tpu.pipeline_mode<synchronous>, transform_indices = @transform_2, window_bounds = array<i64: 64, 1>}, {pipeline_mode = #tpu.pipeline_mode<synchronous>, transform_indices = @transform_3, window_bounds = array<i64: 64, 1>}, {transform_indices = @transform_4, window_bounds = array<i64: 64, 32>}]} {
    %c0 = arith.constant 0 : index
    %c0_0 = arith.constant 0 : index
    %0 = vector.load %arg1[%c0, %c0_0] : memref<64x32xf32, #tpu.memory_space<vmem>>, vector<64x32xf32>
    %c0_1 = arith.constant 0 : index
    %c0_2 = arith.constant 0 : index
    %1 = vector.load %arg2[%c0_1, %c0_2] : memref<32x32xf32, #tpu.memory_space<vmem>>, vector<32x32xf32>
    %cst = arith.constant dense<0.000000e+00> : vector<64x32xf32>
    %2 = tpu.matmul %0, %1, %cst {dimension_numbers = #tpu.dot_dimension_numbers<[1], [0], [0], [1], [0, 0, 1, 1], [], []>} : vector<64x32xf32>, vector<32x32xf32>, vector<64x32xf32> -> vector<64x32xf32>
    %c0_3 = arith.constant 0 : index
    %c0_4 = arith.constant 0 : index
    %3 = vector.load %arg3[%c0_3, %c0_4] : memref<64x1xf32, #tpu.memory_space<vmem>>, vector<64x1xf32>
    %4 = vector.broadcast %3 : vector<64x1xf32> to vector<64x32xf32>
    %5 = arith.mulf %2, %4 : vector<64x32xf32>
    %c0_5 = arith.constant 0 : index
    %c0_6 = arith.constant 0 : index
    %6 = vector.load %arg4[%c0_5, %c0_6] : memref<64x1xf32, #tpu.memory_space<vmem>>, vector<64x1xf32>
    %7 = vector.broadcast %6 : vector<64x1xf32> to vector<64x32xf32>
    %8 = arith.addf %5, %7 : vector<64x32xf32>
    %c0_7 = arith.constant 0 : index
    %c0_8 = arith.constant 0 : index
    %9 = vector.load %arg5[%c0_7, %c0_8] : memref<64x32xf32, #tpu.memory_space<vmem>>, vector<64x32xf32>
    tpu.vector_store %arg5[%c0_7, %c0_8], %8 {strides = array<i32>} : memref<64x32xf32, #tpu.memory_space<vmem>>, vector<64x32xf32>,
    return
  }
  func.func @transform_0(%arg0: i32) -> (i32, i32) {
    %c0_i32 = arith.constant 0 : i32
    %c0_i32_0 = arith.constant 0 : i32
    %c0_i32_1 = arith.constant 0 : i32
    return %c0_i32, %c0_i32_0 : i32, i32
  }
  func.func @transform_1(%arg0: i32) -> (i32, i32) {
    %c0_i32 = arith.constant 0 : i32
    %c0_i32_0 = arith.constant 0 : i32
    return %c0_i32, %arg0 : i32, i32
  }
  func.func @transform_2(%arg0: i32) -> (i32, i32) {
    %c0_i32 = arith.constant 0 : i32
    %c0_i32_0 = arith.constant 0 : i32
    %c0_i32_1 = arith.constant 0 : i32
    return %c0_i32, %c0_i32_0 : i32, i32
  }
  func.func @transform_3(%arg0: i32) -> (i32, i32) {
    %c0_i32 = arith.constant 0 : i32
    %c0_i32_0 = arith.constant 0 : i32
    %c0_i32_1 = arith.constant 0 : i32
    return %c0_i32, %c0_i32_0 : i32, i32
  }
  func.func @transform_4(%arg0: i32) -> (i32, i32) {
    %c0_i32 = arith.constant 0 : i32
    %c0_i32_0 = arith.constant 0 : i32
    return %c0_i32, %arg0 : i32, i32
  }
}

module attributes {stable_mosaic.version = 11 : i64} {
  func.func @_matmul_bn_kernel(%arg0: i32, %arg1: memref<16x144xf32, #tpu.memory_space<vmem>>, %arg2: memref<144x32xf32, #tpu.memory_space<vmem>>, %arg3: memref<16x1xf32, #tpu.memory_space<vmem>>, %arg4: memref<16x1xf32, #tpu.memory_space<vmem>>, %arg5: memref<16x32xf32, #tpu.memory_space<vmem>>) attributes {dimension_semantics = [#tpu.dimension_semantics<parallel>], iteration_bounds = array<i64: 1>, scalar_prefetch = 0 : i64, scratch_operands = 0 : i64, tpu.core_type = #tpu.core_type<tc>, window_params = [{pipeline_mode = #tpu.pipeline_mode<synchronous>, transform_indices = @transform_0, window_bounds = array<i64: 16, 144>}, {transform_indices = @transform_1, window_bounds = array<i64: 144, 32>}, {pipeline_mode = #tpu.pipeline_mode<synchronous>, transform_indices = @transform_2, window_bounds = array<i64: 16, 1>}, {pipeline_mode = #tpu.pipeline_mode<synchronous>, transform_indices = @transform_3, window_bounds = array<i64: 16, 1>}, {transform_indices = @transform_4, window_bounds = array<i64: 16, 32>}]} {
    %c0 = arith.constant 0 : index
    %c0_0 = arith.constant 0 : index
    %0 = vector.load %arg1[%c0, %c0_0] : memref<16x144xf32, #tpu.memory_space<vmem>>, vector<16x144xf32>
    %c0_1 = arith.constant 0 : index
    %c0_2 = arith.constant 0 : index
    %1 = vector.load %arg2[%c0_1, %c0_2] : memref<144x32xf32, #tpu.memory_space<vmem>>, vector<144x32xf32>
    %cst = arith.constant dense<0.000000e+00> : vector<16x32xf32>
    %2 = tpu.matmul %0, %1, %cst {dimension_numbers = #tpu.dot_dimension_numbers<[1], [0], [0], [1], [0, 0, 1, 1], [], []>} : vector<16x144xf32>, vector<144x32xf32>, vector<16x32xf32> -> vector<16x32xf32>
    %c0_3 = arith.constant 0 : index
    %c0_4 = arith.constant 0 : index
    %3 = vector.load %arg3[%c0_3, %c0_4] : memref<16x1xf32, #tpu.memory_space<vmem>>, vector<16x1xf32>
    %4 = vector.broadcast %3 : vector<16x1xf32> to vector<16x32xf32>
    %5 = arith.mulf %2, %4 : vector<16x32xf32>
    %c0_5 = arith.constant 0 : index
    %c0_6 = arith.constant 0 : index
    %6 = vector.load %arg4[%c0_5, %c0_6] : memref<16x1xf32, #tpu.memory_space<vmem>>, vector<16x1xf32>
    %7 = vector.broadcast %6 : vector<16x1xf32> to vector<16x32xf32>
    %8 = arith.addf %5, %7 : vector<16x32xf32>
    %cst_7 = arith.constant 0.000000e+00 : f32
    %9 = vector.broadcast %cst_7 : f32 to vector<16x32xf32>
    %10 = arith.maximumf %8, %9 : vector<16x32xf32>
    %c0_8 = arith.constant 0 : index
    %c0_9 = arith.constant 0 : index
    %11 = vector.load %arg5[%c0_8, %c0_9] : memref<16x32xf32, #tpu.memory_space<vmem>>, vector<16x32xf32>
    tpu.vector_store %arg5[%c0_8, %c0_9], %10 {strides = array<i32>} : memref<16x32xf32, #tpu.memory_space<vmem>>, vector<16x32xf32>,
    return
  }
  func.func @transform_0(%arg0: i32) -> (i32, i32) {
    %c0_i32 = arith.constant 0 : i32
    %c0_i32_0 = arith.constant 0 : i32
    %c0_i32_1 = arith.constant 0 : i32
    return %c0_i32, %c0_i32_0 : i32, i32
  }
  func.func @transform_1(%arg0: i32) -> (i32, i32) {
    %c0_i32 = arith.constant 0 : i32
    %c0_i32_0 = arith.constant 0 : i32
    return %c0_i32, %arg0 : i32, i32
  }
  func.func @transform_2(%arg0: i32) -> (i32, i32) {
    %c0_i32 = arith.constant 0 : i32
    %c0_i32_0 = arith.constant 0 : i32
    %c0_i32_1 = arith.constant 0 : i32
    return %c0_i32, %c0_i32_0 : i32, i32
  }
  func.func @transform_3(%arg0: i32) -> (i32, i32) {
    %c0_i32 = arith.constant 0 : i32
    %c0_i32_0 = arith.constant 0 : i32
    %c0_i32_1 = arith.constant 0 : i32
    return %c0_i32, %c0_i32_0 : i32, i32
  }
  func.func @transform_4(%arg0: i32) -> (i32, i32) {
    %c0_i32 = arith.constant 0 : i32
    %c0_i32_0 = arith.constant 0 : i32
    return %c0_i32, %arg0 : i32, i32
  }
}

module attributes {stable_mosaic.version = 11 : i64} {
  func.func @_matmul_bn_add_relu_kernel(%arg0: i32, %arg1: memref<64x16xf32, #tpu.memory_space<vmem>>, %arg2: memref<16x32xf32, #tpu.memory_space<vmem>>, %arg3: memref<64x1xf32, #tpu.memory_space<vmem>>, %arg4: memref<64x1xf32, #tpu.memory_space<vmem>>, %arg5: memref<64x32xf32, #tpu.memory_space<vmem>>, %arg6: memref<64x32xf32, #tpu.memory_space<vmem>>) attributes {dimension_semantics = [#tpu.dimension_semantics<parallel>], iteration_bounds = array<i64: 1>, scalar_prefetch = 0 : i64, scratch_operands = 0 : i64, tpu.core_type = #tpu.core_type<tc>, window_params = [{pipeline_mode = #tpu.pipeline_mode<synchronous>, transform_indices = @transform_0, window_bounds = array<i64: 64, 16>}, {transform_indices = @transform_1, window_bounds = array<i64: 16, 32>}, {pipeline_mode = #tpu.pipeline_mode<synchronous>, transform_indices = @transform_2, window_bounds = array<i64: 64, 1>}, {pipeline_mode = #tpu.pipeline_mode<synchronous>, transform_indices = @transform_3, window_bounds = array<i64: 64, 1>}, {transform_indices = @transform_4, window_bounds = array<i64: 64, 32>}, {transform_indices = @transform_5, window_bounds = array<i64: 64, 32>}]} {
    %c0 = arith.constant 0 : index
    %c0_0 = arith.constant 0 : index
    %0 = vector.load %arg1[%c0, %c0_0] : memref<64x16xf32, #tpu.memory_space<vmem>>, vector<64x16xf32>
    %c0_1 = arith.constant 0 : index
    %c0_2 = arith.constant 0 : index
    %1 = vector.load %arg2[%c0_1, %c0_2] : memref<16x32xf32, #tpu.memory_space<vmem>>, vector<16x32xf32>
    %cst = arith.constant dense<0.000000e+00> : vector<64x32xf32>
    %2 = tpu.matmul %0, %1, %cst {dimension_numbers = #tpu.dot_dimension_numbers<[1], [0], [0], [1], [0, 0, 1, 1], [], []>} : vector<64x16xf32>, vector<16x32xf32>, vector<64x32xf32> -> vector<64x32xf32>
    %c0_3 = arith.constant 0 : index
    %c0_4 = arith.constant 0 : index
    %3 = vector.load %arg3[%c0_3, %c0_4] : memref<64x1xf32, #tpu.memory_space<vmem>>, vector<64x1xf32>
    %4 = vector.broadcast %3 : vector<64x1xf32> to vector<64x32xf32>
    %5 = arith.mulf %2, %4 : vector<64x32xf32>
    %c0_5 = arith.constant 0 : index
    %c0_6 = arith.constant 0 : index
    %6 = vector.load %arg4[%c0_5, %c0_6] : memref<64x1xf32, #tpu.memory_space<vmem>>, vector<64x1xf32>
    %7 = vector.broadcast %6 : vector<64x1xf32> to vector<64x32xf32>
    %8 = arith.addf %5, %7 : vector<64x32xf32>
    %c0_7 = arith.constant 0 : index
    %c0_8 = arith.constant 0 : index
    %9 = vector.load %arg5[%c0_7, %c0_8] : memref<64x32xf32, #tpu.memory_space<vmem>>, vector<64x32xf32>
    %10 = arith.addf %8, %9 : vector<64x32xf32>
    %cst_9 = arith.constant 0.000000e+00 : f32
    %11 = vector.broadcast %cst_9 : f32 to vector<64x32xf32>
    %12 = arith.maximumf %10, %11 : vector<64x32xf32>
    %c0_10 = arith.constant 0 : index
    %c0_11 = arith.constant 0 : index
    %13 = vector.load %arg6[%c0_10, %c0_11] : memref<64x32xf32, #tpu.memory_space<vmem>>, vector<64x32xf32>
    tpu.vector_store %arg6[%c0_10, %c0_11], %12 {strides = array<i32>} : memref<64x32xf32, #tpu.memory_space<vmem>>, vector<64x32xf32>,
    return
  }
  func.func @transform_0(%arg0: i32) -> (i32, i32) {
    %c0_i32 = arith.constant 0 : i32
    %c0_i32_0 = arith.constant 0 : i32
    %c0_i32_1 = arith.constant 0 : i32
    return %c0_i32, %c0_i32_0 : i32, i32
  }
  func.func @transform_1(%arg0: i32) -> (i32, i32) {
    %c0_i32 = arith.constant 0 : i32
    %c0_i32_0 = arith.constant 0 : i32
    return %c0_i32, %arg0 : i32, i32
  }
  func.func @transform_2(%arg0: i32) -> (i32, i32) {
    %c0_i32 = arith.constant 0 : i32
    %c0_i32_0 = arith.constant 0 : i32
    %c0_i32_1 = arith.constant 0 : i32
    return %c0_i32, %c0_i32_0 : i32, i32
  }
  func.func @transform_3(%arg0: i32) -> (i32, i32) {
    %c0_i32 = arith.constant 0 : i32
    %c0_i32_0 = arith.constant 0 : i32
    %c0_i32_1 = arith.constant 0 : i32
    return %c0_i32, %c0_i32_0 : i32, i32
  }
  func.func @transform_4(%arg0: i32) -> (i32, i32) {
    %c0_i32 = arith.constant 0 : i32
    %c0_i32_0 = arith.constant 0 : i32
    return %c0_i32, %arg0 : i32, i32
  }
  func.func @transform_5(%arg0: i32) -> (i32, i32) {
    %c0_i32 = arith.constant 0 : i32
    %c0_i32_0 = arith.constant 0 : i32
    return %c0_i32, %arg0 : i32, i32
  }
}

module attributes {stable_mosaic.version = 11 : i64} {
  func.func @_matmul_bn_rowmask_kernel(%arg0: i32, %arg1: memref<160x64xf32, #tpu.memory_space<vmem>>, %arg2: memref<64x32xf32, #tpu.memory_space<vmem>>, %arg3: memref<160x1xf32, #tpu.memory_space<vmem>>, %arg4: memref<160x1xf32, #tpu.memory_space<vmem>>, %arg5: memref<160x1xf32, #tpu.memory_space<vmem>>, %arg6: memref<160x32xf32, #tpu.memory_space<vmem>>) attributes {dimension_semantics = [#tpu.dimension_semantics<parallel>], iteration_bounds = array<i64: 1>, scalar_prefetch = 0 : i64, scratch_operands = 0 : i64, tpu.core_type = #tpu.core_type<tc>, window_params = [{pipeline_mode = #tpu.pipeline_mode<synchronous>, transform_indices = @transform_0, window_bounds = array<i64: 160, 64>}, {transform_indices = @transform_1, window_bounds = array<i64: 64, 32>}, {pipeline_mode = #tpu.pipeline_mode<synchronous>, transform_indices = @transform_2, window_bounds = array<i64: 160, 1>}, {pipeline_mode = #tpu.pipeline_mode<synchronous>, transform_indices = @transform_3, window_bounds = array<i64: 160, 1>}, {pipeline_mode = #tpu.pipeline_mode<synchronous>, transform_indices = @transform_4, window_bounds = array<i64: 160, 1>}, {transform_indices = @transform_5, window_bounds = array<i64: 160, 32>}]} {
    %c0 = arith.constant 0 : index
    %c0_0 = arith.constant 0 : index
    %0 = vector.load %arg1[%c0, %c0_0] : memref<160x64xf32, #tpu.memory_space<vmem>>, vector<160x64xf32>
    %c0_1 = arith.constant 0 : index
    %c0_2 = arith.constant 0 : index
    %1 = vector.load %arg2[%c0_1, %c0_2] : memref<64x32xf32, #tpu.memory_space<vmem>>, vector<64x32xf32>
    %cst = arith.constant dense<0.000000e+00> : vector<160x32xf32>
    %2 = tpu.matmul %0, %1, %cst {dimension_numbers = #tpu.dot_dimension_numbers<[1], [0], [0], [1], [0, 0, 1, 1], [], []>} : vector<160x64xf32>, vector<64x32xf32>, vector<160x32xf32> -> vector<160x32xf32>
    %c0_3 = arith.constant 0 : index
    %c0_4 = arith.constant 0 : index
    %3 = vector.load %arg3[%c0_3, %c0_4] : memref<160x1xf32, #tpu.memory_space<vmem>>, vector<160x1xf32>
    %4 = vector.broadcast %3 : vector<160x1xf32> to vector<160x32xf32>
    %5 = arith.mulf %2, %4 : vector<160x32xf32>
    %c0_5 = arith.constant 0 : index
    %c0_6 = arith.constant 0 : index
    %6 = vector.load %arg4[%c0_5, %c0_6] : memref<160x1xf32, #tpu.memory_space<vmem>>, vector<160x1xf32>
    %7 = vector.broadcast %6 : vector<160x1xf32> to vector<160x32xf32>
    %8 = arith.addf %5, %7 : vector<160x32xf32>
    %c0_7 = arith.constant 0 : index
    %c0_8 = arith.constant 0 : index
    %9 = vector.load %arg5[%c0_7, %c0_8] : memref<160x1xf32, #tpu.memory_space<vmem>>, vector<160x1xf32>
    %cst_9 = arith.constant 5.000000e-01 : f32
    %10 = vector.broadcast %cst_9 : f32 to vector<160x1xf32>
    %11 = arith.cmpf ogt, %9, %10 : vector<160x1xf32>
    %cst_10 = arith.constant 0.000000e+00 : f32
    %12 = vector.broadcast %cst_10 : f32 to vector<160x32xf32>
    %13 = arith.maximumf %8, %12 : vector<160x32xf32>
    %14 = vector.shape_cast %11 : vector<160x1xi1> to vector<160x1xi1>
    %15 = vector.broadcast %14 : vector<160x1xi1> to vector<160x32xi1>
    %16 = arith.select %15, %13, %8 : vector<160x32xi1>, vector<160x32xf32>
    %c0_11 = arith.constant 0 : index
    %c0_12 = arith.constant 0 : index
    %17 = vector.load %arg6[%c0_11, %c0_12] : memref<160x32xf32, #tpu.memory_space<vmem>>, vector<160x32xf32>
    tpu.vector_store %arg6[%c0_11, %c0_12], %16 {strides = array<i32>} : memref<160x32xf32, #tpu.memory_space<vmem>>, vector<160x32xf32>,
    return
  }
  func.func @transform_0(%arg0: i32) -> (i32, i32) {
    %c0_i32 = arith.constant 0 : i32
    %c0_i32_0 = arith.constant 0 : i32
    %c0_i32_1 = arith.constant 0 : i32
    return %c0_i32, %c0_i32_0 : i32, i32
  }
  func.func @transform_1(%arg0: i32) -> (i32, i32) {
    %c0_i32 = arith.constant 0 : i32
    %c0_i32_0 = arith.constant 0 : i32
    return %c0_i32, %arg0 : i32, i32
  }
  func.func @transform_2(%arg0: i32) -> (i32, i32) {
    %c0_i32 = arith.constant 0 : i32
    %c0_i32_0 = arith.constant 0 : i32
    %c0_i32_1 = arith.constant 0 : i32
    return %c0_i32, %c0_i32_0 : i32, i32
  }
  func.func @transform_3(%arg0: i32) -> (i32, i32) {
    %c0_i32 = arith.constant 0 : i32
    %c0_i32_0 = arith.constant 0 : i32
    %c0_i32_1 = arith.constant 0 : i32
    return %c0_i32, %c0_i32_0 : i32, i32
  }
  func.func @transform_4(%arg0: i32) -> (i32, i32) {
    %c0_i32 = arith.constant 0 : i32
    %c0_i32_0 = arith.constant 0 : i32
    %c0_i32_1 = arith.constant 0 : i32
    return %c0_i32, %c0_i32_0 : i32, i32
  }
  func.func @transform_5(%arg0: i32) -> (i32, i32) {
    %c0_i32 = arith.constant 0 : i32
    %c0_i32_0 = arith.constant 0 : i32
    return %c0_i32, %arg0 : i32, i32
  }
}

module attributes {stable_mosaic.version = 11 : i64} {
  func.func @_matmul_bn_kernel(%arg0: i32, %arg1: memref<32x288xf32, #tpu.memory_space<vmem>>, %arg2: memref<288x32xf32, #tpu.memory_space<vmem>>, %arg3: memref<32x1xf32, #tpu.memory_space<vmem>>, %arg4: memref<32x1xf32, #tpu.memory_space<vmem>>, %arg5: memref<32x32xf32, #tpu.memory_space<vmem>>) attributes {dimension_semantics = [#tpu.dimension_semantics<parallel>], iteration_bounds = array<i64: 1>, scalar_prefetch = 0 : i64, scratch_operands = 0 : i64, tpu.core_type = #tpu.core_type<tc>, window_params = [{pipeline_mode = #tpu.pipeline_mode<synchronous>, transform_indices = @transform_0, window_bounds = array<i64: 32, 288>}, {transform_indices = @transform_1, window_bounds = array<i64: 288, 32>}, {pipeline_mode = #tpu.pipeline_mode<synchronous>, transform_indices = @transform_2, window_bounds = array<i64: 32, 1>}, {pipeline_mode = #tpu.pipeline_mode<synchronous>, transform_indices = @transform_3, window_bounds = array<i64: 32, 1>}, {transform_indices = @transform_4, window_bounds = array<i64: 32, 32>}]} {
    %c0 = arith.constant 0 : index
    %c0_0 = arith.constant 0 : index
    %0 = vector.load %arg1[%c0, %c0_0] : memref<32x288xf32, #tpu.memory_space<vmem>>, vector<32x288xf32>
    %c0_1 = arith.constant 0 : index
    %c0_2 = arith.constant 0 : index
    %1 = vector.load %arg2[%c0_1, %c0_2] : memref<288x32xf32, #tpu.memory_space<vmem>>, vector<288x32xf32>
    %cst = arith.constant dense<0.000000e+00> : vector<32x32xf32>
    %2 = tpu.matmul %0, %1, %cst {dimension_numbers = #tpu.dot_dimension_numbers<[1], [0], [0], [1], [0, 0, 1, 1], [], []>} : vector<32x288xf32>, vector<288x32xf32>, vector<32x32xf32> -> vector<32x32xf32>
    %c0_3 = arith.constant 0 : index
    %c0_4 = arith.constant 0 : index
    %3 = vector.load %arg3[%c0_3, %c0_4] : memref<32x1xf32, #tpu.memory_space<vmem>>, vector<32x1xf32>
    %4 = vector.broadcast %3 : vector<32x1xf32> to vector<32x32xf32>
    %5 = arith.mulf %2, %4 : vector<32x32xf32>
    %c0_5 = arith.constant 0 : index
    %c0_6 = arith.constant 0 : index
    %6 = vector.load %arg4[%c0_5, %c0_6] : memref<32x1xf32, #tpu.memory_space<vmem>>, vector<32x1xf32>
    %7 = vector.broadcast %6 : vector<32x1xf32> to vector<32x32xf32>
    %8 = arith.addf %5, %7 : vector<32x32xf32>
    %cst_7 = arith.constant 0.000000e+00 : f32
    %9 = vector.broadcast %cst_7 : f32 to vector<32x32xf32>
    %10 = arith.maximumf %8, %9 : vector<32x32xf32>
    %c0_8 = arith.constant 0 : index
    %c0_9 = arith.constant 0 : index
    %11 = vector.load %arg5[%c0_8, %c0_9] : memref<32x32xf32, #tpu.memory_space<vmem>>, vector<32x32xf32>
    tpu.vector_store %arg5[%c0_8, %c0_9], %10 {strides = array<i32>} : memref<32x32xf32, #tpu.memory_space<vmem>>, vector<32x32xf32>,
    return
  }
  func.func @transform_0(%arg0: i32) -> (i32, i32) {
    %c0_i32 = arith.constant 0 : i32
    %c0_i32_0 = arith.constant 0 : i32
    %c0_i32_1 = arith.constant 0 : i32
    return %c0_i32, %c0_i32_0 : i32, i32
  }
  func.func @transform_1(%arg0: i32) -> (i32, i32) {
    %c0_i32 = arith.constant 0 : i32
    %c0_i32_0 = arith.constant 0 : i32
    return %c0_i32, %arg0 : i32, i32
  }
  func.func @transform_2(%arg0: i32) -> (i32, i32) {
    %c0_i32 = arith.constant 0 : i32
    %c0_i32_0 = arith.constant 0 : i32
    %c0_i32_1 = arith.constant 0 : i32
    return %c0_i32, %c0_i32_0 : i32, i32
  }
  func.func @transform_3(%arg0: i32) -> (i32, i32) {
    %c0_i32 = arith.constant 0 : i32
    %c0_i32_0 = arith.constant 0 : i32
    %c0_i32_1 = arith.constant 0 : i32
    return %c0_i32, %c0_i32_0 : i32, i32
  }
  func.func @transform_4(%arg0: i32) -> (i32, i32) {
    %c0_i32 = arith.constant 0 : i32
    %c0_i32_0 = arith.constant 0 : i32
    return %c0_i32, %arg0 : i32, i32
  }
}

module attributes {stable_mosaic.version = 11 : i64} {
  func.func @_matmul_bn_add_relu_kernel(%arg0: i32, %arg1: memref<128x32xf32, #tpu.memory_space<vmem>>, %arg2: memref<32x32xf32, #tpu.memory_space<vmem>>, %arg3: memref<128x1xf32, #tpu.memory_space<vmem>>, %arg4: memref<128x1xf32, #tpu.memory_space<vmem>>, %arg5: memref<128x32xf32, #tpu.memory_space<vmem>>, %arg6: memref<128x32xf32, #tpu.memory_space<vmem>>) attributes {dimension_semantics = [#tpu.dimension_semantics<parallel>], iteration_bounds = array<i64: 1>, scalar_prefetch = 0 : i64, scratch_operands = 0 : i64, tpu.core_type = #tpu.core_type<tc>, window_params = [{pipeline_mode = #tpu.pipeline_mode<synchronous>, transform_indices = @transform_0, window_bounds = array<i64: 128, 32>}, {transform_indices = @transform_1, window_bounds = array<i64: 32, 32>}, {pipeline_mode = #tpu.pipeline_mode<synchronous>, transform_indices = @transform_2, window_bounds = array<i64: 128, 1>}, {pipeline_mode = #tpu.pipeline_mode<synchronous>, transform_indices = @transform_3, window_bounds = array<i64: 128, 1>}, {transform_indices = @transform_4, window_bounds = array<i64: 128, 32>}, {transform_indices = @transform_5, window_bounds = array<i64: 128, 32>}]} {
    %c0 = arith.constant 0 : index
    %c0_0 = arith.constant 0 : index
    %0 = vector.load %arg1[%c0, %c0_0] : memref<128x32xf32, #tpu.memory_space<vmem>>, vector<128x32xf32>
    %c0_1 = arith.constant 0 : index
    %c0_2 = arith.constant 0 : index
    %1 = vector.load %arg2[%c0_1, %c0_2] : memref<32x32xf32, #tpu.memory_space<vmem>>, vector<32x32xf32>
    %cst = arith.constant dense<0.000000e+00> : vector<128x32xf32>
    %2 = tpu.matmul %0, %1, %cst {dimension_numbers = #tpu.dot_dimension_numbers<[1], [0], [0], [1], [0, 0, 1, 1], [], []>} : vector<128x32xf32>, vector<32x32xf32>, vector<128x32xf32> -> vector<128x32xf32>
    %c0_3 = arith.constant 0 : index
    %c0_4 = arith.constant 0 : index
    %3 = vector.load %arg3[%c0_3, %c0_4] : memref<128x1xf32, #tpu.memory_space<vmem>>, vector<128x1xf32>
    %4 = vector.broadcast %3 : vector<128x1xf32> to vector<128x32xf32>
    %5 = arith.mulf %2, %4 : vector<128x32xf32>
    %c0_5 = arith.constant 0 : index
    %c0_6 = arith.constant 0 : index
    %6 = vector.load %arg4[%c0_5, %c0_6] : memref<128x1xf32, #tpu.memory_space<vmem>>, vector<128x1xf32>
    %7 = vector.broadcast %6 : vector<128x1xf32> to vector<128x32xf32>
    %8 = arith.addf %5, %7 : vector<128x32xf32>
    %c0_7 = arith.constant 0 : index
    %c0_8 = arith.constant 0 : index
    %9 = vector.load %arg5[%c0_7, %c0_8] : memref<128x32xf32, #tpu.memory_space<vmem>>, vector<128x32xf32>
    %10 = arith.addf %8, %9 : vector<128x32xf32>
    %cst_9 = arith.constant 0.000000e+00 : f32
    %11 = vector.broadcast %cst_9 : f32 to vector<128x32xf32>
    %12 = arith.maximumf %10, %11 : vector<128x32xf32>
    %c0_10 = arith.constant 0 : index
    %c0_11 = arith.constant 0 : index
    %13 = vector.load %arg6[%c0_10, %c0_11] : memref<128x32xf32, #tpu.memory_space<vmem>>, vector<128x32xf32>
    tpu.vector_store %arg6[%c0_10, %c0_11], %12 {strides = array<i32>} : memref<128x32xf32, #tpu.memory_space<vmem>>, vector<128x32xf32>,
    return
  }
  func.func @transform_0(%arg0: i32) -> (i32, i32) {
    %c0_i32 = arith.constant 0 : i32
    %c0_i32_0 = arith.constant 0 : i32
    %c0_i32_1 = arith.constant 0 : i32
    return %c0_i32, %c0_i32_0 : i32, i32
  }
  func.func @transform_1(%arg0: i32) -> (i32, i32) {
    %c0_i32 = arith.constant 0 : i32
    %c0_i32_0 = arith.constant 0 : i32
    return %c0_i32, %arg0 : i32, i32
  }
  func.func @transform_2(%arg0: i32) -> (i32, i32) {
    %c0_i32 = arith.constant 0 : i32
    %c0_i32_0 = arith.constant 0 : i32
    %c0_i32_1 = arith.constant 0 : i32
    return %c0_i32, %c0_i32_0 : i32, i32
  }
  func.func @transform_3(%arg0: i32) -> (i32, i32) {
    %c0_i32 = arith.constant 0 : i32
    %c0_i32_0 = arith.constant 0 : i32
    %c0_i32_1 = arith.constant 0 : i32
    return %c0_i32, %c0_i32_0 : i32, i32
  }
  func.func @transform_4(%arg0: i32) -> (i32, i32) {
    %c0_i32 = arith.constant 0 : i32
    %c0_i32_0 = arith.constant 0 : i32
    return %c0_i32, %arg0 : i32, i32
  }
  func.func @transform_5(%arg0: i32) -> (i32, i32) {
    %c0_i32 = arith.constant 0 : i32
    %c0_i32_0 = arith.constant 0 : i32
    return %c0_i32, %arg0 : i32, i32
  }
}

module attributes {stable_mosaic.version = 11 : i64} {
  func.func @_pcb_avgpool_kernel(%arg0: memref<256x4x4xf32, #tpu.memory_space<vmem>>, %arg1: memref<256x4xf32, #tpu.memory_space<vmem>>) attributes {dimension_semantics = [], scalar_prefetch = 0 : i64, scratch_operands = 0 : i64, tpu.core_type = #tpu.core_type<tc>} {
    %c0 = arith.constant 0 : index
    %c0_0 = arith.constant 0 : index
    %c0_1 = arith.constant 0 : index
    %0 = vector.load %arg0[%c0, %c0_0, %c0_1] : memref<256x4x4xf32, #tpu.memory_space<vmem>>, vector<256x4x4xf32>
    %cst = arith.constant dense<0.000000e+00> : vector<256x4xf32>
    %1 = vector.multi_reduction <add>, %0, %cst [2] : vector<256x4x4xf32> to vector<256x4xf32>
    %cst_2 = arith.constant 2.500000e-01 : f32
    %2 = vector.broadcast %cst_2 : f32 to vector<256x4xf32>
    %3 = arith.mulf %1, %2 : vector<256x4xf32>
    %c0_3 = arith.constant 0 : index
    %c0_4 = arith.constant 0 : index
    %4 = vector.load %arg1[%c0_3, %c0_4] : memref<256x4xf32, #tpu.memory_space<vmem>>, vector<256x4xf32>
    tpu.vector_store %arg1[%c0_3, %c0_4], %3 {strides = array<i32>} : memref<256x4xf32, #tpu.memory_space<vmem>>, vector<256x4xf32>,
    return
  }
}

</mosaic_0001>

<bundles_post_ra>
// kernel: pcb_test_forward.17
= control target key start
LH: loop header
LB: loop body
LE: loop exit
PB: predicated region body
PF: predicated region fallthrough
CT: control target
= control target key end

     0   :  { %s1341_s15 = smov 0   ;;  %s1343_s16 = smov 0   ;;  %s1901_s0 = inlined_call_operand.vmem [shape: f32[8,147], index: 0, kind: input, shape index: {}]   ;;  %s1902_s1 = inlined_call_operand.vmem [shape: f32[147,2048], index: 1, kind: input, shape index: {}]   ;;  %s1903_s2 = inlined_call_operand.vmem [shape: f32[8,1], index: 2, kind: input, shape index: {}]   ;;  %s1904_s3 = inlined_call_operand.vmem [shape: f32[8,1], index: 3, kind: input, shape index: {}]   ;;  %s1905_s4 = inlined_call_operand.vmem [shape: f32[8,2048], index: 4, kind: output, shape index: {}]  }
   0x1   :  { %s1345_s17 = smov 0  }
   0x2 LB: > { %s1095_s18 = sadd.s32 4294967295, %s1313_s17   ;;  %s1358_s19 = sadd.s32 1, %s1313_s17   ;;  %s1313_s17 = sphi %s1345_s17, %s1908_s17   ;;  %s1309_s16 = sphi %s1343_s16, %s1907_s16   ;;  %s1305_s15 = sphi %s1341_s15, %s1906_s15  }
   0x3   : > { %s39_s20 = ssub.s32 %s1313_s17, %s1358_s19  ;;  %s42_s21 = sadd.s32 1, %s1309_s16 }
   0x4   : > { %p40_p0 = scmp.eq.s32.totalorder %s39_s20, 0  ;;  %p49_p1 = scmp.ne.s32.totalorder %s1309_s16, %s1305_s15 }
   0x5   : > { %p50_p2 = scmp.eq.s32.totalorder %s1313_s17, 0  ;;  %p1098_p4 = scmp.ge.s32.totalorder %s1313_s17, 2 }
   0x6   : > { %s1367_s22 = scalar_select %p40_p0, %s1309_s16, %s42_s21  }
   0x7   : > { %p51_p3 = por %p50_p2, %p49_p1  ;;  %152 = sbr.rel (%p1098_p4) target bundleno = 95 (0x5f), region = 28 }
   0xe   : > { %155 = sbr.rel (!%p51_p3) target bundleno = 95 (0x5f), region = 32  ;;  %s157_s23 = sand.u32 (%p51_p3), 1, %s1309_s16  }
   0xf   : > { %s1118_s24 = sshll.u32 (%p51_p3), %s1313_s17, 6  ;;  %s1263_s25 = smul.u32 (%p51_p3), 1216, %s157_s23 }
  0x10   : > { %s1375_s28 = scalar_lea.vmem (%p51_p3), %s1902_s1, %s1118_s24 }
  0x11   : > { %v175_v0 = vld [vmem:[%s1375_s28] sm:$0xff] (%p51_p3)  ;;  %v177_v1 = vld [vmem:[%s1375_s28 + $0x8] sm:$0xff] (%p51_p3)  ;;  %v179_v2 = vld [vmem:[%s1375_s28 + $0x10] sm:$0xff] (%p51_p3)  ;;  %s1383_s29 = scalar_lea.vmem (%p51_p3), [#allocation2], %s1263_s25 }
  0x12   : > { %v181_v3 = vld [vmem:[%s1375_s28 + $0x18] sm:$0xff] (%p51_p3)  ;;  %v183_v4 = vld [vmem:[%s1375_s28 + $0x20] sm:$0xff] (%p51_p3)  ;;  %v185_v5 = vld [vmem:[%s1375_s28 + $0x28] sm:$0xff] (%p51_p3)  ;;  %176 = vst [vmem:[%s1383_s29] sm:$0xff] (%p51_p3), %v175_v0 }
  0x13   : > { %178 = vst [vmem:[%s1383_s29 + $0x8] sm:$0xff] (%p51_p3), %v177_v1  ;;  %180 = vst [vmem:[%s1383_s29 + $0x10] sm:$0xff] (%p51_p3), %v179_v2  ;;  %v187_v6 = vld [vmem:[%s1375_s28 + $0x30] sm:$0xff] (%p51_p3)  ;;  %v189_v7 = vld [vmem:[%s1375_s28 + $0x38] sm:$0xff] (%p51_p3) }
  0x14   : > { %182 = vst [vmem:[%s1383_s29 + $0x18] sm:$0xff] (%p51_p3), %v181_v3  ;;  %184 = vst [vmem:[%s1383_s29 + $0x20] sm:$0xff] (%p51_p3), %v183_v4  ;;  %v191_v8 = vld [vmem:[%s1375_s28 + $0x80] sm:$0xff] (%p51_p3)  ;;  %v193_v9 = vld [vmem:[%s1375_s28 + $0x88] sm:$0xff] (%p51_p3) }
  0x15   : > { %186 = vst [vmem:[%s1383_s29 + $0x28] sm:$0xff] %v185_v5  ;;  %188 = vst [vmem:[%s1383_s29 + $0x30] sm:$0xff] %v187_v6  ;;  %v195_v10 = vld [vmem:[%s1375_s28 + $0x90] sm:$0xff]  ;;  %v197_v11 = vld [vmem:[%s1375_s28 + $0x98] sm:$0xff] }
  0x16   : > { %190 = vst [vmem:[%s1383_s29 + $0x38] sm:$0xff] %v189_v7  ;;  %192 = vst [vmem:[%s1383_s29 + $0x40] sm:$0xff] %v191_v8  ;;  %v199_v12 = vld [vmem:[%s1375_s28 + $0xa0] sm:$0xff]  ;;  %v201_v13 = vld [vmem:[%s1375_s28 + $0xa8] sm:$0xff] }
  0x17   : > { %194 = vst [vmem:[%s1383_s29 + $0x48] sm:$0xff] %v193_v9  ;;  %196 = vst [vmem:[%s1383_s29 + $0x50] sm:$0xff] %v195_v10  ;;  %v203_v14 = vld [vmem:[%s1375_s28 + $0xb0] sm:$0xff]  ;;  %v205_v15 = vld [vmem:[%s1375_s28 + $0xb8] sm:$0xff] }
  0x18   : > { %198 = vst [vmem:[%s1383_s29 + $0x58] sm:$0xff] %v197_v11  ;;  %200 = vst [vmem:[%s1383_s29 + $0x60] sm:$0xff] %v199_v12  ;;  %v207_v16 = vld [vmem:[%s1375_s28 + $0x100] sm:$0xff]  ;;  %v209_v17 = vld [vmem:[%s1375_s28 + $0x108] sm:$0xff] }
  0x19   : > { %202 = vst [vmem:[%s1383_s29 + $0x68] sm:$0xff] %v201_v13  ;;  %204 = vst [vmem:[%s1383_s29 + $0x70] sm:$0xff] %v203_v14  ;;  %v211_v18 = vld [vmem:[%s1375_s28 + $0x110] sm:$0xff]  ;;  %v213_v19 = vld [vmem:[%s1375_s28 + $0x118] sm:$0xff] }
  0x1a   : > { %206 = vst [vmem:[%s1383_s29 + $0x78] sm:$0xff] %v205_v15  ;;  %208 = vst [vmem:[%s1383_s29 + $0x80] sm:$0xff] %v207_v16  ;;  %v215_v20 = vld [vmem:[%s1375_s28 + $0x120] sm:$0xff]  ;;  %v217_v21 = vld [vmem:[%s1375_s28 + $0x128] sm:$0xff] }
  0x1b   : > { %210 = vst [vmem:[%s1383_s29 + $0x88] sm:$0xff] %v209_v17  ;;  %212 = vst [vmem:[%s1383_s29 + $0x90] sm:$0xff] %v211_v18  ;;  %v219_v22 = vld [vmem:[%s1375_s28 + $0x130] sm:$0xff]  ;;  %v221_v23 = vld [vmem:[%s1375_s28 + $0x138] sm:$0xff] }
  0x1c   : > { %214 = vst [vmem:[%s1383_s29 + $0x98] sm:$0xff] %v213_v19  ;;  %216 = vst [vmem:[%s1383_s29 + $0xa0] sm:$0xff] %v215_v20  ;;  %v223_v24 = vld [vmem:[%s1375_s28 + $0x180] sm:$0xff]  ;;  %v225_v25 = vld [vmem:[%s1375_s28 + $0x188] sm:$0xff] }
  0x1d   : > { %218 = vst [vmem:[%s1383_s29 + $0xa8] sm:$0xff] %v217_v21  ;;  %220 = vst [vmem:[%s1383_s29 + $0xb0] sm:$0xff] %v219_v22  ;;  %v227_v26 = vld [vmem:[%s1375_s28 + $0x190] sm:$0xff]  ;;  %v229_v27 = vld [vmem:[%s1375_s28 + $0x198] sm:$0xff] }
  0x1e   : > { %222 = vst [vmem:[%s1383_s29 + $0xb8] sm:$0xff] %v221_v23  ;;  %224 = vst [vmem:[%s1383_s29 + $0xc0] sm:$0xff] %v223_v24  ;;  %v231_v28 = vld [vmem:[%s1375_s28 + $0x1a0] sm:$0xff]  ;;  %v233_v29 = vld [vmem:[%s1375_s28 + $0x1a8] sm:$0xff] }
  0x1f   : > { %226 = vst [vmem:[%s1383_s29 + $0xc8] sm:$0xff] %v225_v25  ;;  %228 = vst [vmem:[%s1383_s29 + $0xd0] sm:$0xff] %v227_v26  ;;  %v235_v30 = vld [vmem:[%s1375_s28 + $0x1b0] sm:$0xff]  ;;  %v237_v31 = vld [vmem:[%s1375_s28 + $0x1b8] sm:$0xff] }
  0x20   : > { %230 = vst [vmem:[%s1383_s29 + $0xd8] sm:$0xff] %v229_v27  ;;  %232 = vst [vmem:[%s1383_s29 + $0xe0] sm:$0xff] %v231_v28  ;;  %v239_v32 = vld [vmem:[%s1375_s28 + $0x200] sm:$0xff]  ;;  %v241_v33 = vld [vmem:[%s1375_s28 + $0x208] sm:$0xff] }
  0x21   : > { %234 = vst [vmem:[%s1383_s29 + $0xe8] sm:$0xff] %v233_v29  ;;  %236 = vst [vmem:[%s1383_s29 + $0xf0] sm:$0xff] %v235_v30  ;;  %v243_v34 = vld [vmem:[%s1375_s28 + $0x210] sm:$0xff]  ;;  %v245_v35 = vld [vmem:[%s1375_s28 + $0x218] sm:$0xff] }
  0x22   : > { %238 = vst [vmem:[%s1383_s29 + $0xf8] sm:$0xff] %v237_v31  ;;  %240 = vst [vmem:[%s1383_s29 + $0x100] sm:$0xff] %v239_v32  ;;  %v247_v36 = vld [vmem:[%s1375_s28 + $0x220] sm:$0xff]  ;;  %v249_v37 = vld [vmem:[%s1375_s28 + $0x228] sm:$0xff] }
  0x23   : > { %242 = vst [vmem:[%s1383_s29 + $0x108] sm:$0xff] %v241_v33  ;;  %244 = vst [vmem:[%s1383_s29 + $0x110] sm:$0xff] %v243_v34  ;;  %v251_v38 = vld [vmem:[%s1375_s28 + $0x230] sm:$0xff]  ;;  %v253_v39 = vld [vmem:[%s1375_s28 + $0x238] sm:$0xff] }
  0x24   : > { %246 = vst [vmem:[%s1383_s29 + $0x118] sm:$0xff] %v245_v35  ;;  %248 = vst [vmem:[%s1383_s29 + $0x120] sm:$0xff] %v247_v36  ;;  %v255_v40 = vld [vmem:[%s1375_s28 + $0x280] sm:$0xff]  ;;  %v257_v41 = vld [vmem:[%s1375_s28 + $0x288] sm:$0xff] }
  0x25   : > { %250 = vst [vmem:[%s1383_s29 + $0x128] sm:$0xff] %v249_v37  ;;  %252 = vst [vmem:[%s1383_s29 + $0x130] sm:$0xff] %v251_v38  ;;  %v259_v42 = vld [vmem:[%s1375_s28 + $0x290] sm:$0xff]  ;;  %v261_v43 = vld [vmem:[%s1375_s28 + $0x298] sm:$0xff] }
  0x26   : > { %254 = vst [vmem:[%s1383_s29 + $0x138] sm:$0xff] %v253_v39  ;;  %256 = vst [vmem:[%s1383_s29 + $0x140] sm:$0xff] %v255_v40  ;;  %v263_v44 = vld [vmem:[%s1375_s28 + $0x2a0] sm:$0xff]  ;;  %v265_v45 = vld [vmem:[%s1375_s28 + $0x2a8] sm:$0xff] }
  0x27   : > { %258 = vst [vmem:[%s1383_s29 + $0x148] sm:$0xff] %v257_v41  ;;  %260 = vst [vmem:[%s1383_s29 + $0x150] sm:$0xff] %v259_v42  ;;  %v267_v46 = vld [vmem:[%s1375_s28 + $0x2b0] sm:$0xff]  ;;  %v269_v47 = vld [vmem:[%s1375_s28 + $0x2b8] sm:$0xff] }
  0x28   : > { %262 = vst [vmem:[%s1383_s29 + $0x158] sm:$0xff] %v261_v43  ;;  %264 = vst [vmem:[%s1383_s29 + $0x160] sm:$0xff] %v263_v44  ;;  %v271_v48 = vld [vmem:[%s1375_s28 + $0x300] sm:$0xff]  ;;  %v273_v49 = vld [vmem:[%s1375_s28 + $0x308] sm:$0xff] }
  0x29   : > { %266 = vst [vmem:[%s1383_s29 + $0x168] sm:$0xff] %v265_v45  ;;  %268 = vst [vmem:[%s1383_s29 + $0x170] sm:$0xff] %v267_v46  ;;  %v275_v50 = vld [vmem:[%s1375_s28 + $0x310] sm:$0xff]  ;;  %v277_v51 = vld [vmem:[%s1375_s28 + $0x318] sm:$0xff] }
  0x2a   : > { %270 = vst [vmem:[%s1383_s29 + $0x178] sm:$0xff] %v269_v47  ;;  %272 = vst [vmem:[%s1383_s29 + $0x180] sm:$0xff] %v271_v48  ;;  %v279_v52 = vld [vmem:[%s1375_s28 + $0x320] sm:$0xff]  ;;  %v281_v53 = vld [vmem:[%s1375_s28 + $0x328] sm:$0xff] }
  0x2b   : > { %274 = vst [vmem:[%s1383_s29 + $0x188] sm:$0xff] %v273_v49  ;;  %276 = vst [vmem:[%s1383_s29 + $0x190] sm:$0xff] %v275_v50  ;;  %v283_v54 = vld [vmem:[%s1375_s28 + $0x330] sm:$0xff]  ;;  %v285_v55 = vld [vmem:[%s1375_s28 + $0x338] sm:$0xff] }
  0x2c   : > { %278 = vst [vmem:[%s1383_s29 + $0x198] sm:$0xff] %v277_v51  ;;  %280 = vst [vmem:[%s1383_s29 + $0x1a0] sm:$0xff] %v279_v52  ;;  %v287_v56 = vld [vmem:[%s1375_s28 + $0x380] sm:$0xff]  ;;  %v289_v57 = vld [vmem:[%s1375_s28 + $0x388] sm:$0xff] }
  0x2d   : > { %282 = vst [vmem:[%s1383_s29 + $0x1a8] sm:$0xff] %v281_v53  ;;  %284 = vst [vmem:[%s1383_s29 + $0x1b0] sm:$0xff] %v283_v54  ;;  %v291_v58 = vld [vmem:[%s1375_s28 + $0x390] sm:$0xff]  ;;  %v293_v59 = vld [vmem:[%s1375_s28 + $0x398] sm:$0xff] }
  0x2e   : > { %286 = vst [vmem:[%s1383_s29 + $0x1b8] sm:$0xff] %v285_v55  ;;  %288 = vst [vmem:[%s1383_s29 + $0x1c0] sm:$0xff] %v287_v56  ;;  %v295_v60 = vld [vmem:[%s1375_s28 + $0x3a0] sm:$0xff]  ;;  %v297_v61 = vld [vmem:[%s1375_s28 + $0x3a8] sm:$0xff] }
  0x2f   : > { %290 = vst [vmem:[%s1383_s29 + $0x1c8] sm:$0xff] %v289_v57  ;;  %292 = vst [vmem:[%s1383_s29 + $0x1d0] sm:$0xff] %v291_v58  ;;  %v299_v62 = vld [vmem:[%s1375_s28 + $0x3b0] sm:$0xff]  ;;  %v301_v63 = vld [vmem:[%s1375_s28 + $0x3b8] sm:$0xff] }
  0x30   : > { %294 = vst [vmem:[%s1383_s29 + $0x1d8] sm:$0xff] %v293_v59  ;;  %296 = vst [vmem:[%s1383_s29 + $0x1e0] sm:$0xff] %v295_v60  ;;  %v303_v0 = vld [vmem:[%s1375_s28 + $0x400] sm:$0xff]  ;;  %v305_v1 = vld [vmem:[%s1375_s28 + $0x408] sm:$0xff] }
  0x31   : > { %298 = vst [vmem:[%s1383_s29 + $0x1e8] sm:$0xff] %v297_v61  ;;  %300 = vst [vmem:[%s1383_s29 + $0x1f0] sm:$0xff] %v299_v62  ;;  %v307_v2 = vld [vmem:[%s1375_s28 + $0x410] sm:$0xff]  ;;  %v309_v3 = vld [vmem:[%s1375_s28 + $0x418] sm:$0xff] }
  0x32   : > { %302 = vst [vmem:[%s1383_s29 + $0x1f8] sm:$0xff] %v301_v63  ;;  %304 = vst [vmem:[%s1383_s29 + $0x200] sm:$0xff] %v303_v0  ;;  %v311_v4 = vld [vmem:[%s1375_s28 + $0x420] sm:$0xff]  ;;  %v313_v5 = vld [vmem:[%s1375_s28 + $0x428] sm:$0xff] }
  0x33   : > { %306 = vst [vmem:[%s1383_s29 + $0x208] sm:$0xff] %v305_v1  ;;  %308 = vst [vmem:[%s1383_s29 + $0x210] sm:$0xff] %v307_v2  ;;  %v315_v6 = vld [vmem:[%s1375_s28 + $0x430] sm:$0xff]  ;;  %v317_v7 = vld [vmem:[%s1375_s28 + $0x438] sm:$0xff] }
  0x34   : > { %310 = vst [vmem:[%s1383_s29 + $0x218] sm:$0xff] %v309_v3  ;;  %312 = vst [vmem:[%s1383_s29 + $0x220] sm:$0xff] %v311_v4  ;;  %v319_v8 = vld [vmem:[%s1375_s28 + $0x480] sm:$0xff]  ;;  %v321_v9 = vld [vmem:[%s1375_s28 + $0x488] sm:$0xff] }
  0x35   : > { %314 = vst [vmem:[%s1383_s29 + $0x228] sm:$0xff] %v313_v5  ;;  %316 = vst [vmem:[%s1383_s29 + $0x230] sm:$0xff] %v315_v6  ;;  %v323_v10 = vld [vmem:[%s1375_s28 + $0x490] sm:$0xff]  ;;  %v325_v11 = vld [vmem:[%s1375_s28 + $0x498] sm:$0xff] }
  0x36   : > { %318 = vst [vmem:[%s1383_s29 + $0x238] sm:$0xff] %v317_v7  ;;  %320 = vst [vmem:[%s1383_s29 + $0x240] sm:$0xff] %v319_v8  ;;  %v327_v12 = vld [vmem:[%s1375_s28 + $0x4a0] sm:$0xff]  ;;  %v329_v13 = vld [vmem:[%s1375_s28 + $0x4a8] sm:$0xff] }
  0x37   : > { %322 = vst [vmem:[%s1383_s29 + $0x248] sm:$0xff] %v321_v9  ;;  %324 = vst [vmem:[%s1383_s29 + $0x250] sm:$0xff] %v323_v10  ;;  %v331_v14 = vld [vmem:[%s1375_s28 + $0x4b0] sm:$0xff]  ;;  %v333_v15 = vld [vmem:[%s1375_s28 + $0x4b8] sm:$0xff] }
  0x38   : > { %326 = vst [vmem:[%s1383_s29 + $0x258] sm:$0xff] %v325_v11  ;;  %328 = vst [vmem:[%s1383_s29 + $0x260] sm:$0xff] %v327_v12  ;;  %v335_v16 = vld [vmem:[%s1375_s28 + $0x500] sm:$0xff]  ;;  %v337_v17 = vld [vmem:[%s1375_s28 + $0x508] sm:$0xff] }
  0x39   : > { %330 = vst [vmem:[%s1383_s29 + $0x268] sm:$0xff] %v329_v13  ;;  %332 = vst [vmem:[%s1383_s29 + $0x270] sm:$0xff] %v331_v14  ;;  %v339_v18 = vld [vmem:[%s1375_s28 + $0x510] sm:$0xff]  ;;  %v341_v19 = vld [vmem:[%s1375_s28 + $0x518] sm:$0xff] }
  0x3a   : > { %334 = vst [vmem:[%s1383_s29 + $0x278] sm:$0xff] %v333_v15  ;;  %336 = vst [vmem:[%s1383_s29 + $0x280] sm:$0xff] %v335_v16  ;;  %v343_v20 = vld [vmem:[%s1375_s28 + $0x520] sm:$0xff]  ;;  %v345_v21 = vld [vmem:[%s1375_s28 + $0x528] sm:$0xff] }
  0x3b   : > { %338 = vst [vmem:[%s1383_s29 + $0x288] sm:$0xff] %v337_v17  ;;  %340 = vst [vmem:[%s1383_s29 + $0x290] sm:$0xff] %v339_v18  ;;  %v347_v22 = vld [vmem:[%s1375_s28 + $0x530] sm:$0xff]  ;;  %v349_v23 = vld [vmem:[%s1375_s28 + $0x538] sm:$0xff] }
  0x3c   : > { %342 = vst [vmem:[%s1383_s29 + $0x298] sm:$0xff] %v341_v19  ;;  %344 = vst [vmem:[%s1383_s29 + $0x2a0] sm:$0xff] %v343_v20  ;;  %v351_v24 = vld [vmem:[%s1375_s28 + $0x580] sm:$0xff]  ;;  %v353_v25 = vld [vmem:[%s1375_s28 + $0x588] sm:$0xff] }
  0x3d   : > { %346 = vst [vmem:[%s1383_s29 + $0x2a8] sm:$0xff] %v345_v21  ;;  %348 = vst [vmem:[%s1383_s29 + $0x2b0] sm:$0xff] %v347_v22  ;;  %v355_v26 = vld [vmem:[%s1375_s28 + $0x590] sm:$0xff]  ;;  %v357_v27 = vld [vmem:[%s1375_s28 + $0x598] sm:$0xff] }
  0x3e   : > { %350 = vst [vmem:[%s1383_s29 + $0x2b8] sm:$0xff] %v349_v23  ;;  %352 = vst [vmem:[%s1383_s29 + $0x2c0] sm:$0xff] %v351_v24  ;;  %v359_v28 = vld [vmem:[%s1375_s28 + $0x5a0] sm:$0xff]  ;;  %v361_v29 = vld [vmem:[%s1375_s28 + $0x5a8] sm:$0xff] }
  0x3f   : > { %354 = vst [vmem:[%s1383_s29 + $0x2c8] sm:$0xff] %v353_v25  ;;  %356 = vst [vmem:[%s1383_s29 + $0x2d0] sm:$0xff] %v355_v26  ;;  %v363_v30 = vld [vmem:[%s1375_s28 + $0x5b0] sm:$0xff]  ;;  %v365_v31 = vld [vmem:[%s1375_s28 + $0x5b8] sm:$0xff] }
  0x40   : > { %358 = vst [vmem:[%s1383_s29 + $0x2d8] sm:$0xff] %v357_v27  ;;  %360 = vst [vmem:[%s1383_s29 + $0x2e0] sm:$0xff] %v359_v28  ;;  %v367_v32 = vld [vmem:[%s1375_s28 + $0x600] sm:$0xff]  ;;  %v369_v33 = vld [vmem:[%s1375_s28 + $0x608] sm:$0xff] }
  0x41   : > { %362 = vst [vmem:[%s1383_s29 + $0x2e8] sm:$0xff] %v361_v29  ;;  %364 = vst [vmem:[%s1383_s29 + $0x2f0] sm:$0xff] %v363_v30  ;;  %v371_v34 = vld [vmem:[%s1375_s28 + $0x610] sm:$0xff]  ;;  %v373_v35 = vld [vmem:[%s1375_s28 + $0x618] sm:$0xff] }
  0x42   : > { %366 = vst [vmem:[%s1383_s29 + $0x2f8] sm:$0xff] %v365_v31  ;;  %368 = vst [vmem:[%s1383_s29 + $0x300] sm:$0xff] %v367_v32  ;;  %v375_v36 = vld [vmem:[%s1375_s28 + $0x620] sm:$0xff]  ;;  %v377_v37 = vld [vmem:[%s1375_s28 + $0x628] sm:$0xff] }
  0x43   : > { %370 = vst [vmem:[%s1383_s29 + $0x308] sm:$0xff] %v369_v33  ;;  %372 = vst [vmem:[%s1383_s29 + $0x310] sm:$0xff] %v371_v34  ;;  %v379_v38 = vld [vmem:[%s1375_s28 + $0x630] sm:$0xff]  ;;  %v381_v39 = vld [vmem:[%s1375_s28 + $0x638] sm:$0xff] }
  0x44   : > { %374 = vst [vmem:[%s1383_s29 + $0x318] sm:$0xff] %v373_v35  ;;  %376 = vst [vmem:[%s1383_s29 + $0x320] sm:$0xff] %v375_v36  ;;  %v383_v40 = vld [vmem:[%s1375_s28 + $0x680] sm:$0xff]  ;;  %v385_v41 = vld [vmem:[%s1375_s28 + $0x688] sm:$0xff] }
  0x45   : > { %378 = vst [vmem:[%s1383_s29 + $0x328] sm:$0xff] %v377_v37  ;;  %380 = vst [vmem:[%s1383_s29 + $0x330] sm:$0xff] %v379_v38  ;;  %v387_v42 = vld [vmem:[%s1375_s28 + $0x690] sm:$0xff]  ;;  %v389_v43 = vld [vmem:[%s1375_s28 + $0x698] sm:$0xff] }
  0x46   : > { %382 = vst [vmem:[%s1383_s29 + $0x338] sm:$0xff] %v381_v39  ;;  %384 = vst [vmem:[%s1383_s29 + $0x340] sm:$0xff] %v383_v40  ;;  %v391_v44 = vld [vmem:[%s1375_s28 + $0x6a0] sm:$0xff]  ;;  %v393_v45 = vld [vmem:[%s1375_s28 + $0x6a8] sm:$0xff] }
  0x47   : > { %386 = vst [vmem:[%s1383_s29 + $0x348] sm:$0xff] %v385_v41  ;;  %388 = vst [vmem:[%s1383_s29 + $0x350] sm:$0xff] %v387_v42  ;;  %v395_v46 = vld [vmem:[%s1375_s28 + $0x6b0] sm:$0xff]  ;;  %v397_v47 = vld [vmem:[%s1375_s28 + $0x6b8] sm:$0xff] }
  0x48   : > { %390 = vst [vmem:[%s1383_s29 + $0x358] sm:$0xff] %v389_v43  ;;  %392 = vst [vmem:[%s1383_s29 + $0x360] sm:$0xff] %v391_v44  ;;  %v399_v48 = vld [vmem:[%s1375_s28 + $0x700] sm:$0xff]  ;;  %v401_v49 = vld [vmem:[%s1375_s28 + $0x708] sm:$0xff] }
  0x49   : > { %394 = vst [vmem:[%s1383_s29 + $0x368] sm:$0xff] %v393_v45  ;;  %396 = vst [vmem:[%s1383_s29 + $0x370] sm:$0xff] %v395_v46  ;;  %v403_v50 = vld [vmem:[%s1375_s28 + $0x710] sm:$0xff]  ;;  %v405_v51 = vld [vmem:[%s1375_s28 + $0x718] sm:$0xff] }
  0x4a   : > { %398 = vst [vmem:[%s1383_s29 + $0x378] sm:$0xff] %v397_v47  ;;  %400 = vst [vmem:[%s1383_s29 + $0x380] sm:$0xff] %v399_v48  ;;  %v407_v52 = vld [vmem:[%s1375_s28 + $0x720] sm:$0xff]  ;;  %v409_v53 = vld [vmem:[%s1375_s28 + $0x728] sm:$0xff] }
  0x4b   : > { %402 = vst [vmem:[%s1383_s29 + $0x388] sm:$0xff] %v401_v49  ;;  %404 = vst [vmem:[%s1383_s29 + $0x390] sm:$0xff] %v403_v50  ;;  %v411_v54 = vld [vmem:[%s1375_s28 + $0x730] sm:$0xff]  ;;  %v413_v55 = vld [vmem:[%s1375_s28 + $0x738] sm:$0xff] }
  0x4c   : > { %406 = vst [vmem:[%s1383_s29 + $0x398] sm:$0xff] %v405_v51  ;;  %408 = vst [vmem:[%s1383_s29 + $0x3a0] sm:$0xff] %v407_v52  ;;  %v415_v56 = vld [vmem:[%s1375_s28 + $0x780] sm:$0xff]  ;;  %v417_v57 = vld [vmem:[%s1375_s28 + $0x788] sm:$0xff] }
  0x4d   : > { %410 = vst [vmem:[%s1383_s29 + $0x3a8] sm:$0xff] %v409_v53  ;;  %412 = vst [vmem:[%s1383_s29 + $0x3b0] sm:$0xff] %v411_v54  ;;  %v419_v58 = vld [vmem:[%s1375_s28 + $0x790] sm:$0xff]  ;;  %v421_v59 = vld [vmem:[%s1375_s28 + $0x798] sm:$0xff] }
  0x4e   : > { %414 = vst [vmem:[%s1383_s29 + $0x3b8] sm:$0xff] %v413_v55  ;;  %416 = vst [vmem:[%s1383_s29 + $0x3c0] sm:$0xff] %v415_v56  ;;  %v423_v60 = vld [vmem:[%s1375_s28 + $0x7a0] sm:$0xff]  ;;  %v425_v61 = vld [vmem:[%s1375_s28 + $0x7a8] sm:$0xff] }
  0x4f   : > { %418 = vst [vmem:[%s1383_s29 + $0x3c8] sm:$0xff] %v417_v57  ;;  %420 = vst [vmem:[%s1383_s29 + $0x3d0] sm:$0xff] %v419_v58  ;;  %v427_v62 = vld [vmem:[%s1375_s28 + $0x7b0] sm:$0xff]  ;;  %v429_v63 = vld [vmem:[%s1375_s28 + $0x7b8] sm:$0xff] }
  0x50   : > { %422 = vst [vmem:[%s1383_s29 + $0x3d8] sm:$0xff] %v421_v59  ;;  %424 = vst [vmem:[%s1383_s29 + $0x3e0] sm:$0xff] %v423_v60  ;;  %v431_v0 = vld [vmem:[%s1375_s28 + $0x800] sm:$0xff]  ;;  %v433_v1 = vld [vmem:[%s1375_s28 + $0x808] sm:$0xff] }
  0x51   : > { %426 = vst [vmem:[%s1383_s29 + $0x3e8] sm:$0xff] %v425_v61  ;;  %428 = vst [vmem:[%s1383_s29 + $0x3f0] sm:$0xff] %v427_v62  ;;  %v435_v2 = vld [vmem:[%s1375_s28 + $0x810] sm:$0xff]  ;;  %v437_v3 = vld [vmem:[%s1375_s28 + $0x818] sm:$0xff] }
  0x52   : > { %430 = vst [vmem:[%s1383_s29 + $0x3f8] sm:$0xff] %v429_v63  ;;  %432 = vst [vmem:[%s1383_s29 + $0x400] sm:$0xff] %v431_v0  ;;  %v439_v4 = vld [vmem:[%s1375_s28 + $0x820] sm:$0xff]  ;;  %v441_v5 = vld [vmem:[%s1375_s28 + $0x828] sm:$0xff] }
  0x53   : > { %434 = vst [vmem:[%s1383_s29 + $0x408] sm:$0xff] %v433_v1  ;;  %436 = vst [vmem:[%s1383_s29 + $0x410] sm:$0xff] %v435_v2  ;;  %v443_v6 = vld [vmem:[%s1375_s28 + $0x830] sm:$0xff]  ;;  %v445_v7 = vld [vmem:[%s1375_s28 + $0x838] sm:$0xff] }
  0x54   : > { %438 = vst [vmem:[%s1383_s29 + $0x418] sm:$0xff] %v437_v3  ;;  %440 = vst [vmem:[%s1383_s29 + $0x420] sm:$0xff] %v439_v4  ;;  %v447_v8 = vld [vmem:[%s1375_s28 + $0x880] sm:$0xff]  ;;  %v449_v9 = vld [vmem:[%s1375_s28 + $0x888] sm:$0xff] }
  0x55   : > { %442 = vst [vmem:[%s1383_s29 + $0x428] sm:$0xff] %v441_v5  ;;  %444 = vst [vmem:[%s1383_s29 + $0x430] sm:$0xff] %v443_v6  ;;  %v451_v10 = vld [vmem:[%s1375_s28 + $0x890] sm:$0xff]  ;;  %v453_v11 = vld [vmem:[%s1375_s28 + $0x898] sm:$0xff] }
  0x56   : > { %446 = vst [vmem:[%s1383_s29 + $0x438] sm:$0xff] %v445_v7  ;;  %448 = vst [vmem:[%s1383_s29 + $0x440] sm:$0xff] %v447_v8  ;;  %v455_v12 = vld [vmem:[%s1375_s28 + $0x8a0] sm:$0xff]  ;;  %v457_v13 = vld [vmem:[%s1375_s28 + $0x8a8] sm:$0xff] }
  0x57   : > { %450 = vst [vmem:[%s1383_s29 + $0x448] sm:$0xff] %v449_v9  ;;  %452 = vst [vmem:[%s1383_s29 + $0x450] sm:$0xff] %v451_v10  ;;  %v459_v14 = vld [vmem:[%s1375_s28 + $0x8b0] sm:$0xff]  ;;  %v461_v15 = vld [vmem:[%s1375_s28 + $0x8b8] sm:$0xff] }
  0x58   : > { %454 = vst [vmem:[%s1383_s29 + $0x458] sm:$0xff] %v453_v11  ;;  %456 = vst [vmem:[%s1383_s29 + $0x460] sm:$0xff] %v455_v12  ;;  %v463_v16 = vld [vmem:[%s1375_s28 + $0x900] sm:$0xff]  ;;  %v465_v17 = vld [vmem:[%s1375_s28 + $0x908] sm:$0xff] }
  0x59   : > { %458 = vst [vmem:[%s1383_s29 + $0x468] sm:$0xff] %v457_v13  ;;  %460 = vst [vmem:[%s1383_s29 + $0x470] sm:$0xff] %v459_v14  ;;  %v467_v18 = vld [vmem:[%s1375_s28 + $0x910] sm:$0xff]  ;;  %v469_v19 = vld [vmem:[%s1375_s28 + $0x918] sm:$0xff] }
  0x5a   : > { %462 = vst [vmem:[%s1383_s29 + $0x478] sm:$0xff] %v461_v15  ;;  %464 = vst [vmem:[%s1383_s29 + $0x480] sm:$0xff] %v463_v16  ;;  %v471_v20 = vld [vmem:[%s1375_s28 + $0x920] sm:$0xff]  ;;  %v473_v21 = vld [vmem:[%s1375_s28 + $0x928] sm:$0xff] }
  0x5b   : > { %466 = vst [vmem:[%s1383_s29 + $0x488] sm:$0xff] %v465_v17  ;;  %468 = vst [vmem:[%s1383_s29 + $0x490] sm:$0xff] %v467_v18  ;;  %v475_v22 = vld [vmem:[%s1375_s28 + $0x930] sm:$0xff]  ;;  %v477_v23 = vld [vmem:[%s1375_s28 + $0x938] sm:$0xff] }
  0x5c   : > { %470 = vst [vmem:[%s1383_s29 + $0x498] sm:$0xff] %v469_v19  ;;  %472 = vst [vmem:[%s1383_s29 + $0x4a0] sm:$0xff] %v471_v20 }
  0x5d   : > { %474 = vst [vmem:[%s1383_s29 + $0x4a8] sm:$0xff] %v473_v21  ;;  %476 = vst [vmem:[%s1383_s29 + $0x4b0] sm:$0xff] %v475_v22 }
  0x5e   : > { %478 = vst [vmem:[%s1383_s29 + $0x4b8] sm:$0xff] %v477_v23 }
  0x5f PF: > { %p1101_p5 = scmp.ge.s32.totalorder %s1313_s17, 1  ;;  %p483_p6 = scmp.lt.s32.totalorder %s1313_s17, 3 }
  0x61   : > { %p484_p7 = pnand %p1101_p5, %p483_p6 }
  0x62   : > { %s490_s30 = sand.u32 (!%p484_p7), 1, %s1305_s15   ;;  %v1689_v24 = vld [vmem:[%s1901_s0 + $0x8] sm:$0xff] (!%p484_p7)  ;;  %vm676_vm0 = vcmask (!%p484_p7), 154624   ;;  %v989_v25 = vld [vmem:[%s1903_s2] sm:$0xff] (!%p484_p7)  ;;  %v1315_v26 = vmov (!%p484_p7), 0   ;;  %vm680_vm1 = vcmask (!%p484_p7), 1042432  }
  0x63   : > { %487 = sbr.rel (%p484_p7) target bundleno = 405 (0x195), region = 55  ;;  %1106 = vmatprep.mubr.msk.f32.mxu0 (!%p484_p7), %vm676_vm0, %v1689_v24  ;;  %1109 = vmatprep.mubr.msk.f32.mxu1 (!%p484_p7), %vm676_vm0, %v1689_v24  ;;  %v1003_v27 = vld [vmem:[%s1904_s3] sm:$0xff] (!%p484_p7)  ;;  %s1102_s15 = sshll.u32 (!%p484_p7), %s1095_s18, 3 }
  0x64   : > { %s1264_s7 = smul.u32 (!%p484_p7), 1216, %s490_s30  ;;  %1290 = vset.pattern.permute.xlu0 (!%p484_p7), %v1315_v26  ;;  %p517_p8 = scmp.lt.s32.totalorder (!%p484_p7), %s1102_s15, 15 }
  0x65   : > { %992 = vperm.xlu0 (!%p484_p7), %1290, %v989_v25  }
  0x66   : > { %s1701_s12 = scalar_lea.vmem (!%p484_p7), [#allocation2], %s1264_s7 }
  0x67   : > { %v525_v28 = vld [vmem:[%s1701_s12 + $0x8] sm:$0xff] (!%p484_p7)  ;;  %v527_v30 = vld [vmem:[%s1701_s12 + $0x18] sm:$0xff] (!%p484_p7)  ;;  %v524_v33 = vld [vmem:[%s1701_s12] sm:$0xff] (!%p484_p7) }
  0x68   : > { %v533_v29 = vld [vmem:[%s1701_s12 + $0x48] sm:$0xff] (!%p484_p7)  ;;  %v535_v32 = vld [vmem:[%s1701_s12 + $0x58] sm:$0xff] (!%p484_p7)  ;;  %v532_v34 = vld [vmem:[%s1701_s12 + $0x40] sm:$0xff] (!%p484_p7) }
  0x69   : > { %v1119_v31 = vpack.c.bf16 (!%p484_p7), %v533_v29, %v525_v28  ;;  %v1155_v35 = vpack.c.bf16 (!%p484_p7), %v535_v32, %v527_v30  ;;  %v1121_v36 = vpack.c.bf16 (!%p484_p7), %v532_v34, %v524_v33  ;;  %v526_v37 = vld [vmem:[%s1701_s12 + $0x10] sm:$0xff] (!%p484_p7)  ;;  %v541_v39 = vld [vmem:[%s1701_s12 + $0x88] sm:$0xff] (!%p484_p7)  ;;  %v543_v42 = vld [vmem:[%s1701_s12 + $0x98] sm:$0xff] (!%p484_p7)  ;;  %1006 = vperm.xlu0 (!%p484_p7), %1290, %v1003_v27  }
  0x6a   : > { %v534_v38 = vld [vmem:[%s1701_s12 + $0x50] sm:$0xff]  ;;  %v549_v41 = vld [vmem:[%s1701_s12 + $0xc8] sm:$0xff]  ;;  %v551_v43 = vld [vmem:[%s1701_s12 + $0xd8] sm:$0xff]  ;;  %s1910_s15 = smov (!%p517_p8, %s1102_s15), 15 }
  0x6b   : > { %1120 = vmatprep.subr.bf16.mxu0 %v1119_v31  ;;  %v1157_v40 = vpack.c.bf16 %v534_v38, %v526_v37  ;;  %1156 = vmatprep.subr.bf16.mxu1 %v1155_v35  ;;  %v1123_v44 = vpack.c.bf16 %v549_v41, %v541_v39  ;;  %v1159_v45 = vpack.c.bf16 %v551_v43, %v543_v42  ;;  %v540_v46 = vld [vmem:[%s1701_s12 + $0x80] sm:$0xff]  ;;  %v542_v48 = vld [vmem:[%s1701_s12 + $0x90] sm:$0xff]  ;;  %v557_v51 = vld [vmem:[%s1701_s12 + $0x108] sm:$0xff]  ;;  %s1103_s20 = sshll.u32 %s1910_s15, 3 }
  0x6c   : > { %1122 = vmatpush1.bf16.msra.mxu0 %v1121_v36  ;;  %v548_v47 = vld [vmem:[%s1701_s12 + $0xc0] sm:$0xff]  ;;  %v550_v50 = vld [vmem:[%s1701_s12 + $0xd0] sm:$0xff]  ;;  %v565_v52 = vld [vmem:[%s1701_s12 + $0x148] sm:$0xff]  ;;  %s1881_s24 = scalar_lea.vmem %s1905_s4, %s1103_s20 }
  0x6d   : > { %1158 = vmatpush1.bf16.msra.mxu1 %v1157_v40  ;;  %v1125_v49 = vpack.c.bf16 %v548_v47, %v540_v46  ;;  %1124 = vmatprep.subr.bf16.mxu0 %v1123_v44  ;;  %v1161_v53 = vpack.c.bf16 %v550_v50, %v542_v48  ;;  %v1127_v54 = vpack.c.bf16 %v565_v52, %v557_v51  ;;  %v559_v55 = vld [vmem:[%s1701_s12 + $0x118] sm:$0xff]  ;;  %v556_v57 = vld [vmem:[%s1701_s12 + $0x100] sm:$0xff]  ;;  %v558_v60 = vld [vmem:[%s1701_s12 + $0x110] sm:$0xff] }
  0x6e   : > { %1160 = vmatprep.subr.bf16.mxu1 %v1159_v45  ;;  %v567_v56 = vld [vmem:[%s1701_s12 + $0x158] sm:$0xff]  ;;  %v564_v59 = vld [vmem:[%s1701_s12 + $0x140] sm:$0xff]  ;;  %v566_v61 = vld [vmem:[%s1701_s12 + $0x150] sm:$0xff] }
  0x6f   : > { %v1163_v58 = vpack.c.bf16 %v567_v56, %v559_v55  ;;  %v1129_v62 = vpack.c.bf16 %v564_v59, %v556_v57  ;;  %v573_v63 = vld [vmem:[%s1701_s12 + $0x188] sm:$0xff]  ;;  %v575_v1 = vld [vmem:[%s1701_s12 + $0x198] sm:$0xff]  ;;  %v1165_v2 = vpack.c.bf16 %v566_v61, %v558_v60  ;;  %v572_v5 = vld [vmem:[%s1701_s12 + $0x180] sm:$0xff] }
  0x70   : > { %1126 = vmatpush1.bf16.msra.mxu0 %v1125_v49  ;;  %v581_v0 = vld [vmem:[%s1701_s12 + $0x1c8] sm:$0xff]  ;;  %v583_v4 = vld [vmem:[%s1701_s12 + $0x1d8] sm:$0xff]  ;;  %v580_v6 = vld [vmem:[%s1701_s12 + $0x1c0] sm:$0xff] }
  0x71   : > { %1162 = vmatpush1.bf16.msra.mxu1 %v1161_v53  ;;  %1128 = vmatprep.subr.bf16.mxu0 %v1127_v54  ;;  %v1131_v3 = vpack.c.bf16 %v581_v0, %v573_v63  ;;  %v1167_v7 = vpack.c.bf16 %v583_v4, %v575_v1  ;;  %v574_v8 = vld [vmem:[%s1701_s12 + $0x190] sm:$0xff]  ;;  %v589_v10 = vld [vmem:[%s1701_s12 + $0x208] sm:$0xff]  ;;  %v591_v12 = vld [vmem:[%s1701_s12 + $0x218] sm:$0xff]  ;;  %v1133_v14 = vpack.c.bf16 %v580_v6, %v572_v5 }
  0x72   : > { %1164 = vmatprep.subr.bf16.mxu1 %v1163_v58  ;;  %v582_v9 = vld [vmem:[%s1701_s12 + $0x1d0] sm:$0xff]  ;;  %v597_v11 = vld [vmem:[%s1701_s12 + $0x248] sm:$0xff]  ;;  %v599_v13 = vld [vmem:[%s1701_s12 + $0x258] sm:$0xff] }
  0x73   : > { %v1169_v15 = vpack.c.bf16 %v582_v9, %v574_v8  ;;  %v1135_v16 = vpack.c.bf16 %v597_v11, %v589_v10  ;;  %v588_v17 = vld [vmem:[%s1701_s12 + $0x200] sm:$0xff]  ;;  %v590_v19 = vld [vmem:[%s1701_s12 + $0x210] sm:$0xff]  ;;  %v1171_v20 = vpack.c.bf16 %v599_v13, %v591_v12  ;;  %v605_v22 = vld [vmem:[%s1701_s12 + $0x288] sm:$0xff] }
  0x74   : > { %1130 = vmatpush1.bf16.msra.mxu0 %v1129_v62  ;;  %v596_v18 = vld [vmem:[%s1701_s12 + $0x240] sm:$0xff]  ;;  %v598_v21 = vld [vmem:[%s1701_s12 + $0x250] sm:$0xff]  ;;  %v613_v23 = vld [vmem:[%s1701_s12 + $0x2c8] sm:$0xff] }
  0x75   : > { %1166 = vmatpush1.bf16.msra.mxu1 %v1165_v2  ;;  %1132 = vmatprep.subr.bf16.mxu0 %v1131_v3  ;;  %v607_v25 = vld [vmem:[%s1701_s12 + $0x298] sm:$0xff]  ;;  %v1137_v27 = vpack.c.bf16 %v596_v18, %v588_v17  ;;  %v1173_v28 = vpack.c.bf16 %v598_v21, %v590_v19  ;;  %v1139_v29 = vpack.c.bf16 %v613_v23, %v605_v22  ;;  %v604_v30 = vld [vmem:[%s1701_s12 + $0x280] sm:$0xff]  ;;  %v606_v32 = vld [vmem:[%s1701_s12 + $0x290] sm:$0xff] }
  0x76   : > { %1168 = vmatprep.subr.bf16.mxu1 %v1167_v7  ;;  %v615_v26 = vld [vmem:[%s1701_s12 + $0x2d8] sm:$0xff]  ;;  %v612_v31 = vld [vmem:[%s1701_s12 + $0x2c0] sm:$0xff]  ;;  %v614_v34 = vld [vmem:[%s1701_s12 + $0x2d0] sm:$0xff] }
  0x77   : > { %v1175_v33 = vpack.c.bf16 %v615_v26, %v607_v25  ;;  %v621_v35 = vld [vmem:[%s1701_s12 + $0x308] sm:$0xff]  ;;  %v623_v37 = vld [vmem:[%s1701_s12 + $0x318] sm:$0xff]  ;;  %v1141_v39 = vpack.c.bf16 %v612_v31, %v604_v30  ;;  %v1177_v40 = vpack.c.bf16 %v614_v34, %v606_v32  ;;  %v620_v42 = vld [vmem:[%s1701_s12 + $0x300] sm:$0xff] }
  0x78   : > { %1134 = vmatpush1.bf16.msra.mxu0 %v1133_v14  ;;  %v629_v36 = vld [vmem:[%s1701_s12 + $0x348] sm:$0xff]  ;;  %v631_v38 = vld [vmem:[%s1701_s12 + $0x358] sm:$0xff]  ;;  %v628_v43 = vld [vmem:[%s1701_s12 + $0x340] sm:$0xff] }
  0x79   : > { %1170 = vmatpush1.bf16.msra.mxu1 %v1169_v15  ;;  %1136 = vmatprep.subr.bf16.mxu0 %v1135_v16  ;;  %v1143_v41 = vpack.c.bf16 %v629_v36, %v621_v35  ;;  %v622_v44 = vld [vmem:[%s1701_s12 + $0x310] sm:$0xff]  ;;  %v1179_v45 = vpack.c.bf16 %v631_v38, %v623_v37  ;;  %v637_v47 = vld [vmem:[%s1701_s12 + $0x388] sm:$0xff]  ;;  %v639_v49 = vld [vmem:[%s1701_s12 + $0x398] sm:$0xff]  ;;  %v1145_v51 = vpack.c.bf16 %v628_v43, %v620_v42 }
  0x7a   : > { %1172 = vmatprep.subr.bf16.mxu1 %v1171_v20  ;;  %v630_v46 = vld [vmem:[%s1701_s12 + $0x350] sm:$0xff]  ;;  %v645_v48 = vld [vmem:[%s1701_s12 + $0x3c8] sm:$0xff]  ;;  %v647_v50 = vld [vmem:[%s1701_s12 + $0x3d8] sm:$0xff] }
  0x7b   : > { %v1181_v52 = vpack.c.bf16 %v630_v46, %v622_v44  ;;  %v1147_v53 = vpack.c.bf16 %v645_v48, %v637_v47  ;;  %v636_v54 = vld [vmem:[%s1701_s12 + $0x380] sm:$0xff]  ;;  %v638_v56 = vld [vmem:[%s1701_s12 + $0x390] sm:$0xff]  ;;  %v1183_v57 = vpack.c.bf16 %v647_v50, %v639_v49  ;;  %v653_v59 = vld [vmem:[%s1701_s12 + $0x408] sm:$0xff] }
  0x7c   : > { %1138 = vmatpush1.bf16.msra.mxu0 %v1137_v27  ;;  %v644_v55 = vld [vmem:[%s1701_s12 + $0x3c0] sm:$0xff]  ;;  %v646_v58 = vld [vmem:[%s1701_s12 + $0x3d0] sm:$0xff]  ;;  %v661_v60 = vld [vmem:[%s1701_s12 + $0x448] sm:$0xff] }
  0x7d   : > { %1174 = vmatpush1.bf16.msra.mxu1 %v1173_v28  ;;  %1140 = vmatprep.subr.bf16.mxu0 %v1139_v29  ;;  %v655_v61 = vld [vmem:[%s1701_s12 + $0x418] sm:$0xff]  ;;  %v1149_v63 = vpack.c.bf16 %v644_v55, %v636_v54  ;;  %v1185_v0 = vpack.c.bf16 %v646_v58, %v638_v56  ;;  %v1151_v1 = vpack.c.bf16 %v661_v60, %v653_v59  ;;  %v652_v2 = vld [vmem:[%s1701_s12 + $0x400] sm:$0xff]  ;;  %v654_v5 = vld [vmem:[%s1701_s12 + $0x410] sm:$0xff] }
  0x7e   : > { %1176 = vmatprep.subr.bf16.mxu1 %v1175_v33  ;;  %v663_v62 = vld [vmem:[%s1701_s12 + $0x458] sm:$0xff]  ;;  %v660_v3 = vld [vmem:[%s1701_s12 + $0x440] sm:$0xff]  ;;  %v662_v6 = vld [vmem:[%s1701_s12 + $0x450] sm:$0xff] }
  0x7f   : > { %v1187_v4 = vpack.c.bf16 %v663_v62, %v655_v61  ;;  %v1153_v7 = vpack.c.bf16 %v660_v3, %v652_v2  ;;  %v1189_v8 = vpack.c.bf16 %v662_v6, %v654_v5  ;;  %v669_v9 = vld [vmem:[%s1701_s12 + $0x488] sm:$0x7]  ;;  %v671_v10 = vld [vmem:[%s1701_s12 + $0x498] sm:$0x7]  ;;  %v668_v12 = vld [vmem:[%s1701_s12 + $0x480] sm:$0x7] }
  0x80   : > { %1142 = vmatpush1.bf16.msra.mxu0 %v1141_v39  ;;  %v529_v11 = vld [vmem:[%s1701_s12 + $0x28] sm:$0xff]  ;;  %v531_v14 = vld [vmem:[%s1701_s12 + $0x38] sm:$0xff]  ;;  %v1785_v16 = vld [vmem:[%s1901_s0] sm:$0xff] }
  0x81   : > { %1178 = vmatpush1.bf16.msra.mxu1 %v1177_v40  ;;  %1144 = vmatprep.subr.bf16.mxu0 %v1143_v41  ;;  %v537_v13 = vld [vmem:[%s1701_s12 + $0x68] sm:$0xff]  ;;  %v539_v15 = vld [vmem:[%s1701_s12 + $0x78] sm:$0xff]  ;;  %v528_v17 = vld [vmem:[%s1701_s12 + $0x20] sm:$0xff] }
  0x82   : > { %1180 = vmatprep.subr.bf16.mxu1 %v1179_v45  ;;  %v536_v18 = vld [vmem:[%s1701_s12 + $0x60] sm:$0xff]  ;;  %v530_v19 = vld [vmem:[%s1701_s12 + $0x30] sm:$0xff]  ;;  %v545_v21 = vld [vmem:[%s1701_s12 + $0xa8] sm:$0xff]  ;;  %v1191_v25 = vpack.c.bf16 %v537_v13, %v529_v11  ;;  %v1227_v28 = vpack.c.bf16 %v539_v15, %v531_v14 }
  0x83   : > { %v538_v20 = vld [vmem:[%s1701_s12 + $0x70] sm:$0xff]  ;;  %v553_v22 = vld [vmem:[%s1701_s12 + $0xe8] sm:$0xff]  ;;  %v547_v26 = vld [vmem:[%s1701_s12 + $0xb8] sm:$0xff]  ;;  %v1193_v29 = vpack.c.bf16 %v536_v18, %v528_v17 }
  0x84   : > { %1146 = vmatpush1.bf16.msra.mxu0 %v1145_v51  ;;  %v670_v23 = vld [vmem:[%s1701_s12 + $0x490] sm:$0x7]  ;;  %v555_v27 = vld [vmem:[%s1701_s12 + $0xf8] sm:$0xff]  ;;  %v1229_v30 = vpack.c.bf16 %v538_v20, %v530_v19  ;;  %v1195_v31 = vpack.c.bf16 %v553_v22, %v545_v21  ;;  %v544_v32 = vld [vmem:[%s1701_s12 + $0xa0] sm:$0xff] }
  0x85   : > { %1182 = vmatpush1.bf16.msra.mxu1 %v1181_v52  ;;  %1148 = vmatprep.subr.bf16.mxu0 %v1147_v53  ;;  %v552_v33 = vld [vmem:[%s1701_s12 + $0xe0] sm:$0xff]  ;;  %v546_v34 = vld [vmem:[%s1701_s12 + $0xb0] sm:$0xff]  ;;  %v1231_v35 = vpack.c.bf16 %v555_v27, %v547_v26  ;;  %v561_v37 = vld [vmem:[%s1701_s12 + $0x128] sm:$0xff] }
  0x86   : > { %1184 = vmatprep.subr.bf16.mxu1 %v1183_v57  ;;  %v554_v36 = vld [vmem:[%s1701_s12 + $0xf0] sm:$0xff]  ;;  %v569_v38 = vld [vmem:[%s1701_s12 + $0x168] sm:$0xff]  ;;  %v563_v39 = vld [vmem:[%s1701_s12 + $0x138] sm:$0xff]  ;;  %v1197_v41 = vpack.c.bf16 %v552_v33, %v544_v32 }
  0x87   : > { %v571_v40 = vld [vmem:[%s1701_s12 + $0x178] sm:$0xff]  ;;  %v1233_v42 = vpack.c.bf16 %v554_v36, %v546_v34  ;;  %v1199_v43 = vpack.c.bf16 %v569_v38, %v561_v37  ;;  %v560_v44 = vld [vmem:[%s1701_s12 + $0x120] sm:$0xff]  ;;  %v562_v46 = vld [vmem:[%s1701_s12 + $0x130] sm:$0xff] }
  0x88   : > { %1150 = vmatpush1.bf16.msra.mxu0 %v1149_v63  ;;  %v568_v45 = vld [vmem:[%s1701_s12 + $0x160] sm:$0xff]  ;;  %v1235_v47 = vpack.c.bf16 %v571_v40, %v563_v39  ;;  %v570_v48 = vld [vmem:[%s1701_s12 + $0x170] sm:$0xff]  ;;  %v577_v49 = vld [vmem:[%s1701_s12 + $0x1a8] sm:$0xff] }
  0x89   : > { %1186 = vmatpush1.bf16.msra.mxu1 %v1185_v0  ;;  %1152 = vmatprep.subr.bf16.mxu0 %v1151_v1  ;;  %v585_v50 = vld [vmem:[%s1701_s12 + $0x1e8] sm:$0xff]  ;;  %v579_v51 = vld [vmem:[%s1701_s12 + $0x1b8] sm:$0xff]  ;;  %v1201_v53 = vpack.c.bf16 %v568_v45, %v560_v44  ;;  %v1237_v54 = vpack.c.bf16 %v570_v48, %v562_v46  ;;  %v576_v56 = vld [vmem:[%s1701_s12 + $0x1a0] sm:$0xff] }
  0x8a   : > { %1188 = vmatprep.subr.bf16.mxu1 %v1187_v4  ;;  %v587_v52 = vld [vmem:[%s1701_s12 + $0x1f8] sm:$0xff]  ;;  %v1203_v55 = vpack.c.bf16 %v585_v50, %v577_v49  ;;  %v584_v57 = vld [vmem:[%s1701_s12 + $0x1e0] sm:$0xff]  ;;  %v578_v58 = vld [vmem:[%s1701_s12 + $0x1b0] sm:$0xff] }
  0x8b   : > { %v1239_v59 = vpack.c.bf16 %v587_v52, %v579_v51  ;;  %v586_v60 = vld [vmem:[%s1701_s12 + $0x1f0] sm:$0xff]  ;;  %v593_v61 = vld [vmem:[%s1701_s12 + $0x228] sm:$0xff]  ;;  %v595_v62 = vld [vmem:[%s1701_s12 + $0x238] sm:$0xff]  ;;  %v1205_v0 = vpack.c.bf16 %v584_v57, %v576_v56 }
  0x8c   : > { %1154 = vmatpush1.bf16.msra.mxu0 %v1153_v7  ;;  %v603_v63 = vld [vmem:[%s1701_s12 + $0x278] sm:$0xff]  ;;  %v1241_v1 = vpack.c.bf16 %v586_v60, %v578_v58  ;;  %v592_v3 = vld [vmem:[%s1701_s12 + $0x220] sm:$0xff]  ;;  %v594_v5 = vld [vmem:[%s1701_s12 + $0x230] sm:$0xff] }
  0x8d   : > { %1190 = vmatpush1.bf16.msra.mxu1 %v1189_v8  ;;  %1104 = vmatprep.subr.msk.mxu0 %vm680_vm1, %v669_v9  ;;  %v600_v4 = vld [vmem:[%s1701_s12 + $0x260] sm:$0xff]  ;;  %v1243_v6 = vpack.c.bf16 %v603_v63, %v595_v62  ;;  %v602_v7 = vld [vmem:[%s1701_s12 + $0x270] sm:$0xff]  ;;  %v609_v8 = vld [vmem:[%s1701_s12 + $0x2a8] sm:$0xff] }
  0x8e   : > { %1107 = vmatprep.subr.msk.mxu1 %vm680_vm1, %v671_v10  ;;  %v617_v9 = vld [vmem:[%s1701_s12 + $0x2e8] sm:$0xff]  ;;  %v611_v10 = vld [vmem:[%s1701_s12 + $0x2b8] sm:$0xff]  ;;  %v1245_v13 = vpack.c.bf16 %v602_v7, %v594_v5  ;;  %v608_v15 = vld [vmem:[%s1701_s12 + $0x2a0] sm:$0xff] }
  0x8f   : > { %v619_v11 = vld [vmem:[%s1701_s12 + $0x2f8] sm:$0xff]  ;;  %v1211_v14 = vpack.c.bf16 %v617_v9, %v609_v8  ;;  %v616_v17 = vld [vmem:[%s1701_s12 + $0x2e0] sm:$0xff]  ;;  %v610_v18 = vld [vmem:[%s1701_s12 + $0x2b0] sm:$0xff] }
  0x90   : > { %1105 = vmatpush1.msk.msra.mxu0 %vm680_vm1, %v668_v12  ;;  %v1209_v12 = vpack.c.bf16 %v600_v4, %v592_v3  ;;  %v1247_v19 = vpack.c.bf16 %v619_v11, %v611_v10  ;;  %v618_v20 = vld [vmem:[%s1701_s12 + $0x2f0] sm:$0xff]  ;;  %v625_v21 = vld [vmem:[%s1701_s12 + $0x328] sm:$0xff]  ;;  %v1213_v26 = vpack.c.bf16 %v616_v17, %v608_v15  ;;  %v643_v36 = vld [vmem:[%s1701_s12 + $0x3b8] sm:$0xff] }
  0x91   : > { %1108 = vmatpush1.msk.msra.mxu1 %vm680_vm1, %v670_v23  ;;  %770 = vmatmul.mubr.f32.vlgmr.msra.gmra.mrb[0].mxu0 %v1785_v16  ;;  %v633_v22 = vld [vmem:[%s1701_s12 + $0x368] sm:$0xff]  ;;  %v627_v23 = vld [vmem:[%s1701_s12 + $0x338] sm:$0xff]  ;;  %v1249_v27 = vpack.c.bf16 %v618_v20, %v610_v18  ;;  %v634_v33 = vld [vmem:[%s1701_s12 + $0x370] sm:$0xff] }
  0x92   : > { %841 = vmatmul.mubr.f32.vlgmr.msra.gmra.mrb[0].mxu1 %v1785_v16  ;;  %1192 = vmatprep.subr.bf16.mxu0 %v1191_v25  ;;  %v635_v25 = vld [vmem:[%s1701_s12 + $0x378] sm:$0xff]  ;;  %v641_v34 = vld [vmem:[%s1701_s12 + $0x3a8] sm:$0xff]  ;;  %v650_v45 = vld [vmem:[%s1701_s12 + $0x3f0] sm:$0xff] }
  0x93   : > { %1228 = vmatprep.subr.bf16.mxu1 %v1227_v28  ;;  %1194 = vmatpush1.bf16.msra.mxu0 %v1193_v29  ;;  %v1215_v28 = vpack.c.bf16 %v633_v22, %v625_v21  ;;  %v624_v29 = vld [vmem:[%s1701_s12 + $0x320] sm:$0xff]  ;;  %v1251_v32 = vpack.c.bf16 %v635_v25, %v627_v23  ;;  %v651_v37 = vld [vmem:[%s1701_s12 + $0x3f8] sm:$0xff]  ;;  %v657_v46 = vld [vmem:[%s1701_s12 + $0x428] sm:$0xff] }
  0x94   : > { %1230 = vmatpush1.bf16.msra.mxu1 %v1229_v30  ;;  %1196 = vmatprep.subr.bf16.mxu0 %v1195_v31  ;;  %v632_v30 = vld [vmem:[%s1701_s12 + $0x360] sm:$0xff]  ;;  %v626_v31 = vld [vmem:[%s1701_s12 + $0x330] sm:$0xff]  ;;  %v1255_v44 = vpack.c.bf16 %v651_v37, %v643_v36  ;;  %v659_v48 = vld [vmem:[%s1701_s12 + $0x438] sm:$0xff] }
  0x95   : > { %1232 = vmatprep.subr.bf16.mxu1 %v1231_v35  ;;  %1112 = vmatprep.mubr.msk.f32.mxu0 %vm676_vm0, %v1689_v24  ;;  %v649_v35 = vld [vmem:[%s1701_s12 + $0x3e8] sm:$0xff]  ;;  %v1217_v38 = vpack.c.bf16 %v632_v30, %v624_v29  ;;  %v1253_v39 = vpack.c.bf16 %v634_v33, %v626_v31  ;;  %v667_v49 = vld [vmem:[%s1701_s12 + $0x478] sm:$0xff]  ;;  %v658_v56 = vld [vmem:[%s1701_s12 + $0x430] sm:$0xff] }
  0x96   : > { %1115 = vmatprep.mubr.msk.f32.mxu1 %vm676_vm0, %v1689_v24  ;;  %v601_v24 = vld [vmem:[%s1701_s12 + $0x268] sm:$0xff]  ;;  %v1219_v40 = vpack.c.bf16 %v649_v35, %v641_v34  ;;  %v666_v57 = vld [vmem:[%s1701_s12 + $0x470] sm:$0xff] }
  0x97   : > { %1198 = vmatpush1.bf16.msra.mxu0 %v1197_v41  ;;  %v1207_v2 = vpack.c.bf16 %v601_v24, %v593_v61  ;;  %v640_v41 = vld [vmem:[%s1701_s12 + $0x3a0] sm:$0xff]  ;;  %v673_v60 = vld [vmem:[%s1701_s12 + $0x4a8] sm:$0x7]  ;;  %v675_v61 = vld [vmem:[%s1701_s12 + $0x4b8] sm:$0x7] }
  0x98   : > { %1234 = vmatpush1.bf16.msra.mxu1 %v1233_v42  ;;  %1200 = vmatprep.subr.bf16.mxu0 %v1199_v43  ;;  %v648_v42 = vld [vmem:[%s1701_s12 + $0x3e0] sm:$0xff]  ;;  %v642_v43 = vld [vmem:[%s1701_s12 + $0x3b0] sm:$0xff] }
  0x99   : > { %1236 = vmatprep.subr.bf16.mxu1 %v1235_v47  ;;  %v665_v47 = vld [vmem:[%s1701_s12 + $0x468] sm:$0xff]  ;;  %v1221_v50 = vpack.c.bf16 %v648_v42, %v640_v41  ;;  %v1257_v51 = vpack.c.bf16 %v650_v45, %v642_v43  ;;  %v672_v24 = vld [vmem:[%s1701_s12 + $0x4a0] sm:$0x7]  ;;  %v674_v62 = vld [vmem:[%s1701_s12 + $0x4b0] sm:$0x7] }
  0x9a   : > { %v1223_v52 = vpack.c.bf16 %v665_v47, %v657_v46 }
  0x9b   : > { %1202 = vmatpush1.bf16.msra.mxu0 %v1201_v53  ;;  %v656_v53 = vld [vmem:[%s1701_s12 + $0x420] sm:$0xff] }
  0x9c   : > { %1238 = vmatpush1.bf16.msra.mxu1 %v1237_v54  ;;  %1204 = vmatprep.subr.bf16.mxu0 %v1203_v55  ;;  %v664_v54 = vld [vmem:[%s1701_s12 + $0x460] sm:$0xff]  ;;  %v1259_v55 = vpack.c.bf16 %v667_v49, %v659_v48 }
  0x9d   : > { %1240 = vmatprep.subr.bf16.mxu1 %v1239_v59  ;;  %v1225_v58 = vpack.c.bf16 %v664_v54, %v656_v53  ;;  %v1261_v59 = vpack.c.bf16 %v666_v57, %v658_v56 }
  0x9f   : > { %1206 = vmatpush1.bf16.msra.mxu0 %v1205_v0 }
  0xa0   : > { %1242 = vmatpush1.bf16.msra.mxu1 %v1241_v1  ;;  %1208 = vmatprep.subr.bf16.mxu0 %v1207_v2 }
  0xa1   : > { %1244 = vmatprep.subr.bf16.mxu1 %v1243_v6 }
  0xa3   : > { %1210 = vmatpush1.bf16.msra.mxu0 %v1209_v12 }
  0xa4   : > { %1246 = vmatpush1.bf16.msra.mxu1 %v1245_v13  ;;  %1212 = vmatprep.subr.bf16.mxu0 %v1211_v14 }
  0xa5   : > { %1248 = vmatprep.subr.bf16.mxu1 %v1247_v19 }
  0xa7   : > { %1214 = vmatpush1.bf16.msra.mxu0 %v1213_v26 }
  0xa8   : > { %1250 = vmatpush1.bf16.msra.mxu1 %v1249_v27  ;;  %1216 = vmatprep.subr.bf16.mxu0 %v1215_v28 }
  0xa9   : > { %1252 = vmatprep.subr.bf16.mxu1 %v1251_v32 }
  0xab   : > { %1218 = vmatpush1.bf16.msra.mxu0 %v1217_v38 }
  0xac   : > { %1254 = vmatpush1.bf16.msra.mxu1 %v1253_v39  ;;  %1220 = vmatprep.subr.bf16.mxu0 %v1219_v40 }
  0xad   : > { %1256 = vmatprep.subr.bf16.mxu1 %v1255_v44 }
  0xaf   : > { %1222 = vmatpush1.bf16.msra.mxu0 %v1221_v50 }
  0xb0   : > { %1258 = vmatpush1.bf16.msra.mxu1 %v1257_v51  ;;  %1224 = vmatprep.subr.bf16.mxu0 %v1223_v52 }
  0xb1   : > { %1260 = vmatprep.subr.bf16.mxu1 %v1259_v55 }
  0xb3   : > { %1226 = vmatpush1.bf16.msra.mxu0 %v1225_v58 }
  0xb4   : > { %1262 = vmatpush1.bf16.msra.mxu1 %v1261_v59  ;;  %1110 = vmatprep.subr.msk.mxu0 %vm680_vm1, %v673_v60 }
  0xb5   : > { %1113 = vmatprep.subr.msk.mxu1 %vm680_vm1, %v675_v61 }
  0xb7   : > { %1111 = vmatpush1.msk.msra.mxu0 %vm680_vm1, %v672_v24 }
  0xb8   : > { %1114 = vmatpush1.msk.msra.mxu1 %vm680_vm1, %v674_v62  ;;  %912 = vmatmul.mubr.f32.vlgmr.msra.gmra.mrb[2].mxu0 %v1785_v16 }
  0xb9   : > { %983 = vmatmul.mubr.f32.vlgmr.msra.gmra.mrb[2].mxu1 %v1785_v16 }
  0xe4   : > { %v993_v63 = vpop.permute.xlu0 %992 }
  0xe8   : > { %v1007_v1 = vpop.permute.xlu0 %1006 }
 0x164   : > { %v771_v0 = vpop.f32.mrb[0].mxu0 }
 0x165   : > { %v995_v2 = vmul.f32 %v993_v63, %v771_v0  ;;  %v842_v3 = vpop.f32.mrb[0].mxu1  ;;  %v773_v4 = vpop.f32.mrb[1].mxu0 }
 0x166   : > { %v997_v5 = vmul.f32 %v993_v63, %v842_v3  ;;  %v996_v6 = vmul.f32 %v993_v63, %v773_v4  ;;  %v844_v7 = vpop.f32.mrb[1].mxu1 }
 0x167   : > { %v998_v8 = vmul.f32 %v993_v63, %v844_v7  ;;  %v1009_v9 = vadd.f32 %v1007_v1, %v995_v2 }
 0x168   : > { %v1010_v16 = vadd.f32 %v1007_v1, %v996_v6  ;;  %v1011_v10 = vadd.f32 %v1007_v1, %v997_v5 }
 0x169   : > { %v1012_v11 = vadd.f32 %v1007_v1, %v998_v8  ;;  %v1017_v12 = vmax.f32 %v1009_v9, 0.0 }
 0x16a   : > { %v1018_v13 = vmax.f32 %v1010_v16, 0.0  ;;  %v1019_v14 = vmax.f32 %v1011_v10, 0.0 }
 0x16b   : > { %v1020_v15 = vmax.f32 %v1012_v11, 0.0  ;;  %1025 = vst [vmem:[%s1881_s24] sm:$0xff] %v1017_v12 }
 0x16c   : > { %1026 = vst [vmem:[%s1881_s24 + $0x8] sm:$0xff] %v1018_v13  ;;  %1027 = vst [vmem:[%s1881_s24 + $0x10] sm:$0xff] %v1019_v14 }
 0x16d   : > { %1028 = vst [vmem:[%s1881_s24 + $0x18] sm:$0xff] %v1020_v15 }
 0x18b   : > { %v913_v17 = vpop.f32.mrb[2].mxu0 }
 0x18c   : > { %v999_v18 = vmul.f32 %v993_v63, %v913_v17  ;;  %v984_v19 = vpop.f32.mrb[2].mxu1  ;;  %v915_v20 = vpop.f32.mrb[3].mxu0 }
 0x18d   : > { %v1001_v21 = vmul.f32 %v993_v63, %v984_v19  ;;  %v1000_v22 = vmul.f32 %v993_v63, %v915_v20  ;;  %v986_v23 = vpop.f32.mrb[3].mxu1 }
 0x18e   : > { %v1013_v25 = vadd.f32 %v1007_v1, %v999_v18  ;;  %v1002_v26 = vmul.f32 %v993_v63, %v986_v23 }
 0x18f   : > { %v1015_v27 = vadd.f32 %v1007_v1, %v1001_v21  ;;  %v1014_v28 = vadd.f32 %v1007_v1, %v1000_v22 }
 0x190   : > { %v1021_v29 = vmax.f32 %v1013_v25, 0.0  ;;  %v1016_v30 = vadd.f32 %v1007_v1, %v1002_v26 }
 0x191   : > { %v1023_v31 = vmax.f32 %v1015_v27, 0.0  ;;  %v1022_v32 = vmax.f32 %v1014_v28, 0.0 }
 0x192   : > { %1029 = vst [vmem:[%s1881_s24 + $0x20] sm:$0xff] %v1021_v29  ;;  %v1024_v33 = vmax.f32 %v1016_v30, 0.0 }
 0x193   : > { %1031 = vst [vmem:[%s1881_s24 + $0x30] sm:$0xff] %v1023_v31  ;;  %1030 = vst [vmem:[%s1881_s24 + $0x28] sm:$0xff] %v1022_v32 }
 0x194   : > { %1032 = vst [vmem:[%s1881_s24 + $0x38] sm:$0xff] %v1024_v33 }
 0x195 PF: > { %p11_p9 = scmp.ge.s32.totalorder %s1358_s19, 4   ;;  %s1906_s15 = smov %s1309_s16 }
 0x196   : > { %s1907_s16 = smov %s1367_s22  ;;  %s1908_s17 = smov %s1358_s19 }
 0x197   :  { %13 = sbr.rel (!%p11_p9) target bundleno = 2 (0x2), region = 94 }

// kernel: pcb_test_forward.18
= control target key start
LH: loop header
LB: loop body
LE: loop exit
PB: predicated region body
PF: predicated region fallthrough
CT: control target
= control target key end

     0   :  { %s254_s0 = inlined_call_operand.vmem [shape: f32[9,16,256], index: 0, kind: input, shape index: {}]   ;;  %s255_s1 = inlined_call_operand.vmem [shape: f32[16,256], index: 1, kind: output, shape index: {}]  }
   0x1   :  { %v8_v0 = vld [vmem:[%s254_s0] sm:$0xff]  ;;  %v9_v6 = vld [vmem:[%s254_s0 + $0x8] sm:$0xff]  ;;  %v10_v15 = vld [vmem:[%s254_s0 + $0x10] sm:$0xff] }
   0x2   :  { %v92_v1 = vld [vmem:[%s254_s0 + $0x20] sm:$0xff]  ;;  %v93_v7 = vld [vmem:[%s254_s0 + $0x28] sm:$0xff]  ;;  %v94_v16 = vld [vmem:[%s254_s0 + $0x30] sm:$0xff] }
   0x3   :  { %v96_v2 = vld [vmem:[%s254_s0 + $0x40] sm:$0xff]  ;;  %v17_v3 = vmax.f32 %v8_v0, %v92_v1  ;;  %v97_v8 = vld [vmem:[%s254_s0 + $0x48] sm:$0xff]  ;;  %v18_v10 = vmax.f32 %v9_v6, %v93_v7  ;;  %v98_v17 = vld [vmem:[%s254_s0 + $0x50] sm:$0xff]  ;;  %v19_v20 = vmax.f32 %v10_v15, %v94_v16 }
   0x4   :  { %v100_v4 = vld [vmem:[%s254_s0 + $0x60] sm:$0xff]  ;;  %v101_v13 = vld [vmem:[%s254_s0 + $0x68] sm:$0xff]  ;;  %v102_v24 = vld [vmem:[%s254_s0 + $0x70] sm:$0xff] }
   0x5   :  { %v26_v5 = vmax.f32 %v17_v3, %v96_v2  ;;  %v104_v9 = vld [vmem:[%s254_s0 + $0x80] sm:$0xff]  ;;  %v27_v14 = vmax.f32 %v18_v10, %v97_v8  ;;  %v105_v19 = vld [vmem:[%s254_s0 + $0x88] sm:$0xff]  ;;  %v28_v26 = vmax.f32 %v19_v20, %v98_v17  ;;  %v11_v27 = vld [vmem:[%s254_s0 + $0x18] sm:$0xff] }
   0x6   :  { %v108_v12 = vld [vmem:[%s254_s0 + $0xa0] sm:$0xff]  ;;  %v109_v23 = vld [vmem:[%s254_s0 + $0xa8] sm:$0xff]  ;;  %v95_v28 = vld [vmem:[%s254_s0 + $0x38] sm:$0xff] }
   0x7   :  { %v35_v11 = vmax.f32 %v26_v5, %v100_v4  ;;  %v112_v21 = vld [vmem:[%s254_s0 + $0xc0] sm:$0xff]  ;;  %v36_v22 = vmax.f32 %v27_v14, %v101_v13  ;;  %v99_v29 = vld [vmem:[%s254_s0 + $0x58] sm:$0xff]  ;;  %v106_v32 = vld [vmem:[%s254_s0 + $0x90] sm:$0xff]  ;;  %v20_v33 = vmax.f32 %v11_v27, %v95_v28  ;;  %v37_v36 = vmax.f32 %v28_v26, %v102_v24 }
   0x8   :  { %v116_v30 = vld [vmem:[%s254_s0 + $0xe0] sm:$0xff]  ;;  %v113_v35 = vld [vmem:[%s254_s0 + $0xc8] sm:$0xff]  ;;  %v103_v37 = vld [vmem:[%s254_s0 + $0x78] sm:$0xff] }
   0x9   :  { %v44_v18 = vmax.f32 %v35_v11, %v104_v9  ;;  %v45_v31 = vmax.f32 %v36_v22, %v105_v19  ;;  %v120_v38 = vld [vmem:[%s254_s0 + $0x100] sm:$0xff]  ;;  %v110_v40 = vld [vmem:[%s254_s0 + $0xb0] sm:$0xff]  ;;  %v29_v41 = vmax.f32 %v20_v33, %v99_v29  ;;  %v117_v43 = vld [vmem:[%s254_s0 + $0xe8] sm:$0xff]  ;;  %v46_v44 = vmax.f32 %v37_v36, %v106_v32 }
   0xa   :  { %v107_v45 = vld [vmem:[%s254_s0 + $0x98] sm:$0xff]  ;;  %v114_v47 = vld [vmem:[%s254_s0 + $0xd0] sm:$0xff]  ;;  %v121_v50 = vld [vmem:[%s254_s0 + $0x108] sm:$0xff] }
   0xb   :  { %v53_v25 = vmax.f32 %v44_v18, %v108_v12  ;;  %v54_v39 = vmax.f32 %v45_v31, %v109_v23  ;;  %v38_v48 = vmax.f32 %v29_v41, %v103_v37  ;;  %v55_v51 = vmax.f32 %v46_v44, %v110_v40  ;;  %v111_v52 = vld [vmem:[%s254_s0 + $0xb8] sm:$0xff]  ;;  %v118_v54 = vld [vmem:[%s254_s0 + $0xf0] sm:$0xff] }
   0xc   :  { %v115_v57 = vld [vmem:[%s254_s0 + $0xd8] sm:$0xff]  ;;  %v122_v59 = vld [vmem:[%s254_s0 + $0x110] sm:$0xff] }
   0xd   :  { %v62_v34 = vmax.f32 %v53_v25, %v112_v21  ;;  %v63_v46 = vmax.f32 %v54_v39, %v113_v35  ;;  %v47_v55 = vmax.f32 %v38_v48, %v107_v45  ;;  %v64_v56 = vmax.f32 %v55_v51, %v114_v47  ;;  %v119_v62 = vld [vmem:[%s254_s0 + $0xf8] sm:$0xff] }
   0xe   :  { %v123_v1 = vld [vmem:[%s254_s0 + $0x118] sm:$0xff] }
   0xf   :  { %v71_v42 = vmax.f32 %v62_v34, %v116_v30  ;;  %v72_v53 = vmax.f32 %v63_v46, %v117_v43  ;;  %v56_v60 = vmax.f32 %v47_v55, %v111_v52  ;;  %v73_v61 = vmax.f32 %v64_v56, %v118_v54 }
  0x11   :  { %v80_v49 = vmax.f32 %v71_v42, %v120_v38  ;;  %v81_v58 = vmax.f32 %v72_v53, %v121_v50  ;;  %v65_v63 = vmax.f32 %v56_v60, %v115_v57  ;;  %v82_v0 = vmax.f32 %v73_v61, %v122_v59 }
  0x13   :  { %84 = vst [vmem:[%s255_s1] sm:$0xff] %v80_v49  ;;  %85 = vst [vmem:[%s255_s1 + $0x8] sm:$0xff] %v81_v58  ;;  %v74_v2 = vmax.f32 %v65_v63, %v119_v62 }
  0x14   :  { %86 = vst [vmem:[%s255_s1 + $0x10] sm:$0xff] %v82_v0 }
  0x15   :  { %v83_v3 = vmax.f32 %v74_v2, %v123_v1 }
  0x17   :  { %87 = vst [vmem:[%s255_s1 + $0x18] sm:$0xff] %v83_v3 }

// kernel: pcb_test_forward.19
= control target key start
LH: loop header
LB: loop body
LE: loop exit
PB: predicated region body
PF: predicated region fallthrough
CT: control target
= control target key end

     0   :  { %v334_v3 = vmov 0.0   ;;  %vm27_vm0 = vcmask 64512   ;;  %v335_v9 = vmov 0   ;;  %s477_s1 = inlined_call_operand.vmem [shape: f32[8,512], index: 1, kind: input, shape index: {}]   ;;  %s478_s0 = inlined_call_operand.vmem [shape: f32[20,8], index: 0, kind: input, shape index: {}]   ;;  %s479_s2 = inlined_call_operand.vmem [shape: f32[20,1], index: 2, kind: input, shape index: {}]   ;;  %s480_s3 = inlined_call_operand.vmem [shape: f32[20,1], index: 3, kind: input, shape index: {}]   ;;  %s481_s4 = inlined_call_operand.vmem [shape: f32[20,1], index: 4, kind: input, shape index: {}]   ;;  %s482_s5 = inlined_call_operand.vmem [shape: f32[20,512], index: 5, kind: output, shape index: {}]  }
   0x1   :  { %v24_v0 = vld [vmem:[%s477_s1 + $0x8] sm:$0xff]  ;;  %v26_v1 = vld [vmem:[%s477_s1 + $0x18] sm:$0xff]  ;;  %v23_v2 = vld [vmem:[%s477_s1] sm:$0xff]  ;;  %101 = vmatprep.mubr.f32.mxu0 %v334_v3  ;;  %184 = vmatprep.mubr.f32.mxu1 %v334_v3 }
   0x2   :  { %37 = vmatprep.subr.mxu0 %v24_v0  ;;  %120 = vmatprep.subr.mxu1 %v26_v1  ;;  %v25_v4 = vld [vmem:[%s477_s1 + $0x10] sm:$0xff]  ;;  %v20_v5 = vld [vmem:[%s478_s0] sm:$0xff]  ;;  %v21_v8 = vld [vmem:[%s478_s0 + $0x8] sm:$0xff] }
   0x3   :  { %38 = vmatpush1.msra.mxu0 %v23_v2  ;;  %121 = vmatpush1.msra.mxu1 %v25_v4  ;;  %v203_v6 = vld [vmem:[%s479_s2] sm:$0xff]  ;;  %v205_v7 = vld [vmem:[%s479_s2 + $0x10] sm:$0xf]  ;;  %v204_v10 = vld [vmem:[%s479_s2 + $0x8] sm:$0xff] }
   0x4   :  { %324 = vmatmul.mubr.msk.f32.vlgmr.msra.gmra.mrb[0].mxu0 %vm27_vm0, %v20_v5  ;;  %327 = vmatmul.mubr.msk.f32.vlgmr.msra.gmra.mrb[0].mxu1 %vm27_vm0, %v20_v5  ;;  %v233_v11 = vld [vmem:[%s480_s3] sm:$0xff]  ;;  %v22_v12 = vld [vmem:[%s478_s0 + $0x10] sm:$0xf]  ;;  %v264_v14 = vld [vmem:[%s481_s4 + $0x8] sm:$0xff] }
   0x5   :  { %107 = vmatprep.mubr.f32.mxu0 %v334_v3  ;;  %190 = vmatprep.mubr.f32.mxu1 %v334_v3  ;;  %v263_v13 = vld [vmem:[%s481_s4] sm:$0xff]  ;;  %v234_v15 = vld [vmem:[%s480_s3 + $0x8] sm:$0xff]  ;;  %v235_v16 = vld [vmem:[%s480_s3 + $0x10] sm:$0xf]  ;;  %vm267_vm2 = vcmp.gt.f32.partialorder %v264_v14, 0.5 }
   0x6   :  { %332 = vset.pattern.permute.xlu0 %v335_v9  ;;  %333 = vset.pattern.permute.xlu1 %v335_v9  ;;  %vm266_vm1 = vcmp.gt.f32.partialorder %v263_v13, 0.5  ;;  %v265_v17 = vld [vmem:[%s481_s4 + $0x10] sm:$0xf]  ;;  %v282_v19 = vsel %vm267_vm2, 1, %v335_v9 }
   0x7   :  { %208 = vperm.xlu0 %332, %v203_v6   ;;  %218 = vperm.xlu1 %333, %v205_v7   ;;  %v281_v18 = vsel %vm266_vm1, 1, %v335_v9  ;;  %vm268_vm3 = vcmp.gt.f32.partialorder %v265_v17, 0.5 }
   0x8   :  { %325 = vmatmul.mubr.msk.f32.gmra.mrb[2].mxu0 %vm27_vm0, %v21_v8  ;;  %328 = vmatmul.mubr.msk.f32.gmra.mrb[2].mxu1 %vm27_vm0, %v21_v8  ;;  %v283_v20 = vsel %vm268_vm3, 1, %v335_v9 }
   0x9   :  { %113 = vmatprep.mubr.f32.mxu0 %v334_v3  ;;  %196 = vmatprep.mubr.f32.mxu1 %v334_v3 }
   0xb   :  { %213 = vperm.xlu0 %332, %v204_v10   ;;  %238 = vperm.xlu1 %333, %v233_v11  }
   0xc   :  { %326 = vmatmul.mubr.msk.f32.gmra.mrb[4].mxu0 %vm27_vm0, %v22_v12  ;;  %329 = vmatmul.mubr.msk.f32.gmra.mrb[4].mxu1 %vm27_vm0, %v22_v12 }
   0xf   :  { %243 = vperm.xlu0 %332, %v234_v15   ;;  %248 = vperm.xlu1 %333, %v235_v16  }
  0x13   :  { %285 = vperm.xlu0 %332, %v281_v18   ;;  %288 = vperm.xlu1 %333, %v282_v19  }
  0x17   :  { %291 = vperm.xlu0 %332, %v283_v20  }
  0x86   :  { %v219_v21 = vpop.permute.xlu1 %218  ;;  %v209_v22 = vpop.permute.xlu0 %208 }
  0x8a   :  { %v239_v23 = vpop.permute.xlu1 %238  ;;  %v214_v24 = vpop.permute.xlu0 %213 }
  0x8e   :  { %v420_v25 = vpop.permute.xlu1 %248  ;;  %v244_v26 = vpop.permute.xlu0 %243 }
  0x92   :  { %v422_v27 = vpop.permute.xlu1 %288  ;;  %v286_v36 = vpop.permute.xlu0 %285 }
  0x93   :  { %vm293_vm4 = vcmp.eq.s32.totalorder %v286_v36, 1  ;;  %vm294_vm5 = vcmp.eq.s32.totalorder %v422_v27, 1 }
  0x96   :  { %v292_v9 = vpop.permute.xlu0 %291 }
  0x97   :  { %vm295_vm6 = vcmp.eq.s32.totalorder %v292_v9, 1 }
  0xd7   :  { %v103_v28 = vpop.f32.mrb[0].mxu0  ;;  %v186_v29 = vpop.f32.mrb[0].mxu1 }
  0xd8   :  { %v221_v30 = vmul.f32 %v209_v22, %v103_v28  ;;  %v223_v31 = vmul.f32 %v209_v22, %v186_v29  ;;  %v105_v32 = vpop.f32.mrb[1].mxu0  ;;  %v188_v33 = vpop.f32.mrb[1].mxu1 }
  0xd9   :  { %v222_v34 = vmul.f32 %v209_v22, %v105_v32  ;;  %v224_v35 = vmul.f32 %v209_v22, %v188_v33 }
  0xda   :  { %v251_v37 = vadd.f32 %v239_v23, %v221_v30  ;;  %v253_v38 = vadd.f32 %v239_v23, %v223_v31 }
  0xdb   :  { %v252_v39 = vadd.f32 %v239_v23, %v222_v34  ;;  %v254_v40 = vadd.f32 %v239_v23, %v224_v35  ;;  %v109_v41 = vpop.f32.mrb[2].mxu0  ;;  %v192_v42 = vpop.f32.mrb[2].mxu1 }
  0xdc   :  { %v269_v43 = vmax.f32 %v251_v37, 0.0  ;;  %v271_v44 = vmax.f32 %v253_v38, 0.0  ;;  %v225_v45 = vmul.f32 %v214_v24, %v109_v41  ;;  %v227_v46 = vmul.f32 %v214_v24, %v192_v42  ;;  %v111_v47 = vpop.f32.mrb[3].mxu0  ;;  %v194_v48 = vpop.f32.mrb[3].mxu1 }
  0xdd   :  { %v270_v49 = vmax.f32 %v252_v39, 0.0  ;;  %v272_v50 = vmax.f32 %v254_v40, 0.0  ;;  %v226_v51 = vmul.f32 %v214_v24, %v111_v47  ;;  %v228_v52 = vmul.f32 %v214_v24, %v194_v48 }
  0xde   :  { %v296_v53 = vsel %vm293_vm4, %v269_v43, %v251_v37  ;;  %v298_v54 = vsel %vm293_vm4, %v271_v44, %v253_v38  ;;  %v255_v55 = vadd.f32 %v244_v26, %v225_v45  ;;  %v257_v56 = vadd.f32 %v244_v26, %v227_v46 }
  0xdf   :  { %308 = vst [vmem:[%s482_s5] sm:$0xff] %v296_v53  ;;  %310 = vst [vmem:[%s482_s5 + $0x10] sm:$0xff] %v298_v54  ;;  %v297_v57 = vsel %vm293_vm4, %v270_v49, %v252_v39  ;;  %v299_v58 = vsel %vm293_vm4, %v272_v50, %v254_v40  ;;  %v256_v59 = vadd.f32 %v244_v26, %v226_v51  ;;  %v115_v61 = vpop.f32.mrb[4].mxu0  ;;  %v198_v62 = vpop.f32.mrb[4].mxu1 }
  0xe0   :  { %v258_v60 = vadd.f32 %v244_v26, %v228_v52  ;;  %309 = vst [vmem:[%s482_s5 + $0x8] sm:$0xff] %v297_v57  ;;  %311 = vst [vmem:[%s482_s5 + $0x18] sm:$0xff] %v299_v58  ;;  %v273_v63 = vmax.f32 %v255_v55, 0.0  ;;  %v275_v0 = vmax.f32 %v257_v56, 0.0  ;;  %v229_v1 = vmul.f32 %v219_v21, %v115_v61  ;;  %v117_v3 = vpop.f32.mrb[5].mxu0  ;;  %v200_v4 = vpop.f32.mrb[5].mxu1 }
  0xe1   :  { %v231_v2 = vmul.f32 %v219_v21, %v198_v62  ;;  %v274_v5 = vmax.f32 %v256_v59, 0.0  ;;  %v230_v7 = vmul.f32 %v219_v21, %v117_v3  ;;  %v232_v8 = vmul.f32 %v219_v21, %v200_v4 }
  0xe2   :  { %v276_v6 = vmax.f32 %v258_v60, 0.0  ;;  %v300_v10 = vsel %vm294_vm5, %v273_v63, %v255_v55  ;;  %v302_v11 = vsel %vm294_vm5, %v275_v0, %v257_v56  ;;  %v259_v12 = vadd.f32 %v420_v25, %v229_v1 }
  0xe3   :  { %v261_v13 = vadd.f32 %v420_v25, %v231_v2  ;;  %312 = vst [vmem:[%s482_s5 + $0x20] sm:$0xff] %v300_v10  ;;  %314 = vst [vmem:[%s482_s5 + $0x30] sm:$0xff] %v302_v11  ;;  %v301_v14 = vsel %vm294_vm5, %v274_v5, %v256_v59  ;;  %v260_v16 = vadd.f32 %v420_v25, %v230_v7 }
  0xe4   :  { %v303_v15 = vsel %vm294_vm5, %v276_v6, %v258_v60  ;;  %v262_v17 = vadd.f32 %v420_v25, %v232_v8  ;;  %313 = vst [vmem:[%s482_s5 + $0x28] sm:$0xff] %v301_v14  ;;  %v277_v18 = vmax.f32 %v259_v12, 0.0 }
  0xe5   :  { %315 = vst [vmem:[%s482_s5 + $0x38] sm:$0xff] %v303_v15  ;;  %v279_v19 = vmax.f32 %v261_v13, 0.0  ;;  %v278_v20 = vmax.f32 %v260_v16, 0.0 }
  0xe6   :  { %v280_v21 = vmax.f32 %v262_v17, 0.0  ;;  %v304_v22 = vsel %vm295_vm6, %v277_v18, %v259_v12 }
  0xe7   :  { %v306_v23 = vsel %vm295_vm6, %v279_v19, %v261_v13  ;;  %316 = vst [vmem:[%s482_s5 + $0x40] sm:$0xf] %v304_v22  ;;  %v305_v24 = vsel %vm295_vm6, %v278_v20, %v260_v16 }
  0xe8   :  { %318 = vst [vmem:[%s482_s5 + $0x50] sm:$0xf] %v306_v23  ;;  %v307_v25 = vsel %vm295_vm6, %v280_v21, %v262_v17  ;;  %317 = vst [vmem:[%s482_s5 + $0x48] sm:$0xf] %v305_v24 }
  0xe9   :  { %319 = vst [vmem:[%s482_s5 + $0x58] sm:$0xf] %v307_v25 }

// kernel: pcb_test_forward.20
= control target key start
LH: loop header
LB: loop body
LE: loop exit
PB: predicated region body
PF: predicated region fallthrough
CT: control target
= control target key end

     0   :  { %9 = vsyncpa [#allocation3], 0  ;;  %s502_s0 = inlined_call_operand.hbm [shape: f32[4,36], index: 0, kind: input, shape index: {}]   ;;  %s503_s1 = inlined_call_operand.vmem [shape: f32[36,512], index: 1, kind: input, shape index: {}]   ;;  %s504_s2 = inlined_call_operand.hbm [shape: f32[4,1], index: 2, kind: input, shape index: {}]   ;;  %s505_s3 = inlined_call_operand.hbm [shape: f32[4,1], index: 3, kind: input, shape index: {}]   ;;  %s506_s4 = inlined_call_operand.vmem [shape: f32[4,512], index: 4, kind: output, shape index: {}]  }
   0x1   :  { %10 = vsyncpa [#allocation5], 0  ;;  %s370_s15 = smov [#allocation4]   ;;  %s371_s17 = smov [#allocation2]  }
   0x2   :  { %s29_s16 = sshll.u32 %s370_s15, 4  ;;  %s17_s18 = sshll.u32 %s371_s17, 4  ;;  %s30_s16 = int_to_ptr.vmem [resolvable:$true] %s29_s16  ;;  %s18_s18 = int_to_ptr.vmem [resolvable:$true] %s17_s18 }
   0x3   :  { %s300_s21 = scalar_lea.hbm %s504_s2, 64 }
   0x4   :  { %p301_p0 = scmp.ne.s32.totalorder %s504_s2, %s300_s21  ;;  %p304_p1 = scmp.lt.u32.totalorder %s300_s21, %s504_s2 }
   0x6   :  { %p306_p2 = pnand %p304_p1, %p301_p0 }
   0x8   :  { %309 = shalt.err (!%p306_p2)
}
   0x9   :  { %s310_s26 = scalar_lea.vmem %s30_s16, 64  ;;  %p315_p4 = scmp.lt.s32.totalorder %s30_s16, %s30_s16 }
   0xa   :  { %p311_p3 = scmp.ne.s32.totalorder %s30_s16, %s310_s26  ;;  %p316_p5 = scmp.lt.s32.totalorder %s310_s26, %s310_s26 }
   0xc   :  { %p317_p6 = por %p316_p5, %p315_p4 }
   0xe   :  { %p318_p7 = pnand %p317_p6, %p311_p3 }
  0x10   :  { %321 = shalt.err (!%p318_p7)
}
  0x11   :  { %32 = dma.hbm_to_vmem [thread:$0]  %s504_s2, 64, %s30_s16, [#allocation5]  }
  0x12   :  { %s322_s5 = scalar_lea.hbm %s502_s0, 64 }
  0x13   :  { %p323_p8 = scmp.ne.s32.totalorder %s502_s0, %s322_s5  ;;  %p326_p9 = scmp.lt.u32.totalorder %s322_s5, %s502_s0 }
  0x15   :  { %p328_p10 = pnand %p326_p9, %p323_p8 }
  0x17   :  { %331 = shalt.err (!%p328_p10)
}
  0x18   :  { %s332_s10 = scalar_lea.vmem %s18_s18, 64  ;;  %p337_p12 = scmp.lt.s32.totalorder %s18_s18, %s18_s18 }
  0x19   :  { %p333_p11 = scmp.ne.s32.totalorder %s18_s18, %s332_s10  ;;  %p338_p13 = scmp.lt.s32.totalorder %s332_s10, %s332_s10 }
  0x1b   :  { %p339_p0 = por %p338_p13, %p337_p12 }
  0x1d   :  { %p340_p1 = pnand %p339_p0, %p333_p11 }
  0x1f   :  { %343 = shalt.err (!%p340_p1)
}
  0x20   :  { %20 = dma.hbm_to_vmem [thread:$0]  %s502_s0, 64, %s18_s18, [#allocation3]  }
  0x21   :  { %s372_s12 = smov [#allocation6]   ;;  %s344_s16 = scalar_lea.hbm %s505_s3, 64 }
  0x22   :  { %s39_s13 = sshll.u32 %s372_s12, 4  ;;  %p345_p2 = scmp.ne.s32.totalorder %s505_s3, %s344_s16  ;;  %s40_s13 = int_to_ptr.vmem [resolvable:$true] %s39_s13 }
  0x23   :  { %p348_p3 = scmp.lt.u32.totalorder %s344_s16, %s505_s3 }
  0x25   :  { %p350_p4 = pnand %p348_p3, %p345_p2 }
  0x27   :  { %353 = shalt.err (!%p350_p4)
}
  0x28   :  { %s354_s22 = scalar_lea.vmem %s40_s13, 64  ;;  %p359_p6 = scmp.lt.s32.totalorder %s40_s13, %s40_s13 }
  0x29   :  { %p355_p5 = scmp.ne.s32.totalorder %s40_s13, %s354_s22  ;;  %p360_p7 = scmp.lt.s32.totalorder %s354_s22, %s354_s22 }
  0x2b   :  { %p361_p8 = por %p360_p7, %p359_p6 }
  0x2d   :  { %p362_p9 = pnand %p361_p8, %p355_p5 }
  0x2f   :  { %365 = shalt.err (!%p362_p9)
}
  0x30   :  { %42 = dma.hbm_to_vmem [thread:$0]  %s505_s3, 64, %s40_s13, [#allocation5]  }
  0x31   :  { %366 = dma.done.wait [#allocation3], 64  }
  0x32   :  { %367 = vsyncadd [#allocation3], 4294967232 }
  0x33   :  { %368 = dma.done.wait [#allocation5], 128  }
  0x34   :  { %369 = vsyncadd [#allocation5], 4294967168  ;;  %v373_v0 = vmov 0.0   ;;  %v374_v1 = vmov 0   ;;  %v54_v2 = vld [vmem:[%s503_s1 + $0x8] sm:$0xff]  ;;  %v56_v4 = vld [vmem:[%s503_s1 + $0x18] sm:$0xff] }
  0x35   :  { %154 = vmatprep.mubr.f32.mxu0 %v373_v0  ;;  %225 = vmatprep.mubr.f32.mxu1 %v373_v0  ;;  %v58_v3 = vld [vmem:[%s503_s1 + $0x28] sm:$0xff]  ;;  %v60_v6 = vld [vmem:[%s503_s1 + $0x38] sm:$0xff]  ;;  %v53_v7 = vld [vmem:[%s503_s1] sm:$0xff]  ;;  %vm77_vm0 = vcmask 1043456   ;;  %vm73_vm1 = vcmask 293888  }
  0x36   :  { %299 = vset.pattern.permute.xlu0 %v374_v1  ;;  %v278_v5 = vpack.c.bf16 %v58_v3, %v54_v2  ;;  %v57_v8 = vld [vmem:[%s503_s1 + $0x20] sm:$0xff]  ;;  %v286_v9 = vpack.c.bf16 %v60_v6, %v56_v4  ;;  %v55_v11 = vld [vmem:[%s503_s1 + $0x10] sm:$0xff]  ;;  %v62_v13 = vld [vmem:[%s503_s1 + $0x48] sm:$0xff] }
  0x37   :  { %v280_v10 = vpack.c.bf16 %v57_v8, %v53_v7  ;;  %v59_v12 = vld [vmem:[%s503_s1 + $0x30] sm:$0xff]  ;;  %v66_v15 = vld [vmem:[%s503_s1 + $0x68] sm:$0xff]  ;;  %v64_v16 = vld [vmem:[%s503_s1 + $0x58] sm:$0xff] }
  0x38   :  { %279 = vmatprep.subr.bf16.mxu0 %v278_v5  ;;  %v288_v14 = vpack.c.bf16 %v59_v12, %v55_v11  ;;  %v68_v17 = vld [vmem:[%s503_s1 + $0x78] sm:$0xff]  ;;  %287 = vmatprep.subr.bf16.mxu1 %v286_v9  ;;  %v282_v18 = vpack.c.bf16 %v66_v15, %v62_v13  ;;  %v61_v20 = vld [vmem:[%s503_s1 + $0x40] sm:$0xff]  ;;  %v63_v22 = vld [vmem:[%s503_s1 + $0x50] sm:$0xff] }
  0x39   :  { %281 = vmatpush1.bf16.msra.mxu0 %v280_v10  ;;  %v290_v19 = vpack.c.bf16 %v68_v17, %v64_v16  ;;  %v65_v21 = vld [vmem:[%s503_s1 + $0x60] sm:$0xff]  ;;  %v67_v24 = vld [vmem:[%s503_s1 + $0x70] sm:$0xff]  ;;  %v70_v26 = vld [vmem:[%s503_s1 + $0x88] sm:$0xf] }
  0x3a   :  { %289 = vmatpush1.bf16.msra.mxu1 %v288_v14  ;;  %v284_v23 = vpack.c.bf16 %v65_v21, %v61_v20  ;;  %283 = vmatprep.subr.bf16.mxu0 %v282_v18  ;;  %v292_v25 = vpack.c.bf16 %v67_v24, %v63_v22  ;;  %v72_v27 = vld [vmem:[%s503_s1 + $0x98] sm:$0xf]  ;;  %v232_v28 = vld [vmem:[#allocation4] sm:$0xf]  ;;  %v69_v29 = vld [vmem:[%s503_s1 + $0x80] sm:$0xf] }
  0x3b   :  { %291 = vmatprep.subr.bf16.mxu1 %v290_v19  ;;  %235 = vperm.xlu0 %299, %v232_v28   ;;  %v242_v30 = vld [vmem:[#allocation6] sm:$0xf]  ;;  %v71_v31 = vld [vmem:[%s503_s1 + $0x90] sm:$0xf]  ;;  %v52_v32 = vld [vmem:[#allocation2] sm:$0xf] }
  0x3d   :  { %285 = vmatpush1.bf16.msra.mxu0 %v284_v23 }
  0x3e   :  { %293 = vmatpush1.bf16.msra.mxu1 %v292_v25  ;;  %272 = vmatprep.subr.msk.mxu0 %vm77_vm0, %v70_v26 }
  0x3f   :  { %275 = vmatprep.subr.msk.mxu1 %vm77_vm0, %v72_v27  ;;  %245 = vperm.xlu0 %299, %v242_v30  }
  0x41   :  { %273 = vmatpush1.msk.msra.mxu0 %vm77_vm0, %v69_v29 }
  0x42   :  { %276 = vmatpush1.msk.msra.mxu1 %vm77_vm0, %v71_v31  ;;  %274 = vmatmul.mubr.msk.f32.vlgmr.msra.gmra.mrb[0].mxu0 %vm73_vm1, %v52_v32 }
  0x43   :  { %277 = vmatmul.mubr.msk.f32.vlgmr.msra.gmra.mrb[0].mxu1 %vm73_vm1, %v52_v32 }
  0xba   :  { %v236_v33 = vpop.permute.xlu0 %235 }
  0xbe   :  { %v246_v38 = vpop.permute.xlu0 %245 }
 0x115   :  { %v156_v34 = vpop.f32.mrb[0].mxu0 }
 0x116   :  { %v238_v35 = vmul.f32 %v236_v33, %v156_v34  ;;  %v227_v36 = vpop.f32.mrb[0].mxu1  ;;  %v158_v37 = vpop.f32.mrb[1].mxu0 }
 0x117   :  { %v240_v39 = vmul.f32 %v236_v33, %v227_v36  ;;  %v239_v40 = vmul.f32 %v236_v33, %v158_v37  ;;  %v229_v41 = vpop.f32.mrb[1].mxu1 }
 0x118   :  { %v248_v42 = vadd.f32 %v246_v38, %v238_v35  ;;  %v241_v43 = vmul.f32 %v236_v33, %v229_v41 }
 0x119   :  { %v250_v44 = vadd.f32 %v246_v38, %v240_v39  ;;  %v249_v45 = vadd.f32 %v246_v38, %v239_v40 }
 0x11a   :  { %v252_v46 = vmax.f32 %v248_v42, 0.0  ;;  %v251_v47 = vadd.f32 %v246_v38, %v241_v43 }
 0x11b   :  { %v254_v48 = vmax.f32 %v250_v44, 0.0  ;;  %v253_v49 = vmax.f32 %v249_v45, 0.0 }
 0x11c   :  { %v255_v50 = vmax.f32 %v251_v47, 0.0 }
 0x11d   :  { %v260_v51 = vcombine.low %v252_v46, %v253_v49 }
 0x11e   :  { %v261_v52 = vcombine.low %v254_v48, %v255_v50 }
 0x11f   :  { %264 = vst [vmem:[%s506_s4] sm:$0xff] %v260_v51 }
 0x120   :  { %265 = vst [vmem:[%s506_s4 + $0x8] sm:$0xff] %v261_v52 }
 0x121   :  { %270 = vsyncpa [#allocation3], 1 }
 0x122   :  { %271 = vsyncpa [#allocation5], 1 }

// kernel: pcb_test_forward.21
= control target key start
LH: loop header
LB: loop body
LE: loop exit
PB: predicated region body
PF: predicated region fallthrough
CT: control target
= control target key end

     0   :  { %vm35_vm0 = vcmask 1043456   ;;  %v288_v2 = vmov 0.0   ;;  %v289_v5 = vmov 0   ;;  %vm28_vm1 = vcmask 31744   ;;  %s400_s1 = inlined_call_operand.vmem [shape: f32[4,512], index: 1, kind: input, shape index: {}]   ;;  %s401_s0 = inlined_call_operand.vmem [shape: f32[16,4], index: 0, kind: input, shape index: {}]   ;;  %s402_s2 = inlined_call_operand.vmem [shape: f32[16,1], index: 2, kind: input, shape index: {}]   ;;  %s403_s3 = inlined_call_operand.vmem [shape: f32[16,1], index: 3, kind: input, shape index: {}]   ;;  %s404_s4 = inlined_call_operand.vmem [shape: f32[16,512], index: 4, kind: input, shape index: {}]   ;;  %s405_s5 = inlined_call_operand.vmem [shape: f32[16,512], index: 5, kind: output, shape index: {}]  }
   0x1   :  { %v22_v0 = vld [vmem:[%s400_s1] sm:$0xff]  ;;  %v23_v1 = vld [vmem:[%s400_s1 + $0x8] sm:$0xff]  ;;  %108 = vmatprep.mubr.f32.mxu0 %v288_v2  ;;  %185 = vmatprep.mubr.f32.mxu1 %v288_v2  ;;  %v240_v21 = vld [vmem:[%s404_s4 + $0x10] sm:$0xff] }
   0x2   :  { %v26_v3 = vcombine.high %v22_v0, %v22_v0  ;;  %v27_v4 = vcombine.high %v23_v1, %v23_v1  ;;  %284 = vset.pattern.permute.xlu0 %v289_v5  ;;  %v198_v6 = vld [vmem:[%s402_s2] sm:$0xff]  ;;  %285 = vset.pattern.permute.xlu1 %v289_v5  ;;  %v199_v9 = vld [vmem:[%s402_s2 + $0x8] sm:$0xff]  ;;  %v241_v28 = vld [vmem:[%s404_s4 + $0x18] sm:$0xff] }
   0x3   :  { %v218_v7 = vld [vmem:[%s403_s3] sm:$0xff]  ;;  %202 = vperm.xlu0 %284, %v198_v6   ;;  %v219_v10 = vld [vmem:[%s403_s3 + $0x8] sm:$0xff]  ;;  %v244_v43 = vld [vmem:[%s404_s4 + $0x30] sm:$0xff] }
   0x4   :  { %v20_v8 = vld [vmem:[%s401_s0] sm:$0xff]  ;;  %222 = vperm.xlu1 %285, %v218_v7   ;;  %274 = vmatprep.subr.msk.mxu0 %vm35_vm0, %v26_v3  ;;  %v21_v11 = vld [vmem:[%s401_s0 + $0x8] sm:$0xff]  ;;  %v245_v51 = vld [vmem:[%s404_s4 + $0x38] sm:$0xff] }
   0x5   :  { %278 = vmatprep.subr.msk.mxu1 %vm35_vm0, %v27_v4  ;;  %275 = vmatpush1.msk.msra.mxu0 %vm35_vm0, %v22_v0  ;;  %v238_v20 = vld [vmem:[%s404_s4] sm:$0xff]  ;;  %v239_v27 = vld [vmem:[%s404_s4 + $0x8] sm:$0xff] }
   0x6   :  { %279 = vmatpush1.msk.msra.mxu1 %vm35_vm0, %v23_v1  ;;  %276 = vmatmul.mubr.msk.f32.vlgmr.msra.gmra.mrb[0].mxu0 %vm28_vm1, %v20_v8  ;;  %v242_v42 = vld [vmem:[%s404_s4 + $0x20] sm:$0xff]  ;;  %v243_v50 = vld [vmem:[%s404_s4 + $0x28] sm:$0xff] }
   0x7   :  { %280 = vmatmul.mubr.msk.f32.vlgmr.msra.gmra.mrb[0].mxu1 %vm28_vm1, %v20_v8  ;;  %114 = vmatprep.mubr.f32.mxu0 %v288_v2 }
   0x8   :  { %191 = vmatprep.mubr.f32.mxu1 %v288_v2  ;;  %207 = vperm.xlu0 %284, %v199_v9  }
   0x9   :  { %227 = vperm.xlu1 %285, %v219_v10  }
   0xa   :  { %277 = vmatmul.mubr.msk.f32.gmra.mrb[2].mxu0 %vm28_vm1, %v21_v11 }
   0xb   :  { %281 = vmatmul.mubr.msk.f32.gmra.mrb[2].mxu1 %vm28_vm1, %v21_v11 }
  0x82   :  { %v203_v12 = vpop.permute.xlu0 %202 }
  0x83   :  { %v223_v13 = vpop.permute.xlu1 %222 }
  0x87   :  { %v208_v26 = vpop.permute.xlu0 %207 }
  0x88   :  { %v228_v41 = vpop.permute.xlu1 %227 }
  0xd9   :  { %v110_v14 = vpop.f32.mrb[0].mxu0 }
  0xda   :  { %v187_v15 = vpop.f32.mrb[0].mxu1  ;;  %v210_v16 = vmul.f32 %v203_v12, %v110_v14  ;;  %v112_v18 = vpop.f32.mrb[1].mxu0 }
  0xdb   :  { %v212_v17 = vmul.f32 %v203_v12, %v187_v15  ;;  %v189_v19 = vpop.f32.mrb[1].mxu1  ;;  %v211_v22 = vmul.f32 %v203_v12, %v112_v18 }
  0xdc   :  { %v213_v23 = vmul.f32 %v203_v12, %v189_v19  ;;  %v230_v24 = vadd.f32 %v223_v13, %v210_v16 }
  0xdd   :  { %v232_v25 = vadd.f32 %v223_v13, %v212_v17  ;;  %v231_v29 = vadd.f32 %v223_v13, %v211_v22  ;;  %v116_v31 = vpop.f32.mrb[2].mxu0 }
  0xde   :  { %v233_v30 = vadd.f32 %v223_v13, %v213_v23  ;;  %v193_v32 = vpop.f32.mrb[2].mxu1  ;;  %v246_v33 = vadd.f32 %v238_v20, %v230_v24  ;;  %v214_v35 = vmul.f32 %v208_v26, %v116_v31  ;;  %v118_v37 = vpop.f32.mrb[3].mxu0 }
  0xdf   :  { %v248_v34 = vadd.f32 %v240_v21, %v232_v25  ;;  %v216_v36 = vmul.f32 %v208_v26, %v193_v32  ;;  %v195_v38 = vpop.f32.mrb[3].mxu1  ;;  %v247_v39 = vadd.f32 %v239_v27, %v231_v29  ;;  %v215_v44 = vmul.f32 %v208_v26, %v118_v37 }
  0xe0   :  { %v249_v40 = vadd.f32 %v241_v28, %v233_v30  ;;  %v217_v45 = vmul.f32 %v208_v26, %v195_v38  ;;  %v254_v46 = vmax.f32 %v246_v33, 0.0  ;;  %v234_v48 = vadd.f32 %v228_v41, %v214_v35 }
  0xe1   :  { %v256_v47 = vmax.f32 %v248_v34, 0.0  ;;  %v236_v49 = vadd.f32 %v228_v41, %v216_v36  ;;  %v255_v52 = vmax.f32 %v247_v39, 0.0  ;;  %v235_v54 = vadd.f32 %v228_v41, %v215_v44 }
  0xe2   :  { %v257_v53 = vmax.f32 %v249_v40, 0.0  ;;  %v237_v55 = vadd.f32 %v228_v41, %v217_v45  ;;  %262 = vst [vmem:[%s405_s5] sm:$0xff] %v254_v46  ;;  %v250_v56 = vadd.f32 %v242_v42, %v234_v48 }
  0xe3   :  { %264 = vst [vmem:[%s405_s5 + $0x10] sm:$0xff] %v256_v47  ;;  %v252_v57 = vadd.f32 %v244_v43, %v236_v49  ;;  %263 = vst [vmem:[%s405_s5 + $0x8] sm:$0xff] %v255_v52  ;;  %v251_v58 = vadd.f32 %v243_v50, %v235_v54 }
  0xe4   :  { %265 = vst [vmem:[%s405_s5 + $0x18] sm:$0xff] %v257_v53  ;;  %v253_v59 = vadd.f32 %v245_v51, %v237_v55  ;;  %v258_v60 = vmax.f32 %v250_v56, 0.0 }
  0xe5   :  { %v260_v61 = vmax.f32 %v252_v57, 0.0  ;;  %v259_v62 = vmax.f32 %v251_v58, 0.0 }
  0xe6   :  { %v261_v63 = vmax.f32 %v253_v59, 0.0  ;;  %266 = vst [vmem:[%s405_s5 + $0x20] sm:$0xff] %v258_v60 }
  0xe7   :  { %268 = vst [vmem:[%s405_s5 + $0x30] sm:$0xff] %v260_v61  ;;  %267 = vst [vmem:[%s405_s5 + $0x28] sm:$0xff] %v259_v62 }
  0xe8   :  { %269 = vst [vmem:[%s405_s5 + $0x38] sm:$0xff] %v261_v63 }

// kernel: pcb_test_forward.22
= control target key start
LH: loop header
LB: loop body
LE: loop exit
PB: predicated region body
PF: predicated region fallthrough
CT: control target
= control target key end

     0   :  { %9 = vsyncpa [#allocation3], 0  ;;  %s255_s15 = smov [#allocation2]   ;;  %s337_s0 = inlined_call_operand.hbm [shape: f32[8,16], index: 0, kind: input, shape index: {}]   ;;  %s338_s1 = inlined_call_operand.vmem [shape: f32[16,512], index: 1, kind: input, shape index: {}]   ;;  %s339_s2 = inlined_call_operand.vmem [shape: f32[8,1], index: 2, kind: input, shape index: {}]   ;;  %s340_s3 = inlined_call_operand.vmem [shape: f32[8,1], index: 3, kind: input, shape index: {}]   ;;  %s341_s4 = inlined_call_operand.vmem [shape: f32[8,512], index: 4, kind: output, shape index: {}]  }
   0x1   :  { %s16_s16 = sshll.u32 %s255_s15, 4  ;;  %s231_s19 = scalar_lea.hbm %s337_s0, 128  ;;  %s17_s16 = int_to_ptr.vmem [resolvable:$true] %s16_s16 }
   0x2   :  { %p232_p0 = scmp.ne.s32.totalorder %s337_s0, %s231_s19  ;;  %p235_p1 = scmp.lt.u32.totalorder %s231_s19, %s337_s0 }
   0x4   :  { %p237_p2 = pnand %p235_p1, %p232_p0 }
   0x6   :  { %240 = shalt.err (!%p237_p2)
}
   0x7   :  { %s241_s24 = scalar_lea.vmem %s17_s16, 128  ;;  %p246_p4 = scmp.lt.s32.totalorder %s17_s16, %s17_s16 }
   0x8   :  { %p242_p3 = scmp.ne.s32.totalorder %s17_s16, %s241_s24  ;;  %p247_p5 = scmp.lt.s32.totalorder %s241_s24, %s241_s24 }
   0xa   :  { %p248_p6 = por %p247_p5, %p246_p4 }
   0xc   :  { %p249_p7 = pnand %p248_p6, %p242_p3 }
   0xe   :  { %252 = shalt.err (!%p249_p7)
}
   0xf   :  { %19 = dma.hbm_to_vmem [thread:$0]  %s337_s0, 128, %s17_s16, [#allocation3]  }
  0x10   :  { %253 = dma.done.wait [#allocation3], 128  }
  0x11   :  { %254 = vsyncadd [#allocation3], 4294967168  ;;  %v256_v0 = vmov 0.0   ;;  %v257_v1 = vmov 0   ;;  %v31_v2 = vld [vmem:[%s338_s1 + $0x8] sm:$0xff]  ;;  %v33_v4 = vld [vmem:[%s338_s1 + $0x18] sm:$0xff] }
  0x12   :  { %106 = vmatprep.mubr.f32.mxu0 %v256_v0  ;;  %177 = vmatprep.mubr.f32.mxu1 %v256_v0  ;;  %v35_v3 = vld [vmem:[%s338_s1 + $0x28] sm:$0xff]  ;;  %v37_v6 = vld [vmem:[%s338_s1 + $0x38] sm:$0xff]  ;;  %v30_v7 = vld [vmem:[%s338_s1] sm:$0xff]  ;;  %vm38_vm0 = vcmask 130048  }
  0x13   :  { %230 = vset.pattern.permute.xlu0 %v257_v1  ;;  %v219_v5 = vpack.c.bf16 %v35_v3, %v31_v2  ;;  %v34_v8 = vld [vmem:[%s338_s1 + $0x20] sm:$0xff]  ;;  %v223_v9 = vpack.c.bf16 %v37_v6, %v33_v4  ;;  %v32_v11 = vld [vmem:[%s338_s1 + $0x10] sm:$0xff] }
  0x14   :  { %v221_v10 = vpack.c.bf16 %v34_v8, %v30_v7  ;;  %v36_v12 = vld [vmem:[%s338_s1 + $0x30] sm:$0xff]  ;;  %v184_v14 = vld [vmem:[%s339_s2] sm:$0xff] }
  0x15   :  { %220 = vmatprep.subr.bf16.mxu0 %v219_v5  ;;  %v225_v13 = vpack.c.bf16 %v36_v12, %v32_v11  ;;  %224 = vmatprep.subr.bf16.mxu1 %v223_v9  ;;  %v29_v15 = vld [vmem:[#allocation2] sm:$0xff] }
  0x16   :  { %222 = vmatpush1.bf16.msra.mxu0 %v221_v10  ;;  %187 = vperm.xlu0 %230, %v184_v14   ;;  %v194_v16 = vld [vmem:[%s340_s3] sm:$0xff] }
  0x17   :  { %226 = vmatpush1.bf16.msra.mxu1 %v225_v13 }
  0x19   :  { %217 = vmatmul.mubr.msk.f32.vlgmr.msra.gmra.mrb[0].mxu0 %vm38_vm0, %v29_v15 }
  0x1a   :  { %218 = vmatmul.mubr.msk.f32.vlgmr.msra.gmra.mrb[0].mxu1 %vm38_vm0, %v29_v15  ;;  %197 = vperm.xlu0 %230, %v194_v16  }
  0x95   :  { %v188_v17 = vpop.permute.xlu0 %187 }
  0x99   :  { %v198_v22 = vpop.permute.xlu0 %197 }
  0xec   :  { %v108_v18 = vpop.f32.mrb[0].mxu0 }
  0xed   :  { %v190_v19 = vmul.f32 %v188_v17, %v108_v18  ;;  %v179_v20 = vpop.f32.mrb[0].mxu1  ;;  %v110_v21 = vpop.f32.mrb[1].mxu0 }
  0xee   :  { %v192_v23 = vmul.f32 %v188_v17, %v179_v20  ;;  %v191_v24 = vmul.f32 %v188_v17, %v110_v21  ;;  %v181_v25 = vpop.f32.mrb[1].mxu1 }
  0xef   :  { %v200_v26 = vadd.f32 %v198_v22, %v190_v19  ;;  %v193_v27 = vmul.f32 %v188_v17, %v181_v25 }
  0xf0   :  { %v202_v28 = vadd.f32 %v198_v22, %v192_v23  ;;  %v201_v29 = vadd.f32 %v198_v22, %v191_v24 }
  0xf1   :  { %v204_v30 = vmax.f32 %v200_v26, 0.0  ;;  %v203_v31 = vadd.f32 %v198_v22, %v193_v27 }
  0xf2   :  { %v206_v32 = vmax.f32 %v202_v28, 0.0  ;;  %v205_v33 = vmax.f32 %v201_v29, 0.0 }
  0xf3   :  { %208 = vst [vmem:[%s341_s4] sm:$0xff] %v204_v30  ;;  %v207_v34 = vmax.f32 %v203_v31, 0.0 }
  0xf4   :  { %210 = vst [vmem:[%s341_s4 + $0x10] sm:$0xff] %v206_v32  ;;  %209 = vst [vmem:[%s341_s4 + $0x8] sm:$0xff] %v205_v33 }
  0xf5   :  { %211 = vst [vmem:[%s341_s4 + $0x18] sm:$0xff] %v207_v34 }
  0xf6   :  { %216 = vsyncpa [#allocation3], 1 }

// kernel: pcb_test_forward.23
= control target key start
LH: loop header
LB: loop body
LE: loop exit
PB: predicated region body
PF: predicated region fallthrough
CT: control target
= control target key end

     0   :  { %vm23_vm0 = vcmask 130048   ;;  %v214_v3 = vmov 0   ;;  %s298_s1 = inlined_call_operand.vmem [shape: f32[16,128], index: 1, kind: input, shape index: {}]   ;;  %s299_s0 = inlined_call_operand.vmem [shape: f32[32,16], index: 0, kind: input, shape index: {}]   ;;  %s300_s2 = inlined_call_operand.vmem [shape: f32[32,1], index: 2, kind: input, shape index: {}]   ;;  %s301_s3 = inlined_call_operand.vmem [shape: f32[32,1], index: 3, kind: input, shape index: {}]   ;;  %s302_s4 = inlined_call_operand.vmem [shape: f32[32,128], index: 4, kind: output, shape index: {}]  }
   0x1   :  { %v21_v0 = vld [vmem:[%s298_s1] sm:$0xff]  ;;  %v22_v1 = vld [vmem:[%s298_s1 + $0x8] sm:$0xff]  ;;  %213 = vset.pattern.permute.xlu1 %v214_v3  ;;  %212 = vset.pattern.permute.xlu0 %v214_v3  ;;  %v19_v5 = vld [vmem:[%s299_s0 + $0x10] sm:$0xff] }
   0x2   :  { %v17_v2 = vld [vmem:[%s299_s0] sm:$0xff]  ;;  %v205_v4 = vpack.c.bf16 %v22_v1, %v21_v0  ;;  %202 = vmatprep.mubr.msk.f32.mxu1 %vm23_vm0, %v19_v5  ;;  %v123_v6 = vld [vmem:[%s300_s2 + $0x10] sm:$0xff]  ;;  %v18_v8 = vld [vmem:[%s299_s0 + $0x8] sm:$0xff] }
   0x3   :  { %199 = vmatprep.mubr.msk.f32.mxu0 %vm23_vm0, %v17_v2  ;;  %v121_v7 = vld [vmem:[%s300_s2] sm:$0xff]  ;;  %v20_v9 = vld [vmem:[%s299_s0 + $0x18] sm:$0xff]  ;;  %137 = vperm.xlu1 %213, %v123_v6   ;;  %v122_v11 = vld [vmem:[%s300_s2 + $0x8] sm:$0xff] }
   0x4   :  { %206 = vmatprep.subr.bf16.mxu0 %v205_v4  ;;  %209 = vmatprep.subr.bf16.mxu1 %v205_v4  ;;  %v124_v10 = vld [vmem:[%s300_s2 + $0x18] sm:$0xff]  ;;  %v150_v12 = vld [vmem:[%s301_s3 + $0x8] sm:$0xff]  ;;  %v149_v13 = vld [vmem:[%s301_s3] sm:$0xff] }
   0x5   :  { %208 = vmatpush3.bf16.msra.mxu0 %v205_v4  ;;  %210 = vmatpush3.bf16.msra.mxu1 %v205_v4  ;;  %v152_v14 = vld [vmem:[%s301_s3 + $0x18] sm:$0xff]  ;;  %v151_v15 = vld [vmem:[%s301_s3 + $0x10] sm:$0xff] }
   0x6   :  { %127 = vperm.xlu0 %212, %v121_v7  }
   0x7   :  { %142 = vperm.xlu1 %213, %v124_v10  }
   0x8   :  { %200 = vmatmul.mubr.msk.f32.vlgmr.msra.gmra.mrb[0].mxu0 %vm23_vm0, %v18_v8  ;;  %203 = vmatmul.mubr.msk.f32.vlgmr.msra.gmra.mrb[0].mxu1 %vm23_vm0, %v20_v9 }
   0xa   :  { %132 = vperm.xlu0 %212, %v122_v11  }
   0xb   :  { %160 = vperm.xlu1 %213, %v150_v12  }
   0xe   :  { %155 = vperm.xlu0 %212, %v149_v13  }
   0xf   :  { %170 = vperm.xlu1 %213, %v152_v14  }
  0x12   :  { %165 = vperm.xlu0 %212, %v151_v15  }
  0x82   :  { %v138_v16 = vpop.permute.xlu1 %137 }
  0x85   :  { %v128_v17 = vpop.permute.xlu0 %127 }
  0x86   :  { %v143_v18 = vpop.permute.xlu1 %142 }
  0x89   :  { %v133_v19 = vpop.permute.xlu0 %132 }
  0x8a   :  { %v161_v20 = vpop.permute.xlu1 %160 }
  0x8d   :  { %v156_v21 = vpop.permute.xlu0 %155 }
  0x8e   :  { %v171_v28 = vpop.permute.xlu1 %170 }
  0x91   :  { %v166_v31 = vpop.permute.xlu0 %165 }
  0xdb   :  { %v201_v22 = vpop.f32.mrb[0].mxu0  ;;  %v204_v23 = vpop.f32.mrb[0].mxu1 }
  0xdc   :  { %v146_v24 = vmul.f32 %v201_v22, %v133_v19  ;;  %v148_v25 = vmul.f32 %v204_v23, %v143_v18  ;;  %v102_v26 = vpop.f32.mrb[1].mxu0  ;;  %v112_v27 = vpop.f32.mrb[1].mxu1 }
  0xdd   :  { %v145_v29 = vmul.f32 %v128_v17, %v102_v26  ;;  %v147_v30 = vmul.f32 %v138_v16, %v112_v27 }
  0xde   :  { %v174_v32 = vadd.f32 %v161_v20, %v146_v24  ;;  %v176_v33 = vadd.f32 %v171_v28, %v148_v25 }
  0xdf   :  { %v173_v34 = vadd.f32 %v156_v21, %v145_v29  ;;  %v175_v35 = vadd.f32 %v166_v31, %v147_v30 }
  0xe0   :  { %178 = vst [vmem:[%s302_s4 + $0x8] sm:$0xff] %v174_v32  ;;  %180 = vst [vmem:[%s302_s4 + $0x18] sm:$0xff] %v176_v33 }
  0xe1   :  { %177 = vst [vmem:[%s302_s4] sm:$0xff] %v173_v34  ;;  %179 = vst [vmem:[%s302_s4 + $0x10] sm:$0xff] %v175_v35 }

// kernel: pcb_test_forward.24
= control target key start
LH: loop header
LB: loop body
LE: loop exit
PB: predicated region body
PF: predicated region fallthrough
CT: control target
= control target key end

     0   :  { %v170_v0 = vmov 0.0|0.0   ;;  %vm171_vm0 = vmmov 0   ;;  %v172_v4 = vmov 0.0   ;;  %v173_v7 = vmov 0   ;;  %s238_s1 = inlined_call_operand.vmem [shape: f32[72,128], index: 1, kind: input, shape index: {}]   ;;  %s239_s2 = inlined_call_operand.vmem [shape: f32[8,1], index: 2, kind: input, shape index: {}]   ;;  %s240_s3 = inlined_call_operand.vmem [shape: f32[8,1], index: 3, kind: input, shape index: {}]   ;;  %s241_s0 = inlined_call_operand.vmem [shape: f32[8,72], index: 0, kind: input, shape index: {}]   ;;  %s242_s4 = inlined_call_operand.vmem [shape: f32[8,128], index: 4, kind: output, shape index: {}]  }
   0x1   :  { %153 = vmatprep.subr.bf16.mxu0 %v170_v0  ;;  %v18_v1 = vld [vmem:[%s238_s1] sm:$0xff]  ;;  %v19_v2 = vld [vmem:[%s238_s1 + $0x8] sm:$0xff]  ;;  %v20_v3 = vld [vmem:[%s238_s1 + $0x10] sm:$0xff]  ;;  %150 = vmatprep.mubr.msk.f32.mxu0 %vm171_vm0, %v172_v4  ;;  %vm27_vm1 = vcmask 588800  }
   0x2   :  { %v154_v5 = vpack.c.bf16 %v19_v2, %v18_v1  ;;  %v21_v6 = vld [vmem:[%s238_s1 + $0x18] sm:$0xff]  ;;  %169 = vset.pattern.permute.xlu0 %v173_v7  ;;  %v101_v9 = vld [vmem:[%s239_s2] sm:$0xff]  ;;  %v23_v11 = vld [vmem:[%s238_s1 + $0x28] sm:$0xff] }
   0x3   :  { %v157_v8 = vpack.c.bf16 %v21_v6, %v20_v3  ;;  %v22_v10 = vld [vmem:[%s238_s1 + $0x20] sm:$0xff]  ;;  %104 = vperm.xlu0 %169, %v101_v9   ;;  %v24_v14 = vld [vmem:[%s238_s1 + $0x30] sm:$0xff]  ;;  %v25_v15 = vld [vmem:[%s238_s1 + $0x38] sm:$0xff] }
   0x4   :  { %155 = vmatpush3.bf16.msra.mxu0 %v154_v5  ;;  %v108_v12 = vld [vmem:[%s240_s3] sm:$0xff]  ;;  %v160_v13 = vpack.c.bf16 %v23_v11, %v22_v10  ;;  %v163_v16 = vpack.c.bf16 %v25_v15, %v24_v14 }
   0x5   :  { %156 = vmatprep.subr.bf16.mxu0 %v170_v0  ;;  %v26_v17 = vld [vmem:[%s238_s1 + $0x40] sm:$0xff] }
   0x6   :  { %v17_v18 = vld [vmem:[%s241_s0] sm:$0xff] }
   0x7   :  { %111 = vperm.xlu0 %169, %v108_v12  }
   0x8   :  { %158 = vmatpush3.bf16.msra.mxu0 %v157_v8 }
   0x9   :  { %159 = vmatprep.subr.bf16.mxu0 %v170_v0 }
   0xc   :  { %161 = vmatpush3.bf16.msra.mxu0 %v160_v13 }
   0xd   :  { %162 = vmatprep.subr.bf16.mxu0 %v170_v0 }
  0x10   :  { %164 = vmatpush3.bf16.msra.mxu0 %v163_v16 }
  0x11   :  { %148 = vmatprep.subr.mxu0 %v172_v4 }
  0x14   :  { %149 = vmatpush3.msra.mxu0 %v26_v17 }
  0x15   :  { %151 = vmatmul.mubr.msk.f32.vlgmr.msra.gmra.mrb[0].mxu0 %vm27_vm1, %v17_v18 }
  0x82   :  { %v105_v19 = vpop.permute.xlu0 %104 }
  0x86   :  { %v112_v23 = vpop.permute.xlu0 %111 }
  0xe8   :  { %v97_v20 = vpop.f32.mrb[0].mxu0 }
  0xe9   :  { %v107_v21 = vmul.f32 %v105_v19, %v97_v20  ;;  %v152_v22 = vpop.f32.mrb[1].mxu0 }
  0xeb   :  { %v114_v24 = vadd.f32 %v112_v23, %v107_v21 }
  0xed   :  { %v115_v25 = vmax.f32 %v114_v24, 0.0 }
  0xef   :  { %116 = vst [vmem:[%s242_s4] sm:$0xff] %v115_v25 }

// kernel: pcb_test_forward.25
= control target key start
LH: loop header
LB: loop body
LE: loop exit
PB: predicated region body
PF: predicated region fallthrough
CT: control target
= control target key end

     0   :  { %vm25_vm0 = vcmask 64512   ;;  %v221_v3 = vmov 0   ;;  %s319_s1 = inlined_call_operand.vmem [shape: f32[8,128], index: 1, kind: input, shape index: {}]   ;;  %s320_s0 = inlined_call_operand.vmem [shape: f32[32,8], index: 0, kind: input, shape index: {}]   ;;  %s321_s2 = inlined_call_operand.vmem [shape: f32[32,1], index: 2, kind: input, shape index: {}]   ;;  %s322_s3 = inlined_call_operand.vmem [shape: f32[32,1], index: 3, kind: input, shape index: {}]   ;;  %s323_s4 = inlined_call_operand.vmem [shape: f32[32,128], index: 4, kind: input, shape index: {}]   ;;  %s324_s5 = inlined_call_operand.vmem [shape: f32[32,128], index: 5, kind: output, shape index: {}]  }
   0x1   :  { %v24_v0 = vld [vmem:[%s319_s1] sm:$0xff]  ;;  %v22_v2 = vld [vmem:[%s320_s0 + $0x10] sm:$0xff]  ;;  %220 = vset.pattern.permute.xlu1 %v221_v3  ;;  %219 = vset.pattern.permute.xlu0 %v221_v3  ;;  %v21_v4 = vld [vmem:[%s320_s0 + $0x8] sm:$0xff] }
   0x2   :  { %v20_v1 = vld [vmem:[%s320_s0] sm:$0xff]  ;;  %208 = vmatprep.subr.mxu0 %v24_v0  ;;  %216 = vmatprep.subr.mxu1 %v24_v0  ;;  %v23_v5 = vld [vmem:[%s320_s0 + $0x18] sm:$0xff]  ;;  %v125_v6 = vld [vmem:[%s321_s2 + $0x10] sm:$0xff] }
   0x3   :  { %209 = vmatpush3.msra.mxu0 %v24_v0  ;;  %217 = vmatpush3.msra.mxu1 %v24_v0  ;;  %v123_v7 = vld [vmem:[%s321_s2] sm:$0xff]  ;;  %v126_v8 = vld [vmem:[%s321_s2 + $0x18] sm:$0xff]  ;;  %v124_v9 = vld [vmem:[%s321_s2 + $0x8] sm:$0xff] }
   0x4   :  { %210 = vmatprep.mubr.msk.f32.mxu0 %vm25_vm0, %v20_v1  ;;  %213 = vmatprep.mubr.msk.f32.mxu1 %vm25_vm0, %v22_v2  ;;  %v152_v10 = vld [vmem:[%s322_s3 + $0x8] sm:$0xff]  ;;  %v151_v11 = vld [vmem:[%s322_s3] sm:$0xff]  ;;  %v154_v12 = vld [vmem:[%s322_s3 + $0x18] sm:$0xff] }
   0x5   :  { %211 = vmatmul.mubr.msk.f32.vlgmr.msra.gmra.mrb[0].mxu0 %vm25_vm0, %v21_v4  ;;  %214 = vmatmul.mubr.msk.f32.vlgmr.msra.gmra.mrb[0].mxu1 %vm25_vm0, %v23_v5  ;;  %v153_v13 = vld [vmem:[%s322_s3 + $0x10] sm:$0xff]  ;;  %v180_v27 = vld [vmem:[%s323_s4 + $0x8] sm:$0xff]  ;;  %v182_v28 = vld [vmem:[%s323_s4 + $0x18] sm:$0xff] }
   0x6   :  { %139 = vperm.xlu1 %220, %v125_v6   ;;  %129 = vperm.xlu0 %219, %v123_v7   ;;  %v179_v34 = vld [vmem:[%s323_s4] sm:$0xff]  ;;  %v181_v35 = vld [vmem:[%s323_s4 + $0x10] sm:$0xff] }
   0xa   :  { %144 = vperm.xlu1 %220, %v126_v8   ;;  %134 = vperm.xlu0 %219, %v124_v9  }
   0xe   :  { %162 = vperm.xlu1 %220, %v152_v10   ;;  %157 = vperm.xlu0 %219, %v151_v11  }
  0x12   :  { %172 = vperm.xlu1 %220, %v154_v12   ;;  %167 = vperm.xlu0 %219, %v153_v13  }
  0x85   :  { %v140_v14 = vpop.permute.xlu1 %139  ;;  %v130_v15 = vpop.permute.xlu0 %129 }
  0x89   :  { %v145_v16 = vpop.permute.xlu1 %144  ;;  %v135_v17 = vpop.permute.xlu0 %134 }
  0x8d   :  { %v163_v18 = vpop.permute.xlu1 %162  ;;  %v158_v19 = vpop.permute.xlu0 %157 }
  0x91   :  { %v173_v26 = vpop.permute.xlu1 %172  ;;  %v168_v31 = vpop.permute.xlu0 %167 }
  0xd8   :  { %v212_v20 = vpop.f32.mrb[0].mxu0  ;;  %v215_v21 = vpop.f32.mrb[0].mxu1 }
  0xd9   :  { %v148_v22 = vmul.f32 %v212_v20, %v135_v17  ;;  %v150_v23 = vmul.f32 %v215_v21, %v145_v16  ;;  %v104_v24 = vpop.f32.mrb[1].mxu0  ;;  %v114_v25 = vpop.f32.mrb[1].mxu1 }
  0xda   :  { %v147_v29 = vmul.f32 %v130_v15, %v104_v24  ;;  %v149_v30 = vmul.f32 %v140_v14, %v114_v25 }
  0xdb   :  { %v176_v32 = vadd.f32 %v163_v18, %v148_v22  ;;  %v178_v33 = vadd.f32 %v173_v26, %v150_v23 }
  0xdc   :  { %v175_v36 = vadd.f32 %v158_v19, %v147_v29  ;;  %v177_v37 = vadd.f32 %v168_v31, %v149_v30 }
  0xdd   :  { %v184_v38 = vadd.f32 %v180_v27, %v176_v32  ;;  %v186_v39 = vadd.f32 %v182_v28, %v178_v33 }
  0xde   :  { %v183_v40 = vadd.f32 %v179_v34, %v175_v36  ;;  %v185_v41 = vadd.f32 %v181_v35, %v177_v37 }
  0xdf   :  { %v188_v42 = vmax.f32 %v184_v38, 0.0  ;;  %v190_v43 = vmax.f32 %v186_v39, 0.0 }
  0xe0   :  { %v187_v44 = vmax.f32 %v183_v40, 0.0  ;;  %v189_v45 = vmax.f32 %v185_v41, 0.0 }
  0xe1   :  { %192 = vst [vmem:[%s324_s5 + $0x8] sm:$0xff] %v188_v42  ;;  %194 = vst [vmem:[%s324_s5 + $0x18] sm:$0xff] %v190_v43 }
  0xe2   :  { %191 = vst [vmem:[%s324_s5] sm:$0xff] %v187_v44  ;;  %193 = vst [vmem:[%s324_s5 + $0x10] sm:$0xff] %v189_v45 }

// kernel: pcb_test_forward.26
= control target key start
LH: loop header
LB: loop body
LE: loop exit
PB: predicated region body
PF: predicated region fallthrough
CT: control target
= control target key end

     0   :  { %vm23_vm0 = vcmask 261120   ;;  %v171_v3 = vmov 0   ;;  %s235_s1 = inlined_call_operand.vmem [shape: f32[32,128], index: 1, kind: input, shape index: {}]   ;;  %s236_s0 = inlined_call_operand.vmem [shape: f32[16,32], index: 0, kind: input, shape index: {}]   ;;  %s237_s2 = inlined_call_operand.vmem [shape: f32[16,1], index: 2, kind: input, shape index: {}]   ;;  %s238_s3 = inlined_call_operand.vmem [shape: f32[16,1], index: 3, kind: input, shape index: {}]   ;;  %s239_s4 = inlined_call_operand.vmem [shape: f32[16,128], index: 4, kind: output, shape index: {}]  }
   0x1   :  { %v19_v0 = vld [vmem:[%s235_s1] sm:$0xff]  ;;  %v20_v1 = vld [vmem:[%s235_s1 + $0x8] sm:$0xff]  ;;  %v21_v2 = vld [vmem:[%s235_s1 + $0x10] sm:$0xff]  ;;  %169 = vset.pattern.permute.xlu0 %v171_v3  ;;  %170 = vset.pattern.permute.xlu1 %v171_v3 }
   0x2   :  { %v160_v4 = vpack.c.bf16 %v20_v1, %v19_v0  ;;  %v22_v5 = vld [vmem:[%s235_s1 + $0x18] sm:$0xff]  ;;  %v17_v6 = vld [vmem:[%s236_s0] sm:$0xff]  ;;  %v106_v10 = vld [vmem:[%s237_s2 + $0x8] sm:$0xff] }
   0x3   :  { %v164_v7 = vpack.c.bf16 %v22_v5, %v21_v2  ;;  %157 = vmatprep.mubr.msk.f32.mxu0 %vm23_vm0, %v17_v6  ;;  %v105_v8 = vld [vmem:[%s237_s2] sm:$0xff]  ;;  %v120_v11 = vld [vmem:[%s238_s3 + $0x8] sm:$0xff] }
   0x4   :  { %v119_v9 = vld [vmem:[%s238_s3] sm:$0xff]  ;;  %161 = vmatprep.subr.bf16.mxu0 %v160_v4  ;;  %109 = vperm.xlu0 %169, %v105_v8   ;;  %v18_v12 = vld [vmem:[%s236_s0 + $0x8] sm:$0xff] }
   0x5   :  { %163 = vmatpush3.bf16.msra.mxu0 %v160_v4  ;;  %123 = vperm.xlu1 %170, %v119_v9  }
   0x6   :  { %165 = vmatprep.subr.bf16.mxu0 %v164_v7 }
   0x8   :  { %114 = vperm.xlu0 %169, %v106_v10  }
   0x9   :  { %167 = vmatpush3.bf16.msra.mxu0 %v164_v7  ;;  %128 = vperm.xlu1 %170, %v120_v11  }
   0xc   :  { %158 = vmatmul.mubr.msk.f32.vlgmr.msra.gmra.mrb[0].mxu0 %vm23_vm0, %v18_v12 }
  0x83   :  { %v110_v13 = vpop.permute.xlu0 %109 }
  0x84   :  { %v124_v14 = vpop.permute.xlu1 %123 }
  0x87   :  { %v115_v15 = vpop.permute.xlu0 %114 }
  0x88   :  { %v129_v19 = vpop.permute.xlu1 %128 }
  0xdf   :  { %v159_v16 = vpop.f32.mrb[0].mxu0 }
  0xe0   :  { %v118_v17 = vmul.f32 %v159_v16, %v115_v15  ;;  %v96_v18 = vpop.f32.mrb[1].mxu0 }
  0xe1   :  { %v117_v20 = vmul.f32 %v110_v13, %v96_v18 }
  0xe2   :  { %v132_v21 = vadd.f32 %v129_v19, %v118_v17 }
  0xe3   :  { %v131_v22 = vadd.f32 %v124_v14, %v117_v20 }
  0xe4   :  { %v134_v23 = vmax.f32 %v132_v21, 0.0 }
  0xe5   :  { %v133_v24 = vmax.f32 %v131_v22, 0.0 }
  0xe6   :  { %136 = vst [vmem:[%s239_s4 + $0x8] sm:$0xff] %v134_v23 }
  0xe7   :  { %135 = vst [vmem:[%s239_s4] sm:$0xff] %v133_v24 }

// kernel: pcb_test_forward.27
= control target key start
LH: loop header
LB: loop body
LE: loop exit
PB: predicated region body
PF: predicated region fallthrough
CT: control target
= control target key end

     0   :  { %vm29_vm0 = vcmask 261120   ;;  %v338_v3 = vmov 0   ;;  %s488_s1 = inlined_call_operand.vmem [shape: f32[32,32], index: 1, kind: input, shape index: {}]   ;;  %s489_s0 = inlined_call_operand.vmem [shape: f32[64,32], index: 0, kind: input, shape index: {}]   ;;  %s490_s2 = inlined_call_operand.vmem [shape: f32[64,1], index: 2, kind: input, shape index: {}]   ;;  %s491_s3 = inlined_call_operand.vmem [shape: f32[64,1], index: 3, kind: input, shape index: {}]   ;;  %s492_s4 = inlined_call_operand.vmem [shape: f32[64,32], index: 4, kind: output, shape index: {}]  }
   0x1   :  { %v25_v0 = vld [vmem:[%s488_s1] sm:$0xff]  ;;  %v26_v1 = vld [vmem:[%s488_s1 + $0x8] sm:$0xff]  ;;  %v27_v2 = vld [vmem:[%s488_s1 + $0x10] sm:$0xff]  ;;  %337 = vset.pattern.permute.xlu1 %v338_v3  ;;  %336 = vset.pattern.permute.xlu0 %v338_v3 }
   0x2   :  { %v323_v4 = vpack.c.bf16 %v26_v1, %v25_v0  ;;  %v28_v5 = vld [vmem:[%s488_s1 + $0x18] sm:$0xff]  ;;  %v17_v6 = vld [vmem:[%s489_s0] sm:$0xff]  ;;  %v161_v9 = vld [vmem:[%s490_s2 + $0x10] sm:$0xff] }
   0x3   :  { %v21_v7 = vld [vmem:[%s489_s0 + $0x20] sm:$0xff]  ;;  %v327_v8 = vpack.c.bf16 %v28_v5, %v27_v2  ;;  %311 = vmatprep.mubr.msk.f32.mxu0 %vm29_vm0, %v17_v6  ;;  %179 = vperm.xlu1 %337, %v161_v9   ;;  %v162_v11 = vld [vmem:[%s490_s2 + $0x18] sm:$0xff]  ;;  %v160_v12 = vld [vmem:[%s490_s2 + $0x8] sm:$0xff] }
   0x4   :  { %317 = vmatprep.mubr.msk.f32.mxu1 %vm29_vm0, %v21_v7  ;;  %324 = vmatprep.subr.bf16.mxu0 %v323_v4  ;;  %v159_v10 = vld [vmem:[%s490_s2] sm:$0xff]  ;;  %v18_v13 = vld [vmem:[%s489_s0 + $0x8] sm:$0xff]  ;;  %v19_v15 = vld [vmem:[%s489_s0 + $0x10] sm:$0xff] }
   0x5   :  { %331 = vmatprep.subr.bf16.mxu1 %v323_v4  ;;  %326 = vmatpush3.bf16.msra.mxu0 %v323_v4  ;;  %v22_v14 = vld [vmem:[%s489_s0 + $0x28] sm:$0xff]  ;;  %v23_v16 = vld [vmem:[%s489_s0 + $0x30] sm:$0xff]  ;;  %v163_v18 = vld [vmem:[%s490_s2 + $0x20] sm:$0xff] }
   0x6   :  { %333 = vmatpush3.bf16.msra.mxu1 %v323_v4  ;;  %328 = vmatprep.subr.bf16.mxu0 %v327_v8  ;;  %v164_v17 = vld [vmem:[%s490_s2 + $0x28] sm:$0xff]  ;;  %v20_v19 = vld [vmem:[%s489_s0 + $0x18] sm:$0xff]  ;;  %v165_v22 = vld [vmem:[%s490_s2 + $0x30] sm:$0xff] }
   0x7   :  { %332 = vmatprep.subr.bf16.mxu1 %v327_v8  ;;  %169 = vperm.xlu0 %336, %v159_v10   ;;  %v24_v20 = vld [vmem:[%s489_s0 + $0x38] sm:$0xff]  ;;  %v216_v23 = vld [vmem:[%s491_s3 + $0x8] sm:$0xff]  ;;  %v215_v24 = vld [vmem:[%s491_s3] sm:$0xff] }
   0x8   :  { %184 = vperm.xlu1 %337, %v162_v11   ;;  %v166_v21 = vld [vmem:[%s490_s2 + $0x38] sm:$0xff]  ;;  %v217_v26 = vld [vmem:[%s491_s3 + $0x10] sm:$0xff]  ;;  %v220_v27 = vld [vmem:[%s491_s3 + $0x28] sm:$0xff] }
   0x9   :  { %330 = vmatpush3.bf16.msra.mxu0 %v327_v8  ;;  %v218_v25 = vld [vmem:[%s491_s3 + $0x18] sm:$0xff]  ;;  %v219_v28 = vld [vmem:[%s491_s3 + $0x20] sm:$0xff]  ;;  %v221_v30 = vld [vmem:[%s491_s3 + $0x30] sm:$0xff] }
   0xa   :  { %334 = vmatpush3.bf16.msra.mxu1 %v327_v8  ;;  %v222_v29 = vld [vmem:[%s491_s3 + $0x38] sm:$0xff] }
   0xb   :  { %174 = vperm.xlu0 %336, %v160_v12  }
   0xc   :  { %312 = vmatmul.mubr.msk.f32.vlgmr.msra.gmra.mrb[0].mxu0 %vm29_vm0, %v18_v13  ;;  %194 = vperm.xlu1 %337, %v164_v17  }
   0xd   :  { %318 = vmatmul.mubr.msk.f32.vlgmr.msra.gmra.mrb[0].mxu1 %vm29_vm0, %v22_v14  ;;  %314 = vmatprep.mubr.msk.f32.mxu0 %vm29_vm0, %v19_v15 }
   0xe   :  { %320 = vmatprep.mubr.msk.f32.mxu1 %vm29_vm0, %v23_v16 }
   0xf   :  { %189 = vperm.xlu0 %336, %v163_v18  }
  0x10   :  { %315 = vmatmul.mubr.msk.f32.gmra.mrb[2].mxu0 %vm29_vm0, %v20_v19  ;;  %204 = vperm.xlu1 %337, %v166_v21  }
  0x11   :  { %321 = vmatmul.mubr.msk.f32.gmra.mrb[2].mxu1 %vm29_vm0, %v24_v20 }
  0x13   :  { %199 = vperm.xlu0 %336, %v165_v22  }
  0x14   :  { %230 = vperm.xlu1 %337, %v216_v23  }
  0x17   :  { %225 = vperm.xlu0 %336, %v215_v24  }
  0x18   :  { %240 = vperm.xlu1 %337, %v218_v25  }
  0x1b   :  { %235 = vperm.xlu0 %336, %v217_v26  }
  0x1c   :  { %250 = vperm.xlu1 %337, %v220_v27  }
  0x1f   :  { %245 = vperm.xlu0 %336, %v219_v28  }
  0x20   :  { %260 = vperm.xlu1 %337, %v222_v29  }
  0x23   :  { %255 = vperm.xlu0 %336, %v221_v30  }
  0x82   :  { %v180_v31 = vpop.permute.xlu1 %179 }
  0x86   :  { %v170_v32 = vpop.permute.xlu0 %169 }
  0x87   :  { %v185_v33 = vpop.permute.xlu1 %184 }
  0x8a   :  { %v175_v34 = vpop.permute.xlu0 %174 }
  0x8b   :  { %v195_v35 = vpop.permute.xlu1 %194 }
  0x8e   :  { %v190_v36 = vpop.permute.xlu0 %189 }
  0x8f   :  { %v205_v37 = vpop.permute.xlu1 %204 }
  0x92   :  { %v200_v38 = vpop.permute.xlu0 %199 }
  0x93   :  { %v231_v39 = vpop.permute.xlu1 %230 }
  0x96   :  { %v226_v40 = vpop.permute.xlu0 %225 }
  0x97   :  { %v241_v41 = vpop.permute.xlu1 %240 }
  0x9a   :  { %v236_v42 = vpop.permute.xlu0 %235 }
  0x9b   :  { %v251_v43 = vpop.permute.xlu1 %250 }
  0x9e   :  { %v246_v44 = vpop.permute.xlu0 %245 }
  0x9f   :  { %v261_v63 = vpop.permute.xlu1 %260 }
  0xa2   :  { %v256_v2 = vpop.permute.xlu0 %255 }
  0xdf   :  { %v313_v45 = vpop.f32.mrb[0].mxu0 }
  0xe0   :  { %v319_v46 = vpop.f32.mrb[0].mxu1  ;;  %v208_v47 = vmul.f32 %v313_v45, %v175_v34  ;;  %v120_v49 = vpop.f32.mrb[1].mxu0 }
  0xe1   :  { %v212_v48 = vmul.f32 %v319_v46, %v195_v35  ;;  %v140_v50 = vpop.f32.mrb[1].mxu1  ;;  %v207_v51 = vmul.f32 %v170_v32, %v120_v49 }
  0xe2   :  { %v211_v52 = vmul.f32 %v190_v36, %v140_v50  ;;  %v264_v53 = vadd.f32 %v231_v39, %v208_v47 }
  0xe3   :  { %v268_v54 = vadd.f32 %v251_v43, %v212_v48  ;;  %v263_v55 = vadd.f32 %v226_v40, %v207_v51  ;;  %v316_v57 = vpop.f32.mrb[2].mxu0 }
  0xe4   :  { %v267_v56 = vadd.f32 %v246_v44, %v211_v52  ;;  %v322_v58 = vpop.f32.mrb[2].mxu1  ;;  %272 = vst.msk [vmem:[%s492_s4 + $0x8] sm:$0xff] %vm29_vm0, %v264_v53  ;;  %v210_v59 = vmul.f32 %v316_v57, %v185_v33  ;;  %v130_v61 = vpop.f32.mrb[3].mxu0 }
  0xe5   :  { %276 = vst.msk [vmem:[%s492_s4 + $0x28] sm:$0xff] %vm29_vm0, %v268_v54  ;;  %v214_v60 = vmul.f32 %v322_v58, %v205_v37  ;;  %v150_v62 = vpop.f32.mrb[3].mxu1  ;;  %271 = vst.msk [vmem:[%s492_s4] sm:$0xff] %vm29_vm0, %v263_v55  ;;  %v209_v0 = vmul.f32 %v180_v31, %v130_v61 }
  0xe6   :  { %275 = vst.msk [vmem:[%s492_s4 + $0x20] sm:$0xff] %vm29_vm0, %v267_v56  ;;  %v213_v1 = vmul.f32 %v200_v38, %v150_v62  ;;  %v266_v3 = vadd.f32 %v241_v41, %v210_v59 }
  0xe7   :  { %v270_v4 = vadd.f32 %v261_v63, %v214_v60  ;;  %v265_v5 = vadd.f32 %v236_v42, %v209_v0 }
  0xe8   :  { %v269_v6 = vadd.f32 %v256_v2, %v213_v1  ;;  %274 = vst.msk [vmem:[%s492_s4 + $0x18] sm:$0xff] %vm29_vm0, %v266_v3 }
  0xe9   :  { %278 = vst.msk [vmem:[%s492_s4 + $0x38] sm:$0xff] %vm29_vm0, %v270_v4  ;;  %273 = vst.msk [vmem:[%s492_s4 + $0x10] sm:$0xff] %vm29_vm0, %v265_v5 }
  0xea   :  { %277 = vst.msk [vmem:[%s492_s4 + $0x30] sm:$0xff] %vm29_vm0, %v269_v6 }

// kernel: pcb_test_forward.28
= control target key start
LH: loop header
LB: loop body
LE: loop exit
PB: predicated region body
PF: predicated region fallthrough
CT: control target
= control target key end

     0   :  { %v209_v0 = vmov 0.0|0.0   ;;  %v210_v6 = vmov 0   ;;  %vm39_vm0 = vcmask 130048   ;;  %vm151_vm1 = vcmask 261120   ;;  %s338_s1 = inlined_call_operand.vmem [shape: f32[144,32], index: 1, kind: input, shape index: {}]   ;;  %s339_s0 = inlined_call_operand.vmem [shape: f32[16,144], index: 0, kind: input, shape index: {}]   ;;  %s340_s2 = inlined_call_operand.vmem [shape: f32[16,1], index: 2, kind: input, shape index: {}]   ;;  %s341_s3 = inlined_call_operand.vmem [shape: f32[16,1], index: 3, kind: input, shape index: {}]   ;;  %s342_s4 = inlined_call_operand.vmem [shape: f32[16,32], index: 4, kind: output, shape index: {}]  }
   0x1   :  { %160 = vmatprep.subr.bf16.mxu0 %v209_v0  ;;  %187 = vmatprep.subr.bf16.mxu1 %v209_v0  ;;  %v21_v1 = vld [vmem:[%s338_s1] sm:$0xff]  ;;  %v22_v2 = vld [vmem:[%s338_s1 + $0x8] sm:$0xff]  ;;  %v23_v3 = vld [vmem:[%s338_s1 + $0x10] sm:$0xff] }
   0x2   :  { %v161_v4 = vpack.c.bf16 %v22_v2, %v21_v1  ;;  %v24_v5 = vld [vmem:[%s338_s1 + $0x18] sm:$0xff]  ;;  %207 = vset.pattern.permute.xlu0 %v210_v6  ;;  %208 = vset.pattern.permute.xlu1 %v210_v6  ;;  %v25_v8 = vld [vmem:[%s338_s1 + $0x20] sm:$0xff]  ;;  %v26_v9 = vld [vmem:[%s338_s1 + $0x28] sm:$0xff] }
   0x3   :  { %v164_v7 = vpack.c.bf16 %v24_v5, %v23_v3  ;;  %v18_v10 = vld [vmem:[%s339_s0 + $0x8] sm:$0xff]  ;;  %v20_v11 = vld [vmem:[%s339_s0 + $0x18] sm:$0xff]  ;;  %v167_v12 = vpack.c.bf16 %v26_v9, %v25_v8  ;;  %v121_v13 = vld [vmem:[%s340_s2] sm:$0xff] }
   0x4   :  { %162 = vmatpush1.bf16.msra.mxu0 %v161_v4  ;;  %196 = vmatpush1.bf16.msra.mxu1 %v161_v4  ;;  %v135_v14 = vld [vmem:[%s341_s3] sm:$0xff]  ;;  %v27_v15 = vld [vmem:[%s338_s1 + $0x30] sm:$0xff]  ;;  %v28_v16 = vld [vmem:[%s338_s1 + $0x38] sm:$0xff] }
   0x5   :  { %163 = vmatprep.subr.bf16.mxu0 %v209_v0  ;;  %188 = vmatprep.subr.bf16.mxu1 %v209_v0  ;;  %v170_v17 = vpack.c.bf16 %v28_v16, %v27_v15  ;;  %v122_v18 = vld [vmem:[%s340_s2 + $0x8] sm:$0xff]  ;;  %v29_v20 = vld [vmem:[%s338_s1 + $0x40] sm:$0xff]  ;;  %v31_v23 = vld [vmem:[%s338_s1 + $0x50] sm:$0xff] }
   0x6   :  { %158 = vmatprep.mubr.msk.f32.mxu0 %vm39_vm0, %v18_v10  ;;  %159 = vmatprep.mubr.msk.f32.mxu1 %vm39_vm0, %v20_v11  ;;  %v136_v19 = vld [vmem:[%s341_s3 + $0x8] sm:$0xff]  ;;  %v32_v24 = vld [vmem:[%s338_s1 + $0x58] sm:$0xff]  ;;  %v33_v26 = vld [vmem:[%s338_s1 + $0x60] sm:$0xff] }
   0x7   :  { %125 = vperm.xlu0 %207, %v121_v13   ;;  %139 = vperm.xlu1 %208, %v135_v14   ;;  %v30_v21 = vld [vmem:[%s338_s1 + $0x48] sm:$0xff]  ;;  %v176_v25 = vpack.c.bf16 %v32_v24, %v31_v23  ;;  %v35_v29 = vld [vmem:[%s338_s1 + $0x70] sm:$0xff]  ;;  %v36_v30 = vld [vmem:[%s338_s1 + $0x78] sm:$0xff] }
   0x8   :  { %165 = vmatpush1.bf16.msra.mxu0 %v164_v7  ;;  %197 = vmatpush1.bf16.msra.mxu1 %v164_v7  ;;  %v173_v22 = vpack.c.bf16 %v30_v21, %v29_v20  ;;  %v34_v27 = vld [vmem:[%s338_s1 + $0x68] sm:$0xff]  ;;  %v182_v31 = vpack.c.bf16 %v36_v30, %v35_v29  ;;  %v37_v32 = vld [vmem:[%s338_s1 + $0x80] sm:$0xff]  ;;  %v19_v36 = vld [vmem:[%s339_s0 + $0x10] sm:$0xff] }
   0x9   :  { %166 = vmatprep.subr.bf16.mxu0 %v209_v0  ;;  %189 = vmatprep.subr.bf16.mxu1 %v209_v0  ;;  %v179_v28 = vpack.c.bf16 %v34_v27, %v33_v26  ;;  %v38_v33 = vld [vmem:[%s338_s1 + $0x88] sm:$0xff]  ;;  %v17_v35 = vld [vmem:[%s339_s0] sm:$0xff] }
   0xa   :  { %v185_v34 = vpack.c.bf16 %v38_v33, %v37_v32 }
   0xb   :  { %130 = vperm.xlu0 %207, %v122_v18   ;;  %144 = vperm.xlu1 %208, %v136_v19  }
   0xc   :  { %168 = vmatpush1.bf16.msra.mxu0 %v167_v12  ;;  %198 = vmatpush1.bf16.msra.mxu1 %v167_v12 }
   0xd   :  { %169 = vmatprep.subr.bf16.mxu0 %v209_v0  ;;  %190 = vmatprep.subr.bf16.mxu1 %v209_v0 }
  0x10   :  { %171 = vmatpush1.bf16.msra.mxu0 %v170_v17  ;;  %199 = vmatpush1.bf16.msra.mxu1 %v170_v17 }
  0x11   :  { %172 = vmatprep.subr.bf16.mxu0 %v209_v0  ;;  %191 = vmatprep.subr.bf16.mxu1 %v209_v0 }
  0x14   :  { %174 = vmatpush1.bf16.msra.mxu0 %v173_v22  ;;  %200 = vmatpush1.bf16.msra.mxu1 %v173_v22 }
  0x15   :  { %175 = vmatprep.subr.bf16.mxu0 %v209_v0  ;;  %192 = vmatprep.subr.bf16.mxu1 %v209_v0 }
  0x18   :  { %177 = vmatpush1.bf16.msra.mxu0 %v176_v25  ;;  %201 = vmatpush1.bf16.msra.mxu1 %v176_v25 }
  0x19   :  { %178 = vmatprep.subr.bf16.mxu0 %v209_v0  ;;  %193 = vmatprep.subr.bf16.mxu1 %v209_v0 }
  0x1c   :  { %180 = vmatpush1.bf16.msra.mxu0 %v179_v28  ;;  %202 = vmatpush1.bf16.msra.mxu1 %v179_v28 }
  0x1d   :  { %181 = vmatprep.subr.bf16.mxu0 %v209_v0  ;;  %194 = vmatprep.subr.bf16.mxu1 %v209_v0 }
  0x20   :  { %183 = vmatpush1.bf16.msra.mxu0 %v182_v31  ;;  %203 = vmatpush1.bf16.msra.mxu1 %v182_v31 }
  0x21   :  { %184 = vmatprep.subr.bf16.mxu0 %v209_v0  ;;  %195 = vmatprep.subr.bf16.mxu1 %v209_v0 }
  0x24   :  { %186 = vmatpush1.bf16.msra.mxu0 %v185_v34  ;;  %204 = vmatpush1.bf16.msra.mxu1 %v185_v34 }
  0x27   :  { %111 = vmatmul.mubr.f32.vlgmr.msra.gmra.mrb[0].mxu0 %v17_v35  ;;  %116 = vmatmul.mubr.f32.vlgmr.msra.gmra.mrb[0].mxu1 %v19_v36 }
  0x86   :  { %v126_v37 = vpop.permute.xlu0 %125  ;;  %v140_v38 = vpop.permute.xlu1 %139 }
  0x8a   :  { %v131_v39 = vpop.permute.xlu0 %130  ;;  %v145_v46 = vpop.permute.xlu1 %144 }
  0xfa   :  { %v112_v40 = vpop.f32.mrb[0].mxu0  ;;  %v117_v41 = vpop.f32.mrb[0].mxu1 }
  0xfb   :  { %v133_v42 = vmul.f32 %v126_v37, %v112_v40  ;;  %v134_v43 = vmul.f32 %v131_v39, %v117_v41  ;;  %v114_v44 = vpop.f32.mrb[1].mxu0  ;;  %v119_v45 = vpop.f32.mrb[1].mxu1 }
  0xfd   :  { %v147_v47 = vadd.f32 %v140_v38, %v133_v42  ;;  %v148_v48 = vadd.f32 %v145_v46, %v134_v43 }
  0xff   :  { %v149_v49 = vmax.f32 %v147_v47, 0.0  ;;  %v150_v50 = vmax.f32 %v148_v48, 0.0 }
 0x101   :  { %152 = vst.msk [vmem:[%s342_s4] sm:$0xff] %vm151_vm1, %v149_v49  ;;  %153 = vst.msk [vmem:[%s342_s4 + $0x8] sm:$0xff] %vm151_vm1, %v150_v50 }

// kernel: pcb_test_forward.29
= control target key start
LH: loop header
LB: loop body
LE: loop exit
PB: predicated region body
PF: predicated region fallthrough
CT: control target
= control target key end

     0   :  { %vm30_vm0 = vcmask 130048   ;;  %v352_v3 = vmov 0   ;;  %vm296_vm1 = vcmask 261120   ;;  %s525_s1 = inlined_call_operand.vmem [shape: f32[16,32], index: 1, kind: input, shape index: {}]   ;;  %s526_s0 = inlined_call_operand.vmem [shape: f32[64,16], index: 0, kind: input, shape index: {}]   ;;  %s527_s2 = inlined_call_operand.vmem [shape: f32[64,1], index: 2, kind: input, shape index: {}]   ;;  %s528_s3 = inlined_call_operand.vmem [shape: f32[64,1], index: 3, kind: input, shape index: {}]   ;;  %s529_s4 = inlined_call_operand.vmem [shape: f32[64,32], index: 4, kind: input, shape index: {}]   ;;  %s530_s5 = inlined_call_operand.vmem [shape: f32[64,32], index: 5, kind: output, shape index: {}]  }
   0x1   :  { %v28_v0 = vld [vmem:[%s525_s1] sm:$0xff]  ;;  %v29_v1 = vld [vmem:[%s525_s1 + $0x8] sm:$0xff]  ;;  %351 = vset.pattern.permute.xlu1 %v352_v3  ;;  %350 = vset.pattern.permute.xlu0 %v352_v3  ;;  %v162_v6 = vld [vmem:[%s527_s2 + $0x10] sm:$0xff] }
   0x2   :  { %v20_v2 = vld [vmem:[%s526_s0] sm:$0xff]  ;;  %v343_v4 = vpack.c.bf16 %v29_v1, %v28_v0  ;;  %v21_v8 = vld [vmem:[%s526_s0 + $0x8] sm:$0xff]  ;;  %v22_v10 = vld [vmem:[%s526_s0 + $0x10] sm:$0xff]  ;;  %180 = vperm.xlu1 %351, %v162_v6  }
   0x3   :  { %331 = vmatprep.mubr.msk.f32.mxu0 %vm30_vm0, %v20_v2  ;;  %v24_v5 = vld [vmem:[%s526_s0 + $0x20] sm:$0xff]  ;;  %v25_v9 = vld [vmem:[%s526_s0 + $0x28] sm:$0xff]  ;;  %v26_v11 = vld [vmem:[%s526_s0 + $0x30] sm:$0xff] }
   0x4   :  { %337 = vmatprep.mubr.msk.f32.mxu1 %vm30_vm0, %v24_v5  ;;  %344 = vmatprep.subr.bf16.mxu0 %v343_v4  ;;  %v160_v7 = vld [vmem:[%s527_s2] sm:$0xff]  ;;  %v163_v12 = vld [vmem:[%s527_s2 + $0x18] sm:$0xff]  ;;  %v161_v13 = vld [vmem:[%s527_s2 + $0x8] sm:$0xff] }
   0x5   :  { %347 = vmatprep.subr.bf16.mxu1 %v343_v4  ;;  %346 = vmatpush3.bf16.msra.mxu0 %v343_v4  ;;  %v23_v14 = vld [vmem:[%s526_s0 + $0x18] sm:$0xff]  ;;  %v165_v16 = vld [vmem:[%s527_s2 + $0x28] sm:$0xff]  ;;  %v164_v17 = vld [vmem:[%s527_s2 + $0x20] sm:$0xff] }
   0x6   :  { %348 = vmatpush3.bf16.msra.mxu1 %v343_v4  ;;  %170 = vperm.xlu0 %350, %v160_v7   ;;  %v27_v15 = vld [vmem:[%s526_s0 + $0x38] sm:$0xff]  ;;  %v166_v19 = vld [vmem:[%s527_s2 + $0x30] sm:$0xff]  ;;  %v217_v20 = vld [vmem:[%s528_s3 + $0x8] sm:$0xff] }
   0x7   :  { %185 = vperm.xlu1 %351, %v163_v12   ;;  %v167_v18 = vld [vmem:[%s527_s2 + $0x38] sm:$0xff]  ;;  %v216_v21 = vld [vmem:[%s528_s3] sm:$0xff]  ;;  %v218_v23 = vld [vmem:[%s528_s3 + $0x10] sm:$0xff] }
   0x8   :  { %332 = vmatmul.mubr.msk.f32.vlgmr.msra.gmra.mrb[0].mxu0 %vm30_vm0, %v21_v8  ;;  %v219_v22 = vld [vmem:[%s528_s3 + $0x18] sm:$0xff]  ;;  %v221_v24 = vld [vmem:[%s528_s3 + $0x28] sm:$0xff]  ;;  %v220_v25 = vld [vmem:[%s528_s3 + $0x20] sm:$0xff] }
   0x9   :  { %338 = vmatmul.mubr.msk.f32.vlgmr.msra.gmra.mrb[0].mxu1 %vm30_vm0, %v25_v9  ;;  %334 = vmatprep.mubr.msk.f32.mxu0 %vm30_vm0, %v22_v10  ;;  %v223_v26 = vld [vmem:[%s528_s3 + $0x38] sm:$0xff]  ;;  %v222_v27 = vld [vmem:[%s528_s3 + $0x30] sm:$0xff]  ;;  %v273_v48 = vld [vmem:[%s529_s4 + $0x8] sm:$0xff] }
   0xa   :  { %340 = vmatprep.mubr.msk.f32.mxu1 %vm30_vm0, %v26_v11  ;;  %175 = vperm.xlu0 %350, %v161_v13   ;;  %v277_v49 = vld [vmem:[%s529_s4 + $0x28] sm:$0xff]  ;;  %v272_v54 = vld [vmem:[%s529_s4] sm:$0xff]  ;;  %v275_v5 = vld [vmem:[%s529_s4 + $0x18] sm:$0xff] }
   0xb   :  { %195 = vperm.xlu1 %351, %v165_v16   ;;  %v276_v55 = vld [vmem:[%s529_s4 + $0x20] sm:$0xff]  ;;  %v279_v6 = vld [vmem:[%s529_s4 + $0x38] sm:$0xff] }
   0xc   :  { %335 = vmatmul.mubr.msk.f32.gmra.mrb[2].mxu0 %vm30_vm0, %v23_v14  ;;  %v274_v14 = vld [vmem:[%s529_s4 + $0x10] sm:$0xff] }
   0xd   :  { %341 = vmatmul.mubr.msk.f32.gmra.mrb[2].mxu1 %vm30_vm0, %v27_v15  ;;  %v278_v15 = vld [vmem:[%s529_s4 + $0x30] sm:$0xff] }
   0xe   :  { %190 = vperm.xlu0 %350, %v164_v17  }
   0xf   :  { %205 = vperm.xlu1 %351, %v167_v18  }
  0x12   :  { %200 = vperm.xlu0 %350, %v166_v19  }
  0x13   :  { %231 = vperm.xlu1 %351, %v217_v20  }
  0x16   :  { %226 = vperm.xlu0 %350, %v216_v21  }
  0x17   :  { %241 = vperm.xlu1 %351, %v219_v22  }
  0x1a   :  { %236 = vperm.xlu0 %350, %v218_v23  }
  0x1b   :  { %251 = vperm.xlu1 %351, %v221_v24  }
  0x1e   :  { %246 = vperm.xlu0 %350, %v220_v25  }
  0x1f   :  { %261 = vperm.xlu1 %351, %v223_v26  }
  0x22   :  { %256 = vperm.xlu0 %350, %v222_v27  }
  0x81   :  { %v181_v28 = vpop.permute.xlu1 %180 }
  0x85   :  { %v171_v29 = vpop.permute.xlu0 %170 }
  0x86   :  { %v186_v30 = vpop.permute.xlu1 %185 }
  0x89   :  { %v176_v31 = vpop.permute.xlu0 %175 }
  0x8a   :  { %v196_v32 = vpop.permute.xlu1 %195 }
  0x8d   :  { %v191_v33 = vpop.permute.xlu0 %190 }
  0x8e   :  { %v206_v34 = vpop.permute.xlu1 %205 }
  0x91   :  { %v201_v35 = vpop.permute.xlu0 %200 }
  0x92   :  { %v232_v36 = vpop.permute.xlu1 %231 }
  0x95   :  { %v227_v37 = vpop.permute.xlu0 %226 }
  0x96   :  { %v242_v38 = vpop.permute.xlu1 %241 }
  0x99   :  { %v237_v39 = vpop.permute.xlu0 %236 }
  0x9a   :  { %v252_v40 = vpop.permute.xlu1 %251 }
  0x9d   :  { %v247_v41 = vpop.permute.xlu0 %246 }
  0x9e   :  { %v262_v2 = vpop.permute.xlu1 %261 }
  0xa1   :  { %v257_v9 = vpop.permute.xlu0 %256 }
  0xdb   :  { %v333_v42 = vpop.f32.mrb[0].mxu0 }
  0xdc   :  { %v339_v43 = vpop.f32.mrb[0].mxu1  ;;  %v209_v44 = vmul.f32 %v333_v42, %v176_v31  ;;  %v121_v46 = vpop.f32.mrb[1].mxu0 }
  0xdd   :  { %v213_v45 = vmul.f32 %v339_v43, %v196_v32  ;;  %v141_v47 = vpop.f32.mrb[1].mxu1  ;;  %v208_v50 = vmul.f32 %v171_v29, %v121_v46 }
  0xde   :  { %v212_v51 = vmul.f32 %v191_v33, %v141_v47  ;;  %v265_v52 = vadd.f32 %v232_v36, %v209_v44 }
  0xdf   :  { %v269_v53 = vadd.f32 %v252_v40, %v213_v45  ;;  %v264_v56 = vadd.f32 %v227_v37, %v208_v50  ;;  %v336_v58 = vpop.f32.mrb[2].mxu0 }
  0xe0   :  { %v268_v57 = vadd.f32 %v247_v41, %v212_v51  ;;  %v342_v59 = vpop.f32.mrb[2].mxu1  ;;  %v281_v60 = vadd.f32 %v273_v48, %v265_v52  ;;  %v211_v62 = vmul.f32 %v336_v58, %v186_v30  ;;  %v131_v0 = vpop.f32.mrb[3].mxu0 }
  0xe1   :  { %v285_v61 = vadd.f32 %v277_v49, %v269_v53  ;;  %v215_v63 = vmul.f32 %v342_v59, %v206_v34  ;;  %v151_v1 = vpop.f32.mrb[3].mxu1  ;;  %v280_v3 = vadd.f32 %v272_v54, %v264_v56  ;;  %v210_v7 = vmul.f32 %v181_v28, %v131_v0 }
  0xe2   :  { %v284_v4 = vadd.f32 %v276_v55, %v268_v57  ;;  %v214_v8 = vmul.f32 %v201_v35, %v151_v1  ;;  %v289_v10 = vmax.f32 %v281_v60, 0.0  ;;  %v267_v12 = vadd.f32 %v242_v38, %v211_v62 }
  0xe3   :  { %v293_v11 = vmax.f32 %v285_v61, 0.0  ;;  %v271_v13 = vadd.f32 %v262_v2, %v215_v63  ;;  %v288_v16 = vmax.f32 %v280_v3, 0.0  ;;  %v266_v18 = vadd.f32 %v237_v39, %v210_v7 }
  0xe4   :  { %v292_v17 = vmax.f32 %v284_v4, 0.0  ;;  %v270_v19 = vadd.f32 %v257_v9, %v214_v8  ;;  %298 = vst.msk [vmem:[%s530_s5 + $0x8] sm:$0xff] %vm296_vm1, %v289_v10  ;;  %v283_v20 = vadd.f32 %v275_v5, %v267_v12 }
  0xe5   :  { %302 = vst.msk [vmem:[%s530_s5 + $0x28] sm:$0xff] %vm296_vm1, %v293_v11  ;;  %v287_v21 = vadd.f32 %v279_v6, %v271_v13  ;;  %297 = vst.msk [vmem:[%s530_s5] sm:$0xff] %vm296_vm1, %v288_v16  ;;  %v282_v22 = vadd.f32 %v274_v14, %v266_v18 }
  0xe6   :  { %301 = vst.msk [vmem:[%s530_s5 + $0x20] sm:$0xff] %vm296_vm1, %v292_v17  ;;  %v286_v23 = vadd.f32 %v278_v15, %v270_v19  ;;  %v291_v24 = vmax.f32 %v283_v20, 0.0 }
  0xe7   :  { %v295_v25 = vmax.f32 %v287_v21, 0.0  ;;  %v290_v26 = vmax.f32 %v282_v22, 0.0 }
  0xe8   :  { %v294_v27 = vmax.f32 %v286_v23, 0.0  ;;  %300 = vst.msk [vmem:[%s530_s5 + $0x18] sm:$0xff] %vm296_vm1, %v291_v24 }
  0xe9   :  { %304 = vst.msk [vmem:[%s530_s5 + $0x38] sm:$0xff] %vm296_vm1, %v295_v25  ;;  %299 = vst.msk [vmem:[%s530_s5 + $0x10] sm:$0xff] %vm296_vm1, %v290_v26 }
  0xea   :  { %303 = vst.msk [vmem:[%s530_s5 + $0x30] sm:$0xff] %vm296_vm1, %v294_v27 }

// kernel: pcb_test_forward.30
= control target key start
LH: loop header
LB: loop body
LE: loop exit
PB: predicated region body
PF: predicated region fallthrough
CT: control target
= control target key end

     0   :  { %v880_v0 = vmov 0   ;;  %vm48_vm0 = vcmask 523264   ;;  %s1437_s2 = inlined_call_operand.vmem [shape: f32[160,1], index: 2, kind: input, shape index: {}]   ;;  %s1438_s1 = inlined_call_operand.vmem [shape: f32[64,32], index: 1, kind: input, shape index: {}]   ;;  %s1439_s0 = inlined_call_operand.vmem [shape: f32[160,64], index: 0, kind: input, shape index: {}]   ;;  %s1440_s3 = inlined_call_operand.vmem [shape: f32[160,1], index: 3, kind: input, shape index: {}]   ;;  %s1441_s4 = inlined_call_operand.vmem [shape: f32[160,1], index: 4, kind: input, shape index: {}]   ;;  %s1442_s5 = inlined_call_operand.vmem [shape: f32[160,32], index: 5, kind: output, shape index: {}]  }
   0x1   :  { %879 = vset.pattern.permute.xlu1 %v880_v0  ;;  %878 = vset.pattern.permute.xlu0 %v880_v0  ;;  %v276_v1 = vld [vmem:[%s1437_s2 + $0x10] sm:$0xff]  ;;  %v274_v2 = vld [vmem:[%s1437_s2] sm:$0xff]  ;;  %v41_v4 = vld [vmem:[%s1438_s1 + $0x8] sm:$0xff] }
   0x2   :  { %v40_v3 = vld [vmem:[%s1438_s1] sm:$0xff]  ;;  %306 = vperm.xlu1 %879, %v276_v1   ;;  %296 = vperm.xlu0 %878, %v274_v2   ;;  %v42_v6 = vld [vmem:[%s1438_s1 + $0x10] sm:$0xff]  ;;  %v43_v7 = vld [vmem:[%s1438_s1 + $0x18] sm:$0xff] }
   0x3   :  { %v853_v5 = vpack.c.bf16 %v41_v4, %v40_v3  ;;  %v277_v8 = vld [vmem:[%s1437_s2 + $0x18] sm:$0xff]  ;;  %v275_v9 = vld [vmem:[%s1437_s2 + $0x8] sm:$0xff]  ;;  %v857_v10 = vpack.c.bf16 %v43_v7, %v42_v6  ;;  %v44_v11 = vld [vmem:[%s1438_s1 + $0x20] sm:$0xff] }
   0x4   :  { %v45_v12 = vld [vmem:[%s1438_s1 + $0x28] sm:$0xff]  ;;  %v20_v13 = vld [vmem:[%s1439_s0] sm:$0xff]  ;;  %v30_v14 = vld [vmem:[%s1439_s0 + $0x50] sm:$0xff] }
   0x5   :  { %854 = vmatprep.subr.bf16.mxu0 %v853_v5  ;;  %869 = vmatprep.subr.bf16.mxu1 %v853_v5  ;;  %v279_v15 = vld [vmem:[%s1437_s2 + $0x28] sm:$0xff]  ;;  %v278_v16 = vld [vmem:[%s1437_s2 + $0x20] sm:$0xff]  ;;  %v861_v17 = vpack.c.bf16 %v45_v12, %v44_v11  ;;  %v46_v18 = vld [vmem:[%s1438_s1 + $0x30] sm:$0xff] }
   0x6   :  { %856 = vmatpush3.bf16.msra.mxu0 %v853_v5  ;;  %873 = vmatpush3.bf16.msra.mxu1 %v853_v5  ;;  %v47_v19 = vld [vmem:[%s1438_s1 + $0x38] sm:$0xff]  ;;  %v280_v21 = vld [vmem:[%s1437_s2 + $0x30] sm:$0xff]  ;;  %v283_v23 = vld [vmem:[%s1437_s2 + $0x48] sm:$0xff] }
   0x7   :  { %311 = vperm.xlu1 %879, %v277_v8   ;;  %301 = vperm.xlu0 %878, %v275_v9   ;;  %v281_v20 = vld [vmem:[%s1437_s2 + $0x38] sm:$0xff]  ;;  %v865_v22 = vpack.c.bf16 %v47_v19, %v46_v18  ;;  %v282_v24 = vld [vmem:[%s1437_s2 + $0x40] sm:$0xff]  ;;  %v21_v25 = vld [vmem:[%s1439_s0 + $0x8] sm:$0xff] }
   0x8   :  { %858 = vmatprep.subr.bf16.mxu0 %v857_v10  ;;  %870 = vmatprep.subr.bf16.mxu1 %v857_v10  ;;  %v31_v26 = vld [vmem:[%s1439_s0 + $0x58] sm:$0xff]  ;;  %v22_v27 = vld [vmem:[%s1439_s0 + $0x10] sm:$0xff]  ;;  %v32_v28 = vld [vmem:[%s1439_s0 + $0x60] sm:$0xff] }
   0x9   :  { %823 = vmatprep.mubr.msk.f32.mxu0 %vm48_vm0, %v20_v13  ;;  %838 = vmatprep.mubr.msk.f32.mxu1 %vm48_vm0, %v30_v14  ;;  %v285_v29 = vld [vmem:[%s1437_s2 + $0x58] sm:$0xff]  ;;  %v284_v30 = vld [vmem:[%s1437_s2 + $0x50] sm:$0xff]  ;;  %v33_v32 = vld [vmem:[%s1439_s0 + $0x68] sm:$0xff] }
   0xa   :  { %860 = vmatpush3.bf16.msra.mxu0 %v857_v10  ;;  %874 = vmatpush3.bf16.msra.mxu1 %v857_v10  ;;  %v23_v31 = vld [vmem:[%s1439_s0 + $0x18] sm:$0xff]  ;;  %v24_v33 = vld [vmem:[%s1439_s0 + $0x20] sm:$0xff]  ;;  %v34_v34 = vld [vmem:[%s1439_s0 + $0x70] sm:$0xff] }
   0xb   :  { %321 = vperm.xlu1 %879, %v279_v15   ;;  %316 = vperm.xlu0 %878, %v278_v16   ;;  %v287_v35 = vld [vmem:[%s1437_s2 + $0x68] sm:$0xff]  ;;  %v286_v36 = vld [vmem:[%s1437_s2 + $0x60] sm:$0xff]  ;;  %v35_v38 = vld [vmem:[%s1439_s0 + $0x78] sm:$0xff] }
   0xc   :  { %862 = vmatprep.subr.bf16.mxu0 %v861_v17  ;;  %871 = vmatprep.subr.bf16.mxu1 %v861_v17  ;;  %v25_v37 = vld [vmem:[%s1439_s0 + $0x28] sm:$0xff]  ;;  %v26_v39 = vld [vmem:[%s1439_s0 + $0x30] sm:$0xff]  ;;  %v36_v40 = vld [vmem:[%s1439_s0 + $0x80] sm:$0xff] }
   0xd   :  { %v289_v41 = vld [vmem:[%s1437_s2 + $0x78] sm:$0xff]  ;;  %v288_v42 = vld [vmem:[%s1437_s2 + $0x70] sm:$0xff]  ;;  %v37_v44 = vld [vmem:[%s1439_s0 + $0x88] sm:$0xff] }
   0xe   :  { %864 = vmatpush3.bf16.msra.mxu0 %v861_v17  ;;  %875 = vmatpush3.bf16.msra.mxu1 %v861_v17  ;;  %v27_v43 = vld [vmem:[%s1439_s0 + $0x38] sm:$0xff]  ;;  %v28_v45 = vld [vmem:[%s1439_s0 + $0x40] sm:$0xff]  ;;  %v38_v46 = vld [vmem:[%s1439_s0 + $0x90] sm:$0xff] }
   0xf   :  { %331 = vperm.xlu1 %879, %v281_v20   ;;  %326 = vperm.xlu0 %878, %v280_v21   ;;  %v291_v47 = vld [vmem:[%s1437_s2 + $0x88] sm:$0xff]  ;;  %v290_v48 = vld [vmem:[%s1437_s2 + $0x80] sm:$0xff]  ;;  %v39_v50 = vld [vmem:[%s1439_s0 + $0x98] sm:$0xff] }
  0x10   :  { %866 = vmatprep.subr.bf16.mxu0 %v865_v22  ;;  %872 = vmatprep.subr.bf16.mxu1 %v865_v22  ;;  %v29_v49 = vld [vmem:[%s1439_s0 + $0x48] sm:$0xff]  ;;  %v293_v51 = vld [vmem:[%s1437_s2 + $0x98] sm:$0xff]  ;;  %v292_v52 = vld [vmem:[%s1437_s2 + $0x90] sm:$0xff] }
  0x11   :  { %v415_v53 = vld [vmem:[%s1440_s3 + $0x8] sm:$0xff]  ;;  %v414_v54 = vld [vmem:[%s1440_s3] sm:$0xff]  ;;  %v417_v55 = vld [vmem:[%s1440_s3 + $0x18] sm:$0xff] }
  0x12   :  { %868 = vmatpush3.bf16.msra.mxu0 %v865_v22  ;;  %876 = vmatpush3.bf16.msra.mxu1 %v865_v22  ;;  %v416_v56 = vld [vmem:[%s1440_s3 + $0x10] sm:$0xff]  ;;  %v419_v57 = vld [vmem:[%s1440_s3 + $0x28] sm:$0xff]  ;;  %v418_v58 = vld [vmem:[%s1440_s3 + $0x20] sm:$0xff] }
  0x13   :  { %341 = vperm.xlu1 %879, %v283_v23   ;;  %336 = vperm.xlu0 %878, %v282_v24   ;;  %v421_v59 = vld [vmem:[%s1440_s3 + $0x38] sm:$0xff]  ;;  %v420_v60 = vld [vmem:[%s1440_s3 + $0x30] sm:$0xff]  ;;  %v423_v61 = vld [vmem:[%s1440_s3 + $0x48] sm:$0xff] }
  0x14   :  { %v422_v62 = vld [vmem:[%s1440_s3 + $0x40] sm:$0xff]  ;;  %v425_v63 = vld [vmem:[%s1440_s3 + $0x58] sm:$0xff]  ;;  %v424_v1 = vld [vmem:[%s1440_s3 + $0x50] sm:$0xff] }
  0x15   :  { %824 = vmatmul.mubr.msk.f32.vlgmr.msra.gmra.mrb[0].mxu0 %vm48_vm0, %v21_v25  ;;  %839 = vmatmul.mubr.msk.f32.vlgmr.msra.gmra.mrb[0].mxu1 %vm48_vm0, %v31_v26  ;;  %v427_v2 = vld [vmem:[%s1440_s3 + $0x68] sm:$0xff]  ;;  %v426_v3 = vld [vmem:[%s1440_s3 + $0x60] sm:$0xff]  ;;  %v429_v4 = vld [vmem:[%s1440_s3 + $0x78] sm:$0xff] }
  0x16   :  { %826 = vmatprep.mubr.msk.f32.mxu0 %vm48_vm0, %v22_v27  ;;  %841 = vmatprep.mubr.msk.f32.mxu1 %vm48_vm0, %v32_v28  ;;  %v428_v5 = vld [vmem:[%s1440_s3 + $0x70] sm:$0xff]  ;;  %v431_v6 = vld [vmem:[%s1440_s3 + $0x88] sm:$0xff]  ;;  %v430_v7 = vld [vmem:[%s1440_s3 + $0x80] sm:$0xff] }
  0x17   :  { %351 = vperm.xlu1 %879, %v285_v29   ;;  %346 = vperm.xlu0 %878, %v284_v30   ;;  %v555_v8 = vld [vmem:[%s1441_s4 + $0x8] sm:$0xff]  ;;  %v554_v9 = vld [vmem:[%s1441_s4] sm:$0xff]  ;;  %v433_v10 = vld [vmem:[%s1440_s3 + $0x98] sm:$0xff] }
  0x18   :  { %v432_v11 = vld [vmem:[%s1440_s3 + $0x90] sm:$0xff]  ;;  %vm575_vm1 = vcmp.gt.f32.partialorder %v555_v8, 0.5  ;;  %vm574_vm2 = vcmp.gt.f32.partialorder %v554_v9, 0.5  ;;  %v557_v12 = vld [vmem:[%s1441_s4 + $0x18] sm:$0xff]  ;;  %v559_v16 = vld [vmem:[%s1441_s4 + $0x28] sm:$0xff] }
  0x19   :  { %827 = vmatmul.mubr.msk.f32.gmra.mrb[2].mxu0 %vm48_vm0, %v23_v31  ;;  %842 = vmatmul.mubr.msk.f32.gmra.mrb[2].mxu1 %vm48_vm0, %v33_v32  ;;  %v556_v13 = vld [vmem:[%s1441_s4 + $0x10] sm:$0xff]  ;;  %v615_v14 = vsel %vm575_vm1, 1, %v880_v0  ;;  %v614_v15 = vsel %vm574_vm2, 1, %v880_v0  ;;  %vm577_vm3 = vcmp.gt.f32.partialorder %v557_v12, 0.5  ;;  %v558_v17 = vld [vmem:[%s1441_s4 + $0x20] sm:$0xff]  ;;  %vm579_vm5 = vcmp.gt.f32.partialorder %v559_v16, 0.5 }
  0x1a   :  { %829 = vmatprep.mubr.msk.f32.mxu0 %vm48_vm0, %v24_v33  ;;  %844 = vmatprep.mubr.msk.f32.mxu1 %vm48_vm0, %v34_v34  ;;  %vm576_vm4 = vcmp.gt.f32.partialorder %v556_v13, 0.5  ;;  %v617_v18 = vsel %vm577_vm3, 1, %v880_v0  ;;  %vm578_vm6 = vcmp.gt.f32.partialorder %v558_v17, 0.5  ;;  %v561_v20 = vld [vmem:[%s1441_s4 + $0x38] sm:$0xff]  ;;  %v560_v21 = vld [vmem:[%s1441_s4 + $0x30] sm:$0xff]  ;;  %v619_v22 = vsel %vm579_vm5, 1, %v880_v0 }
  0x1b   :  { %361 = vperm.xlu1 %879, %v287_v35   ;;  %356 = vperm.xlu0 %878, %v286_v36   ;;  %v616_v19 = vsel %vm576_vm4, 1, %v880_v0  ;;  %v618_v23 = vsel %vm578_vm6, 1, %v880_v0  ;;  %vm581_vm7 = vcmp.gt.f32.partialorder %v561_v20, 0.5  ;;  %vm580_vm8 = vcmp.gt.f32.partialorder %v560_v21, 0.5  ;;  %v563_v24 = vld [vmem:[%s1441_s4 + $0x48] sm:$0xff]  ;;  %v562_v25 = vld [vmem:[%s1441_s4 + $0x40] sm:$0xff] }
  0x1c   :  { %v621_v26 = vsel %vm581_vm7, 1, %v880_v0  ;;  %v620_v27 = vsel %vm580_vm8, 1, %v880_v0  ;;  %vm583_vm9 = vcmp.gt.f32.partialorder %v563_v24, 0.5  ;;  %vm582_vm10 = vcmp.gt.f32.partialorder %v562_v25, 0.5  ;;  %v565_v28 = vld [vmem:[%s1441_s4 + $0x58] sm:$0xff]  ;;  %v564_v29 = vld [vmem:[%s1441_s4 + $0x50] sm:$0xff] }
  0x1d   :  { %830 = vmatmul.mubr.msk.f32.gmra.mrb[4].mxu0 %vm48_vm0, %v25_v37  ;;  %845 = vmatmul.mubr.msk.f32.gmra.mrb[4].mxu1 %vm48_vm0, %v35_v38  ;;  %v623_v30 = vsel %vm583_vm9, 1, %v880_v0  ;;  %v622_v31 = vsel %vm582_vm10, 1, %v880_v0  ;;  %vm585_vm11 = vcmp.gt.f32.partialorder %v565_v28, 0.5  ;;  %vm584_vm12 = vcmp.gt.f32.partialorder %v564_v29, 0.5  ;;  %v567_v32 = vld [vmem:[%s1441_s4 + $0x68] sm:$0xff]  ;;  %v566_v33 = vld [vmem:[%s1441_s4 + $0x60] sm:$0xff] }
  0x1e   :  { %832 = vmatprep.mubr.msk.f32.mxu0 %vm48_vm0, %v26_v39  ;;  %847 = vmatprep.mubr.msk.f32.mxu1 %vm48_vm0, %v36_v40  ;;  %v625_v34 = vsel %vm585_vm11, 1, %v880_v0  ;;  %v624_v35 = vsel %vm584_vm12, 1, %v880_v0  ;;  %vm587_vm13 = vcmp.gt.f32.partialorder %v567_v32, 0.5  ;;  %vm586_vm14 = vcmp.gt.f32.partialorder %v566_v33, 0.5  ;;  %v569_v36 = vld [vmem:[%s1441_s4 + $0x78] sm:$0xff]  ;;  %v568_v37 = vld [vmem:[%s1441_s4 + $0x70] sm:$0xff] }
  0x1f   :  { %371 = vperm.xlu1 %879, %v289_v41   ;;  %366 = vperm.xlu0 %878, %v288_v42   ;;  %v627_v38 = vsel %vm587_vm13, 1, %v880_v0  ;;  %v626_v39 = vsel %vm586_vm14, 1, %v880_v0  ;;  %vm589_vm15 = vcmp.gt.f32.partialorder %v569_v36, 0.5  ;;  %v571_v40 = vld [vmem:[%s1441_s4 + $0x88] sm:$0xff]  ;;  %v570_v41 = vld [vmem:[%s1441_s4 + $0x80] sm:$0xff]  ;;  %vm734_vm5 = vcmask 261120  }
  0x20   :  { %v629_v42 = vsel %vm589_vm15, 1, %v880_v0  ;;  %vm591_vm1 = vcmp.gt.f32.partialorder %v571_v40, 0.5  ;;  %vm590_vm2 = vcmp.gt.f32.partialorder %v570_v41, 0.5 }
  0x21   :  { %833 = vmatmul.mubr.msk.f32.gmra.mrb[6].mxu0 %vm48_vm0, %v27_v43  ;;  %848 = vmatmul.mubr.msk.f32.gmra.mrb[6].mxu1 %vm48_vm0, %v37_v44  ;;  %v573_v44 = vld [vmem:[%s1441_s4 + $0x98] sm:$0xff] }
  0x22   :  { %835 = vmatprep.mubr.msk.f32.mxu0 %vm48_vm0, %v28_v45  ;;  %850 = vmatprep.mubr.msk.f32.mxu1 %vm48_vm0, %v38_v46  ;;  %v572_v45 = vld [vmem:[%s1441_s4 + $0x90] sm:$0xff]  ;;  %v631_v46 = vsel %vm591_vm1, 1, %v880_v0  ;;  %vm593_vm3 = vcmp.gt.f32.partialorder %v573_v44, 0.5 }
  0x23   :  { %381 = vperm.xlu1 %879, %v291_v47   ;;  %376 = vperm.xlu0 %878, %v290_v48   ;;  %v630_v47 = vsel %vm590_vm2, 1, %v880_v0  ;;  %vm592_vm4 = vcmp.gt.f32.partialorder %v572_v45, 0.5  ;;  %v633_v48 = vsel %vm593_vm3, 1, %v880_v0 }
  0x25   :  { %836 = vmatmul.mubr.msk.f32.gmra.mrb[8].mxu0 %vm48_vm0, %v29_v49  ;;  %851 = vmatmul.mubr.msk.f32.gmra.mrb[8].mxu1 %vm48_vm0, %v39_v50  ;;  %vm588_vm0 = vcmp.gt.f32.partialorder %v568_v37, 0.5  ;;  %v632_v49 = vsel %vm592_vm4, 1, %v880_v0 }
  0x26   :  { %v628_v43 = vsel %vm588_vm0, 1, %v880_v0 }
  0x27   :  { %391 = vperm.xlu1 %879, %v293_v51   ;;  %386 = vperm.xlu0 %878, %v292_v52  }
  0x2b   :  { %441 = vperm.xlu1 %879, %v415_v53   ;;  %436 = vperm.xlu0 %878, %v414_v54  }
  0x2f   :  { %451 = vperm.xlu1 %879, %v417_v55   ;;  %446 = vperm.xlu0 %878, %v416_v56  }
  0x33   :  { %461 = vperm.xlu1 %879, %v419_v57   ;;  %456 = vperm.xlu0 %878, %v418_v58  }
  0x37   :  { %471 = vperm.xlu1 %879, %v421_v59   ;;  %466 = vperm.xlu0 %878, %v420_v60  }
  0x3b   :  { %481 = vperm.xlu1 %879, %v423_v61   ;;  %476 = vperm.xlu0 %878, %v422_v62  }
  0x3f   :  { %491 = vperm.xlu1 %879, %v425_v63   ;;  %486 = vperm.xlu0 %878, %v424_v1  }
  0x43   :  { %501 = vperm.xlu1 %879, %v427_v2   ;;  %496 = vperm.xlu0 %878, %v426_v3  }
  0x47   :  { %511 = vperm.xlu1 %879, %v429_v4   ;;  %506 = vperm.xlu0 %878, %v428_v5  }
  0x4b   :  { %521 = vperm.xlu1 %879, %v431_v6   ;;  %516 = vperm.xlu0 %878, %v430_v7  }
  0x4f   :  { %531 = vperm.xlu1 %879, %v433_v10   ;;  %526 = vperm.xlu0 %878, %v432_v11  }
  0x53   :  { %638 = vperm.xlu1 %879, %v615_v14   ;;  %635 = vperm.xlu0 %878, %v614_v15  }
  0x57   :  { %644 = vperm.xlu1 %879, %v617_v18   ;;  %641 = vperm.xlu0 %878, %v616_v19  }
  0x5b   :  { %650 = vperm.xlu1 %879, %v619_v22   ;;  %647 = vperm.xlu0 %878, %v618_v23  }
  0x5f   :  { %656 = vperm.xlu1 %879, %v621_v26   ;;  %653 = vperm.xlu0 %878, %v620_v27  }
  0x63   :  { %662 = vperm.xlu1 %879, %v623_v30   ;;  %659 = vperm.xlu0 %878, %v622_v31  }
  0x67   :  { %668 = vperm.xlu1 %879, %v625_v34   ;;  %665 = vperm.xlu0 %878, %v624_v35  }
  0x6b   :  { %674 = vperm.xlu1 %879, %v627_v38   ;;  %671 = vperm.xlu0 %878, %v626_v39  }
  0x6f   :  { %680 = vperm.xlu1 %879, %v629_v42   ;;  %677 = vperm.xlu0 %878, %v628_v43  }
  0x73   :  { %686 = vperm.xlu1 %879, %v631_v46   ;;  %683 = vperm.xlu0 %878, %v630_v47  }
  0x77   :  { %692 = vperm.xlu1 %879, %v633_v48   ;;  %689 = vperm.xlu0 %878, %v632_v49  }
  0x81   :  { %v1217_v50 = vpop.permute.xlu1 %306  ;;  %v297_v51 = vpop.permute.xlu0 %296 }
  0x86   :  { %v1219_v52 = vpop.permute.xlu1 %311  ;;  %v302_v53 = vpop.permute.xlu0 %301 }
  0x8a   :  { %v1221_v54 = vpop.permute.xlu1 %321  ;;  %v1223_v55 = vpop.permute.xlu0 %316 }
  0x8e   :  { %v1225_v56 = vpop.permute.xlu1 %331  ;;  %v1227_v57 = vpop.permute.xlu0 %326 }
  0x92   :  { %v1229_v58 = vpop.permute.xlu1 %341  ;;  %v1231_v59 = vpop.permute.xlu0 %336 }
  0x96   :  { %v352_v0 = vpop.permute.xlu1 %351  ;;  %v347_v60 = vpop.permute.xlu0 %346 }
  0x9a   :  { %v1233_v61 = vpop.permute.xlu1 %361  ;;  %v1235_v62 = vpop.permute.xlu0 %356 }
  0x9e   :  { %v1237_v63 = vpop.permute.xlu1 %371  ;;  %v1239_v1 = vpop.permute.xlu0 %366 }
  0xa2   :  { %v1241_v2 = vpop.permute.xlu1 %381  ;;  %v1243_v3 = vpop.permute.xlu0 %376 }
  0xa6   :  { %v1245_v4 = vpop.permute.xlu1 %391  ;;  %v1247_v5 = vpop.permute.xlu0 %386 }
  0xaa   :  { %v442_v6 = vpop.permute.xlu1 %441  ;;  %v437_v7 = vpop.permute.xlu0 %436 }
  0xae   :  { %v1249_v8 = vpop.permute.xlu1 %451  ;;  %v1251_v9 = vpop.permute.xlu0 %446 }
  0xb2   :  { %v1253_v10 = vpop.permute.xlu1 %461  ;;  %v1255_v11 = vpop.permute.xlu0 %456 }
  0xb6   :  { %v1257_v12 = vpop.permute.xlu1 %471  ;;  %v1259_v13 = vpop.permute.xlu0 %466 }
  0xba   :  { %v1261_v14 = vpop.permute.xlu1 %481  ;;  %v1263_v15 = vpop.permute.xlu0 %476 }
  0xbb   :  { %1443 = vst [vmem:[#allocation2_spill] sm:$0xff] %v1263_v15 }
  0xbe   :  { %v492_v16 = vpop.permute.xlu1 %491  ;;  %v487_v17 = vpop.permute.xlu0 %486 }
  0xc2   :  { %v502_v18 = vpop.permute.xlu1 %501  ;;  %v1265_v19 = vpop.permute.xlu0 %496 }
  0xc6   :  { %v1267_v20 = vpop.permute.xlu1 %511  ;;  %v1269_v21 = vpop.permute.xlu0 %506 }
  0xca   :  { %v1271_v22 = vpop.permute.xlu1 %521  ;;  %v1273_v23 = vpop.permute.xlu0 %516 }
  0xce   :  { %v1275_v24 = vpop.permute.xlu1 %531  ;;  %v1277_v25 = vpop.permute.xlu0 %526 }
  0xcf   :  { %1444 = vst [vmem:[#allocation3_spill] sm:$0xff] %v1275_v24  ;;  %1445 = vst [vmem:[#allocation4_spill] sm:$0xff] %v1277_v25 }
  0xd2   :  { %v639_v26 = vpop.permute.xlu1 %638  ;;  %v636_v27 = vpop.permute.xlu0 %635 }
  0xd3   :  { %vm695_vm6 = vcmp.eq.s32.totalorder %v639_v26, 1  ;;  %vm694_vm7 = vcmp.eq.s32.totalorder %v636_v27, 1 }
  0xd6   :  { %v1279_v28 = vpop.permute.xlu1 %644  ;;  %v1281_v29 = vpop.permute.xlu0 %641 }
  0xd7   :  { %vm697_vm8 = vcmp.eq.s32.totalorder %v1279_v28, 1  ;;  %vm696_vm9 = vcmp.eq.s32.totalorder %v1281_v29, 1 }
  0xda   :  { %v1283_v30 = vpop.permute.xlu1 %650  ;;  %v1285_v31 = vpop.permute.xlu0 %647 }
  0xdb   :  { %vm699_vm12 = vcmp.eq.s32.totalorder %v1283_v30, 1  ;;  %vm698_vm13 = vcmp.eq.s32.totalorder %v1285_v31, 1 }
  0xde   :  { %v1287_v32 = vpop.permute.xlu1 %656  ;;  %v1289_v33 = vpop.permute.xlu0 %653 }
  0xdf   :  { %vm701_vm0 = vcmp.eq.s32.totalorder %v1287_v32, 1  ;;  %vm700_vm1 = vcmp.eq.s32.totalorder %v1289_v33, 1 }
  0xe2   :  { %v1291_v34 = vpop.permute.xlu1 %662  ;;  %v1293_v35 = vpop.permute.xlu0 %659 }
  0xe3   :  { %1446 = vst [vmem:[#allocation5_spill] sm:$0xff] %v1291_v34  ;;  %1447 = vst [vmem:[#allocation6_spill] sm:$0xff] %v1293_v35 }
  0xe6   :  { %v669_v36 = vpop.permute.xlu1 %668  ;;  %v666_v37 = vpop.permute.xlu0 %665 }
  0xe7   :  { %vm705_vm10 = vcmp.eq.s32.totalorder %v669_v36, 1  ;;  %vm704_vm11 = vcmp.eq.s32.totalorder %v666_v37, 1 }
  0xe8   :  { %v825_v38 = vpop.f32.mrb[0].mxu0  ;;  %v840_v39 = vpop.f32.mrb[0].mxu1 }
  0xe9   :  { %v395_v40 = vmul.f32 %v825_v38, %v302_v53  ;;  %v405_v41 = vmul.f32 %v840_v39, %v352_v0  ;;  %v175_v42 = vpop.f32.mrb[1].mxu0  ;;  %v225_v43 = vpop.f32.mrb[1].mxu1 }
  0xea   :  { %v394_v44 = vmul.f32 %v297_v51, %v175_v42  ;;  %v404_v45 = vmul.f32 %v347_v60, %v225_v43  ;;  %v675_v46 = vpop.permute.xlu1 %674  ;;  %v672_v47 = vpop.permute.xlu0 %671 }
  0xeb   :  { %v535_v48 = vadd.f32 %v442_v6, %v395_v40  ;;  %v545_v49 = vadd.f32 %v492_v16, %v405_v41  ;;  %vm707_vm14 = vcmp.eq.s32.totalorder %v675_v46, 1  ;;  %vm706_vm15 = vcmp.eq.s32.totalorder %v672_v47, 1 }
  0xec   :  { %v534_v35 = vadd.f32 %v437_v7, %v394_v44  ;;  %v544_v53 = vadd.f32 %v487_v17, %v404_v45  ;;  %v828_v38 = vpop.f32.mrb[2].mxu0  ;;  %v843_v0 = vpop.f32.mrb[2].mxu1 }
  0xed   :  { %v595_v39 = vmax.f32 %v535_v48, 0.0  ;;  %v605_v34 = vmax.f32 %v545_v49, 0.0  ;;  %v397_v25 = vmul.f32 %v828_v38, %v1219_v52  ;;  %v407_v51 = vmul.f32 %v843_v0, %v1233_v61  ;;  %v185_v60 = vpop.f32.mrb[3].mxu0  ;;  %v235_v42 = vpop.f32.mrb[3].mxu1 }
  0xee   :  { %v594_v43 = vmax.f32 %v534_v35, 0.0  ;;  %v604_v15 = vmax.f32 %v544_v53, 0.0  ;;  %v396_v24 = vmul.f32 %v1217_v50, %v185_v60  ;;  %v406_v6 = vmul.f32 %v1235_v62, %v235_v42  ;;  %v681_v52 = vpop.permute.xlu1 %680  ;;  %v1305_v41 = vpop.permute.xlu0 %677 }
  0xef   :  { %v715_v7 = vsel %vm695_vm6, %v595_v39, %v535_v48  ;;  %v725_v16 = vsel %vm705_vm10, %v605_v34, %v545_v49  ;;  %v537_v17 = vadd.f32 %v1249_v8, %v397_v25  ;;  %v547_v40 = vadd.f32 %v502_v18, %v407_v51 }
  0xf0   :  { %736 = vst.msk [vmem:[%s1442_s5 + $0x8] sm:$0xff] %vm734_vm5, %v715_v7  ;;  %746 = vst.msk [vmem:[%s1442_s5 + $0x58] sm:$0xff] %vm734_vm5, %v725_v16  ;;  %v714_v50 = vsel %vm694_vm7, %v594_v43, %v534_v35  ;;  %v724_v61 = vsel %vm704_vm11, %v604_v15, %v544_v53  ;;  %v536_v62 = vadd.f32 %v1251_v9, %v396_v24  ;;  %v831_v18 = vpop.f32.mrb[4].mxu0  ;;  %v846_v25 = vpop.f32.mrb[4].mxu1  ;;  %vm709_vm2 = vcmp.eq.s32.totalorder %v681_v52, 1 }
  0xf1   :  { %v546_v8 = vadd.f32 %v1265_v19, %v406_v6  ;;  %735 = vst.msk [vmem:[%s1442_s5] sm:$0xff] %vm734_vm5, %v714_v50  ;;  %745 = vst.msk [vmem:[%s1442_s5 + $0x50] sm:$0xff] %vm734_vm5, %v724_v61  ;;  %v597_v26 = vmax.f32 %v537_v17, 0.0  ;;  %v607_v15 = vmax.f32 %v547_v40, 0.0  ;;  %v195_v27 = vpop.f32.mrb[5].mxu0  ;;  %v245_v9 = vpop.f32.mrb[5].mxu1  ;;  %v399_v34 = vmul.f32 %v831_v18, %v1221_v54 }
  0xf2   :  { %v596_v24 = vmax.f32 %v536_v62, 0.0  ;;  %v409_v35 = vmul.f32 %v846_v25, %v1237_v63  ;;  %v398_v44 = vmul.f32 %v1223_v55, %v195_v27  ;;  %v408_v45 = vmul.f32 %v1239_v1, %v245_v9  ;;  %v687_v51 = vpop.permute.xlu1 %686  ;;  %v684_v60 = vpop.permute.xlu0 %683  ;;  %v1449_v25 = vld [vmem:[#allocation2_spill] sm:$0xff] }
  0xf3   :  { %v606_v19 = vmax.f32 %v546_v8, 0.0  ;;  %v717_v36 = vsel %vm697_vm8, %v597_v26, %v537_v17  ;;  %v727_v37 = vsel %vm707_vm14, %v607_v15, %v547_v40  ;;  %v539_v55 = vadd.f32 %v1253_v10, %v399_v34  ;;  %v1450_v26 = vld [vmem:[#allocation4_spill] sm:$0xff]  ;;  %v1452_v34 = vld [vmem:[#allocation6_spill] sm:$0xff] }
  0xf4   :  { %738 = vst.msk [vmem:[%s1442_s5 + $0x18] sm:$0xff] %vm734_vm5, %v717_v36  ;;  %748 = vst.msk [vmem:[%s1442_s5 + $0x68] sm:$0xff] %vm734_vm5, %v727_v37  ;;  %v716_v54 = vsel %vm696_vm9, %v596_v24, %v536_v62  ;;  %v549_v1 = vadd.f32 %v1267_v20, %v409_v35  ;;  %v834_v28 = vpop.f32.mrb[6].mxu0  ;;  %v849_v46 = vpop.f32.mrb[6].mxu1  ;;  %vm708_vm3 = vcmp.eq.s32.totalorder %v1305_v41, 1  ;;  %v538_v29 = vadd.f32 %v1255_v11, %v398_v44 }
  0xf5   :  { %v726_v63 = vsel %vm706_vm15, %v606_v19, %v546_v8  ;;  %737 = vst.msk [vmem:[%s1442_s5 + $0x10] sm:$0xff] %vm734_vm5, %v716_v54  ;;  %v548_v10 = vadd.f32 %v1269_v21, %v408_v45  ;;  %v205_v20 = vpop.f32.mrb[7].mxu0  ;;  %v255_v47 = vpop.f32.mrb[7].mxu1  ;;  %v599_v48 = vmax.f32 %v539_v55, 0.0  ;;  %v401_v53 = vmul.f32 %v834_v28, %v1225_v56 }
  0xf6   :  { %747 = vst.msk [vmem:[%s1442_s5 + $0x60] sm:$0xff] %vm734_vm5, %v726_v63  ;;  %v609_v49 = vmax.f32 %v549_v1, 0.0  ;;  %v411_v38 = vmul.f32 %v849_v46, %v1241_v2  ;;  %v598_v0 = vmax.f32 %v538_v29, 0.0  ;;  %v400_v42 = vmul.f32 %v1227_v57, %v205_v20  ;;  %v693_v32 = vpop.permute.xlu1 %692 }
  0xf7   :  { %v608_v39 = vmax.f32 %v548_v10, 0.0  ;;  %v410_v43 = vmul.f32 %v1243_v3, %v255_v47  ;;  %v719_v11 = vsel %vm699_vm12, %v599_v48, %v539_v55  ;;  %v541_v6 = vadd.f32 %v1257_v12, %v401_v53 }
  0xf8   :  { %v729_v21 = vsel %vm709_vm2, %v609_v49, %v549_v1  ;;  %v551_v7 = vadd.f32 %v1271_v22, %v411_v38  ;;  %v837_v56 = vpop.f32.mrb[8].mxu0  ;;  %v852_v16 = vpop.f32.mrb[8].mxu1  ;;  %740 = vst.msk [vmem:[%s1442_s5 + $0x28] sm:$0xff] %vm734_vm5, %v719_v11  ;;  %v718_v57 = vsel %vm698_vm13, %v598_v0, %v538_v29  ;;  %v540_v3 = vadd.f32 %v1259_v13, %v400_v42 }
  0xf9   :  { %750 = vst.msk [vmem:[%s1442_s5 + $0x78] sm:$0xff] %vm734_vm5, %v729_v21  ;;  %v728_v2 = vsel %vm708_vm3, %v608_v39, %v548_v10  ;;  %v550_v12 = vadd.f32 %v1273_v23, %v410_v43  ;;  %v215_v22 = vpop.f32.mrb[9].mxu0  ;;  %v265_v30 = vpop.f32.mrb[9].mxu1  ;;  %739 = vst.msk [vmem:[%s1442_s5 + $0x20] sm:$0xff] %vm734_vm5, %v718_v57  ;;  %vm711_vm4 = vcmp.eq.s32.totalorder %v687_v51, 1  ;;  %vm710_vm6 = vcmp.eq.s32.totalorder %v684_v60, 1 }
  0xfa   :  { %749 = vst.msk [vmem:[%s1442_s5 + $0x70] sm:$0xff] %vm734_vm5, %v728_v2  ;;  %v601_v31 = vmax.f32 %v541_v6, 0.0  ;;  %v611_v17 = vmax.f32 %v551_v7, 0.0  ;;  %v600_v40 = vmax.f32 %v540_v3, 0.0  ;;  %v403_v23 = vmul.f32 %v837_v56, %v1229_v58 }
  0xfb   :  { %v610_v13 = vmax.f32 %v550_v12, 0.0  ;;  %v413_v52 = vmul.f32 %v852_v16, %v1245_v4  ;;  %v402_v61 = vmul.f32 %v1231_v59, %v215_v22  ;;  %v412_v62 = vmul.f32 %v1247_v5, %v265_v30  ;;  %v1448_v59 = vld [vmem:[#allocation3_spill] sm:$0xff]  ;;  %v690_v5 = vpop.permute.xlu0 %689 }
  0xfc   :  { %v721_v41 = vsel %vm701_vm0, %v601_v31, %v541_v6  ;;  %v731_v50 = vsel %vm711_vm4, %v611_v17, %v551_v7  ;;  %v720_v58 = vsel %vm700_vm1, %v600_v40, %v540_v3  ;;  %v543_v8 = vadd.f32 %v1261_v14, %v403_v23  ;;  %v1451_v14 = vld [vmem:[#allocation5_spill] sm:$0xff] }
  0xfd   :  { %742 = vst.msk [vmem:[%s1442_s5 + $0x38] sm:$0xff] %vm734_vm5, %v721_v41  ;;  %752 = vst.msk [vmem:[%s1442_s5 + $0x88] sm:$0xff] %vm734_vm5, %v731_v50  ;;  %v730_v4 = vsel %vm710_vm6, %v610_v13, %v550_v12  ;;  %v553_v18 = vadd.f32 %v1448_v59, %v413_v52  ;;  %v542_v33 = vadd.f32 %v1449_v25, %v402_v61  ;;  %vm703_vm7 = vcmp.eq.s32.totalorder %v1451_v14, 1 }
  0xfe   :  { %741 = vst.msk [vmem:[%s1442_s5 + $0x30] sm:$0xff] %vm734_vm5, %v720_v58  ;;  %751 = vst.msk [vmem:[%s1442_s5 + $0x80] sm:$0xff] %vm734_vm5, %v730_v4  ;;  %v552_v15 = vadd.f32 %v1450_v26, %v412_v62  ;;  %v603_v27 = vmax.f32 %v543_v8, 0.0  ;;  %vm713_vm8 = vcmp.eq.s32.totalorder %v693_v32, 1  ;;  %vm702_vm9 = vcmp.eq.s32.totalorder %v1452_v34, 1 }
  0xff   :  { %v613_v9 = vmax.f32 %v553_v18, 0.0  ;;  %v602_v24 = vmax.f32 %v542_v33, 0.0  ;;  %vm712_vm10 = vcmp.eq.s32.totalorder %v690_v5, 1 }
 0x100   :  { %v612_v19 = vmax.f32 %v552_v15, 0.0  ;;  %v723_v35 = vsel %vm703_vm7, %v603_v27, %v543_v8 }
 0x101   :  { %v733_v36 = vsel %vm713_vm8, %v613_v9, %v553_v18  ;;  %744 = vst.msk [vmem:[%s1442_s5 + $0x48] sm:$0xff] %vm734_vm5, %v723_v35  ;;  %v722_v37 = vsel %vm702_vm9, %v602_v24, %v542_v33 }
 0x102   :  { %754 = vst.msk [vmem:[%s1442_s5 + $0x98] sm:$0xff] %vm734_vm5, %v733_v36  ;;  %v732_v44 = vsel %vm712_vm10, %v612_v19, %v552_v15  ;;  %743 = vst.msk [vmem:[%s1442_s5 + $0x40] sm:$0xff] %vm734_vm5, %v722_v37 }
 0x103   :  { %753 = vst.msk [vmem:[%s1442_s5 + $0x90] sm:$0xff] %vm734_vm5, %v732_v44 }

// kernel: pcb_test_forward.31
= control target key start
LH: loop header
LB: loop body
LE: loop exit
PB: predicated region body
PF: predicated region fallthrough
CT: control target
= control target key end

     0   :  { %v429_v3 = vmov 0   ;;  %vm65_vm0 = vcmask 261120   ;;  %s643_s1 = inlined_call_operand.vmem [shape: f32[288,32], index: 1, kind: input, shape index: {}]   ;;  %s644_s0 = inlined_call_operand.vmem [shape: f32[32,288], index: 0, kind: input, shape index: {}]   ;;  %s645_s2 = inlined_call_operand.vmem [shape: f32[32,1], index: 2, kind: input, shape index: {}]   ;;  %s646_s3 = inlined_call_operand.vmem [shape: f32[32,1], index: 3, kind: input, shape index: {}]   ;;  %s647_s4 = inlined_call_operand.vmem [shape: f32[32,32], index: 4, kind: output, shape index: {}]  }
   0x1   :  { %v45_v0 = vld [vmem:[%s643_s1 + $0x80] sm:$0xff]  ;;  %v46_v1 = vld [vmem:[%s643_s1 + $0x88] sm:$0xff]  ;;  %428 = vset.pattern.permute.xlu1 %v429_v3  ;;  %427 = vset.pattern.permute.xlu0 %v429_v3  ;;  %v47_v6 = vld [vmem:[%s643_s1 + $0x90] sm:$0xff] }
   0x2   :  { %v29_v2 = vld [vmem:[%s643_s1] sm:$0xff]  ;;  %v386_v4 = vpack.c.bf16 %v46_v1, %v45_v0  ;;  %v30_v5 = vld [vmem:[%s643_s1 + $0x8] sm:$0xff]  ;;  %v48_v7 = vld [vmem:[%s643_s1 + $0x98] sm:$0xff] }
   0x3   :  { %v388_v8 = vpack.c.bf16 %v30_v5, %v29_v2  ;;  %v390_v9 = vpack.c.bf16 %v48_v7, %v47_v6  ;;  %v31_v10 = vld [vmem:[%s643_s1 + $0x10] sm:$0xff]  ;;  %v32_v11 = vld [vmem:[%s643_s1 + $0x18] sm:$0xff]  ;;  %v49_v12 = vld [vmem:[%s643_s1 + $0xa0] sm:$0xff] }
   0x4   :  { %387 = vmatprep.subr.bf16.mxu0 %v386_v4  ;;  %v50_v13 = vld [vmem:[%s643_s1 + $0xa8] sm:$0xff]  ;;  %v392_v14 = vpack.c.bf16 %v32_v11, %v31_v10  ;;  %v33_v16 = vld [vmem:[%s643_s1 + $0x20] sm:$0xff]  ;;  %v51_v18 = vld [vmem:[%s643_s1 + $0xb0] sm:$0xff] }
   0x5   :  { %389 = vmatpush3.bf16.msra.mxu0 %v388_v8  ;;  %v394_v15 = vpack.c.bf16 %v50_v13, %v49_v12  ;;  %v34_v17 = vld [vmem:[%s643_s1 + $0x28] sm:$0xff]  ;;  %v52_v19 = vld [vmem:[%s643_s1 + $0xb8] sm:$0xff]  ;;  %v35_v21 = vld [vmem:[%s643_s1 + $0x30] sm:$0xff] }
   0x6   :  { %391 = vmatprep.subr.bf16.mxu0 %v390_v9  ;;  %v396_v20 = vpack.c.bf16 %v34_v17, %v33_v16  ;;  %v398_v22 = vpack.c.bf16 %v52_v19, %v51_v18  ;;  %v36_v23 = vld [vmem:[%s643_s1 + $0x38] sm:$0xff]  ;;  %v61_v24 = vld [vmem:[%s643_s1 + $0x100] sm:$0xff]  ;;  %v62_v25 = vld [vmem:[%s643_s1 + $0x108] sm:$0xff] }
   0x7   :  { %v53_v26 = vld [vmem:[%s643_s1 + $0xc0] sm:$0xff]  ;;  %v54_v27 = vld [vmem:[%s643_s1 + $0xc8] sm:$0xff]  ;;  %v418_v28 = vpack.c.bf16 %v62_v25, %v61_v24  ;;  %v63_v29 = vld [vmem:[%s643_s1 + $0x110] sm:$0xff]  ;;  %v400_v31 = vpack.c.bf16 %v36_v23, %v35_v21 }
   0x8   :  { %v64_v30 = vld [vmem:[%s643_s1 + $0x118] sm:$0xff]  ;;  %v18_v33 = vld [vmem:[%s644_s0 + $0x8] sm:$0xff]  ;;  %v19_v34 = vld [vmem:[%s644_s0 + $0x10] sm:$0xff]  ;;  %v402_v35 = vpack.c.bf16 %v54_v27, %v53_v26 }
   0x9   :  { %393 = vmatpush3.bf16.msra.mxu0 %v392_v14  ;;  %419 = vmatprep.subr.bf16.mxu1 %v418_v28  ;;  %v422_v32 = vpack.c.bf16 %v64_v30, %v63_v29  ;;  %v37_v36 = vld [vmem:[%s643_s1 + $0x40] sm:$0xff]  ;;  %v38_v37 = vld [vmem:[%s643_s1 + $0x48] sm:$0xff]  ;;  %v55_v38 = vld [vmem:[%s643_s1 + $0xd0] sm:$0xff] }
   0xa   :  { %395 = vmatprep.subr.bf16.mxu0 %v394_v15  ;;  %421 = vmatpush3.bf16.msra.mxu1 %v418_v28  ;;  %v56_v39 = vld [vmem:[%s643_s1 + $0xd8] sm:$0xff]  ;;  %v404_v40 = vpack.c.bf16 %v38_v37, %v37_v36  ;;  %v250_v41 = vld [vmem:[%s645_s2 + $0x10] sm:$0xff]  ;;  %v248_v42 = vld [vmem:[%s645_s2] sm:$0xff] }
   0xb   :  { %423 = vmatprep.subr.bf16.mxu1 %v422_v32  ;;  %142 = vmatprep.mubr.f32.mxu0 %v18_v33  ;;  %v406_v43 = vpack.c.bf16 %v56_v39, %v55_v38  ;;  %v39_v44 = vld [vmem:[%s643_s1 + $0x50] sm:$0xff]  ;;  %v40_v45 = vld [vmem:[%s643_s1 + $0x58] sm:$0xff]  ;;  %v22_v46 = vld [vmem:[%s644_s0 + $0x28] sm:$0xff] }
   0xc   :  { %380 = vmatprep.mubr.msk.f32.mxu1 %vm65_vm0, %v19_v34  ;;  %v57_v47 = vld [vmem:[%s643_s1 + $0xe0] sm:$0xff]  ;;  %v58_v48 = vld [vmem:[%s643_s1 + $0xe8] sm:$0xff]  ;;  %264 = vperm.xlu1 %428, %v250_v41   ;;  %v251_v50 = vld [vmem:[%s645_s2 + $0x18] sm:$0xff]  ;;  %v408_v52 = vpack.c.bf16 %v40_v45, %v39_v44 }
   0xd   :  { %397 = vmatpush3.bf16.msra.mxu0 %v396_v20  ;;  %v25_v49 = vld [vmem:[%s644_s0 + $0x40] sm:$0xff]  ;;  %254 = vperm.xlu0 %427, %v248_v42   ;;  %v249_v51 = vld [vmem:[%s645_s2 + $0x8] sm:$0xff]  ;;  %v410_v53 = vpack.c.bf16 %v58_v48, %v57_v47  ;;  %v28_v56 = vld [vmem:[%s644_s0 + $0x58] sm:$0xff] }
   0xe   :  { %399 = vmatprep.subr.bf16.mxu0 %v398_v22  ;;  %425 = vmatpush3.bf16.msra.mxu1 %v422_v32  ;;  %v41_v54 = vld [vmem:[%s643_s1 + $0x60] sm:$0xff]  ;;  %v42_v55 = vld [vmem:[%s643_s1 + $0x68] sm:$0xff]  ;;  %v59_v57 = vld [vmem:[%s643_s1 + $0xf0] sm:$0xff] }
   0xf   :  { %v60_v58 = vld [vmem:[%s643_s1 + $0xf8] sm:$0xff]  ;;  %v277_v59 = vld [vmem:[%s646_s3 + $0x8] sm:$0xff]  ;;  %v276_v60 = vld [vmem:[%s646_s3] sm:$0xff]  ;;  %v412_v61 = vpack.c.bf16 %v42_v55, %v41_v54 }
  0x10   :  { %269 = vperm.xlu1 %428, %v251_v50   ;;  %v414_v62 = vpack.c.bf16 %v60_v58, %v59_v57  ;;  %v43_v63 = vld [vmem:[%s643_s1 + $0x70] sm:$0xff]  ;;  %v44_v0 = vld [vmem:[%s643_s1 + $0x78] sm:$0xff]  ;;  %v17_v4 = vld [vmem:[%s644_s0] sm:$0xff] }
  0x11   :  { %401 = vmatpush3.bf16.msra.mxu0 %v400_v31  ;;  %381 = vmatmul.mubr.msk.f32.vlgmr.msra.gmra.mrb[0].mxu1 %vm65_vm0, %v22_v46  ;;  %v279_v1 = vld [vmem:[%s646_s3 + $0x18] sm:$0xff]  ;;  %v278_v2 = vld [vmem:[%s646_s3 + $0x10] sm:$0xff]  ;;  %v416_v3 = vpack.c.bf16 %v44_v0, %v43_v63  ;;  %v21_v5 = vld [vmem:[%s644_s0 + $0x20] sm:$0xff] }
  0x12   :  { %403 = vmatprep.subr.bf16.mxu0 %v402_v35  ;;  %383 = vmatprep.mubr.msk.f32.mxu1 %vm65_vm0, %v25_v49  ;;  %v20_v6 = vld [vmem:[%s644_s0 + $0x18] sm:$0xff]  ;;  %v23_v8 = vld [vmem:[%s644_s0 + $0x30] sm:$0xff]  ;;  %v26_v10 = vld [vmem:[%s644_s0 + $0x48] sm:$0xff] }
  0x13   :  { %259 = vperm.xlu0 %427, %v249_v51   ;;  %v24_v7 = vld [vmem:[%s644_s0 + $0x38] sm:$0xff]  ;;  %v27_v9 = vld [vmem:[%s644_s0 + $0x50] sm:$0xff] }
  0x14   :  { %287 = vperm.xlu1 %428, %v277_v59  }
  0x15   :  { %405 = vmatpush3.bf16.msra.mxu0 %v404_v40  ;;  %384 = vmatmul.mubr.msk.f32.gmra.mrb[2].mxu1 %vm65_vm0, %v28_v56 }
  0x16   :  { %407 = vmatprep.subr.bf16.mxu0 %v406_v43 }
  0x17   :  { %282 = vperm.xlu0 %427, %v276_v60  }
  0x18   :  { %297 = vperm.xlu1 %428, %v279_v1  }
  0x19   :  { %409 = vmatpush3.bf16.msra.mxu0 %v408_v52 }
  0x1a   :  { %411 = vmatprep.subr.bf16.mxu0 %v410_v53 }
  0x1b   :  { %292 = vperm.xlu0 %427, %v278_v2  }
  0x1d   :  { %413 = vmatpush3.bf16.msra.mxu0 %v412_v61 }
  0x1e   :  { %415 = vmatprep.subr.bf16.mxu0 %v414_v62 }
  0x21   :  { %417 = vmatpush3.bf16.msra.mxu0 %v416_v3 }
  0x24   :  { %143 = vmatmul.mubr.f32.vlgmr.msra.gmra.mrb[0].mxu0 %v17_v4 }
  0x25   :  { %147 = vmatprep.mubr.f32.mxu0 %v21_v5 }
  0x28   :  { %148 = vmatmul.mubr.f32.gmra.mrb[2].mxu0 %v20_v6 }
  0x29   :  { %152 = vmatprep.mubr.f32.mxu0 %v24_v7 }
  0x2c   :  { %153 = vmatmul.mubr.f32.gmra.mrb[4].mxu0 %v23_v8 }
  0x2d   :  { %157 = vmatprep.mubr.f32.mxu0 %v27_v9 }
  0x30   :  { %158 = vmatmul.mubr.f32.gmra.mrb[6].mxu0 %v26_v10 }
  0x8b   :  { %v265_v16 = vpop.permute.xlu1 %264 }
  0x8c   :  { %v255_v15 = vpop.permute.xlu0 %254 }
  0x8f   :  { %v270_v23 = vpop.permute.xlu1 %269 }
  0x92   :  { %v260_v18 = vpop.permute.xlu0 %259 }
  0x93   :  { %v288_v35 = vpop.permute.xlu1 %287 }
  0x96   :  { %v283_v27 = vpop.permute.xlu0 %282 }
  0x97   :  { %v298_v48 = vpop.permute.xlu1 %297 }
  0x9a   :  { %v293_v43 = vpop.permute.xlu0 %292 }
  0xe4   :  { %v382_v11 = vpop.f32.mrb[0].mxu1 }
  0xe5   :  { %v229_v12 = vpop.f32.mrb[1].mxu1 }
  0xe8   :  { %v385_v13 = vpop.f32.mrb[2].mxu1 }
  0xe9   :  { %v239_v14 = vpop.f32.mrb[3].mxu1 }
  0xf7   :  { %v352_v17 = vpop.f32.mrb[0].mxu0 }
  0xf8   :  { %v353_v19 = vpop.f32.mrb[1].mxu0 }
  0xf9   :  { %v354_v20 = vadd.f32 %v353_v19, %v352_v17 }
  0xfb   :  { %v230_v21 = vadd.f32 %v354_v20, %v229_v12  ;;  %v355_v22 = vpop.f32.mrb[2].mxu0 }
  0xfc   :  { %v356_v24 = vpop.f32.mrb[3].mxu0 }
  0xfd   :  { %v272_v25 = vmul.f32 %v255_v15, %v230_v21  ;;  %v357_v26 = vadd.f32 %v356_v24, %v355_v22 }
  0xff   :  { %v300_v28 = vadd.f32 %v283_v27, %v272_v25  ;;  %v235_v29 = vadd.f32 %v382_v11, %v357_v26  ;;  %v358_v30 = vpop.f32.mrb[4].mxu0 }
 0x100   :  { %v359_v31 = vpop.f32.mrb[5].mxu0 }
 0x101   :  { %v304_v32 = vmax.f32 %v300_v28, 0.0  ;;  %v273_v33 = vmul.f32 %v260_v18, %v235_v29  ;;  %v360_v34 = vadd.f32 %v359_v31, %v358_v30 }
 0x103   :  { %308 = vst.msk [vmem:[%s647_s4] sm:$0xff] %vm65_vm0, %v304_v32  ;;  %v301_v36 = vadd.f32 %v288_v35, %v273_v33  ;;  %v240_v37 = vadd.f32 %v360_v34, %v239_v14  ;;  %v361_v38 = vpop.f32.mrb[6].mxu0 }
 0x104   :  { %v362_v39 = vpop.f32.mrb[7].mxu0 }
 0x105   :  { %v305_v40 = vmax.f32 %v301_v36, 0.0  ;;  %v274_v41 = vmul.f32 %v265_v16, %v240_v37  ;;  %v363_v42 = vadd.f32 %v362_v39, %v361_v38 }
 0x107   :  { %309 = vst.msk [vmem:[%s647_s4 + $0x8] sm:$0xff] %vm65_vm0, %v305_v40  ;;  %v302_v44 = vadd.f32 %v293_v43, %v274_v41  ;;  %v245_v45 = vadd.f32 %v385_v13, %v363_v42 }
 0x109   :  { %v306_v46 = vmax.f32 %v302_v44, 0.0  ;;  %v275_v47 = vmul.f32 %v270_v23, %v245_v45 }
 0x10b   :  { %310 = vst.msk [vmem:[%s647_s4 + $0x10] sm:$0xff] %vm65_vm0, %v306_v46  ;;  %v303_v49 = vadd.f32 %v298_v48, %v275_v47 }
 0x10d   :  { %v307_v50 = vmax.f32 %v303_v49, 0.0 }
 0x10f   :  { %311 = vst.msk [vmem:[%s647_s4 + $0x18] sm:$0xff] %vm65_vm0, %v307_v50 }

// kernel: pcb_test_forward.32
= control target key start
LH: loop header
LB: loop body
LE: loop exit
PB: predicated region body
PF: predicated region fallthrough
CT: control target
= control target key end

     0   :  { %v609_v0 = vmov 0   ;;  %vm40_vm0 = vcmask 261120   ;;  %s960_s2 = inlined_call_operand.vmem [shape: f32[128,1], index: 2, kind: input, shape index: {}]   ;;  %s961_s1 = inlined_call_operand.vmem [shape: f32[32,32], index: 1, kind: input, shape index: {}]   ;;  %s962_s0 = inlined_call_operand.vmem [shape: f32[128,32], index: 0, kind: input, shape index: {}]   ;;  %s963_s3 = inlined_call_operand.vmem [shape: f32[128,1], index: 3, kind: input, shape index: {}]   ;;  %s964_s4 = inlined_call_operand.vmem [shape: f32[128,32], index: 4, kind: input, shape index: {}]   ;;  %s965_s5 = inlined_call_operand.vmem [shape: f32[128,32], index: 5, kind: output, shape index: {}]  }
   0x1   :  { %608 = vset.pattern.permute.xlu1 %v609_v0  ;;  %607 = vset.pattern.permute.xlu0 %v609_v0  ;;  %v236_v1 = vld [vmem:[%s960_s2 + $0x10] sm:$0xff]  ;;  %v234_v2 = vld [vmem:[%s960_s2] sm:$0xff]  ;;  %v37_v4 = vld [vmem:[%s961_s1 + $0x8] sm:$0xff] }
   0x2   :  { %v36_v3 = vld [vmem:[%s961_s1] sm:$0xff]  ;;  %262 = vperm.xlu1 %608, %v236_v1   ;;  %252 = vperm.xlu0 %607, %v234_v2   ;;  %v38_v6 = vld [vmem:[%s961_s1 + $0x10] sm:$0xff]  ;;  %v39_v7 = vld [vmem:[%s961_s1 + $0x18] sm:$0xff] }
   0x3   :  { %v594_v5 = vpack.c.bf16 %v37_v4, %v36_v3  ;;  %v237_v8 = vld [vmem:[%s960_s2 + $0x18] sm:$0xff]  ;;  %v235_v9 = vld [vmem:[%s960_s2 + $0x8] sm:$0xff]  ;;  %v598_v10 = vpack.c.bf16 %v39_v7, %v38_v6  ;;  %v20_v11 = vld [vmem:[%s962_s0] sm:$0xff] }
   0x4   :  { %v28_v12 = vld [vmem:[%s962_s0 + $0x40] sm:$0xff]  ;;  %v239_v13 = vld [vmem:[%s960_s2 + $0x28] sm:$0xff]  ;;  %570 = vmatprep.mubr.msk.f32.mxu0 %vm40_vm0, %v20_v11  ;;  %v22_v17 = vld [vmem:[%s962_s0 + $0x10] sm:$0xff] }
   0x5   :  { %595 = vmatprep.subr.bf16.mxu0 %v594_v5  ;;  %602 = vmatprep.subr.bf16.mxu1 %v594_v5  ;;  %v238_v14 = vld [vmem:[%s960_s2 + $0x20] sm:$0xff]  ;;  %v21_v15 = vld [vmem:[%s962_s0 + $0x8] sm:$0xff]  ;;  %v30_v18 = vld [vmem:[%s962_s0 + $0x50] sm:$0xff] }
   0x6   :  { %597 = vmatpush3.bf16.msra.mxu0 %v594_v5  ;;  %604 = vmatpush3.bf16.msra.mxu1 %v594_v5  ;;  %v29_v16 = vld [vmem:[%s962_s0 + $0x48] sm:$0xff]  ;;  %v241_v19 = vld [vmem:[%s960_s2 + $0x38] sm:$0xff]  ;;  %v240_v20 = vld [vmem:[%s960_s2 + $0x30] sm:$0xff] }
   0x7   :  { %267 = vperm.xlu1 %608, %v237_v8   ;;  %257 = vperm.xlu0 %607, %v235_v9   ;;  %v23_v21 = vld [vmem:[%s962_s0 + $0x18] sm:$0xff]  ;;  %v24_v23 = vld [vmem:[%s962_s0 + $0x20] sm:$0xff]  ;;  %v243_v25 = vld [vmem:[%s960_s2 + $0x48] sm:$0xff] }
   0x8   :  { %599 = vmatprep.subr.bf16.mxu0 %v598_v10  ;;  %603 = vmatprep.subr.bf16.mxu1 %v598_v10  ;;  %v31_v22 = vld [vmem:[%s962_s0 + $0x58] sm:$0xff]  ;;  %v32_v24 = vld [vmem:[%s962_s0 + $0x60] sm:$0xff]  ;;  %v25_v27 = vld [vmem:[%s962_s0 + $0x28] sm:$0xff] }
   0x9   :  { %582 = vmatprep.mubr.msk.f32.mxu1 %vm40_vm0, %v28_v12  ;;  %v242_v26 = vld [vmem:[%s960_s2 + $0x40] sm:$0xff]  ;;  %v33_v28 = vld [vmem:[%s962_s0 + $0x68] sm:$0xff]  ;;  %v26_v29 = vld [vmem:[%s962_s0 + $0x30] sm:$0xff] }
   0xa   :  { %601 = vmatpush3.bf16.msra.mxu0 %v598_v10  ;;  %605 = vmatpush3.bf16.msra.mxu1 %v598_v10  ;;  %v34_v30 = vld [vmem:[%s962_s0 + $0x70] sm:$0xff]  ;;  %v245_v31 = vld [vmem:[%s960_s2 + $0x58] sm:$0xff]  ;;  %v247_v35 = vld [vmem:[%s960_s2 + $0x68] sm:$0xff] }
   0xb   :  { %277 = vperm.xlu1 %608, %v239_v13   ;;  %272 = vperm.xlu0 %607, %v238_v14   ;;  %v244_v32 = vld [vmem:[%s960_s2 + $0x50] sm:$0xff]  ;;  %v27_v33 = vld [vmem:[%s962_s0 + $0x38] sm:$0xff]  ;;  %v246_v36 = vld [vmem:[%s960_s2 + $0x60] sm:$0xff] }
   0xc   :  { %v35_v34 = vld [vmem:[%s962_s0 + $0x78] sm:$0xff]  ;;  %v248_v38 = vld [vmem:[%s960_s2 + $0x70] sm:$0xff]  ;;  %v347_v39 = vld [vmem:[%s963_s3 + $0x8] sm:$0xff] }
   0xd   :  { %571 = vmatmul.mubr.msk.f32.vlgmr.msra.gmra.mrb[0].mxu0 %vm40_vm0, %v21_v15  ;;  %583 = vmatmul.mubr.msk.f32.vlgmr.msra.gmra.mrb[0].mxu1 %vm40_vm0, %v29_v16  ;;  %v249_v37 = vld [vmem:[%s960_s2 + $0x78] sm:$0xff]  ;;  %v346_v40 = vld [vmem:[%s963_s3] sm:$0xff]  ;;  %v348_v42 = vld [vmem:[%s963_s3 + $0x10] sm:$0xff] }
   0xe   :  { %573 = vmatprep.mubr.msk.f32.mxu0 %vm40_vm0, %v22_v17  ;;  %585 = vmatprep.mubr.msk.f32.mxu1 %vm40_vm0, %v30_v18  ;;  %v349_v41 = vld [vmem:[%s963_s3 + $0x18] sm:$0xff]  ;;  %v351_v43 = vld [vmem:[%s963_s3 + $0x28] sm:$0xff]  ;;  %v350_v44 = vld [vmem:[%s963_s3 + $0x20] sm:$0xff] }
   0xf   :  { %287 = vperm.xlu1 %608, %v241_v19   ;;  %282 = vperm.xlu0 %607, %v240_v20   ;;  %v353_v45 = vld [vmem:[%s963_s3 + $0x38] sm:$0xff]  ;;  %v352_v46 = vld [vmem:[%s963_s3 + $0x30] sm:$0xff]  ;;  %v355_v47 = vld [vmem:[%s963_s3 + $0x48] sm:$0xff] }
  0x10   :  { %v354_v48 = vld [vmem:[%s963_s3 + $0x40] sm:$0xff]  ;;  %v357_v49 = vld [vmem:[%s963_s3 + $0x58] sm:$0xff]  ;;  %v356_v50 = vld [vmem:[%s963_s3 + $0x50] sm:$0xff] }
  0x11   :  { %574 = vmatmul.mubr.msk.f32.gmra.mrb[2].mxu0 %vm40_vm0, %v23_v21  ;;  %586 = vmatmul.mubr.msk.f32.gmra.mrb[2].mxu1 %vm40_vm0, %v31_v22  ;;  %v359_v51 = vld [vmem:[%s963_s3 + $0x68] sm:$0xff]  ;;  %v358_v52 = vld [vmem:[%s963_s3 + $0x60] sm:$0xff]  ;;  %v361_v53 = vld [vmem:[%s963_s3 + $0x78] sm:$0xff] }
  0x12   :  { %576 = vmatprep.mubr.msk.f32.mxu0 %vm40_vm0, %v24_v23  ;;  %588 = vmatprep.mubr.msk.f32.mxu1 %vm40_vm0, %v32_v24  ;;  %v360_v54 = vld [vmem:[%s963_s3 + $0x70] sm:$0xff] }
  0x13   :  { %297 = vperm.xlu1 %608, %v243_v25   ;;  %292 = vperm.xlu0 %607, %v242_v26   ;;  %v459_v25 = vld [vmem:[%s964_s4 + $0x8] sm:$0xff] }
  0x14   :  { %v467_v26 = vld [vmem:[%s964_s4 + $0x48] sm:$0xff] }
  0x15   :  { %577 = vmatmul.mubr.msk.f32.gmra.mrb[4].mxu0 %vm40_vm0, %v25_v27  ;;  %589 = vmatmul.mubr.msk.f32.gmra.mrb[4].mxu1 %vm40_vm0, %v33_v28 }
  0x16   :  { %579 = vmatprep.mubr.msk.f32.mxu0 %vm40_vm0, %v26_v29  ;;  %591 = vmatprep.mubr.msk.f32.mxu1 %vm40_vm0, %v34_v30 }
  0x17   :  { %307 = vperm.xlu1 %608, %v245_v31   ;;  %302 = vperm.xlu0 %607, %v244_v32   ;;  %v458_v31 = vld [vmem:[%s964_s4] sm:$0xff] }
  0x18   :  { %v466_v32 = vld [vmem:[%s964_s4 + $0x40] sm:$0xff] }
  0x19   :  { %580 = vmatmul.mubr.msk.f32.gmra.mrb[6].mxu0 %vm40_vm0, %v27_v33  ;;  %592 = vmatmul.mubr.msk.f32.gmra.mrb[6].mxu1 %vm40_vm0, %v35_v34 }
  0x1b   :  { %317 = vperm.xlu1 %608, %v247_v35   ;;  %312 = vperm.xlu0 %607, %v246_v36  }
  0x1f   :  { %327 = vperm.xlu1 %608, %v249_v37   ;;  %322 = vperm.xlu0 %607, %v248_v38  }
  0x23   :  { %369 = vperm.xlu1 %608, %v347_v39   ;;  %364 = vperm.xlu0 %607, %v346_v40  }
  0x27   :  { %379 = vperm.xlu1 %608, %v349_v41   ;;  %374 = vperm.xlu0 %607, %v348_v42  }
  0x2b   :  { %389 = vperm.xlu1 %608, %v351_v43   ;;  %384 = vperm.xlu0 %607, %v350_v44  }
  0x2f   :  { %399 = vperm.xlu1 %608, %v353_v45   ;;  %394 = vperm.xlu0 %607, %v352_v46   ;;  %v461_v45 = vld [vmem:[%s964_s4 + $0x18] sm:$0xff] }
  0x30   :  { %v469_v46 = vld [vmem:[%s964_s4 + $0x58] sm:$0xff] }
  0x33   :  { %409 = vperm.xlu1 %608, %v355_v47   ;;  %404 = vperm.xlu0 %607, %v354_v48  }
  0x37   :  { %419 = vperm.xlu1 %608, %v357_v49   ;;  %414 = vperm.xlu0 %607, %v356_v50  }
  0x3b   :  { %429 = vperm.xlu1 %608, %v359_v51   ;;  %424 = vperm.xlu0 %607, %v358_v52  }
  0x3f   :  { %439 = vperm.xlu1 %608, %v361_v53   ;;  %434 = vperm.xlu0 %607, %v360_v54  }
  0x81   :  { %v263_v55 = vpop.permute.xlu1 %262  ;;  %v253_v56 = vpop.permute.xlu0 %252 }
  0x86   :  { %v268_v57 = vpop.permute.xlu1 %267  ;;  %v258_v58 = vpop.permute.xlu0 %257 }
  0x8a   :  { %v812_v59 = vpop.permute.xlu1 %277  ;;  %v814_v60 = vpop.permute.xlu0 %272 }
  0x8e   :  { %v816_v61 = vpop.permute.xlu1 %287  ;;  %v818_v62 = vpop.permute.xlu0 %282 }
  0x92   :  { %v298_v63 = vpop.permute.xlu1 %297  ;;  %v293_v0 = vpop.permute.xlu0 %292 }
  0x96   :  { %v308_v1 = vpop.permute.xlu1 %307  ;;  %v303_v2 = vpop.permute.xlu0 %302 }
  0x9a   :  { %v820_v3 = vpop.permute.xlu1 %317  ;;  %v822_v4 = vpop.permute.xlu0 %312 }
  0x9e   :  { %v824_v5 = vpop.permute.xlu1 %327  ;;  %v826_v6 = vpop.permute.xlu0 %322 }
  0xa2   :  { %v370_v7 = vpop.permute.xlu1 %369  ;;  %v365_v8 = vpop.permute.xlu0 %364 }
  0xa6   :  { %v380_v9 = vpop.permute.xlu1 %379  ;;  %v375_v10 = vpop.permute.xlu0 %374 }
  0xaa   :  { %v828_v11 = vpop.permute.xlu1 %389  ;;  %v830_v12 = vpop.permute.xlu0 %384 }
  0xae   :  { %v832_v13 = vpop.permute.xlu1 %399  ;;  %v834_v14 = vpop.permute.xlu0 %394 }
  0xb2   :  { %v410_v15 = vpop.permute.xlu1 %409  ;;  %v405_v16 = vpop.permute.xlu0 %404 }
  0xb6   :  { %v420_v17 = vpop.permute.xlu1 %419  ;;  %v415_v18 = vpop.permute.xlu0 %414 }
  0xba   :  { %v430_v49 = vpop.permute.xlu1 %429  ;;  %v425_v50 = vpop.permute.xlu0 %424 }
  0xe0   :  { %v572_v19 = vpop.f32.mrb[0].mxu0  ;;  %v584_v20 = vpop.f32.mrb[0].mxu1 }
  0xe1   :  { %v331_v21 = vmul.f32 %v572_v19, %v258_v58  ;;  %v339_v22 = vmul.f32 %v584_v20, %v298_v63  ;;  %v155_v23 = vpop.f32.mrb[1].mxu0  ;;  %v195_v24 = vpop.f32.mrb[1].mxu1 }
  0xe2   :  { %v330_v27 = vmul.f32 %v253_v56, %v155_v23  ;;  %v338_v28 = vmul.f32 %v293_v0, %v195_v24  ;;  %v460_v56 = vld [vmem:[%s964_s4 + $0x10] sm:$0xff] }
  0xe3   :  { %v443_v29 = vadd.f32 %v370_v7, %v331_v21  ;;  %v451_v30 = vadd.f32 %v410_v15, %v339_v22 }
  0xe4   :  { %v442_v33 = vadd.f32 %v365_v8, %v330_v27  ;;  %v450_v34 = vadd.f32 %v405_v16, %v338_v28  ;;  %v575_v35 = vpop.f32.mrb[2].mxu0  ;;  %v587_v36 = vpop.f32.mrb[2].mxu1 }
  0xe5   :  { %v475_v37 = vadd.f32 %v459_v25, %v443_v29  ;;  %v483_v38 = vadd.f32 %v467_v26, %v451_v30  ;;  %v333_v39 = vmul.f32 %v575_v35, %v268_v57  ;;  %v341_v40 = vmul.f32 %v587_v36, %v308_v1  ;;  %v165_v41 = vpop.f32.mrb[3].mxu0  ;;  %v205_v42 = vpop.f32.mrb[3].mxu1  ;;  %v468_v57 = vld [vmem:[%s964_s4 + $0x50] sm:$0xff]  ;;  %v462_v25 = vld [vmem:[%s964_s4 + $0x20] sm:$0xff] }
  0xe6   :  { %v474_v43 = vadd.f32 %v458_v31, %v442_v33  ;;  %v482_v44 = vadd.f32 %v466_v32, %v450_v34  ;;  %v332_v47 = vmul.f32 %v263_v55, %v165_v41  ;;  %v340_v48 = vmul.f32 %v303_v2, %v205_v42  ;;  %v470_v26 = vld [vmem:[%s964_s4 + $0x60] sm:$0xff]  ;;  %v440_v35 = vpop.permute.xlu1 %439 }
  0xe7   :  { %v491_v51 = vmax.f32 %v475_v37, 0.0  ;;  %v499_v52 = vmax.f32 %v483_v38, 0.0  ;;  %v445_v53 = vadd.f32 %v380_v9, %v333_v39  ;;  %v453_v54 = vadd.f32 %v420_v17, %v341_v40  ;;  %v435_v40 = vpop.permute.xlu0 %434 }
  0xe8   :  { %v490_v58 = vmax.f32 %v474_v43, 0.0  ;;  %v498_v63 = vmax.f32 %v482_v44, 0.0  ;;  %v444_v0 = vadd.f32 %v375_v10, %v332_v47  ;;  %v452_v1 = vadd.f32 %v415_v18, %v340_v48  ;;  %v578_v55 = vpop.f32.mrb[4].mxu0  ;;  %v590_v2 = vpop.f32.mrb[4].mxu1 }
  0xe9   :  { %507 = vst.msk [vmem:[%s965_s5 + $0x8] sm:$0xff] %vm40_vm0, %v491_v51  ;;  %515 = vst.msk [vmem:[%s965_s5 + $0x48] sm:$0xff] %vm40_vm0, %v499_v52  ;;  %v477_v7 = vadd.f32 %v461_v45, %v445_v53  ;;  %v485_v8 = vadd.f32 %v469_v46, %v453_v54  ;;  %v335_v9 = vmul.f32 %v578_v55, %v812_v59  ;;  %v175_v10 = vpop.f32.mrb[5].mxu0  ;;  %v215_v16 = vpop.f32.mrb[5].mxu1  ;;  %v463_v59 = vld [vmem:[%s964_s4 + $0x28] sm:$0xff]  ;;  %v464_v45 = vld [vmem:[%s964_s4 + $0x30] sm:$0xff] }
  0xea   :  { %v343_v15 = vmul.f32 %v590_v2, %v820_v3  ;;  %506 = vst.msk [vmem:[%s965_s5] sm:$0xff] %vm40_vm0, %v490_v58  ;;  %514 = vst.msk [vmem:[%s965_s5 + $0x40] sm:$0xff] %vm40_vm0, %v498_v63  ;;  %v476_v17 = vadd.f32 %v460_v56, %v444_v0  ;;  %v484_v18 = vadd.f32 %v468_v57, %v452_v1  ;;  %v471_v3 = vld [vmem:[%s964_s4 + $0x68] sm:$0xff]  ;;  %v472_v46 = vld [vmem:[%s964_s4 + $0x70] sm:$0xff] }
  0xeb   :  { %v334_v19 = vmul.f32 %v814_v60, %v175_v10  ;;  %v342_v20 = vmul.f32 %v822_v4, %v215_v16  ;;  %v493_v21 = vmax.f32 %v477_v7, 0.0  ;;  %v501_v22 = vmax.f32 %v485_v8, 0.0 }
  0xec   :  { %v447_v23 = vadd.f32 %v828_v11, %v335_v9  ;;  %v455_v24 = vadd.f32 %v430_v49, %v343_v15  ;;  %v492_v27 = vmax.f32 %v476_v17, 0.0  ;;  %v500_v28 = vmax.f32 %v484_v18, 0.0  ;;  %v581_v30 = vpop.f32.mrb[6].mxu0  ;;  %v593_v4 = vpop.f32.mrb[6].mxu1 }
  0xed   :  { %v446_v29 = vadd.f32 %v830_v12, %v334_v19  ;;  %v454_v60 = vadd.f32 %v425_v50, %v342_v20  ;;  %509 = vst.msk [vmem:[%s965_s5 + $0x18] sm:$0xff] %vm40_vm0, %v493_v21  ;;  %517 = vst.msk [vmem:[%s965_s5 + $0x58] sm:$0xff] %vm40_vm0, %v501_v22  ;;  %v337_v32 = vmul.f32 %v581_v30, %v816_v61  ;;  %v185_v12 = vpop.f32.mrb[7].mxu0  ;;  %v225_v34 = vpop.f32.mrb[7].mxu1  ;;  %v465_v61 = vld [vmem:[%s964_s4 + $0x38] sm:$0xff] }
  0xee   :  { %v479_v11 = vadd.f32 %v463_v59, %v447_v23  ;;  %v487_v31 = vadd.f32 %v471_v3, %v455_v24  ;;  %v345_v33 = vmul.f32 %v593_v4, %v824_v5  ;;  %508 = vst.msk [vmem:[%s965_s5 + $0x10] sm:$0xff] %vm40_vm0, %v492_v27  ;;  %516 = vst.msk [vmem:[%s965_s5 + $0x50] sm:$0xff] %vm40_vm0, %v500_v28  ;;  %v473_v5 = vld [vmem:[%s964_s4 + $0x78] sm:$0xff] }
  0xef   :  { %v478_v36 = vadd.f32 %v462_v25, %v446_v29  ;;  %v486_v37 = vadd.f32 %v470_v26, %v454_v60  ;;  %v336_v38 = vmul.f32 %v818_v62, %v185_v12  ;;  %v344_v39 = vmul.f32 %v826_v6, %v225_v34 }
  0xf0   :  { %v495_v41 = vmax.f32 %v479_v11, 0.0  ;;  %v503_v42 = vmax.f32 %v487_v31, 0.0  ;;  %v449_v43 = vadd.f32 %v832_v13, %v337_v32  ;;  %v457_v44 = vadd.f32 %v440_v35, %v345_v33 }
  0xf1   :  { %v494_v47 = vmax.f32 %v478_v36, 0.0  ;;  %v502_v48 = vmax.f32 %v486_v37, 0.0  ;;  %v448_v62 = vadd.f32 %v834_v14, %v336_v38  ;;  %v456_v49 = vadd.f32 %v435_v40, %v344_v39 }
  0xf2   :  { %511 = vst.msk [vmem:[%s965_s5 + $0x28] sm:$0xff] %vm40_vm0, %v495_v41  ;;  %519 = vst.msk [vmem:[%s965_s5 + $0x68] sm:$0xff] %vm40_vm0, %v503_v42  ;;  %v481_v6 = vadd.f32 %v465_v61, %v449_v43  ;;  %v489_v13 = vadd.f32 %v473_v5, %v457_v44 }
  0xf3   :  { %510 = vst.msk [vmem:[%s965_s5 + $0x20] sm:$0xff] %vm40_vm0, %v494_v47  ;;  %518 = vst.msk [vmem:[%s965_s5 + $0x60] sm:$0xff] %vm40_vm0, %v502_v48  ;;  %v480_v14 = vadd.f32 %v464_v45, %v448_v62  ;;  %v488_v50 = vadd.f32 %v472_v46, %v456_v49 }
  0xf4   :  { %v497_v51 = vmax.f32 %v481_v6, 0.0  ;;  %v505_v52 = vmax.f32 %v489_v13, 0.0 }
  0xf5   :  { %v496_v53 = vmax.f32 %v480_v14, 0.0  ;;  %v504_v54 = vmax.f32 %v488_v50, 0.0 }
  0xf6   :  { %513 = vst.msk [vmem:[%s965_s5 + $0x38] sm:$0xff] %vm40_vm0, %v497_v51  ;;  %521 = vst.msk [vmem:[%s965_s5 + $0x78] sm:$0xff] %vm40_vm0, %v505_v52 }
  0xf7   :  { %512 = vst.msk [vmem:[%s965_s5 + $0x30] sm:$0xff] %vm40_vm0, %v496_v53  ;;  %520 = vst.msk [vmem:[%s965_s5 + $0x70] sm:$0xff] %vm40_vm0, %v504_v54 }

// kernel: pcb_test_forward.33
= control target key start
LH: loop header
LB: loop body
LE: loop exit
PB: predicated region body
PF: predicated region fallthrough
CT: control target
= control target key end

     0   :  { %vm264_vm0 = vcmask 27648   ;;  %vm2571_vm1 = vcmask 1041409   ;;  %vm2573_vm2 = vcmask 1042434   ;;  %vm2575_vm3 = vcmask 1043459   ;;  %s4533_s0 = inlined_call_operand.vmem [shape: f32[256,4,4], index: 0, kind: input, shape index: {}]   ;;  %s4534_s1 = inlined_call_operand.vmem [shape: f32[256,4], index: 1, kind: output, shape index: {}]  }
   0x1   :  { %v10_v0 = vld [vmem:[%s4533_s0 + $0x8] sm:$0xf]  ;;  %v8_v1 = vld [vmem:[%s4533_s0] sm:$0xf]  ;;  %v11_v2 = vld [vmem:[%s4533_s0 + $0xc] sm:$0xf] }
   0x2   :  { %v271_v3 = vsel %vm264_vm0, %v10_v0, 0.0  ;;  %v265_v4 = vsel %vm264_vm0, %v8_v1, 0.0  ;;  %v9_v5 = vld [vmem:[%s4533_s0 + $0x4] sm:$0xf]  ;;  %v274_v6 = vsel %vm264_vm0, %v11_v2, 0.0  ;;  %vm2577_vm4 = vcmask 1044484  }
   0x3   :  { %272 = vadd.xlane.f32.xlu1 %v271_v3  ;;  %266 = vadd.xlane.f32.xlu0 %v265_v4  ;;  %v268_v7 = vsel %vm264_vm0, %v9_v5, 0.0  ;;  %v13_v8 = vld [vmem:[%s4533_s0 + $0x14] sm:$0xf]  ;;  %v12_v9 = vld [vmem:[%s4533_s0 + $0x10] sm:$0xf]  ;;  %vm2579_vm5 = vcmask 1045509  }
   0x4   :  { %v280_v10 = vsel %vm264_vm0, %v13_v8, 0.0  ;;  %v277_v11 = vsel %vm264_vm0, %v12_v9, 0.0  ;;  %v15_v12 = vld [vmem:[%s4533_s0 + $0x1c] sm:$0xf]  ;;  %v14_v13 = vld [vmem:[%s4533_s0 + $0x18] sm:$0xf] }
   0x5   :  { %v286_v14 = vsel %vm264_vm0, %v15_v12, 0.0  ;;  %v283_v15 = vsel %vm264_vm0, %v14_v13, 0.0  ;;  %v17_v16 = vld [vmem:[%s4533_s0 + $0x24] sm:$0xf]  ;;  %v16_v17 = vld [vmem:[%s4533_s0 + $0x20] sm:$0xf] }
   0x6   :  { %v292_v18 = vsel %vm264_vm0, %v17_v16, 0.0  ;;  %v289_v19 = vsel %vm264_vm0, %v16_v17, 0.0  ;;  %v19_v20 = vld [vmem:[%s4533_s0 + $0x2c] sm:$0xf]  ;;  %v18_v21 = vld [vmem:[%s4533_s0 + $0x28] sm:$0xf] }
   0x7   :  { %275 = vadd.xlane.f32.xlu1 %v274_v6  ;;  %269 = vadd.xlane.f32.xlu0 %v268_v7  ;;  %v298_v22 = vsel %vm264_vm0, %v19_v20, 0.0  ;;  %v295_v23 = vsel %vm264_vm0, %v18_v21, 0.0  ;;  %v21_v24 = vld [vmem:[%s4533_s0 + $0x34] sm:$0xf]  ;;  %v20_v25 = vld [vmem:[%s4533_s0 + $0x30] sm:$0xf] }
   0x8   :  { %v304_v26 = vsel %vm264_vm0, %v21_v24, 0.0  ;;  %v301_v27 = vsel %vm264_vm0, %v20_v25, 0.0  ;;  %v23_v28 = vld [vmem:[%s4533_s0 + $0x3c] sm:$0xf]  ;;  %v22_v29 = vld [vmem:[%s4533_s0 + $0x38] sm:$0xf] }
   0x9   :  { %v310_v30 = vsel %vm264_vm0, %v23_v28, 0.0  ;;  %v307_v31 = vsel %vm264_vm0, %v22_v29, 0.0  ;;  %v25_v32 = vld [vmem:[%s4533_s0 + $0x44] sm:$0xf]  ;;  %v24_v33 = vld [vmem:[%s4533_s0 + $0x40] sm:$0xf] }
   0xa   :  { %v316_v34 = vsel %vm264_vm0, %v25_v32, 0.0  ;;  %v313_v35 = vsel %vm264_vm0, %v24_v33, 0.0  ;;  %v27_v36 = vld [vmem:[%s4533_s0 + $0x4c] sm:$0xf]  ;;  %v26_v37 = vld [vmem:[%s4533_s0 + $0x48] sm:$0xf] }
   0xb   :  { %281 = vadd.xlane.f32.xlu1 %v280_v10  ;;  %278 = vadd.xlane.f32.xlu0 %v277_v11  ;;  %v322_v38 = vsel %vm264_vm0, %v27_v36, 0.0  ;;  %v319_v39 = vsel %vm264_vm0, %v26_v37, 0.0  ;;  %v29_v40 = vld [vmem:[%s4533_s0 + $0x54] sm:$0xf]  ;;  %v28_v41 = vld [vmem:[%s4533_s0 + $0x50] sm:$0xf] }
   0xc   :  { %v328_v42 = vsel %vm264_vm0, %v29_v40, 0.0  ;;  %v325_v43 = vsel %vm264_vm0, %v28_v41, 0.0  ;;  %v31_v44 = vld [vmem:[%s4533_s0 + $0x5c] sm:$0xf]  ;;  %v30_v45 = vld [vmem:[%s4533_s0 + $0x58] sm:$0xf] }
   0xd   :  { %v334_v46 = vsel %vm264_vm0, %v31_v44, 0.0  ;;  %v331_v47 = vsel %vm264_vm0, %v30_v45, 0.0  ;;  %v33_v48 = vld [vmem:[%s4533_s0 + $0x64] sm:$0xf]  ;;  %v32_v49 = vld [vmem:[%s4533_s0 + $0x60] sm:$0xf] }
   0xe   :  { %v340_v50 = vsel %vm264_vm0, %v33_v48, 0.0  ;;  %v337_v51 = vsel %vm264_vm0, %v32_v49, 0.0  ;;  %v35_v52 = vld [vmem:[%s4533_s0 + $0x6c] sm:$0xf]  ;;  %v34_v53 = vld [vmem:[%s4533_s0 + $0x68] sm:$0xf] }
   0xf   :  { %287 = vadd.xlane.f32.xlu1 %v286_v14  ;;  %284 = vadd.xlane.f32.xlu0 %v283_v15  ;;  %v346_v54 = vsel %vm264_vm0, %v35_v52, 0.0  ;;  %v343_v55 = vsel %vm264_vm0, %v34_v53, 0.0  ;;  %v37_v56 = vld [vmem:[%s4533_s0 + $0x74] sm:$0xf]  ;;  %v36_v57 = vld [vmem:[%s4533_s0 + $0x70] sm:$0xf] }
  0x10   :  { %v352_v58 = vsel %vm264_vm0, %v37_v56, 0.0  ;;  %v349_v59 = vsel %vm264_vm0, %v36_v57, 0.0  ;;  %v39_v60 = vld [vmem:[%s4533_s0 + $0x7c] sm:$0xf]  ;;  %v38_v61 = vld [vmem:[%s4533_s0 + $0x78] sm:$0xf] }
  0x11   :  { %v358_v62 = vsel %vm264_vm0, %v39_v60, 0.0  ;;  %v355_v63 = vsel %vm264_vm0, %v38_v61, 0.0  ;;  %v41_v0 = vld [vmem:[%s4533_s0 + $0x84] sm:$0xf]  ;;  %v40_v1 = vld [vmem:[%s4533_s0 + $0x80] sm:$0xf] }
  0x12   :  { %v364_v2 = vsel %vm264_vm0, %v41_v0, 0.0  ;;  %v361_v3 = vsel %vm264_vm0, %v40_v1, 0.0  ;;  %v43_v4 = vld [vmem:[%s4533_s0 + $0x8c] sm:$0xf]  ;;  %v42_v5 = vld [vmem:[%s4533_s0 + $0x88] sm:$0xf] }
  0x13   :  { %293 = vadd.xlane.f32.xlu1 %v292_v18  ;;  %290 = vadd.xlane.f32.xlu0 %v289_v19  ;;  %v370_v6 = vsel %vm264_vm0, %v43_v4, 0.0  ;;  %v367_v7 = vsel %vm264_vm0, %v42_v5, 0.0  ;;  %v45_v8 = vld [vmem:[%s4533_s0 + $0x94] sm:$0xf]  ;;  %v44_v9 = vld [vmem:[%s4533_s0 + $0x90] sm:$0xf] }
  0x14   :  { %v376_v10 = vsel %vm264_vm0, %v45_v8, 0.0  ;;  %v373_v11 = vsel %vm264_vm0, %v44_v9, 0.0  ;;  %v47_v12 = vld [vmem:[%s4533_s0 + $0x9c] sm:$0xf]  ;;  %v46_v13 = vld [vmem:[%s4533_s0 + $0x98] sm:$0xf] }
  0x15   :  { %v382_v14 = vsel %vm264_vm0, %v47_v12, 0.0  ;;  %v379_v15 = vsel %vm264_vm0, %v46_v13, 0.0  ;;  %v49_v16 = vld [vmem:[%s4533_s0 + $0xa4] sm:$0xf]  ;;  %v48_v17 = vld [vmem:[%s4533_s0 + $0xa0] sm:$0xf] }
  0x16   :  { %v388_v18 = vsel %vm264_vm0, %v49_v16, 0.0  ;;  %v385_v19 = vsel %vm264_vm0, %v48_v17, 0.0  ;;  %v51_v20 = vld [vmem:[%s4533_s0 + $0xac] sm:$0xf]  ;;  %v50_v21 = vld [vmem:[%s4533_s0 + $0xa8] sm:$0xf] }
  0x17   :  { %299 = vadd.xlane.f32.xlu1 %v298_v22  ;;  %296 = vadd.xlane.f32.xlu0 %v295_v23  ;;  %v394_v22 = vsel %vm264_vm0, %v51_v20, 0.0  ;;  %v391_v23 = vsel %vm264_vm0, %v50_v21, 0.0  ;;  %v53_v24 = vld [vmem:[%s4533_s0 + $0xb4] sm:$0xf]  ;;  %v52_v25 = vld [vmem:[%s4533_s0 + $0xb0] sm:$0xf] }
  0x18   :  { %v55_v28 = vld [vmem:[%s4533_s0 + $0xbc] sm:$0xf]  ;;  %v54_v29 = vld [vmem:[%s4533_s0 + $0xb8] sm:$0xf]  ;;  %v57_v32 = vld [vmem:[%s4533_s0 + $0xc4] sm:$0xf] }
  0x19   :  { %v56_v33 = vld [vmem:[%s4533_s0 + $0xc0] sm:$0xf]  ;;  %v59_v36 = vld [vmem:[%s4533_s0 + $0xcc] sm:$0xf]  ;;  %v58_v37 = vld [vmem:[%s4533_s0 + $0xc8] sm:$0xf] }
  0x1a   :  { %v61_v40 = vld [vmem:[%s4533_s0 + $0xd4] sm:$0xf]  ;;  %v60_v41 = vld [vmem:[%s4533_s0 + $0xd0] sm:$0xf]  ;;  %v63_v44 = vld [vmem:[%s4533_s0 + $0xdc] sm:$0xf] }
  0x1b   :  { %305 = vadd.xlane.f32.xlu1 %v304_v26  ;;  %302 = vadd.xlane.f32.xlu0 %v301_v27  ;;  %v400_v26 = vsel %vm264_vm0, %v53_v24, 0.0  ;;  %v397_v27 = vsel %vm264_vm0, %v52_v25, 0.0  ;;  %v62_v45 = vld [vmem:[%s4533_s0 + $0xd8] sm:$0xf]  ;;  %v65_v48 = vld [vmem:[%s4533_s0 + $0xe4] sm:$0xf] }
  0x1c   :  { %v64_v49 = vld [vmem:[%s4533_s0 + $0xe0] sm:$0xf]  ;;  %v67_v52 = vld [vmem:[%s4533_s0 + $0xec] sm:$0xf]  ;;  %v66_v53 = vld [vmem:[%s4533_s0 + $0xe8] sm:$0xf] }
  0x1d   :  { %v69_v56 = vld [vmem:[%s4533_s0 + $0xf4] sm:$0xf]  ;;  %v68_v57 = vld [vmem:[%s4533_s0 + $0xf0] sm:$0xf]  ;;  %v71_v60 = vld [vmem:[%s4533_s0 + $0xfc] sm:$0xf] }
  0x1e   :  { %v70_v61 = vld [vmem:[%s4533_s0 + $0xf8] sm:$0xf]  ;;  %v73_v0 = vld [vmem:[%s4533_s0 + $0x104] sm:$0xf]  ;;  %v72_v1 = vld [vmem:[%s4533_s0 + $0x100] sm:$0xf] }
  0x1f   :  { %311 = vadd.xlane.f32.xlu1 %v310_v30  ;;  %308 = vadd.xlane.f32.xlu0 %v307_v31  ;;  %v406_v30 = vsel %vm264_vm0, %v55_v28, 0.0  ;;  %v403_v31 = vsel %vm264_vm0, %v54_v29, 0.0  ;;  %v75_v4 = vld [vmem:[%s4533_s0 + $0x10c] sm:$0xf]  ;;  %v74_v5 = vld [vmem:[%s4533_s0 + $0x108] sm:$0xf] }
  0x20   :  { %v77_v8 = vld [vmem:[%s4533_s0 + $0x114] sm:$0xf]  ;;  %v76_v9 = vld [vmem:[%s4533_s0 + $0x110] sm:$0xf]  ;;  %v79_v12 = vld [vmem:[%s4533_s0 + $0x11c] sm:$0xf] }
  0x21   :  { %v78_v13 = vld [vmem:[%s4533_s0 + $0x118] sm:$0xf]  ;;  %v81_v17 = vld [vmem:[%s4533_s0 + $0x124] sm:$0xf]  ;;  %v83_v25 = vld [vmem:[%s4533_s0 + $0x12c] sm:$0xf] }
  0x22   :  { %v475_v16 = vsel %vm264_vm0, %v78_v13, 0.0  ;;  %vm2581_vm6 = vcmask 1046534   ;;  %vm2583_vm7 = vcmask 1047559   ;;  %vm2834_vm8 = vcmask 31744  }
  0x23   :  { %317 = vadd.xlane.f32.xlu1 %v316_v34  ;;  %314 = vadd.xlane.f32.xlu0 %v313_v35  ;;  %v412_v34 = vsel %vm264_vm0, %v57_v32, 0.0  ;;  %v409_v35 = vsel %vm264_vm0, %v56_v33, 0.0  ;;  %v490_v32 = vsel %vm264_vm0, %v83_v25, 0.0 }
  0x27   :  { %323 = vadd.xlane.f32.xlu1 %v322_v38  ;;  %320 = vadd.xlane.f32.xlu0 %v319_v39  ;;  %v418_v38 = vsel %vm264_vm0, %v59_v36, 0.0  ;;  %v415_v39 = vsel %vm264_vm0, %v58_v37, 0.0  ;;  %v85_v36 = vld [vmem:[%s4533_s0 + $0x134] sm:$0xf]  ;;  %v84_v37 = vld [vmem:[%s4533_s0 + $0x130] sm:$0xf] }
  0x2b   :  { %329 = vadd.xlane.f32.xlu1 %v328_v42  ;;  %326 = vadd.xlane.f32.xlu0 %v325_v43  ;;  %v424_v42 = vsel %vm264_vm0, %v61_v40, 0.0  ;;  %v421_v43 = vsel %vm264_vm0, %v60_v41, 0.0 }
  0x2f   :  { %335 = vadd.xlane.f32.xlu1 %v334_v46  ;;  %332 = vadd.xlane.f32.xlu0 %v331_v47  ;;  %v430_v46 = vsel %vm264_vm0, %v63_v44, 0.0  ;;  %v427_v47 = vsel %vm264_vm0, %v62_v45, 0.0  ;;  %v493_v44 = vsel %vm264_vm0, %v84_v37, 0.0 }
  0x33   :  { %341 = vadd.xlane.f32.xlu1 %v340_v50  ;;  %338 = vadd.xlane.f32.xlu0 %v337_v51  ;;  %v436_v50 = vsel %vm264_vm0, %v65_v48, 0.0  ;;  %v433_v51 = vsel %vm264_vm0, %v64_v49, 0.0  ;;  %v87_v49 = vld [vmem:[%s4533_s0 + $0x13c] sm:$0xf] }
  0x37   :  { %347 = vadd.xlane.f32.xlu1 %v346_v54  ;;  %344 = vadd.xlane.f32.xlu0 %v343_v55  ;;  %v442_v54 = vsel %vm264_vm0, %v67_v52, 0.0  ;;  %v439_v55 = vsel %vm264_vm0, %v66_v53, 0.0 }
  0x3b   :  { %353 = vadd.xlane.f32.xlu1 %v352_v58  ;;  %350 = vadd.xlane.f32.xlu0 %v349_v59  ;;  %v448_v58 = vsel %vm264_vm0, %v69_v56, 0.0  ;;  %v445_v59 = vsel %vm264_vm0, %v68_v57, 0.0  ;;  %v502_v57 = vsel %vm264_vm0, %v87_v49, 0.0 }
  0x3f   :  { %359 = vadd.xlane.f32.xlu1 %v358_v62  ;;  %356 = vadd.xlane.f32.xlu0 %v355_v63  ;;  %v454_v62 = vsel %vm264_vm0, %v71_v60, 0.0  ;;  %v451_v63 = vsel %vm264_vm0, %v70_v61, 0.0 }
  0x43   :  { %365 = vadd.xlane.f32.xlu1 %v364_v2  ;;  %362 = vadd.xlane.f32.xlu0 %v361_v3  ;;  %v460_v2 = vsel %vm264_vm0, %v73_v0, 0.0  ;;  %v457_v3 = vsel %vm264_vm0, %v72_v1, 0.0 }
  0x47   :  { %371 = vadd.xlane.f32.xlu1 %v370_v6  ;;  %368 = vadd.xlane.f32.xlu0 %v367_v7  ;;  %v466_v6 = vsel %vm264_vm0, %v75_v4, 0.0  ;;  %v463_v7 = vsel %vm264_vm0, %v74_v5, 0.0 }
  0x4b   :  { %377 = vadd.xlane.f32.xlu1 %v376_v10  ;;  %374 = vadd.xlane.f32.xlu0 %v373_v11  ;;  %v472_v10 = vsel %vm264_vm0, %v77_v8, 0.0  ;;  %v469_v11 = vsel %vm264_vm0, %v76_v9, 0.0 }
  0x4f   :  { %383 = vadd.xlane.f32.xlu1 %v382_v14  ;;  %380 = vadd.xlane.f32.xlu0 %v379_v15  ;;  %v1545_v14 = vlaneseq  ;;  %v478_v15 = vsel %vm264_vm0, %v79_v12, 0.0 }
  0x51   :  { %v1548_v20 = vshrl.u32 %v1545_v14, 7 }
  0x53   :  { %389 = vadd.xlane.f32.xlu1 %v388_v18  ;;  %386 = vadd.xlane.f32.xlu0 %v385_v19  ;;  %v80_v18 = vld [vmem:[%s4533_s0 + $0x120] sm:$0xf]  ;;  %v1546_v19 = vand.u32 127, %v1545_v14 }
  0x54   :  { %v481_v24 = vsel %vm264_vm0, %v80_v18, 0.0 }
  0x57   :  { %395 = vadd.xlane.f32.xlu1 %v394_v22  ;;  %392 = vadd.xlane.f32.xlu0 %v391_v23  ;;  %v484_v23 = vsel %vm264_vm0, %v81_v17, 0.0 }
  0x5b   :  { %401 = vadd.xlane.f32.xlu1 %v400_v26  ;;  %398 = vadd.xlane.f32.xlu0 %v397_v27  ;;  %v82_v26 = vld [vmem:[%s4533_s0 + $0x128] sm:$0xf]  ;;  %v3183_v27 = vsub.s32 %v1546_v19, %v1548_v20 }
  0x5c   :  { %v487_v33 = vsel %vm264_vm0, %v82_v26, 0.0 }
  0x5f   :  { %407 = vadd.xlane.f32.xlu1 %v406_v30  ;;  %404 = vadd.xlane.f32.xlu0 %v403_v31 }
  0x63   :  { %413 = vadd.xlane.f32.xlu1 %v412_v34  ;;  %410 = vadd.xlane.f32.xlu0 %v409_v35 }
  0x67   :  { %419 = vadd.xlane.f32.xlu1 %v418_v38  ;;  %416 = vadd.xlane.f32.xlu0 %v415_v39 }
  0x6b   :  { %425 = vadd.xlane.f32.xlu1 %v424_v42  ;;  %422 = vadd.xlane.f32.xlu0 %v421_v43  ;;  %v496_v43 = vsel %vm264_vm0, %v85_v36, 0.0 }
  0x6f   :  { %431 = vadd.xlane.f32.xlu1 %v430_v46  ;;  %428 = vadd.xlane.f32.xlu0 %v427_v47 }
  0x73   :  { %437 = vadd.xlane.f32.xlu1 %v436_v50  ;;  %434 = vadd.xlane.f32.xlu0 %v433_v51  ;;  %v86_v50 = vld [vmem:[%s4533_s0 + $0x138] sm:$0xf] }
  0x77   :  { %443 = vadd.xlane.f32.xlu1 %v442_v54  ;;  %440 = vadd.xlane.f32.xlu0 %v439_v55 }
  0x7b   :  { %449 = vadd.xlane.f32.xlu1 %v448_v58  ;;  %446 = vadd.xlane.f32.xlu0 %v445_v59  ;;  %v499_v58 = vsel %vm264_vm0, %v86_v50, 0.0 }
  0x7f   :  { %455 = vadd.xlane.f32.xlu1 %v454_v62  ;;  %452 = vadd.xlane.f32.xlu0 %v451_v63  ;;  %v89_v62 = vld [vmem:[%s4533_s0 + $0x144] sm:$0xf]  ;;  %v88_v63 = vld [vmem:[%s4533_s0 + $0x140] sm:$0xf] }
  0x80   :  { %v508_v5 = vsel %vm264_vm0, %v89_v62, 0.0 }
  0x83   :  { %461 = vadd.xlane.f32.xlu1 %v460_v2  ;;  %458 = vadd.xlane.f32.xlu0 %v457_v3 }
  0x87   :  { %467 = vadd.xlane.f32.xlu1 %v466_v6  ;;  %464 = vadd.xlane.f32.xlu0 %v463_v7  ;;  %v505_v6 = vsel %vm264_vm0, %v88_v63, 0.0 }
  0x8b   :  { %473 = vadd.xlane.f32.xlu1 %v472_v10  ;;  %470 = vadd.xlane.f32.xlu0 %v469_v11  ;;  %v91_v10 = vld [vmem:[%s4533_s0 + $0x14c] sm:$0xf]  ;;  %v90_v11 = vld [vmem:[%s4533_s0 + $0x148] sm:$0xf] }
  0x8c   :  { %v514_v17 = vsel %vm264_vm0, %v91_v10, 0.0  ;;  %v511_v18 = vsel %vm264_vm0, %v90_v11, 0.0 }
  0x8f   :  { %479 = vadd.xlane.f32.xlu1 %v478_v15  ;;  %476 = vadd.xlane.f32.xlu0 %v475_v16 }
  0x90   :  { %v273_v21 = vpop.xlane.xlu1 %272  ;;  %v267_v22 = vpop.xlane.xlu0 %266 }
  0x91   :  { %v1033_v28 = vmul.f32 0.25, %v267_v22  ;;  %v1035_v29 = vmul.f32 0.25, %v273_v21  ;;  %v93_v21 = vld [vmem:[%s4533_s0 + $0x154] sm:$0xf]  ;;  %v92_v22 = vld [vmem:[%s4533_s0 + $0x150] sm:$0xf] }
  0x93   :  { %485 = vadd.xlane.f32.xlu1 %v484_v23  ;;  %482 = vadd.xlane.f32.xlu0 %v481_v24  ;;  %v1550_v38 = vrot.slane %v1033_v28, %v3183_v27  ;;  %v1558_v40 = vrot.slane %v1035_v29, %v3183_v27  ;;  %v520_v29 = vsel %vm264_vm0, %v93_v21, 0.0 }
  0x94   :  { %v276_v30 = vpop.xlane.xlu1 %275  ;;  %v270_v31 = vpop.xlane.xlu0 %269 }
  0x95   :  { %v1036_v34 = vmul.f32 0.25, %v276_v30  ;;  %v1034_v35 = vmul.f32 0.25, %v270_v31  ;;  %v517_v30 = vsel %vm264_vm0, %v92_v22, 0.0 }
  0x97   :  { %v1554_v39 = vrot.slane %v1034_v35, %v3183_v27  ;;  %491 = vadd.xlane.f32.xlu1 %v490_v32  ;;  %488 = vadd.xlane.f32.xlu0 %v487_v33  ;;  %v1562_v45 = vrot.slane %v1036_v34, %v3183_v27  ;;  %v95_v34 = vld [vmem:[%s4533_s0 + $0x15c] sm:$0xf]  ;;  %v94_v35 = vld [vmem:[%s4533_s0 + $0x158] sm:$0xf] }
  0x98   :  { %v282_v41 = vpop.xlane.xlu1 %281  ;;  %v279_v42 = vpop.xlane.xlu0 %278 }
  0x99   :  { %v2572_v46 = vsel %vm2571_vm1, %v1554_v39, %v1550_v38  ;;  %v1038_v47 = vmul.f32 0.25, %v282_v41  ;;  %v1037_v48 = vmul.f32 0.25, %v279_v42  ;;  %v526_v41 = vsel %vm264_vm0, %v95_v34, 0.0 }
  0x9a   :  { %v2574_v51 = vsel %vm2573_vm2, %v1558_v40, %v2572_v46  ;;  %v523_v42 = vsel %vm264_vm0, %v94_v35, 0.0  ;;  %v97_v46 = vld [vmem:[%s4533_s0 + $0x164] sm:$0xf] }
  0x9b   :  { %v2576_v52 = vsel %vm2575_vm3, %v1562_v45, %v2574_v51  ;;  %v1566_v53 = vrot.slane %v1037_v48, %v3183_v27  ;;  %497 = vadd.xlane.f32.xlu1 %v496_v43  ;;  %494 = vadd.xlane.f32.xlu0 %v493_v44  ;;  %v1570_v54 = vrot.slane %v1038_v47, %v3183_v27  ;;  %v96_v47 = vld [vmem:[%s4533_s0 + $0x160] sm:$0xf] }
  0x9c   :  { %v288_v55 = vpop.xlane.xlu1 %287  ;;  %v285_v56 = vpop.xlane.xlu0 %284 }
  0x9d   :  { %v2578_v59 = vsel %vm2577_vm4, %v1566_v53, %v2576_v52  ;;  %v1040_v60 = vmul.f32 0.25, %v288_v55  ;;  %v1039_v61 = vmul.f32 0.25, %v285_v56  ;;  %v532_v53 = vsel %vm264_vm0, %v97_v46, 0.0 }
  0x9e   :  { %v2580_v2 = vsel %vm2579_vm5, %v1570_v54, %v2578_v59  ;;  %v529_v54 = vsel %vm264_vm0, %v96_v47, 0.0  ;;  %v98_v59 = vld [vmem:[%s4533_s0 + $0x168] sm:$0xf] }
  0x9f   :  { %v1578_v0 = vrot.slane %v1040_v60, %v3183_v27  ;;  %v1574_v1 = vrot.slane %v1039_v61, %v3183_v27  ;;  %503 = vadd.xlane.f32.xlu1 %v502_v57  ;;  %500 = vadd.xlane.f32.xlu0 %v499_v58  ;;  %v99_v58 = vld [vmem:[%s4533_s0 + $0x16c] sm:$0xf] }
  0xa0   :  { %v294_v3 = vpop.xlane.xlu1 %293  ;;  %v291_v4 = vpop.xlane.xlu0 %290 }
  0xa1   :  { %v2582_v7 = vsel %vm2581_vm6, %v1574_v1, %v2580_v2  ;;  %v1042_v8 = vmul.f32 0.25, %v294_v3  ;;  %v1041_v9 = vmul.f32 0.25, %v291_v4  ;;  %v538_v1 = vsel %vm264_vm0, %v99_v58, 0.0 }
  0xa2   :  { %v2584_v12 = vsel %vm2583_vm7, %v1578_v0, %v2582_v7  ;;  %v535_v2 = vsel %vm264_vm0, %v98_v59, 0.0 }
  0xa3   :  { %2835 = vst.msk [vmem:[%s4534_s1] sm:$0xff] %vm2834_vm8, %v2584_v12  ;;  %509 = vadd.xlane.f32.xlu1 %v508_v5  ;;  %506 = vadd.xlane.f32.xlu0 %v505_v6  ;;  %v1586_v13 = vrot.slane %v1042_v8, %v3183_v27  ;;  %v1582_v14 = vrot.slane %v1041_v9, %v3183_v27  ;;  %v101_v5 = vld [vmem:[%s4533_s0 + $0x174] sm:$0xf]  ;;  %v100_v6 = vld [vmem:[%s4533_s0 + $0x170] sm:$0xf] }
  0xa4   :  { %v300_v15 = vpop.xlane.xlu1 %299  ;;  %v297_v16 = vpop.xlane.xlu0 %296  ;;  %v544_v12 = vsel %vm264_vm0, %v101_v5, 0.0 }
  0xa5   :  { %v1044_v19 = vmul.f32 0.25, %v300_v15  ;;  %v1043_v20 = vmul.f32 0.25, %v297_v16  ;;  %v2585_v24 = vsel %vm2571_vm1, %v1586_v13, %v1582_v14  ;;  %v541_v13 = vsel %vm264_vm0, %v100_v6, 0.0 }
  0xa7   :  { %v1590_v23 = vrot.slane %v1043_v20, %v3183_v27  ;;  %515 = vadd.xlane.f32.xlu1 %v514_v17  ;;  %512 = vadd.xlane.f32.xlu0 %v511_v18  ;;  %v1594_v25 = vrot.slane %v1044_v19, %v3183_v27  ;;  %v103_v17 = vld [vmem:[%s4533_s0 + $0x17c] sm:$0xf]  ;;  %v102_v18 = vld [vmem:[%s4533_s0 + $0x178] sm:$0xf] }
  0xa8   :  { %v306_v26 = vpop.xlane.xlu1 %305  ;;  %v303_v28 = vpop.xlane.xlu0 %302 }
  0xa9   :  { %v2586_v31 = vsel %vm2573_vm2, %v1590_v23, %v2585_v24  ;;  %v1046_v32 = vmul.f32 0.25, %v306_v26  ;;  %v1045_v33 = vmul.f32 0.25, %v303_v28  ;;  %v550_v24 = vsel %vm264_vm0, %v103_v17, 0.0 }
  0xaa   :  { %v2587_v38 = vsel %vm2575_vm3, %v1594_v25, %v2586_v31  ;;  %v547_v25 = vsel %vm264_vm0, %v102_v18, 0.0  ;;  %v104_v31 = vld [vmem:[%s4533_s0 + $0x180] sm:$0xf] }
  0xab   :  { %v1598_v36 = vrot.slane %v1045_v33, %v3183_v27  ;;  %521 = vadd.xlane.f32.xlu1 %v520_v29  ;;  %518 = vadd.xlane.f32.xlu0 %v517_v30  ;;  %v1602_v37 = vrot.slane %v1046_v32, %v3183_v27  ;;  %v105_v30 = vld [vmem:[%s4533_s0 + $0x184] sm:$0xf] }
  0xac   :  { %v312_v39 = vpop.xlane.xlu1 %311  ;;  %v309_v40 = vpop.xlane.xlu0 %308 }
  0xad   :  { %v2588_v43 = vsel %vm2577_vm4, %v1598_v36, %v2587_v38  ;;  %v1048_v44 = vmul.f32 0.25, %v312_v39  ;;  %v1047_v45 = vmul.f32 0.25, %v309_v40  ;;  %v553_v38 = vsel %vm264_vm0, %v104_v31, 0.0 }
  0xae   :  { %v2589_v50 = vsel %vm2579_vm5, %v1602_v37, %v2588_v43  ;;  %v556_v37 = vsel %vm264_vm0, %v105_v30, 0.0  ;;  %v106_v43 = vld [vmem:[%s4533_s0 + $0x188] sm:$0xf] }
  0xaf   :  { %v1610_v48 = vrot.slane %v1048_v44, %v3183_v27  ;;  %v1606_v49 = vrot.slane %v1047_v45, %v3183_v27  ;;  %527 = vadd.xlane.f32.xlu1 %v526_v41  ;;  %524 = vadd.xlane.f32.xlu0 %v523_v42  ;;  %v107_v42 = vld [vmem:[%s4533_s0 + $0x18c] sm:$0xf] }
  0xb0   :  { %v318_v51 = vpop.xlane.xlu1 %317  ;;  %v315_v52 = vpop.xlane.xlu0 %314 }
  0xb1   :  { %v2590_v55 = vsel %vm2581_vm6, %v1606_v49, %v2589_v50  ;;  %v1050_v56 = vmul.f32 0.25, %v318_v51  ;;  %v1049_v57 = vmul.f32 0.25, %v315_v52  ;;  %v562_v49 = vsel %vm264_vm0, %v107_v42, 0.0 }
  0xb2   :  { %v2591_v60 = vsel %vm2583_vm7, %v1610_v48, %v2590_v55  ;;  %v559_v50 = vsel %vm264_vm0, %v106_v43, 0.0 }
  0xb3   :  { %2836 = vst.msk [vmem:[%s4534_s1 + $0x8] sm:$0xff] %vm2834_vm8, %v2591_v60  ;;  %533 = vadd.xlane.f32.xlu1 %v532_v53  ;;  %530 = vadd.xlane.f32.xlu0 %v529_v54  ;;  %v1618_v61 = vrot.slane %v1050_v56, %v3183_v27  ;;  %v1614_v62 = vrot.slane %v1049_v57, %v3183_v27  ;;  %v109_v53 = vld [vmem:[%s4533_s0 + $0x194] sm:$0xf]  ;;  %v108_v54 = vld [vmem:[%s4533_s0 + $0x190] sm:$0xf] }
  0xb4   :  { %v324_v63 = vpop.xlane.xlu1 %323  ;;  %v321_v0 = vpop.xlane.xlu0 %320  ;;  %v568_v60 = vsel %vm264_vm0, %v109_v53, 0.0 }
  0xb5   :  { %v1052_v3 = vmul.f32 0.25, %v324_v63  ;;  %v1051_v4 = vmul.f32 0.25, %v321_v0  ;;  %v2592_v8 = vsel %vm2571_vm1, %v1618_v61, %v1614_v62  ;;  %v565_v61 = vsel %vm264_vm0, %v108_v54, 0.0 }
  0xb7   :  { %v1622_v7 = vrot.slane %v1051_v4, %v3183_v27  ;;  %539 = vadd.xlane.f32.xlu1 %v538_v1  ;;  %536 = vadd.xlane.f32.xlu0 %v535_v2  ;;  %v1626_v9 = vrot.slane %v1052_v3, %v3183_v27  ;;  %v111_v1 = vld [vmem:[%s4533_s0 + $0x19c] sm:$0xf]  ;;  %v110_v2 = vld [vmem:[%s4533_s0 + $0x198] sm:$0xf] }
  0xb8   :  { %v330_v10 = vpop.xlane.xlu1 %329  ;;  %v327_v11 = vpop.xlane.xlu0 %326 }
  0xb9   :  { %v2593_v14 = vsel %vm2573_vm2, %v1622_v7, %v2592_v8  ;;  %v1054_v15 = vmul.f32 0.25, %v330_v10  ;;  %v1053_v16 = vmul.f32 0.25, %v327_v11  ;;  %v574_v8 = vsel %vm264_vm0, %v111_v1, 0.0 }
  0xba   :  { %v2594_v21 = vsel %vm2575_vm3, %v1626_v9, %v2593_v14  ;;  %v571_v9 = vsel %vm264_vm0, %v110_v2, 0.0  ;;  %v112_v14 = vld [vmem:[%s4533_s0 + $0x1a0] sm:$0xf] }
  0xbb   :  { %v1630_v19 = vrot.slane %v1053_v16, %v3183_v27  ;;  %545 = vadd.xlane.f32.xlu1 %v544_v12  ;;  %542 = vadd.xlane.f32.xlu0 %v541_v13  ;;  %v1634_v20 = vrot.slane %v1054_v15, %v3183_v27  ;;  %v113_v13 = vld [vmem:[%s4533_s0 + $0x1a4] sm:$0xf] }
  0xbc   :  { %v336_v22 = vpop.xlane.xlu1 %335  ;;  %v333_v23 = vpop.xlane.xlu0 %332 }
  0xbd   :  { %v2595_v26 = vsel %vm2577_vm4, %v1630_v19, %v2594_v21  ;;  %v1056_v28 = vmul.f32 0.25, %v336_v22  ;;  %v1055_v29 = vmul.f32 0.25, %v333_v23  ;;  %v577_v21 = vsel %vm264_vm0, %v112_v14, 0.0 }
  0xbe   :  { %v2596_v34 = vsel %vm2579_vm5, %v1634_v20, %v2595_v26  ;;  %v580_v20 = vsel %vm264_vm0, %v113_v13, 0.0  ;;  %v114_v26 = vld [vmem:[%s4533_s0 + $0x1a8] sm:$0xf] }
  0xbf   :  { %v1642_v32 = vrot.slane %v1056_v28, %v3183_v27  ;;  %v1638_v33 = vrot.slane %v1055_v29, %v3183_v27  ;;  %551 = vadd.xlane.f32.xlu1 %v550_v24  ;;  %548 = vadd.xlane.f32.xlu0 %v547_v25  ;;  %v115_v25 = vld [vmem:[%s4533_s0 + $0x1ac] sm:$0xf] }
  0xc0   :  { %v342_v35 = vpop.xlane.xlu1 %341  ;;  %v339_v36 = vpop.xlane.xlu0 %338 }
  0xc1   :  { %v2597_v39 = vsel %vm2581_vm6, %v1638_v33, %v2596_v34  ;;  %v1058_v40 = vmul.f32 0.25, %v342_v35  ;;  %v1057_v41 = vmul.f32 0.25, %v339_v36  ;;  %v586_v33 = vsel %vm264_vm0, %v115_v25, 0.0 }
  0xc2   :  { %v2598_v44 = vsel %vm2583_vm7, %v1642_v32, %v2597_v39  ;;  %v583_v34 = vsel %vm264_vm0, %v114_v26, 0.0 }
  0xc3   :  { %2837 = vst.msk [vmem:[%s4534_s1 + $0x10] sm:$0xff] %vm2834_vm8, %v2598_v44  ;;  %557 = vadd.xlane.f32.xlu1 %v556_v37  ;;  %554 = vadd.xlane.f32.xlu0 %v553_v38  ;;  %v1650_v45 = vrot.slane %v1058_v40, %v3183_v27  ;;  %v1646_v46 = vrot.slane %v1057_v41, %v3183_v27  ;;  %v117_v37 = vld [vmem:[%s4533_s0 + $0x1b4] sm:$0xf]  ;;  %v116_v38 = vld [vmem:[%s4533_s0 + $0x1b0] sm:$0xf] }
  0xc4   :  { %v348_v47 = vpop.xlane.xlu1 %347  ;;  %v345_v48 = vpop.xlane.xlu0 %344  ;;  %v592_v44 = vsel %vm264_vm0, %v117_v37, 0.0 }
  0xc5   :  { %v1060_v51 = vmul.f32 0.25, %v348_v47  ;;  %v1059_v52 = vmul.f32 0.25, %v345_v48  ;;  %v2599_v56 = vsel %vm2571_vm1, %v1650_v45, %v1646_v46  ;;  %v589_v45 = vsel %vm264_vm0, %v116_v38, 0.0 }
  0xc7   :  { %v1654_v55 = vrot.slane %v1059_v52, %v3183_v27  ;;  %563 = vadd.xlane.f32.xlu1 %v562_v49  ;;  %560 = vadd.xlane.f32.xlu0 %v559_v50  ;;  %v1658_v57 = vrot.slane %v1060_v51, %v3183_v27  ;;  %v119_v49 = vld [vmem:[%s4533_s0 + $0x1bc] sm:$0xf]  ;;  %v118_v50 = vld [vmem:[%s4533_s0 + $0x1b8] sm:$0xf] }
  0xc8   :  { %v354_v58 = vpop.xlane.xlu1 %353  ;;  %v351_v59 = vpop.xlane.xlu0 %350 }
  0xc9   :  { %v2600_v62 = vsel %vm2573_vm2, %v1654_v55, %v2599_v56  ;;  %v1062_v63 = vmul.f32 0.25, %v354_v58  ;;  %v1061_v0 = vmul.f32 0.25, %v351_v59  ;;  %v598_v56 = vsel %vm264_vm0, %v119_v49, 0.0 }
  0xca   :  { %v2601_v5 = vsel %vm2575_vm3, %v1658_v57, %v2600_v62  ;;  %v595_v57 = vsel %vm264_vm0, %v118_v50, 0.0  ;;  %v120_v62 = vld [vmem:[%s4533_s0 + $0x1c0] sm:$0xf] }
  0xcb   :  { %v1662_v3 = vrot.slane %v1061_v0, %v3183_v27  ;;  %569 = vadd.xlane.f32.xlu1 %v568_v60  ;;  %566 = vadd.xlane.f32.xlu0 %v565_v61  ;;  %v1666_v4 = vrot.slane %v1062_v63, %v3183_v27  ;;  %v121_v61 = vld [vmem:[%s4533_s0 + $0x1c4] sm:$0xf] }
  0xcc   :  { %v360_v6 = vpop.xlane.xlu1 %359  ;;  %v357_v7 = vpop.xlane.xlu0 %356 }
  0xcd   :  { %v2602_v10 = vsel %vm2577_vm4, %v1662_v3, %v2601_v5  ;;  %v1064_v11 = vmul.f32 0.25, %v360_v6  ;;  %v1063_v12 = vmul.f32 0.25, %v357_v7  ;;  %v601_v5 = vsel %vm264_vm0, %v120_v62, 0.0 }
  0xce   :  { %v2603_v17 = vsel %vm2579_vm5, %v1666_v4, %v2602_v10  ;;  %v604_v4 = vsel %vm264_vm0, %v121_v61, 0.0  ;;  %v122_v10 = vld [vmem:[%s4533_s0 + $0x1c8] sm:$0xf] }
  0xcf   :  { %v1674_v15 = vrot.slane %v1064_v11, %v3183_v27  ;;  %v1670_v16 = vrot.slane %v1063_v12, %v3183_v27  ;;  %575 = vadd.xlane.f32.xlu1 %v574_v8  ;;  %572 = vadd.xlane.f32.xlu0 %v571_v9  ;;  %v123_v9 = vld [vmem:[%s4533_s0 + $0x1cc] sm:$0xf] }
  0xd0   :  { %v366_v18 = vpop.xlane.xlu1 %365  ;;  %v363_v19 = vpop.xlane.xlu0 %362 }
  0xd1   :  { %v2604_v22 = vsel %vm2581_vm6, %v1670_v16, %v2603_v17  ;;  %v1066_v23 = vmul.f32 0.25, %v366_v18  ;;  %v1065_v24 = vmul.f32 0.25, %v363_v19  ;;  %v610_v16 = vsel %vm264_vm0, %v123_v9, 0.0 }
  0xd2   :  { %v2605_v28 = vsel %vm2583_vm7, %v1674_v15, %v2604_v22  ;;  %v607_v17 = vsel %vm264_vm0, %v122_v10, 0.0 }
  0xd3   :  { %2838 = vst.msk [vmem:[%s4534_s1 + $0x18] sm:$0xff] %vm2834_vm8, %v2605_v28  ;;  %581 = vadd.xlane.f32.xlu1 %v580_v20  ;;  %578 = vadd.xlane.f32.xlu0 %v577_v21  ;;  %v1682_v29 = vrot.slane %v1066_v23, %v3183_v27  ;;  %v1678_v30 = vrot.slane %v1065_v24, %v3183_v27  ;;  %v125_v20 = vld [vmem:[%s4533_s0 + $0x1d4] sm:$0xf]  ;;  %v124_v21 = vld [vmem:[%s4533_s0 + $0x1d0] sm:$0xf] }
  0xd4   :  { %v372_v31 = vpop.xlane.xlu1 %371  ;;  %v369_v32 = vpop.xlane.xlu0 %368  ;;  %v616_v28 = vsel %vm264_vm0, %v125_v20, 0.0 }
  0xd5   :  { %v1068_v35 = vmul.f32 0.25, %v372_v31  ;;  %v1067_v36 = vmul.f32 0.25, %v369_v32  ;;  %v2606_v40 = vsel %vm2571_vm1, %v1682_v29, %v1678_v30  ;;  %v613_v29 = vsel %vm264_vm0, %v124_v21, 0.0 }
  0xd7   :  { %v1686_v39 = vrot.slane %v1067_v36, %v3183_v27  ;;  %587 = vadd.xlane.f32.xlu1 %v586_v33  ;;  %584 = vadd.xlane.f32.xlu0 %v583_v34  ;;  %v1690_v41 = vrot.slane %v1068_v35, %v3183_v27  ;;  %v127_v33 = vld [vmem:[%s4533_s0 + $0x1dc] sm:$0xf]  ;;  %v126_v34 = vld [vmem:[%s4533_s0 + $0x1d8] sm:$0xf] }
  0xd8   :  { %v378_v42 = vpop.xlane.xlu1 %377  ;;  %v375_v43 = vpop.xlane.xlu0 %374 }
  0xd9   :  { %v2607_v46 = vsel %vm2573_vm2, %v1686_v39, %v2606_v40  ;;  %v1070_v47 = vmul.f32 0.25, %v378_v42  ;;  %v1069_v48 = vmul.f32 0.25, %v375_v43  ;;  %v622_v40 = vsel %vm264_vm0, %v127_v33, 0.0 }
  0xda   :  { %v2608_v53 = vsel %vm2575_vm3, %v1690_v41, %v2607_v46  ;;  %v619_v41 = vsel %vm264_vm0, %v126_v34, 0.0  ;;  %v128_v46 = vld [vmem:[%s4533_s0 + $0x1e0] sm:$0xf] }
  0xdb   :  { %v1694_v51 = vrot.slane %v1069_v48, %v3183_v27  ;;  %593 = vadd.xlane.f32.xlu1 %v592_v44  ;;  %590 = vadd.xlane.f32.xlu0 %v589_v45  ;;  %v1698_v52 = vrot.slane %v1070_v47, %v3183_v27  ;;  %v129_v45 = vld [vmem:[%s4533_s0 + $0x1e4] sm:$0xf] }
  0xdc   :  { %v384_v54 = vpop.xlane.xlu1 %383  ;;  %v381_v55 = vpop.xlane.xlu0 %380 }
  0xdd   :  { %v2609_v58 = vsel %vm2577_vm4, %v1694_v51, %v2608_v53  ;;  %v1072_v59 = vmul.f32 0.25, %v384_v54  ;;  %v1071_v60 = vmul.f32 0.25, %v381_v55  ;;  %v625_v53 = vsel %vm264_vm0, %v128_v46, 0.0 }
  0xde   :  { %v2610_v1 = vsel %vm2579_vm5, %v1698_v52, %v2609_v58  ;;  %v628_v52 = vsel %vm264_vm0, %v129_v45, 0.0  ;;  %v130_v58 = vld [vmem:[%s4533_s0 + $0x1e8] sm:$0xf] }
  0xdf   :  { %v1706_v63 = vrot.slane %v1072_v59, %v3183_v27  ;;  %v1702_v0 = vrot.slane %v1071_v60, %v3183_v27  ;;  %599 = vadd.xlane.f32.xlu1 %v598_v56  ;;  %596 = vadd.xlane.f32.xlu0 %v595_v57  ;;  %v131_v57 = vld [vmem:[%s4533_s0 + $0x1ec] sm:$0xf] }
  0xe0   :  { %v390_v2 = vpop.xlane.xlu1 %389  ;;  %v387_v3 = vpop.xlane.xlu0 %386 }
  0xe1   :  { %v2611_v6 = vsel %vm2581_vm6, %v1702_v0, %v2610_v1  ;;  %v1074_v7 = vmul.f32 0.25, %v390_v2  ;;  %v1073_v8 = vmul.f32 0.25, %v387_v3  ;;  %v634_v0 = vsel %vm264_vm0, %v131_v57, 0.0 }
  0xe2   :  { %v2612_v11 = vsel %vm2583_vm7, %v1706_v63, %v2611_v6  ;;  %v631_v1 = vsel %vm264_vm0, %v130_v58, 0.0 }
  0xe3   :  { %2839 = vst.msk [vmem:[%s4534_s1 + $0x20] sm:$0xff] %vm2834_vm8, %v2612_v11  ;;  %605 = vadd.xlane.f32.xlu1 %v604_v4  ;;  %602 = vadd.xlane.f32.xlu0 %v601_v5  ;;  %v1714_v12 = vrot.slane %v1074_v7, %v3183_v27  ;;  %v1710_v13 = vrot.slane %v1073_v8, %v3183_v27  ;;  %v133_v4 = vld [vmem:[%s4533_s0 + $0x1f4] sm:$0xf]  ;;  %v132_v5 = vld [vmem:[%s4533_s0 + $0x1f0] sm:$0xf] }
  0xe4   :  { %v396_v14 = vpop.xlane.xlu1 %395  ;;  %v393_v15 = vpop.xlane.xlu0 %392  ;;  %v640_v11 = vsel %vm264_vm0, %v133_v4, 0.0 }
  0xe5   :  { %v1076_v18 = vmul.f32 0.25, %v396_v14  ;;  %v1075_v19 = vmul.f32 0.25, %v393_v15  ;;  %v2613_v23 = vsel %vm2571_vm1, %v1714_v12, %v1710_v13  ;;  %v637_v12 = vsel %vm264_vm0, %v132_v5, 0.0 }
  0xe7   :  { %v1718_v22 = vrot.slane %v1075_v19, %v3183_v27  ;;  %611 = vadd.xlane.f32.xlu1 %v610_v16  ;;  %608 = vadd.xlane.f32.xlu0 %v607_v17  ;;  %v1722_v24 = vrot.slane %v1076_v18, %v3183_v27  ;;  %v135_v16 = vld [vmem:[%s4533_s0 + $0x1fc] sm:$0xf]  ;;  %v134_v17 = vld [vmem:[%s4533_s0 + $0x1f8] sm:$0xf] }
  0xe8   :  { %v402_v25 = vpop.xlane.xlu1 %401  ;;  %v399_v26 = vpop.xlane.xlu0 %398 }
  0xe9   :  { %v2614_v30 = vsel %vm2573_vm2, %v1718_v22, %v2613_v23  ;;  %v1078_v31 = vmul.f32 0.25, %v402_v25  ;;  %v1077_v32 = vmul.f32 0.25, %v399_v26  ;;  %v646_v23 = vsel %vm264_vm0, %v135_v16, 0.0 }
  0xea   :  { %v2615_v37 = vsel %vm2575_vm3, %v1722_v24, %v2614_v30  ;;  %v643_v24 = vsel %vm264_vm0, %v134_v17, 0.0  ;;  %v136_v30 = vld [vmem:[%s4533_s0 + $0x200] sm:$0xf] }
  0xeb   :  { %v1726_v35 = vrot.slane %v1077_v32, %v3183_v27  ;;  %617 = vadd.xlane.f32.xlu1 %v616_v28  ;;  %614 = vadd.xlane.f32.xlu0 %v613_v29  ;;  %v1730_v36 = vrot.slane %v1078_v31, %v3183_v27  ;;  %v137_v29 = vld [vmem:[%s4533_s0 + $0x204] sm:$0xf] }
  0xec   :  { %v408_v38 = vpop.xlane.xlu1 %407  ;;  %v405_v39 = vpop.xlane.xlu0 %404 }
  0xed   :  { %v2616_v42 = vsel %vm2577_vm4, %v1726_v35, %v2615_v37  ;;  %v1080_v43 = vmul.f32 0.25, %v408_v38  ;;  %v1079_v44 = vmul.f32 0.25, %v405_v39  ;;  %v649_v37 = vsel %vm264_vm0, %v136_v30, 0.0 }
  0xee   :  { %v2617_v49 = vsel %vm2579_vm5, %v1730_v36, %v2616_v42  ;;  %v652_v36 = vsel %vm264_vm0, %v137_v29, 0.0  ;;  %v138_v42 = vld [vmem:[%s4533_s0 + $0x208] sm:$0xf] }
  0xef   :  { %v1738_v47 = vrot.slane %v1080_v43, %v3183_v27  ;;  %v1734_v48 = vrot.slane %v1079_v44, %v3183_v27  ;;  %623 = vadd.xlane.f32.xlu1 %v622_v40  ;;  %620 = vadd.xlane.f32.xlu0 %v619_v41  ;;  %v139_v41 = vld [vmem:[%s4533_s0 + $0x20c] sm:$0xf] }
  0xf0   :  { %v414_v50 = vpop.xlane.xlu1 %413  ;;  %v411_v51 = vpop.xlane.xlu0 %410 }
  0xf1   :  { %v2618_v54 = vsel %vm2581_vm6, %v1734_v48, %v2617_v49  ;;  %v1082_v55 = vmul.f32 0.25, %v414_v50  ;;  %v1081_v56 = vmul.f32 0.25, %v411_v51  ;;  %v658_v48 = vsel %vm264_vm0, %v139_v41, 0.0 }
  0xf2   :  { %v2619_v59 = vsel %vm2583_vm7, %v1738_v47, %v2618_v54  ;;  %v655_v49 = vsel %vm264_vm0, %v138_v42, 0.0 }
  0xf3   :  { %2840 = vst.msk [vmem:[%s4534_s1 + $0x28] sm:$0xff] %vm2834_vm8, %v2619_v59  ;;  %629 = vadd.xlane.f32.xlu1 %v628_v52  ;;  %626 = vadd.xlane.f32.xlu0 %v625_v53  ;;  %v1746_v60 = vrot.slane %v1082_v55, %v3183_v27  ;;  %v1742_v61 = vrot.slane %v1081_v56, %v3183_v27  ;;  %v141_v52 = vld [vmem:[%s4533_s0 + $0x214] sm:$0xf]  ;;  %v140_v53 = vld [vmem:[%s4533_s0 + $0x210] sm:$0xf] }
  0xf4   :  { %v420_v62 = vpop.xlane.xlu1 %419  ;;  %v417_v63 = vpop.xlane.xlu0 %416  ;;  %v664_v59 = vsel %vm264_vm0, %v141_v52, 0.0 }
  0xf5   :  { %v1084_v2 = vmul.f32 0.25, %v420_v62  ;;  %v1083_v3 = vmul.f32 0.25, %v417_v63  ;;  %v2620_v7 = vsel %vm2571_vm1, %v1746_v60, %v1742_v61  ;;  %v661_v60 = vsel %vm264_vm0, %v140_v53, 0.0 }
  0xf7   :  { %v1750_v6 = vrot.slane %v1083_v3, %v3183_v27  ;;  %635 = vadd.xlane.f32.xlu1 %v634_v0  ;;  %632 = vadd.xlane.f32.xlu0 %v631_v1  ;;  %v1754_v8 = vrot.slane %v1084_v2, %v3183_v27  ;;  %v143_v0 = vld [vmem:[%s4533_s0 + $0x21c] sm:$0xf]  ;;  %v142_v1 = vld [vmem:[%s4533_s0 + $0x218] sm:$0xf] }
  0xf8   :  { %v426_v9 = vpop.xlane.xlu1 %425  ;;  %v423_v10 = vpop.xlane.xlu0 %422 }
  0xf9   :  { %v2621_v13 = vsel %vm2573_vm2, %v1750_v6, %v2620_v7  ;;  %v1086_v14 = vmul.f32 0.25, %v426_v9  ;;  %v1085_v15 = vmul.f32 0.25, %v423_v10  ;;  %v670_v7 = vsel %vm264_vm0, %v143_v0, 0.0 }
  0xfa   :  { %v2622_v20 = vsel %vm2575_vm3, %v1754_v8, %v2621_v13  ;;  %v667_v8 = vsel %vm264_vm0, %v142_v1, 0.0  ;;  %v144_v13 = vld [vmem:[%s4533_s0 + $0x220] sm:$0xf] }
  0xfb   :  { %v1758_v18 = vrot.slane %v1085_v15, %v3183_v27  ;;  %641 = vadd.xlane.f32.xlu1 %v640_v11  ;;  %638 = vadd.xlane.f32.xlu0 %v637_v12  ;;  %v1762_v19 = vrot.slane %v1086_v14, %v3183_v27  ;;  %v145_v12 = vld [vmem:[%s4533_s0 + $0x224] sm:$0xf] }
  0xfc   :  { %v432_v21 = vpop.xlane.xlu1 %431  ;;  %v429_v22 = vpop.xlane.xlu0 %428 }
  0xfd   :  { %v2623_v25 = vsel %vm2577_vm4, %v1758_v18, %v2622_v20  ;;  %v1088_v26 = vmul.f32 0.25, %v432_v21  ;;  %v1087_v28 = vmul.f32 0.25, %v429_v22  ;;  %v673_v20 = vsel %vm264_vm0, %v144_v13, 0.0 }
  0xfe   :  { %v2624_v33 = vsel %vm2579_vm5, %v1762_v19, %v2623_v25  ;;  %v676_v19 = vsel %vm264_vm0, %v145_v12, 0.0  ;;  %v146_v25 = vld [vmem:[%s4533_s0 + $0x228] sm:$0xf] }
  0xff   :  { %v1770_v31 = vrot.slane %v1088_v26, %v3183_v27  ;;  %v1766_v32 = vrot.slane %v1087_v28, %v3183_v27  ;;  %647 = vadd.xlane.f32.xlu1 %v646_v23  ;;  %644 = vadd.xlane.f32.xlu0 %v643_v24  ;;  %v147_v24 = vld [vmem:[%s4533_s0 + $0x22c] sm:$0xf] }
 0x100   :  { %v438_v34 = vpop.xlane.xlu1 %437  ;;  %v435_v35 = vpop.xlane.xlu0 %434 }
 0x101   :  { %v2625_v38 = vsel %vm2581_vm6, %v1766_v32, %v2624_v33  ;;  %v1090_v39 = vmul.f32 0.25, %v438_v34  ;;  %v1089_v40 = vmul.f32 0.25, %v435_v35  ;;  %v682_v32 = vsel %vm264_vm0, %v147_v24, 0.0 }
 0x102   :  { %v2626_v43 = vsel %vm2583_vm7, %v1770_v31, %v2625_v38  ;;  %v679_v33 = vsel %vm264_vm0, %v146_v25, 0.0 }
 0x103   :  { %2841 = vst.msk [vmem:[%s4534_s1 + $0x30] sm:$0xff] %vm2834_vm8, %v2626_v43  ;;  %653 = vadd.xlane.f32.xlu1 %v652_v36  ;;  %650 = vadd.xlane.f32.xlu0 %v649_v37  ;;  %v1778_v44 = vrot.slane %v1090_v39, %v3183_v27  ;;  %v1774_v45 = vrot.slane %v1089_v40, %v3183_v27  ;;  %v149_v36 = vld [vmem:[%s4533_s0 + $0x234] sm:$0xf]  ;;  %v148_v37 = vld [vmem:[%s4533_s0 + $0x230] sm:$0xf] }
 0x104   :  { %v444_v46 = vpop.xlane.xlu1 %443  ;;  %v441_v47 = vpop.xlane.xlu0 %440  ;;  %v688_v43 = vsel %vm264_vm0, %v149_v36, 0.0 }
 0x105   :  { %v1092_v50 = vmul.f32 0.25, %v444_v46  ;;  %v1091_v51 = vmul.f32 0.25, %v441_v47  ;;  %v2627_v55 = vsel %vm2571_vm1, %v1778_v44, %v1774_v45  ;;  %v685_v44 = vsel %vm264_vm0, %v148_v37, 0.0 }
 0x107   :  { %v1782_v54 = vrot.slane %v1091_v51, %v3183_v27  ;;  %659 = vadd.xlane.f32.xlu1 %v658_v48  ;;  %656 = vadd.xlane.f32.xlu0 %v655_v49  ;;  %v1786_v56 = vrot.slane %v1092_v50, %v3183_v27  ;;  %v151_v48 = vld [vmem:[%s4533_s0 + $0x23c] sm:$0xf]  ;;  %v150_v49 = vld [vmem:[%s4533_s0 + $0x238] sm:$0xf] }
 0x108   :  { %v450_v57 = vpop.xlane.xlu1 %449  ;;  %v447_v58 = vpop.xlane.xlu0 %446 }
 0x109   :  { %v2628_v61 = vsel %vm2573_vm2, %v1782_v54, %v2627_v55  ;;  %v1094_v62 = vmul.f32 0.25, %v450_v57  ;;  %v1093_v63 = vmul.f32 0.25, %v447_v58  ;;  %v694_v55 = vsel %vm264_vm0, %v151_v48, 0.0 }
 0x10a   :  { %v2629_v4 = vsel %vm2575_vm3, %v1786_v56, %v2628_v61  ;;  %v691_v56 = vsel %vm264_vm0, %v150_v49, 0.0  ;;  %v152_v61 = vld [vmem:[%s4533_s0 + $0x240] sm:$0xf] }
 0x10b   :  { %v1790_v2 = vrot.slane %v1093_v63, %v3183_v27  ;;  %665 = vadd.xlane.f32.xlu1 %v664_v59  ;;  %662 = vadd.xlane.f32.xlu0 %v661_v60  ;;  %v1794_v3 = vrot.slane %v1094_v62, %v3183_v27  ;;  %v153_v60 = vld [vmem:[%s4533_s0 + $0x244] sm:$0xf] }
 0x10c   :  { %v456_v5 = vpop.xlane.xlu1 %455  ;;  %v453_v6 = vpop.xlane.xlu0 %452 }
 0x10d   :  { %v2630_v9 = vsel %vm2577_vm4, %v1790_v2, %v2629_v4  ;;  %v1096_v10 = vmul.f32 0.25, %v456_v5  ;;  %v1095_v11 = vmul.f32 0.25, %v453_v6  ;;  %v697_v4 = vsel %vm264_vm0, %v152_v61, 0.0 }
 0x10e   :  { %v2631_v16 = vsel %vm2579_vm5, %v1794_v3, %v2630_v9  ;;  %v700_v3 = vsel %vm264_vm0, %v153_v60, 0.0  ;;  %v154_v9 = vld [vmem:[%s4533_s0 + $0x248] sm:$0xf] }
 0x10f   :  { %v1802_v14 = vrot.slane %v1096_v10, %v3183_v27  ;;  %v1798_v15 = vrot.slane %v1095_v11, %v3183_v27  ;;  %671 = vadd.xlane.f32.xlu1 %v670_v7  ;;  %668 = vadd.xlane.f32.xlu0 %v667_v8  ;;  %v155_v8 = vld [vmem:[%s4533_s0 + $0x24c] sm:$0xf] }
 0x110   :  { %v462_v17 = vpop.xlane.xlu1 %461  ;;  %v459_v18 = vpop.xlane.xlu0 %458 }
 0x111   :  { %v2632_v21 = vsel %vm2581_vm6, %v1798_v15, %v2631_v16  ;;  %v1098_v22 = vmul.f32 0.25, %v462_v17  ;;  %v1097_v23 = vmul.f32 0.25, %v459_v18  ;;  %v706_v15 = vsel %vm264_vm0, %v155_v8, 0.0 }
 0x112   :  { %v2633_v26 = vsel %vm2583_vm7, %v1802_v14, %v2632_v21  ;;  %v703_v16 = vsel %vm264_vm0, %v154_v9, 0.0 }
 0x113   :  { %2842 = vst.msk [vmem:[%s4534_s1 + $0x38] sm:$0xff] %vm2834_vm8, %v2633_v26  ;;  %677 = vadd.xlane.f32.xlu1 %v676_v19  ;;  %674 = vadd.xlane.f32.xlu0 %v673_v20  ;;  %v1810_v28 = vrot.slane %v1098_v22, %v3183_v27  ;;  %v1806_v29 = vrot.slane %v1097_v23, %v3183_v27  ;;  %v157_v19 = vld [vmem:[%s4533_s0 + $0x254] sm:$0xf]  ;;  %v156_v20 = vld [vmem:[%s4533_s0 + $0x250] sm:$0xf] }
 0x114   :  { %v468_v30 = vpop.xlane.xlu1 %467  ;;  %v465_v31 = vpop.xlane.xlu0 %464  ;;  %v712_v26 = vsel %vm264_vm0, %v157_v19, 0.0 }
 0x115   :  { %v1100_v34 = vmul.f32 0.25, %v468_v30  ;;  %v1099_v35 = vmul.f32 0.25, %v465_v31  ;;  %v2634_v39 = vsel %vm2571_vm1, %v1810_v28, %v1806_v29  ;;  %v709_v28 = vsel %vm264_vm0, %v156_v20, 0.0 }
 0x117   :  { %v1814_v38 = vrot.slane %v1099_v35, %v3183_v27  ;;  %683 = vadd.xlane.f32.xlu1 %v682_v32  ;;  %680 = vadd.xlane.f32.xlu0 %v679_v33  ;;  %v1818_v40 = vrot.slane %v1100_v34, %v3183_v27  ;;  %v159_v32 = vld [vmem:[%s4533_s0 + $0x25c] sm:$0xf]  ;;  %v158_v33 = vld [vmem:[%s4533_s0 + $0x258] sm:$0xf] }
 0x118   :  { %v474_v41 = vpop.xlane.xlu1 %473  ;;  %v471_v42 = vpop.xlane.xlu0 %470 }
 0x119   :  { %v2635_v45 = vsel %vm2573_vm2, %v1814_v38, %v2634_v39  ;;  %v1102_v46 = vmul.f32 0.25, %v474_v41  ;;  %v1101_v47 = vmul.f32 0.25, %v471_v42  ;;  %v718_v39 = vsel %vm264_vm0, %v159_v32, 0.0 }
 0x11a   :  { %v2636_v52 = vsel %vm2575_vm3, %v1818_v40, %v2635_v45  ;;  %v715_v40 = vsel %vm264_vm0, %v158_v33, 0.0  ;;  %v160_v45 = vld [vmem:[%s4533_s0 + $0x260] sm:$0xf] }
 0x11b   :  { %v1822_v50 = vrot.slane %v1101_v47, %v3183_v27  ;;  %689 = vadd.xlane.f32.xlu1 %v688_v43  ;;  %686 = vadd.xlane.f32.xlu0 %v685_v44  ;;  %v1826_v51 = vrot.slane %v1102_v46, %v3183_v27  ;;  %v161_v44 = vld [vmem:[%s4533_s0 + $0x264] sm:$0xf] }
 0x11c   :  { %v480_v53 = vpop.xlane.xlu1 %479  ;;  %v477_v54 = vpop.xlane.xlu0 %476 }
 0x11d   :  { %v2637_v57 = vsel %vm2577_vm4, %v1822_v50, %v2636_v52  ;;  %v1104_v58 = vmul.f32 0.25, %v480_v53  ;;  %v1103_v59 = vmul.f32 0.25, %v477_v54  ;;  %v721_v52 = vsel %vm264_vm0, %v160_v45, 0.0 }
 0x11e   :  { %v2638_v0 = vsel %vm2579_vm5, %v1826_v51, %v2637_v57  ;;  %v724_v51 = vsel %vm264_vm0, %v161_v44, 0.0  ;;  %v162_v57 = vld [vmem:[%s4533_s0 + $0x268] sm:$0xf] }
 0x11f   :  { %v1834_v62 = vrot.slane %v1104_v58, %v3183_v27  ;;  %v1830_v63 = vrot.slane %v1103_v59, %v3183_v27  ;;  %695 = vadd.xlane.f32.xlu1 %v694_v55  ;;  %692 = vadd.xlane.f32.xlu0 %v691_v56  ;;  %v163_v56 = vld [vmem:[%s4533_s0 + $0x26c] sm:$0xf] }
 0x120   :  { %v486_v1 = vpop.xlane.xlu1 %485  ;;  %v483_v2 = vpop.xlane.xlu0 %482 }
 0x121   :  { %v2639_v5 = vsel %vm2581_vm6, %v1830_v63, %v2638_v0  ;;  %v1106_v6 = vmul.f32 0.25, %v486_v1  ;;  %v1105_v7 = vmul.f32 0.25, %v483_v2  ;;  %v730_v63 = vsel %vm264_vm0, %v163_v56, 0.0 }
 0x122   :  { %v2640_v10 = vsel %vm2583_vm7, %v1834_v62, %v2639_v5  ;;  %v727_v0 = vsel %vm264_vm0, %v162_v57, 0.0 }
 0x123   :  { %2843 = vst.msk [vmem:[%s4534_s1 + $0x40] sm:$0xff] %vm2834_vm8, %v2640_v10  ;;  %701 = vadd.xlane.f32.xlu1 %v700_v3  ;;  %698 = vadd.xlane.f32.xlu0 %v697_v4  ;;  %v1842_v11 = vrot.slane %v1106_v6, %v3183_v27  ;;  %v1838_v12 = vrot.slane %v1105_v7, %v3183_v27  ;;  %v165_v3 = vld [vmem:[%s4533_s0 + $0x274] sm:$0xf]  ;;  %v164_v4 = vld [vmem:[%s4533_s0 + $0x270] sm:$0xf] }
 0x124   :  { %v492_v13 = vpop.xlane.xlu1 %491  ;;  %v489_v14 = vpop.xlane.xlu0 %488  ;;  %v736_v10 = vsel %vm264_vm0, %v165_v3, 0.0 }
 0x125   :  { %v1108_v17 = vmul.f32 0.25, %v492_v13  ;;  %v1107_v18 = vmul.f32 0.25, %v489_v14  ;;  %v2641_v22 = vsel %vm2571_vm1, %v1842_v11, %v1838_v12  ;;  %v733_v11 = vsel %vm264_vm0, %v164_v4, 0.0 }
 0x127   :  { %v1846_v21 = vrot.slane %v1107_v18, %v3183_v27  ;;  %707 = vadd.xlane.f32.xlu1 %v706_v15  ;;  %704 = vadd.xlane.f32.xlu0 %v703_v16  ;;  %v1850_v23 = vrot.slane %v1108_v17, %v3183_v27  ;;  %v167_v15 = vld [vmem:[%s4533_s0 + $0x27c] sm:$0xf]  ;;  %v166_v16 = vld [vmem:[%s4533_s0 + $0x278] sm:$0xf] }
 0x128   :  { %v498_v24 = vpop.xlane.xlu1 %497  ;;  %v495_v25 = vpop.xlane.xlu0 %494 }
 0x129   :  { %v2642_v29 = vsel %vm2573_vm2, %v1846_v21, %v2641_v22  ;;  %v1110_v30 = vmul.f32 0.25, %v498_v24  ;;  %v1109_v31 = vmul.f32 0.25, %v495_v25  ;;  %v742_v22 = vsel %vm264_vm0, %v167_v15, 0.0 }
 0x12a   :  { %v2643_v36 = vsel %vm2575_vm3, %v1850_v23, %v2642_v29  ;;  %v739_v23 = vsel %vm264_vm0, %v166_v16, 0.0  ;;  %v168_v29 = vld [vmem:[%s4533_s0 + $0x280] sm:$0xf] }
 0x12b   :  { %v1854_v34 = vrot.slane %v1109_v31, %v3183_v27  ;;  %713 = vadd.xlane.f32.xlu1 %v712_v26  ;;  %710 = vadd.xlane.f32.xlu0 %v709_v28  ;;  %v1858_v35 = vrot.slane %v1110_v30, %v3183_v27  ;;  %v169_v28 = vld [vmem:[%s4533_s0 + $0x284] sm:$0xf] }
 0x12c   :  { %v504_v37 = vpop.xlane.xlu1 %503  ;;  %v501_v38 = vpop.xlane.xlu0 %500 }
 0x12d   :  { %v2644_v41 = vsel %vm2577_vm4, %v1854_v34, %v2643_v36  ;;  %v1112_v42 = vmul.f32 0.25, %v504_v37  ;;  %v1111_v43 = vmul.f32 0.25, %v501_v38  ;;  %v745_v36 = vsel %vm264_vm0, %v168_v29, 0.0 }
 0x12e   :  { %v2645_v48 = vsel %vm2579_vm5, %v1858_v35, %v2644_v41  ;;  %v748_v35 = vsel %vm264_vm0, %v169_v28, 0.0  ;;  %v170_v41 = vld [vmem:[%s4533_s0 + $0x288] sm:$0xf] }
 0x12f   :  { %v1866_v46 = vrot.slane %v1112_v42, %v3183_v27  ;;  %v1862_v47 = vrot.slane %v1111_v43, %v3183_v27  ;;  %719 = vadd.xlane.f32.xlu1 %v718_v39  ;;  %716 = vadd.xlane.f32.xlu0 %v715_v40  ;;  %v171_v40 = vld [vmem:[%s4533_s0 + $0x28c] sm:$0xf] }
 0x130   :  { %v510_v49 = vpop.xlane.xlu1 %509  ;;  %v507_v50 = vpop.xlane.xlu0 %506 }
 0x131   :  { %v2646_v53 = vsel %vm2581_vm6, %v1862_v47, %v2645_v48  ;;  %v1114_v54 = vmul.f32 0.25, %v510_v49  ;;  %v1113_v55 = vmul.f32 0.25, %v507_v50  ;;  %v754_v47 = vsel %vm264_vm0, %v171_v40, 0.0 }
 0x132   :  { %v2647_v58 = vsel %vm2583_vm7, %v1866_v46, %v2646_v53  ;;  %v751_v48 = vsel %vm264_vm0, %v170_v41, 0.0 }
 0x133   :  { %2844 = vst.msk [vmem:[%s4534_s1 + $0x48] sm:$0xff] %vm2834_vm8, %v2647_v58  ;;  %725 = vadd.xlane.f32.xlu1 %v724_v51  ;;  %722 = vadd.xlane.f32.xlu0 %v721_v52  ;;  %v1874_v59 = vrot.slane %v1114_v54, %v3183_v27  ;;  %v1870_v60 = vrot.slane %v1113_v55, %v3183_v27  ;;  %v173_v51 = vld [vmem:[%s4533_s0 + $0x294] sm:$0xf]  ;;  %v172_v52 = vld [vmem:[%s4533_s0 + $0x290] sm:$0xf] }
 0x134   :  { %v516_v61 = vpop.xlane.xlu1 %515  ;;  %v513_v62 = vpop.xlane.xlu0 %512  ;;  %v760_v58 = vsel %vm264_vm0, %v173_v51, 0.0 }
 0x135   :  { %v1116_v1 = vmul.f32 0.25, %v516_v61  ;;  %v1115_v2 = vmul.f32 0.25, %v513_v62  ;;  %v2648_v6 = vsel %vm2571_vm1, %v1874_v59, %v1870_v60  ;;  %v757_v59 = vsel %vm264_vm0, %v172_v52, 0.0 }
 0x137   :  { %v1878_v5 = vrot.slane %v1115_v2, %v3183_v27  ;;  %731 = vadd.xlane.f32.xlu1 %v730_v63  ;;  %728 = vadd.xlane.f32.xlu0 %v727_v0  ;;  %v1882_v7 = vrot.slane %v1116_v1, %v3183_v27  ;;  %v175_v63 = vld [vmem:[%s4533_s0 + $0x29c] sm:$0xf]  ;;  %v174_v0 = vld [vmem:[%s4533_s0 + $0x298] sm:$0xf] }
 0x138   :  { %v522_v8 = vpop.xlane.xlu1 %521  ;;  %v519_v9 = vpop.xlane.xlu0 %518 }
 0x139   :  { %v2649_v12 = vsel %vm2573_vm2, %v1878_v5, %v2648_v6  ;;  %v1118_v13 = vmul.f32 0.25, %v522_v8  ;;  %v1117_v14 = vmul.f32 0.25, %v519_v9  ;;  %v766_v6 = vsel %vm264_vm0, %v175_v63, 0.0 }
 0x13a   :  { %v2650_v19 = vsel %vm2575_vm3, %v1882_v7, %v2649_v12  ;;  %v763_v7 = vsel %vm264_vm0, %v174_v0, 0.0  ;;  %v176_v12 = vld [vmem:[%s4533_s0 + $0x2a0] sm:$0xf] }
 0x13b   :  { %v1886_v17 = vrot.slane %v1117_v14, %v3183_v27  ;;  %737 = vadd.xlane.f32.xlu1 %v736_v10  ;;  %734 = vadd.xlane.f32.xlu0 %v733_v11  ;;  %v1890_v18 = vrot.slane %v1118_v13, %v3183_v27  ;;  %v177_v11 = vld [vmem:[%s4533_s0 + $0x2a4] sm:$0xf] }
 0x13c   :  { %v528_v20 = vpop.xlane.xlu1 %527  ;;  %v525_v21 = vpop.xlane.xlu0 %524 }
 0x13d   :  { %v2651_v24 = vsel %vm2577_vm4, %v1886_v17, %v2650_v19  ;;  %v1120_v25 = vmul.f32 0.25, %v528_v20  ;;  %v1119_v26 = vmul.f32 0.25, %v525_v21  ;;  %v769_v19 = vsel %vm264_vm0, %v176_v12, 0.0 }
 0x13e   :  { %v2652_v32 = vsel %vm2579_vm5, %v1890_v18, %v2651_v24  ;;  %v772_v18 = vsel %vm264_vm0, %v177_v11, 0.0  ;;  %v178_v24 = vld [vmem:[%s4533_s0 + $0x2a8] sm:$0xf] }
 0x13f   :  { %v1898_v30 = vrot.slane %v1120_v25, %v3183_v27  ;;  %v1894_v31 = vrot.slane %v1119_v26, %v3183_v27  ;;  %743 = vadd.xlane.f32.xlu1 %v742_v22  ;;  %740 = vadd.xlane.f32.xlu0 %v739_v23  ;;  %v179_v23 = vld [vmem:[%s4533_s0 + $0x2ac] sm:$0xf] }
 0x140   :  { %v534_v33 = vpop.xlane.xlu1 %533  ;;  %v531_v34 = vpop.xlane.xlu0 %530 }
 0x141   :  { %v2653_v37 = vsel %vm2581_vm6, %v1894_v31, %v2652_v32  ;;  %v1122_v38 = vmul.f32 0.25, %v534_v33  ;;  %v1121_v39 = vmul.f32 0.25, %v531_v34  ;;  %v778_v31 = vsel %vm264_vm0, %v179_v23, 0.0 }
 0x142   :  { %v2654_v42 = vsel %vm2583_vm7, %v1898_v30, %v2653_v37  ;;  %v775_v32 = vsel %vm264_vm0, %v178_v24, 0.0 }
 0x143   :  { %2845 = vst.msk [vmem:[%s4534_s1 + $0x50] sm:$0xff] %vm2834_vm8, %v2654_v42  ;;  %749 = vadd.xlane.f32.xlu1 %v748_v35  ;;  %746 = vadd.xlane.f32.xlu0 %v745_v36  ;;  %v1906_v43 = vrot.slane %v1122_v38, %v3183_v27  ;;  %v1902_v44 = vrot.slane %v1121_v39, %v3183_v27  ;;  %v181_v35 = vld [vmem:[%s4533_s0 + $0x2b4] sm:$0xf]  ;;  %v180_v36 = vld [vmem:[%s4533_s0 + $0x2b0] sm:$0xf] }
 0x144   :  { %v540_v45 = vpop.xlane.xlu1 %539  ;;  %v537_v46 = vpop.xlane.xlu0 %536  ;;  %v784_v42 = vsel %vm264_vm0, %v181_v35, 0.0 }
 0x145   :  { %v1124_v49 = vmul.f32 0.25, %v540_v45  ;;  %v1123_v50 = vmul.f32 0.25, %v537_v46  ;;  %v2655_v54 = vsel %vm2571_vm1, %v1906_v43, %v1902_v44  ;;  %v781_v43 = vsel %vm264_vm0, %v180_v36, 0.0 }
 0x147   :  { %v1910_v53 = vrot.slane %v1123_v50, %v3183_v27  ;;  %755 = vadd.xlane.f32.xlu1 %v754_v47  ;;  %752 = vadd.xlane.f32.xlu0 %v751_v48  ;;  %v1914_v55 = vrot.slane %v1124_v49, %v3183_v27  ;;  %v183_v47 = vld [vmem:[%s4533_s0 + $0x2bc] sm:$0xf]  ;;  %v182_v48 = vld [vmem:[%s4533_s0 + $0x2b8] sm:$0xf] }
 0x148   :  { %v546_v56 = vpop.xlane.xlu1 %545  ;;  %v543_v57 = vpop.xlane.xlu0 %542 }
 0x149   :  { %v2656_v60 = vsel %vm2573_vm2, %v1910_v53, %v2655_v54  ;;  %v1126_v61 = vmul.f32 0.25, %v546_v56  ;;  %v1125_v62 = vmul.f32 0.25, %v543_v57  ;;  %v790_v54 = vsel %vm264_vm0, %v183_v47, 0.0 }
 0x14a   :  { %v2657_v3 = vsel %vm2575_vm3, %v1914_v55, %v2656_v60  ;;  %v787_v55 = vsel %vm264_vm0, %v182_v48, 0.0  ;;  %v184_v60 = vld [vmem:[%s4533_s0 + $0x2c0] sm:$0xf] }
 0x14b   :  { %v1918_v1 = vrot.slane %v1125_v62, %v3183_v27  ;;  %761 = vadd.xlane.f32.xlu1 %v760_v58  ;;  %758 = vadd.xlane.f32.xlu0 %v757_v59  ;;  %v1922_v2 = vrot.slane %v1126_v61, %v3183_v27  ;;  %v185_v59 = vld [vmem:[%s4533_s0 + $0x2c4] sm:$0xf] }
 0x14c   :  { %v552_v4 = vpop.xlane.xlu1 %551  ;;  %v549_v5 = vpop.xlane.xlu0 %548 }
 0x14d   :  { %v2658_v8 = vsel %vm2577_vm4, %v1918_v1, %v2657_v3  ;;  %v1128_v9 = vmul.f32 0.25, %v552_v4  ;;  %v1127_v10 = vmul.f32 0.25, %v549_v5  ;;  %v793_v3 = vsel %vm264_vm0, %v184_v60, 0.0 }
 0x14e   :  { %v2659_v15 = vsel %vm2579_vm5, %v1922_v2, %v2658_v8  ;;  %v796_v2 = vsel %vm264_vm0, %v185_v59, 0.0  ;;  %v186_v8 = vld [vmem:[%s4533_s0 + $0x2c8] sm:$0xf] }
 0x14f   :  { %v1930_v13 = vrot.slane %v1128_v9, %v3183_v27  ;;  %v1926_v14 = vrot.slane %v1127_v10, %v3183_v27  ;;  %767 = vadd.xlane.f32.xlu1 %v766_v6  ;;  %764 = vadd.xlane.f32.xlu0 %v763_v7  ;;  %v187_v7 = vld [vmem:[%s4533_s0 + $0x2cc] sm:$0xf] }
 0x150   :  { %v558_v16 = vpop.xlane.xlu1 %557  ;;  %v555_v17 = vpop.xlane.xlu0 %554 }
 0x151   :  { %v2660_v20 = vsel %vm2581_vm6, %v1926_v14, %v2659_v15  ;;  %v1130_v21 = vmul.f32 0.25, %v558_v16  ;;  %v1129_v22 = vmul.f32 0.25, %v555_v17  ;;  %v802_v14 = vsel %vm264_vm0, %v187_v7, 0.0 }
 0x152   :  { %v2661_v25 = vsel %vm2583_vm7, %v1930_v13, %v2660_v20  ;;  %v799_v15 = vsel %vm264_vm0, %v186_v8, 0.0 }
 0x153   :  { %2846 = vst.msk [vmem:[%s4534_s1 + $0x58] sm:$0xff] %vm2834_vm8, %v2661_v25  ;;  %773 = vadd.xlane.f32.xlu1 %v772_v18  ;;  %770 = vadd.xlane.f32.xlu0 %v769_v19  ;;  %v1938_v26 = vrot.slane %v1130_v21, %v3183_v27  ;;  %v1934_v28 = vrot.slane %v1129_v22, %v3183_v27  ;;  %v189_v18 = vld [vmem:[%s4533_s0 + $0x2d4] sm:$0xf]  ;;  %v188_v19 = vld [vmem:[%s4533_s0 + $0x2d0] sm:$0xf] }
 0x154   :  { %v564_v29 = vpop.xlane.xlu1 %563  ;;  %v561_v30 = vpop.xlane.xlu0 %560  ;;  %v808_v25 = vsel %vm264_vm0, %v189_v18, 0.0 }
 0x155   :  { %v1132_v33 = vmul.f32 0.25, %v564_v29  ;;  %v1131_v34 = vmul.f32 0.25, %v561_v30  ;;  %v2662_v38 = vsel %vm2571_vm1, %v1938_v26, %v1934_v28  ;;  %v805_v26 = vsel %vm264_vm0, %v188_v19, 0.0 }
 0x157   :  { %v1942_v37 = vrot.slane %v1131_v34, %v3183_v27  ;;  %779 = vadd.xlane.f32.xlu1 %v778_v31  ;;  %776 = vadd.xlane.f32.xlu0 %v775_v32  ;;  %v1946_v39 = vrot.slane %v1132_v33, %v3183_v27  ;;  %v191_v31 = vld [vmem:[%s4533_s0 + $0x2dc] sm:$0xf]  ;;  %v190_v32 = vld [vmem:[%s4533_s0 + $0x2d8] sm:$0xf] }
 0x158   :  { %v570_v40 = vpop.xlane.xlu1 %569  ;;  %v567_v41 = vpop.xlane.xlu0 %566 }
 0x159   :  { %v2663_v44 = vsel %vm2573_vm2, %v1942_v37, %v2662_v38  ;;  %v1134_v45 = vmul.f32 0.25, %v570_v40  ;;  %v1133_v46 = vmul.f32 0.25, %v567_v41  ;;  %v814_v38 = vsel %vm264_vm0, %v191_v31, 0.0 }
 0x15a   :  { %v2664_v51 = vsel %vm2575_vm3, %v1946_v39, %v2663_v44  ;;  %v811_v39 = vsel %vm264_vm0, %v190_v32, 0.0  ;;  %v192_v44 = vld [vmem:[%s4533_s0 + $0x2e0] sm:$0xf] }
 0x15b   :  { %v1950_v49 = vrot.slane %v1133_v46, %v3183_v27  ;;  %785 = vadd.xlane.f32.xlu1 %v784_v42  ;;  %782 = vadd.xlane.f32.xlu0 %v781_v43  ;;  %v1954_v50 = vrot.slane %v1134_v45, %v3183_v27  ;;  %v193_v43 = vld [vmem:[%s4533_s0 + $0x2e4] sm:$0xf] }
 0x15c   :  { %v576_v52 = vpop.xlane.xlu1 %575  ;;  %v573_v53 = vpop.xlane.xlu0 %572 }
 0x15d   :  { %v2665_v56 = vsel %vm2577_vm4, %v1950_v49, %v2664_v51  ;;  %v1136_v57 = vmul.f32 0.25, %v576_v52  ;;  %v1135_v58 = vmul.f32 0.25, %v573_v53  ;;  %v817_v51 = vsel %vm264_vm0, %v192_v44, 0.0 }
 0x15e   :  { %v2666_v63 = vsel %vm2579_vm5, %v1954_v50, %v2665_v56  ;;  %v820_v50 = vsel %vm264_vm0, %v193_v43, 0.0  ;;  %v194_v56 = vld [vmem:[%s4533_s0 + $0x2e8] sm:$0xf] }
 0x15f   :  { %v1962_v61 = vrot.slane %v1136_v57, %v3183_v27  ;;  %v1958_v62 = vrot.slane %v1135_v58, %v3183_v27  ;;  %791 = vadd.xlane.f32.xlu1 %v790_v54  ;;  %788 = vadd.xlane.f32.xlu0 %v787_v55  ;;  %v195_v55 = vld [vmem:[%s4533_s0 + $0x2ec] sm:$0xf] }
 0x160   :  { %v582_v0 = vpop.xlane.xlu1 %581  ;;  %v579_v1 = vpop.xlane.xlu0 %578 }
 0x161   :  { %v2667_v4 = vsel %vm2581_vm6, %v1958_v62, %v2666_v63  ;;  %v1138_v5 = vmul.f32 0.25, %v582_v0  ;;  %v1137_v6 = vmul.f32 0.25, %v579_v1  ;;  %v826_v62 = vsel %vm264_vm0, %v195_v55, 0.0 }
 0x162   :  { %v2668_v9 = vsel %vm2583_vm7, %v1962_v61, %v2667_v4  ;;  %v823_v63 = vsel %vm264_vm0, %v194_v56, 0.0 }
 0x163   :  { %2847 = vst.msk [vmem:[%s4534_s1 + $0x60] sm:$0xff] %vm2834_vm8, %v2668_v9  ;;  %797 = vadd.xlane.f32.xlu1 %v796_v2  ;;  %794 = vadd.xlane.f32.xlu0 %v793_v3  ;;  %v1970_v10 = vrot.slane %v1138_v5, %v3183_v27  ;;  %v1966_v11 = vrot.slane %v1137_v6, %v3183_v27  ;;  %v197_v2 = vld [vmem:[%s4533_s0 + $0x2f4] sm:$0xf]  ;;  %v196_v3 = vld [vmem:[%s4533_s0 + $0x2f0] sm:$0xf] }
 0x164   :  { %v588_v12 = vpop.xlane.xlu1 %587  ;;  %v585_v13 = vpop.xlane.xlu0 %584  ;;  %v832_v9 = vsel %vm264_vm0, %v197_v2, 0.0 }
 0x165   :  { %v1140_v16 = vmul.f32 0.25, %v588_v12  ;;  %v1139_v17 = vmul.f32 0.25, %v585_v13  ;;  %v2669_v21 = vsel %vm2571_vm1, %v1970_v10, %v1966_v11  ;;  %v829_v10 = vsel %vm264_vm0, %v196_v3, 0.0 }
 0x167   :  { %v1974_v20 = vrot.slane %v1139_v17, %v3183_v27  ;;  %803 = vadd.xlane.f32.xlu1 %v802_v14  ;;  %800 = vadd.xlane.f32.xlu0 %v799_v15  ;;  %v1978_v22 = vrot.slane %v1140_v16, %v3183_v27  ;;  %v199_v14 = vld [vmem:[%s4533_s0 + $0x2fc] sm:$0xf]  ;;  %v198_v15 = vld [vmem:[%s4533_s0 + $0x2f8] sm:$0xf] }
 0x168   :  { %v594_v23 = vpop.xlane.xlu1 %593  ;;  %v591_v24 = vpop.xlane.xlu0 %590 }
 0x169   :  { %v2670_v28 = vsel %vm2573_vm2, %v1974_v20, %v2669_v21  ;;  %v1142_v29 = vmul.f32 0.25, %v594_v23  ;;  %v1141_v30 = vmul.f32 0.25, %v591_v24  ;;  %v838_v21 = vsel %vm264_vm0, %v199_v14, 0.0 }
 0x16a   :  { %v2671_v35 = vsel %vm2575_vm3, %v1978_v22, %v2670_v28  ;;  %v835_v22 = vsel %vm264_vm0, %v198_v15, 0.0  ;;  %v200_v28 = vld [vmem:[%s4533_s0 + $0x300] sm:$0xf] }
 0x16b   :  { %v1982_v33 = vrot.slane %v1141_v30, %v3183_v27  ;;  %809 = vadd.xlane.f32.xlu1 %v808_v25  ;;  %806 = vadd.xlane.f32.xlu0 %v805_v26  ;;  %v1986_v34 = vrot.slane %v1142_v29, %v3183_v27  ;;  %v201_v26 = vld [vmem:[%s4533_s0 + $0x304] sm:$0xf] }
 0x16c   :  { %v600_v36 = vpop.xlane.xlu1 %599  ;;  %v597_v37 = vpop.xlane.xlu0 %596 }
 0x16d   :  { %v2672_v40 = vsel %vm2577_vm4, %v1982_v33, %v2671_v35  ;;  %v1144_v41 = vmul.f32 0.25, %v600_v36  ;;  %v1143_v42 = vmul.f32 0.25, %v597_v37  ;;  %v841_v35 = vsel %vm264_vm0, %v200_v28, 0.0 }
 0x16e   :  { %v2673_v47 = vsel %vm2579_vm5, %v1986_v34, %v2672_v40  ;;  %v844_v34 = vsel %vm264_vm0, %v201_v26, 0.0  ;;  %v202_v40 = vld [vmem:[%s4533_s0 + $0x308] sm:$0xf] }
 0x16f   :  { %v1994_v45 = vrot.slane %v1144_v41, %v3183_v27  ;;  %v1990_v46 = vrot.slane %v1143_v42, %v3183_v27  ;;  %815 = vadd.xlane.f32.xlu1 %v814_v38  ;;  %812 = vadd.xlane.f32.xlu0 %v811_v39  ;;  %v203_v39 = vld [vmem:[%s4533_s0 + $0x30c] sm:$0xf] }
 0x170   :  { %v606_v48 = vpop.xlane.xlu1 %605  ;;  %v603_v49 = vpop.xlane.xlu0 %602 }
 0x171   :  { %v2674_v52 = vsel %vm2581_vm6, %v1990_v46, %v2673_v47  ;;  %v1146_v53 = vmul.f32 0.25, %v606_v48  ;;  %v1145_v54 = vmul.f32 0.25, %v603_v49  ;;  %v850_v46 = vsel %vm264_vm0, %v203_v39, 0.0 }
 0x172   :  { %v2675_v57 = vsel %vm2583_vm7, %v1994_v45, %v2674_v52  ;;  %v847_v47 = vsel %vm264_vm0, %v202_v40, 0.0 }
 0x173   :  { %2848 = vst.msk [vmem:[%s4534_s1 + $0x68] sm:$0xff] %vm2834_vm8, %v2675_v57  ;;  %821 = vadd.xlane.f32.xlu1 %v820_v50  ;;  %818 = vadd.xlane.f32.xlu0 %v817_v51  ;;  %v2002_v58 = vrot.slane %v1146_v53, %v3183_v27  ;;  %v1998_v59 = vrot.slane %v1145_v54, %v3183_v27  ;;  %v205_v50 = vld [vmem:[%s4533_s0 + $0x314] sm:$0xf]  ;;  %v204_v51 = vld [vmem:[%s4533_s0 + $0x310] sm:$0xf] }
 0x174   :  { %v612_v60 = vpop.xlane.xlu1 %611  ;;  %v609_v61 = vpop.xlane.xlu0 %608  ;;  %v856_v57 = vsel %vm264_vm0, %v205_v50, 0.0 }
 0x175   :  { %v1148_v0 = vmul.f32 0.25, %v612_v60  ;;  %v1147_v1 = vmul.f32 0.25, %v609_v61  ;;  %v2676_v5 = vsel %vm2571_vm1, %v2002_v58, %v1998_v59  ;;  %v853_v58 = vsel %vm264_vm0, %v204_v51, 0.0 }
 0x177   :  { %v2006_v4 = vrot.slane %v1147_v1, %v3183_v27  ;;  %827 = vadd.xlane.f32.xlu1 %v826_v62  ;;  %824 = vadd.xlane.f32.xlu0 %v823_v63  ;;  %v2010_v6 = vrot.slane %v1148_v0, %v3183_v27  ;;  %v207_v62 = vld [vmem:[%s4533_s0 + $0x31c] sm:$0xf]  ;;  %v206_v63 = vld [vmem:[%s4533_s0 + $0x318] sm:$0xf] }
 0x178   :  { %v618_v7 = vpop.xlane.xlu1 %617  ;;  %v615_v8 = vpop.xlane.xlu0 %614 }
 0x179   :  { %v2677_v11 = vsel %vm2573_vm2, %v2006_v4, %v2676_v5  ;;  %v1150_v12 = vmul.f32 0.25, %v618_v7  ;;  %v1149_v13 = vmul.f32 0.25, %v615_v8  ;;  %v862_v5 = vsel %vm264_vm0, %v207_v62, 0.0 }
 0x17a   :  { %v2678_v18 = vsel %vm2575_vm3, %v2010_v6, %v2677_v11  ;;  %v859_v6 = vsel %vm264_vm0, %v206_v63, 0.0  ;;  %v208_v11 = vld [vmem:[%s4533_s0 + $0x320] sm:$0xf] }
 0x17b   :  { %v2014_v16 = vrot.slane %v1149_v13, %v3183_v27  ;;  %833 = vadd.xlane.f32.xlu1 %v832_v9  ;;  %830 = vadd.xlane.f32.xlu0 %v829_v10  ;;  %v2018_v17 = vrot.slane %v1150_v12, %v3183_v27  ;;  %v209_v10 = vld [vmem:[%s4533_s0 + $0x324] sm:$0xf] }
 0x17c   :  { %v624_v19 = vpop.xlane.xlu1 %623  ;;  %v621_v20 = vpop.xlane.xlu0 %620 }
 0x17d   :  { %v2679_v23 = vsel %vm2577_vm4, %v2014_v16, %v2678_v18  ;;  %v1152_v24 = vmul.f32 0.25, %v624_v19  ;;  %v1151_v25 = vmul.f32 0.25, %v621_v20  ;;  %v865_v18 = vsel %vm264_vm0, %v208_v11, 0.0 }
 0x17e   :  { %v2680_v31 = vsel %vm2579_vm5, %v2018_v17, %v2679_v23  ;;  %v868_v17 = vsel %vm264_vm0, %v209_v10, 0.0  ;;  %v210_v23 = vld [vmem:[%s4533_s0 + $0x328] sm:$0xf] }
 0x17f   :  { %v2026_v29 = vrot.slane %v1152_v24, %v3183_v27  ;;  %v2022_v30 = vrot.slane %v1151_v25, %v3183_v27  ;;  %839 = vadd.xlane.f32.xlu1 %v838_v21  ;;  %836 = vadd.xlane.f32.xlu0 %v835_v22  ;;  %v211_v22 = vld [vmem:[%s4533_s0 + $0x32c] sm:$0xf] }
 0x180   :  { %v630_v32 = vpop.xlane.xlu1 %629  ;;  %v627_v33 = vpop.xlane.xlu0 %626 }
 0x181   :  { %v2681_v36 = vsel %vm2581_vm6, %v2022_v30, %v2680_v31  ;;  %v1154_v37 = vmul.f32 0.25, %v630_v32  ;;  %v1153_v38 = vmul.f32 0.25, %v627_v33  ;;  %v874_v30 = vsel %vm264_vm0, %v211_v22, 0.0 }
 0x182   :  { %v2682_v41 = vsel %vm2583_vm7, %v2026_v29, %v2681_v36  ;;  %v871_v31 = vsel %vm264_vm0, %v210_v23, 0.0 }
 0x183   :  { %2849 = vst.msk [vmem:[%s4534_s1 + $0x70] sm:$0xff] %vm2834_vm8, %v2682_v41  ;;  %845 = vadd.xlane.f32.xlu1 %v844_v34  ;;  %842 = vadd.xlane.f32.xlu0 %v841_v35  ;;  %v2034_v42 = vrot.slane %v1154_v37, %v3183_v27  ;;  %v2030_v43 = vrot.slane %v1153_v38, %v3183_v27  ;;  %v213_v34 = vld [vmem:[%s4533_s0 + $0x334] sm:$0xf]  ;;  %v212_v35 = vld [vmem:[%s4533_s0 + $0x330] sm:$0xf] }
 0x184   :  { %v636_v44 = vpop.xlane.xlu1 %635  ;;  %v633_v45 = vpop.xlane.xlu0 %632  ;;  %v880_v41 = vsel %vm264_vm0, %v213_v34, 0.0 }
 0x185   :  { %v1156_v48 = vmul.f32 0.25, %v636_v44  ;;  %v1155_v49 = vmul.f32 0.25, %v633_v45  ;;  %v2683_v53 = vsel %vm2571_vm1, %v2034_v42, %v2030_v43  ;;  %v877_v42 = vsel %vm264_vm0, %v212_v35, 0.0 }
 0x187   :  { %v2038_v52 = vrot.slane %v1155_v49, %v3183_v27  ;;  %851 = vadd.xlane.f32.xlu1 %v850_v46  ;;  %848 = vadd.xlane.f32.xlu0 %v847_v47  ;;  %v2042_v54 = vrot.slane %v1156_v48, %v3183_v27  ;;  %v215_v46 = vld [vmem:[%s4533_s0 + $0x33c] sm:$0xf]  ;;  %v214_v47 = vld [vmem:[%s4533_s0 + $0x338] sm:$0xf] }
 0x188   :  { %v642_v55 = vpop.xlane.xlu1 %641  ;;  %v639_v56 = vpop.xlane.xlu0 %638 }
 0x189   :  { %v2684_v59 = vsel %vm2573_vm2, %v2038_v52, %v2683_v53  ;;  %v1158_v60 = vmul.f32 0.25, %v642_v55  ;;  %v1157_v61 = vmul.f32 0.25, %v639_v56  ;;  %v886_v53 = vsel %vm264_vm0, %v215_v46, 0.0 }
 0x18a   :  { %v2685_v2 = vsel %vm2575_vm3, %v2042_v54, %v2684_v59  ;;  %v883_v54 = vsel %vm264_vm0, %v214_v47, 0.0  ;;  %v216_v59 = vld [vmem:[%s4533_s0 + $0x340] sm:$0xf] }
 0x18b   :  { %v2046_v0 = vrot.slane %v1157_v61, %v3183_v27  ;;  %857 = vadd.xlane.f32.xlu1 %v856_v57  ;;  %854 = vadd.xlane.f32.xlu0 %v853_v58  ;;  %v2050_v1 = vrot.slane %v1158_v60, %v3183_v27  ;;  %v217_v58 = vld [vmem:[%s4533_s0 + $0x344] sm:$0xf] }
 0x18c   :  { %v648_v3 = vpop.xlane.xlu1 %647  ;;  %v645_v4 = vpop.xlane.xlu0 %644 }
 0x18d   :  { %v2686_v7 = vsel %vm2577_vm4, %v2046_v0, %v2685_v2  ;;  %v1160_v8 = vmul.f32 0.25, %v648_v3  ;;  %v1159_v9 = vmul.f32 0.25, %v645_v4  ;;  %v889_v2 = vsel %vm264_vm0, %v216_v59, 0.0 }
 0x18e   :  { %v2687_v14 = vsel %vm2579_vm5, %v2050_v1, %v2686_v7  ;;  %v892_v1 = vsel %vm264_vm0, %v217_v58, 0.0  ;;  %v218_v7 = vld [vmem:[%s4533_s0 + $0x348] sm:$0xf] }
 0x18f   :  { %v2058_v12 = vrot.slane %v1160_v8, %v3183_v27  ;;  %v2054_v13 = vrot.slane %v1159_v9, %v3183_v27  ;;  %863 = vadd.xlane.f32.xlu1 %v862_v5  ;;  %860 = vadd.xlane.f32.xlu0 %v859_v6  ;;  %v219_v6 = vld [vmem:[%s4533_s0 + $0x34c] sm:$0xf] }
 0x190   :  { %v654_v15 = vpop.xlane.xlu1 %653  ;;  %v651_v16 = vpop.xlane.xlu0 %650 }
 0x191   :  { %v2688_v19 = vsel %vm2581_vm6, %v2054_v13, %v2687_v14  ;;  %v1162_v20 = vmul.f32 0.25, %v654_v15  ;;  %v1161_v21 = vmul.f32 0.25, %v651_v16  ;;  %v898_v13 = vsel %vm264_vm0, %v219_v6, 0.0 }
 0x192   :  { %v2689_v24 = vsel %vm2583_vm7, %v2058_v12, %v2688_v19  ;;  %v895_v14 = vsel %vm264_vm0, %v218_v7, 0.0 }
 0x193   :  { %2850 = vst.msk [vmem:[%s4534_s1 + $0x78] sm:$0xff] %vm2834_vm8, %v2689_v24  ;;  %869 = vadd.xlane.f32.xlu1 %v868_v17  ;;  %866 = vadd.xlane.f32.xlu0 %v865_v18  ;;  %v2066_v25 = vrot.slane %v1162_v20, %v3183_v27  ;;  %v2062_v26 = vrot.slane %v1161_v21, %v3183_v27  ;;  %v221_v17 = vld [vmem:[%s4533_s0 + $0x354] sm:$0xf]  ;;  %v220_v18 = vld [vmem:[%s4533_s0 + $0x350] sm:$0xf] }
 0x194   :  { %v660_v28 = vpop.xlane.xlu1 %659  ;;  %v657_v29 = vpop.xlane.xlu0 %656  ;;  %v904_v24 = vsel %vm264_vm0, %v221_v17, 0.0 }
 0x195   :  { %v1164_v32 = vmul.f32 0.25, %v660_v28  ;;  %v1163_v33 = vmul.f32 0.25, %v657_v29  ;;  %v2690_v37 = vsel %vm2571_vm1, %v2066_v25, %v2062_v26  ;;  %v901_v25 = vsel %vm264_vm0, %v220_v18, 0.0 }
 0x197   :  { %v2070_v36 = vrot.slane %v1163_v33, %v3183_v27  ;;  %875 = vadd.xlane.f32.xlu1 %v874_v30  ;;  %872 = vadd.xlane.f32.xlu0 %v871_v31  ;;  %v2074_v38 = vrot.slane %v1164_v32, %v3183_v27  ;;  %v224_v30 = vld [vmem:[%s4533_s0 + $0x360] sm:$0xf]  ;;  %v222_v31 = vld [vmem:[%s4533_s0 + $0x358] sm:$0xf] }
 0x198   :  { %v666_v39 = vpop.xlane.xlu1 %665  ;;  %v663_v40 = vpop.xlane.xlu0 %662 }
 0x199   :  { %v2691_v43 = vsel %vm2573_vm2, %v2070_v36, %v2690_v37  ;;  %v1166_v44 = vmul.f32 0.25, %v666_v39  ;;  %v1165_v45 = vmul.f32 0.25, %v663_v40  ;;  %v913_v37 = vsel %vm264_vm0, %v224_v30, 0.0 }
 0x19a   :  { %v2692_v50 = vsel %vm2575_vm3, %v2074_v38, %v2691_v43  ;;  %v907_v38 = vsel %vm264_vm0, %v222_v31, 0.0  ;;  %v225_v43 = vld [vmem:[%s4533_s0 + $0x364] sm:$0xf] }
 0x19b   :  { %v2078_v48 = vrot.slane %v1165_v45, %v3183_v27  ;;  %881 = vadd.xlane.f32.xlu1 %v880_v41  ;;  %878 = vadd.xlane.f32.xlu0 %v877_v42  ;;  %v2082_v49 = vrot.slane %v1166_v44, %v3183_v27  ;;  %v232_v42 = vld [vmem:[%s4533_s0 + $0x380] sm:$0xf] }
 0x19c   :  { %v672_v51 = vpop.xlane.xlu1 %671  ;;  %v669_v52 = vpop.xlane.xlu0 %668 }
 0x19d   :  { %v2693_v55 = vsel %vm2577_vm4, %v2078_v48, %v2692_v50  ;;  %v1168_v56 = vmul.f32 0.25, %v672_v51  ;;  %v1167_v57 = vmul.f32 0.25, %v669_v52  ;;  %v916_v50 = vsel %vm264_vm0, %v225_v43, 0.0 }
 0x19e   :  { %v2694_v62 = vsel %vm2579_vm5, %v2082_v49, %v2693_v55  ;;  %v937_v49 = vsel %vm264_vm0, %v232_v42, 0.0  ;;  %v233_v55 = vld [vmem:[%s4533_s0 + $0x384] sm:$0xf] }
 0x19f   :  { %v2090_v60 = vrot.slane %v1168_v56, %v3183_v27  ;;  %v2086_v61 = vrot.slane %v1167_v57, %v3183_v27  ;;  %887 = vadd.xlane.f32.xlu1 %v886_v53  ;;  %884 = vadd.xlane.f32.xlu0 %v883_v54  ;;  %v240_v54 = vld [vmem:[%s4533_s0 + $0x3a0] sm:$0xf] }
 0x1a0   :  { %v678_v63 = vpop.xlane.xlu1 %677  ;;  %v675_v0 = vpop.xlane.xlu0 %674 }
 0x1a1   :  { %v2695_v3 = vsel %vm2581_vm6, %v2086_v61, %v2694_v62  ;;  %v1170_v4 = vmul.f32 0.25, %v678_v63  ;;  %v1169_v5 = vmul.f32 0.25, %v675_v0  ;;  %v961_v61 = vsel %vm264_vm0, %v240_v54, 0.0 }
 0x1a2   :  { %v2696_v8 = vsel %vm2583_vm7, %v2090_v60, %v2695_v3  ;;  %v940_v62 = vsel %vm264_vm0, %v233_v55, 0.0 }
 0x1a3   :  { %2851 = vst.msk [vmem:[%s4534_s1 + $0x80] sm:$0xff] %vm2834_vm8, %v2696_v8  ;;  %893 = vadd.xlane.f32.xlu1 %v892_v1  ;;  %890 = vadd.xlane.f32.xlu0 %v889_v2  ;;  %v2098_v9 = vrot.slane %v1170_v4, %v3183_v27  ;;  %v2094_v10 = vrot.slane %v1169_v5, %v3183_v27  ;;  %v248_v1 = vld [vmem:[%s4533_s0 + $0x3c0] sm:$0xf]  ;;  %v241_v2 = vld [vmem:[%s4533_s0 + $0x3a4] sm:$0xf] }
 0x1a4   :  { %v684_v11 = vpop.xlane.xlu1 %683  ;;  %v681_v12 = vpop.xlane.xlu0 %680  ;;  %v985_v8 = vsel %vm264_vm0, %v248_v1, 0.0 }
 0x1a5   :  { %v1172_v15 = vmul.f32 0.25, %v684_v11  ;;  %v1171_v16 = vmul.f32 0.25, %v681_v12  ;;  %v2697_v20 = vsel %vm2571_vm1, %v2098_v9, %v2094_v10  ;;  %v964_v9 = vsel %vm264_vm0, %v241_v2, 0.0 }
 0x1a7   :  { %v2102_v19 = vrot.slane %v1171_v16, %v3183_v27  ;;  %899 = vadd.xlane.f32.xlu1 %v898_v13  ;;  %896 = vadd.xlane.f32.xlu0 %v895_v14  ;;  %v2106_v21 = vrot.slane %v1172_v15, %v3183_v27  ;;  %v256_v13 = vld [vmem:[%s4533_s0 + $0x3e0] sm:$0xf]  ;;  %v249_v14 = vld [vmem:[%s4533_s0 + $0x3c4] sm:$0xf] }
 0x1a8   :  { %v690_v22 = vpop.xlane.xlu1 %689  ;;  %v687_v23 = vpop.xlane.xlu0 %686 }
 0x1a9   :  { %v2698_v26 = vsel %vm2573_vm2, %v2102_v19, %v2697_v20  ;;  %v1174_v28 = vmul.f32 0.25, %v690_v22  ;;  %v1173_v29 = vmul.f32 0.25, %v687_v23  ;;  %v1009_v20 = vsel %vm264_vm0, %v256_v13, 0.0 }
 0x1aa   :  { %v2699_v34 = vsel %vm2575_vm3, %v2106_v21, %v2698_v26  ;;  %v988_v21 = vsel %vm264_vm0, %v249_v14, 0.0  ;;  %v257_v26 = vld [vmem:[%s4533_s0 + $0x3e4] sm:$0xf] }
 0x1ab   :  { %v2110_v32 = vrot.slane %v1173_v29, %v3183_v27  ;;  %905 = vadd.xlane.f32.xlu1 %v904_v24  ;;  %902 = vadd.xlane.f32.xlu0 %v901_v25  ;;  %v2114_v33 = vrot.slane %v1174_v28, %v3183_v27  ;;  %v226_v25 = vld [vmem:[%s4533_s0 + $0x368] sm:$0xf] }
 0x1ac   :  { %v696_v35 = vpop.xlane.xlu1 %695  ;;  %v693_v36 = vpop.xlane.xlu0 %692 }
 0x1ad   :  { %v2700_v39 = vsel %vm2577_vm4, %v2110_v32, %v2699_v34  ;;  %v1176_v40 = vmul.f32 0.25, %v696_v35  ;;  %v1175_v41 = vmul.f32 0.25, %v693_v36  ;;  %v1012_v34 = vsel %vm264_vm0, %v257_v26, 0.0 }
 0x1ae   :  { %v2701_v46 = vsel %vm2579_vm5, %v2114_v33, %v2700_v39  ;;  %v919_v33 = vsel %vm264_vm0, %v226_v25, 0.0  ;;  %v234_v39 = vld [vmem:[%s4533_s0 + $0x388] sm:$0xf] }
 0x1af   :  { %v2122_v44 = vrot.slane %v1176_v40, %v3183_v27  ;;  %v2118_v45 = vrot.slane %v1175_v41, %v3183_v27  ;;  %914 = vadd.xlane.f32.xlu1 %v913_v37  ;;  %908 = vadd.xlane.f32.xlu0 %v907_v38  ;;  %v242_v38 = vld [vmem:[%s4533_s0 + $0x3a8] sm:$0xf] }
 0x1b0   :  { %v702_v47 = vpop.xlane.xlu1 %701  ;;  %v699_v48 = vpop.xlane.xlu0 %698 }
 0x1b1   :  { %v2702_v51 = vsel %vm2581_vm6, %v2118_v45, %v2701_v46  ;;  %v1178_v52 = vmul.f32 0.25, %v702_v47  ;;  %v1177_v53 = vmul.f32 0.25, %v699_v48  ;;  %v967_v45 = vsel %vm264_vm0, %v242_v38, 0.0 }
 0x1b2   :  { %v2703_v56 = vsel %vm2583_vm7, %v2122_v44, %v2702_v51  ;;  %v943_v46 = vsel %vm264_vm0, %v234_v39, 0.0 }
 0x1b3   :  { %2852 = vst.msk [vmem:[%s4534_s1 + $0x88] sm:$0xff] %vm2834_vm8, %v2703_v56  ;;  %938 = vadd.xlane.f32.xlu1 %v937_v49  ;;  %917 = vadd.xlane.f32.xlu0 %v916_v50  ;;  %v2130_v57 = vrot.slane %v1178_v52, %v3183_v27  ;;  %v2126_v58 = vrot.slane %v1177_v53, %v3183_v27  ;;  %v258_v49 = vld [vmem:[%s4533_s0 + $0x3e8] sm:$0xf] }
 0x1b4   :  { %v708_v59 = vpop.xlane.xlu1 %707  ;;  %v705_v60 = vpop.xlane.xlu0 %704  ;;  %v250_v50 = vld [vmem:[%s4533_s0 + $0x3c8] sm:$0xf]  ;;  %v1015_v56 = vsel %vm264_vm0, %v258_v49, 0.0 }
 0x1b5   :  { %v1180_v63 = vmul.f32 0.25, %v708_v59  ;;  %v1179_v0 = vmul.f32 0.25, %v705_v60  ;;  %v2704_v4 = vsel %vm2571_vm1, %v2130_v57, %v2126_v58  ;;  %v991_v57 = vsel %vm264_vm0, %v250_v50, 0.0 }
 0x1b7   :  { %v2134_v3 = vrot.slane %v1179_v0, %v3183_v27  ;;  %962 = vadd.xlane.f32.xlu1 %v961_v61  ;;  %941 = vadd.xlane.f32.xlu0 %v940_v62  ;;  %v2138_v5 = vrot.slane %v1180_v63, %v3183_v27  ;;  %v235_v61 = vld [vmem:[%s4533_s0 + $0x38c] sm:$0xf] }
 0x1b8   :  { %v714_v6 = vpop.xlane.xlu1 %713  ;;  %v711_v7 = vpop.xlane.xlu0 %710  ;;  %v227_v62 = vld [vmem:[%s4533_s0 + $0x36c] sm:$0xf] }
 0x1b9   :  { %v2705_v10 = vsel %vm2573_vm2, %v2134_v3, %v2704_v4  ;;  %v1182_v11 = vmul.f32 0.25, %v714_v6  ;;  %v1181_v12 = vmul.f32 0.25, %v711_v7  ;;  %v946_v4 = vsel %vm264_vm0, %v235_v61, 0.0 }
 0x1ba   :  { %v2706_v17 = vsel %vm2575_vm3, %v2138_v5, %v2705_v10  ;;  %v922_v5 = vsel %vm264_vm0, %v227_v62, 0.0  ;;  %v243_v10 = vld [vmem:[%s4533_s0 + $0x3ac] sm:$0xf] }
 0x1bb   :  { %v2142_v15 = vrot.slane %v1181_v12, %v3183_v27  ;;  %986 = vadd.xlane.f32.xlu1 %v985_v8  ;;  %965 = vadd.xlane.f32.xlu0 %v964_v9  ;;  %v2146_v16 = vrot.slane %v1182_v11, %v3183_v27  ;;  %v251_v9 = vld [vmem:[%s4533_s0 + $0x3cc] sm:$0xf] }
 0x1bc   :  { %v720_v18 = vpop.xlane.xlu1 %719  ;;  %v717_v19 = vpop.xlane.xlu0 %716 }
 0x1bd   :  { %v2707_v22 = vsel %vm2577_vm4, %v2142_v15, %v2706_v17  ;;  %v1184_v23 = vmul.f32 0.25, %v720_v18  ;;  %v1183_v24 = vmul.f32 0.25, %v717_v19  ;;  %v970_v17 = vsel %vm264_vm0, %v243_v10, 0.0 }
 0x1be   :  { %v2708_v30 = vsel %vm2579_vm5, %v2146_v16, %v2707_v22  ;;  %v994_v16 = vsel %vm264_vm0, %v251_v9, 0.0  ;;  %v259_v22 = vld [vmem:[%s4533_s0 + $0x3ec] sm:$0xf] }
 0x1bf   :  { %v2154_v28 = vrot.slane %v1184_v23, %v3183_v27  ;;  %v2150_v29 = vrot.slane %v1183_v24, %v3183_v27  ;;  %1010 = vadd.xlane.f32.xlu1 %v1009_v20  ;;  %989 = vadd.xlane.f32.xlu0 %v988_v21  ;;  %v228_v21 = vld [vmem:[%s4533_s0 + $0x370] sm:$0xf] }
 0x1c0   :  { %v726_v31 = vpop.xlane.xlu1 %725  ;;  %v723_v32 = vpop.xlane.xlu0 %722 }
 0x1c1   :  { %v2709_v35 = vsel %vm2581_vm6, %v2150_v29, %v2708_v30  ;;  %v1186_v36 = vmul.f32 0.25, %v726_v31  ;;  %v1185_v37 = vmul.f32 0.25, %v723_v32  ;;  %v925_v29 = vsel %vm264_vm0, %v228_v21, 0.0 }
 0x1c2   :  { %v2710_v40 = vsel %vm2583_vm7, %v2154_v28, %v2709_v35  ;;  %v1018_v30 = vsel %vm264_vm0, %v259_v22, 0.0 }
 0x1c3   :  { %2853 = vst.msk [vmem:[%s4534_s1 + $0x90] sm:$0xff] %vm2834_vm8, %v2710_v40  ;;  %920 = vadd.xlane.f32.xlu1 %v919_v33  ;;  %1013 = vadd.xlane.f32.xlu0 %v1012_v34  ;;  %v2162_v41 = vrot.slane %v1186_v36, %v3183_v27  ;;  %v2158_v42 = vrot.slane %v1185_v37, %v3183_v27  ;;  %v244_v33 = vld [vmem:[%s4533_s0 + $0x3b0] sm:$0xf] }
 0x1c4   :  { %v732_v43 = vpop.xlane.xlu1 %731  ;;  %v729_v44 = vpop.xlane.xlu0 %728  ;;  %v236_v34 = vld [vmem:[%s4533_s0 + $0x390] sm:$0xf]  ;;  %v973_v40 = vsel %vm264_vm0, %v244_v33, 0.0 }
 0x1c5   :  { %v1188_v47 = vmul.f32 0.25, %v732_v43  ;;  %v1187_v48 = vmul.f32 0.25, %v729_v44  ;;  %v2711_v52 = vsel %vm2571_vm1, %v2162_v41, %v2158_v42  ;;  %v949_v41 = vsel %vm264_vm0, %v236_v34, 0.0 }
 0x1c7   :  { %v2166_v51 = vrot.slane %v1187_v48, %v3183_v27  ;;  %968 = vadd.xlane.f32.xlu1 %v967_v45  ;;  %944 = vadd.xlane.f32.xlu0 %v943_v46  ;;  %v2170_v53 = vrot.slane %v1188_v47, %v3183_v27  ;;  %v260_v45 = vld [vmem:[%s4533_s0 + $0x3f0] sm:$0xf] }
 0x1c8   :  { %v738_v54 = vpop.xlane.xlu1 %737  ;;  %v735_v55 = vpop.xlane.xlu0 %734  ;;  %v252_v46 = vld [vmem:[%s4533_s0 + $0x3d0] sm:$0xf] }
 0x1c9   :  { %v2712_v58 = vsel %vm2573_vm2, %v2166_v51, %v2711_v52  ;;  %v1190_v59 = vmul.f32 0.25, %v738_v54  ;;  %v1189_v60 = vmul.f32 0.25, %v735_v55  ;;  %v1021_v52 = vsel %vm264_vm0, %v260_v45, 0.0 }
 0x1ca   :  { %v2713_v1 = vsel %vm2575_vm3, %v2170_v53, %v2712_v58  ;;  %v997_v53 = vsel %vm264_vm0, %v252_v46, 0.0  ;;  %v229_v58 = vld [vmem:[%s4533_s0 + $0x374] sm:$0xf] }
 0x1cb   :  { %v2174_v63 = vrot.slane %v1189_v60, %v3183_v27  ;;  %1016 = vadd.xlane.f32.xlu1 %v1015_v56  ;;  %992 = vadd.xlane.f32.xlu0 %v991_v57  ;;  %v2178_v0 = vrot.slane %v1190_v59, %v3183_v27  ;;  %v237_v57 = vld [vmem:[%s4533_s0 + $0x394] sm:$0xf] }
 0x1cc   :  { %v744_v2 = vpop.xlane.xlu1 %743  ;;  %v741_v3 = vpop.xlane.xlu0 %740 }
 0x1cd   :  { %v2714_v6 = vsel %vm2577_vm4, %v2174_v63, %v2713_v1  ;;  %v1192_v7 = vmul.f32 0.25, %v744_v2  ;;  %v1191_v8 = vmul.f32 0.25, %v741_v3  ;;  %v928_v1 = vsel %vm264_vm0, %v229_v58, 0.0 }
 0x1ce   :  { %v2715_v13 = vsel %vm2579_vm5, %v2178_v0, %v2714_v6  ;;  %v952_v0 = vsel %vm264_vm0, %v237_v57, 0.0  ;;  %v245_v6 = vld [vmem:[%s4533_s0 + $0x3b4] sm:$0xf] }
 0x1cf   :  { %v2186_v11 = vrot.slane %v1192_v7, %v3183_v27  ;;  %v2182_v12 = vrot.slane %v1191_v8, %v3183_v27  ;;  %947 = vadd.xlane.f32.xlu1 %v946_v4  ;;  %923 = vadd.xlane.f32.xlu0 %v922_v5  ;;  %v253_v5 = vld [vmem:[%s4533_s0 + $0x3d4] sm:$0xf] }
 0x1d0   :  { %v750_v14 = vpop.xlane.xlu1 %749  ;;  %v747_v15 = vpop.xlane.xlu0 %746 }
 0x1d1   :  { %v2716_v18 = vsel %vm2581_vm6, %v2182_v12, %v2715_v13  ;;  %v1194_v19 = vmul.f32 0.25, %v750_v14  ;;  %v1193_v20 = vmul.f32 0.25, %v747_v15  ;;  %v1000_v12 = vsel %vm264_vm0, %v253_v5, 0.0 }
 0x1d2   :  { %v2717_v23 = vsel %vm2583_vm7, %v2186_v11, %v2716_v18  ;;  %v976_v13 = vsel %vm264_vm0, %v245_v6, 0.0 }
 0x1d3   :  { %2854 = vst.msk [vmem:[%s4534_s1 + $0x98] sm:$0xff] %vm2834_vm8, %v2717_v23  ;;  %995 = vadd.xlane.f32.xlu1 %v994_v16  ;;  %971 = vadd.xlane.f32.xlu0 %v970_v17  ;;  %v2194_v24 = vrot.slane %v1194_v19, %v3183_v27  ;;  %v2190_v25 = vrot.slane %v1193_v20, %v3183_v27  ;;  %v230_v16 = vld [vmem:[%s4533_s0 + $0x378] sm:$0xf]  ;;  %v261_v17 = vld [vmem:[%s4533_s0 + $0x3f4] sm:$0xf] }
 0x1d4   :  { %v756_v26 = vpop.xlane.xlu1 %755  ;;  %v753_v28 = vpop.xlane.xlu0 %752  ;;  %v931_v23 = vsel %vm264_vm0, %v230_v16, 0.0 }
 0x1d5   :  { %v1196_v31 = vmul.f32 0.25, %v756_v26  ;;  %v1195_v32 = vmul.f32 0.25, %v753_v28  ;;  %v2718_v36 = vsel %vm2571_vm1, %v2194_v24, %v2190_v25  ;;  %v1024_v24 = vsel %vm264_vm0, %v261_v17, 0.0 }
 0x1d7   :  { %v2198_v35 = vrot.slane %v1195_v32, %v3183_v27  ;;  %926 = vadd.xlane.f32.xlu1 %v925_v29  ;;  %1019 = vadd.xlane.f32.xlu0 %v1018_v30  ;;  %v2202_v37 = vrot.slane %v1196_v31, %v3183_v27  ;;  %v246_v29 = vld [vmem:[%s4533_s0 + $0x3b8] sm:$0xf] }
 0x1d8   :  { %v762_v38 = vpop.xlane.xlu1 %761  ;;  %v759_v39 = vpop.xlane.xlu0 %758  ;;  %v238_v30 = vld [vmem:[%s4533_s0 + $0x398] sm:$0xf] }
 0x1d9   :  { %v2719_v42 = vsel %vm2573_vm2, %v2198_v35, %v2718_v36  ;;  %v1198_v43 = vmul.f32 0.25, %v762_v38  ;;  %v1197_v44 = vmul.f32 0.25, %v759_v39  ;;  %v979_v36 = vsel %vm264_vm0, %v246_v29, 0.0 }
 0x1da   :  { %v2720_v49 = vsel %vm2575_vm3, %v2202_v37, %v2719_v42  ;;  %v955_v37 = vsel %vm264_vm0, %v238_v30, 0.0  ;;  %v254_v42 = vld [vmem:[%s4533_s0 + $0x3d8] sm:$0xf] }
 0x1db   :  { %v2206_v47 = vrot.slane %v1197_v44, %v3183_v27  ;;  %974 = vadd.xlane.f32.xlu1 %v973_v40  ;;  %950 = vadd.xlane.f32.xlu0 %v949_v41  ;;  %v2210_v48 = vrot.slane %v1198_v43, %v3183_v27  ;;  %v262_v41 = vld [vmem:[%s4533_s0 + $0x3f8] sm:$0xf] }
 0x1dc   :  { %v768_v50 = vpop.xlane.xlu1 %767  ;;  %v765_v51 = vpop.xlane.xlu0 %764 }
 0x1dd   :  { %v2721_v54 = vsel %vm2577_vm4, %v2206_v47, %v2720_v49  ;;  %v1200_v55 = vmul.f32 0.25, %v768_v50  ;;  %v1199_v56 = vmul.f32 0.25, %v765_v51  ;;  %v1003_v49 = vsel %vm264_vm0, %v254_v42, 0.0 }
 0x1de   :  { %v2722_v61 = vsel %vm2579_vm5, %v2210_v48, %v2721_v54  ;;  %v1027_v48 = vsel %vm264_vm0, %v262_v41, 0.0  ;;  %v223_v54 = vld [vmem:[%s4533_s0 + $0x35c] sm:$0xf] }
 0x1df   :  { %v2218_v59 = vrot.slane %v1200_v55, %v3183_v27  ;;  %v2214_v60 = vrot.slane %v1199_v56, %v3183_v27  ;;  %1022 = vadd.xlane.f32.xlu1 %v1021_v52  ;;  %998 = vadd.xlane.f32.xlu0 %v997_v53  ;;  %v231_v53 = vld [vmem:[%s4533_s0 + $0x37c] sm:$0xf] }
 0x1e0   :  { %v774_v62 = vpop.xlane.xlu1 %773  ;;  %v771_v63 = vpop.xlane.xlu0 %770 }
 0x1e1   :  { %v2723_v2 = vsel %vm2581_vm6, %v2214_v60, %v2722_v61  ;;  %v1202_v3 = vmul.f32 0.25, %v774_v62  ;;  %v1201_v4 = vmul.f32 0.25, %v771_v63  ;;  %v934_v60 = vsel %vm264_vm0, %v231_v53, 0.0 }
 0x1e2   :  { %v2724_v7 = vsel %vm2583_vm7, %v2218_v59, %v2723_v2  ;;  %v910_v61 = vsel %vm264_vm0, %v223_v54, 0.0 }
 0x1e3   :  { %2855 = vst.msk [vmem:[%s4534_s1 + $0xa0] sm:$0xff] %vm2834_vm8, %v2724_v7  ;;  %953 = vadd.xlane.f32.xlu1 %v952_v0  ;;  %929 = vadd.xlane.f32.xlu0 %v928_v1  ;;  %v2226_v8 = vrot.slane %v1202_v3, %v3183_v27  ;;  %v2222_v9 = vrot.slane %v1201_v4, %v3183_v27  ;;  %v247_v0 = vld [vmem:[%s4533_s0 + $0x3bc] sm:$0xf] }
 0x1e4   :  { %v780_v10 = vpop.xlane.xlu1 %779  ;;  %v777_v11 = vpop.xlane.xlu0 %776  ;;  %v239_v1 = vld [vmem:[%s4533_s0 + $0x39c] sm:$0xf]  ;;  %v982_v7 = vsel %vm264_vm0, %v247_v0, 0.0 }
 0x1e5   :  { %v1204_v14 = vmul.f32 0.25, %v780_v10  ;;  %v1203_v15 = vmul.f32 0.25, %v777_v11  ;;  %v2725_v19 = vsel %vm2571_vm1, %v2226_v8, %v2222_v9  ;;  %v958_v8 = vsel %vm264_vm0, %v239_v1, 0.0 }
 0x1e7   :  { %v2230_v18 = vrot.slane %v1203_v15, %v3183_v27  ;;  %1001 = vadd.xlane.f32.xlu1 %v1000_v12  ;;  %977 = vadd.xlane.f32.xlu0 %v976_v13  ;;  %v2234_v20 = vrot.slane %v1204_v14, %v3183_v27  ;;  %v263_v12 = vld [vmem:[%s4533_s0 + $0x3fc] sm:$0xf] }
 0x1e8   :  { %v786_v21 = vpop.xlane.xlu1 %785  ;;  %v783_v22 = vpop.xlane.xlu0 %782  ;;  %v255_v13 = vld [vmem:[%s4533_s0 + $0x3dc] sm:$0xf] }
 0x1e9   :  { %v2726_v25 = vsel %vm2573_vm2, %v2230_v18, %v2725_v19  ;;  %v1206_v26 = vmul.f32 0.25, %v786_v21  ;;  %v1205_v28 = vmul.f32 0.25, %v783_v22  ;;  %v1030_v19 = vsel %vm264_vm0, %v263_v12, 0.0 }
 0x1ea   :  { %v2727_v33 = vsel %vm2575_vm3, %v2234_v20, %v2726_v25  ;;  %v1006_v20 = vsel %vm264_vm0, %v255_v13, 0.0 }
 0x1eb   :  { %v2238_v31 = vrot.slane %v1205_v28, %v3183_v27  ;;  %932 = vadd.xlane.f32.xlu1 %v931_v23  ;;  %1025 = vadd.xlane.f32.xlu0 %v1024_v24  ;;  %v2242_v32 = vrot.slane %v1206_v26, %v3183_v27 }
 0x1ec   :  { %v792_v34 = vpop.xlane.xlu1 %791  ;;  %v789_v35 = vpop.xlane.xlu0 %788 }
 0x1ed   :  { %v2728_v38 = vsel %vm2577_vm4, %v2238_v31, %v2727_v33  ;;  %v1208_v39 = vmul.f32 0.25, %v792_v34  ;;  %v1207_v40 = vmul.f32 0.25, %v789_v35 }
 0x1ee   :  { %v2729_v45 = vsel %vm2579_vm5, %v2242_v32, %v2728_v38 }
 0x1ef   :  { %v2250_v43 = vrot.slane %v1208_v39, %v3183_v27  ;;  %v2246_v44 = vrot.slane %v1207_v40, %v3183_v27  ;;  %980 = vadd.xlane.f32.xlu1 %v979_v36  ;;  %956 = vadd.xlane.f32.xlu0 %v955_v37 }
 0x1f0   :  { %v798_v46 = vpop.xlane.xlu1 %797  ;;  %v795_v47 = vpop.xlane.xlu0 %794 }
 0x1f1   :  { %v2730_v50 = vsel %vm2581_vm6, %v2246_v44, %v2729_v45  ;;  %v1210_v51 = vmul.f32 0.25, %v798_v46  ;;  %v1209_v52 = vmul.f32 0.25, %v795_v47 }
 0x1f2   :  { %v2731_v55 = vsel %vm2583_vm7, %v2250_v43, %v2730_v50 }
 0x1f3   :  { %2856 = vst.msk [vmem:[%s4534_s1 + $0xa8] sm:$0xff] %vm2834_vm8, %v2731_v55  ;;  %1028 = vadd.xlane.f32.xlu1 %v1027_v48  ;;  %1004 = vadd.xlane.f32.xlu0 %v1003_v49  ;;  %v2258_v56 = vrot.slane %v1210_v51, %v3183_v27  ;;  %v2254_v57 = vrot.slane %v1209_v52, %v3183_v27 }
 0x1f4   :  { %v804_v58 = vpop.xlane.xlu1 %803  ;;  %v801_v59 = vpop.xlane.xlu0 %800 }
 0x1f5   :  { %v1212_v62 = vmul.f32 0.25, %v804_v58  ;;  %v1211_v63 = vmul.f32 0.25, %v801_v59  ;;  %v2732_v3 = vsel %vm2571_vm1, %v2258_v56, %v2254_v57 }
 0x1f7   :  { %v2262_v2 = vrot.slane %v1211_v63, %v3183_v27  ;;  %935 = vadd.xlane.f32.xlu1 %v934_v60  ;;  %911 = vadd.xlane.f32.xlu0 %v910_v61  ;;  %v2266_v4 = vrot.slane %v1212_v62, %v3183_v27 }
 0x1f8   :  { %v810_v5 = vpop.xlane.xlu1 %809  ;;  %v807_v6 = vpop.xlane.xlu0 %806 }
 0x1f9   :  { %v2733_v9 = vsel %vm2573_vm2, %v2262_v2, %v2732_v3  ;;  %v1214_v10 = vmul.f32 0.25, %v810_v5  ;;  %v1213_v11 = vmul.f32 0.25, %v807_v6 }
 0x1fa   :  { %v2734_v16 = vsel %vm2575_vm3, %v2266_v4, %v2733_v9 }
 0x1fb   :  { %v2270_v14 = vrot.slane %v1213_v11, %v3183_v27  ;;  %983 = vadd.xlane.f32.xlu1 %v982_v7  ;;  %959 = vadd.xlane.f32.xlu0 %v958_v8  ;;  %v2274_v15 = vrot.slane %v1214_v10, %v3183_v27 }
 0x1fc   :  { %v816_v17 = vpop.xlane.xlu1 %815  ;;  %v813_v18 = vpop.xlane.xlu0 %812 }
 0x1fd   :  { %v2735_v21 = vsel %vm2577_vm4, %v2270_v14, %v2734_v16  ;;  %v1216_v22 = vmul.f32 0.25, %v816_v17  ;;  %v1215_v23 = vmul.f32 0.25, %v813_v18 }
 0x1fe   :  { %v2736_v26 = vsel %vm2579_vm5, %v2274_v15, %v2735_v21 }
 0x1ff   :  { %v2282_v24 = vrot.slane %v1216_v22, %v3183_v27  ;;  %v2278_v25 = vrot.slane %v1215_v23, %v3183_v27  ;;  %1031 = vadd.xlane.f32.xlu1 %v1030_v19  ;;  %1007 = vadd.xlane.f32.xlu0 %v1006_v20 }
 0x200   :  { %v822_v28 = vpop.xlane.xlu1 %821  ;;  %v819_v29 = vpop.xlane.xlu0 %818 }
 0x201   :  { %v2737_v30 = vsel %vm2581_vm6, %v2278_v25, %v2736_v26  ;;  %v1218_v31 = vmul.f32 0.25, %v822_v28  ;;  %v1217_v32 = vmul.f32 0.25, %v819_v29 }
 0x202   :  { %v2738_v33 = vsel %vm2583_vm7, %v2282_v24, %v2737_v30 }
 0x203   :  { %2857 = vst.msk [vmem:[%s4534_s1 + $0xb0] sm:$0xff] %vm2834_vm8, %v2738_v33  ;;  %v2290_v34 = vrot.slane %v1218_v31, %v3183_v27  ;;  %v2286_v35 = vrot.slane %v1217_v32, %v3183_v27 }
 0x204   :  { %v828_v36 = vpop.xlane.xlu1 %827  ;;  %v825_v37 = vpop.xlane.xlu0 %824 }
 0x205   :  { %v1220_v38 = vmul.f32 0.25, %v828_v36  ;;  %v1219_v39 = vmul.f32 0.25, %v825_v37  ;;  %v2739_v41 = vsel %vm2571_vm1, %v2290_v34, %v2286_v35 }
 0x207   :  { %v2294_v40 = vrot.slane %v1219_v39, %v3183_v27  ;;  %v2298_v42 = vrot.slane %v1220_v38, %v3183_v27 }
 0x208   :  { %v834_v43 = vpop.xlane.xlu1 %833  ;;  %v831_v44 = vpop.xlane.xlu0 %830 }
 0x209   :  { %v2740_v45 = vsel %vm2573_vm2, %v2294_v40, %v2739_v41  ;;  %v1222_v46 = vmul.f32 0.25, %v834_v43  ;;  %v1221_v47 = vmul.f32 0.25, %v831_v44 }
 0x20a   :  { %v2741_v50 = vsel %vm2575_vm3, %v2298_v42, %v2740_v45 }
 0x20b   :  { %v2302_v48 = vrot.slane %v1221_v47, %v3183_v27  ;;  %v2306_v49 = vrot.slane %v1222_v46, %v3183_v27 }
 0x20c   :  { %v840_v51 = vpop.xlane.xlu1 %839  ;;  %v837_v52 = vpop.xlane.xlu0 %836 }
 0x20d   :  { %v2742_v53 = vsel %vm2577_vm4, %v2302_v48, %v2741_v50  ;;  %v1224_v54 = vmul.f32 0.25, %v840_v51  ;;  %v1223_v55 = vmul.f32 0.25, %v837_v52 }
 0x20e   :  { %v2743_v58 = vsel %vm2579_vm5, %v2306_v49, %v2742_v53 }
 0x20f   :  { %v2314_v56 = vrot.slane %v1224_v54, %v3183_v27  ;;  %v2310_v57 = vrot.slane %v1223_v55, %v3183_v27 }
 0x210   :  { %v846_v59 = vpop.xlane.xlu1 %845  ;;  %v843_v60 = vpop.xlane.xlu0 %842 }
 0x211   :  { %v2744_v61 = vsel %vm2581_vm6, %v2310_v57, %v2743_v58  ;;  %v1226_v62 = vmul.f32 0.25, %v846_v59  ;;  %v1225_v63 = vmul.f32 0.25, %v843_v60 }
 0x212   :  { %v2745_v0 = vsel %vm2583_vm7, %v2314_v56, %v2744_v61 }
 0x213   :  { %2858 = vst.msk [vmem:[%s4534_s1 + $0xb8] sm:$0xff] %vm2834_vm8, %v2745_v0  ;;  %v2322_v1 = vrot.slane %v1226_v62, %v3183_v27  ;;  %v2318_v2 = vrot.slane %v1225_v63, %v3183_v27 }
 0x214   :  { %v852_v3 = vpop.xlane.xlu1 %851  ;;  %v849_v4 = vpop.xlane.xlu0 %848 }
 0x215   :  { %v1228_v5 = vmul.f32 0.25, %v852_v3  ;;  %v1227_v6 = vmul.f32 0.25, %v849_v4  ;;  %v2746_v8 = vsel %vm2571_vm1, %v2322_v1, %v2318_v2 }
 0x217   :  { %v2326_v7 = vrot.slane %v1227_v6, %v3183_v27  ;;  %v2330_v9 = vrot.slane %v1228_v5, %v3183_v27 }
 0x218   :  { %v858_v10 = vpop.xlane.xlu1 %857  ;;  %v855_v11 = vpop.xlane.xlu0 %854 }
 0x219   :  { %v2747_v12 = vsel %vm2573_vm2, %v2326_v7, %v2746_v8  ;;  %v1230_v13 = vmul.f32 0.25, %v858_v10  ;;  %v1229_v14 = vmul.f32 0.25, %v855_v11 }
 0x21a   :  { %v2748_v17 = vsel %vm2575_vm3, %v2330_v9, %v2747_v12 }
 0x21b   :  { %v2334_v15 = vrot.slane %v1229_v14, %v3183_v27  ;;  %v2338_v16 = vrot.slane %v1230_v13, %v3183_v27 }
 0x21c   :  { %v864_v18 = vpop.xlane.xlu1 %863  ;;  %v861_v19 = vpop.xlane.xlu0 %860 }
 0x21d   :  { %v2749_v20 = vsel %vm2577_vm4, %v2334_v15, %v2748_v17  ;;  %v1232_v21 = vmul.f32 0.25, %v864_v18  ;;  %v1231_v22 = vmul.f32 0.25, %v861_v19 }
 0x21e   :  { %v2750_v25 = vsel %vm2579_vm5, %v2338_v16, %v2749_v20 }
 0x21f   :  { %v2346_v23 = vrot.slane %v1232_v21, %v3183_v27  ;;  %v2342_v24 = vrot.slane %v1231_v22, %v3183_v27 }
 0x220   :  { %v870_v26 = vpop.xlane.xlu1 %869  ;;  %v867_v28 = vpop.xlane.xlu0 %866 }
 0x221   :  { %v2751_v29 = vsel %vm2581_vm6, %v2342_v24, %v2750_v25  ;;  %v1234_v30 = vmul.f32 0.25, %v870_v26  ;;  %v1233_v31 = vmul.f32 0.25, %v867_v28 }
 0x222   :  { %v2752_v32 = vsel %vm2583_vm7, %v2346_v23, %v2751_v29 }
 0x223   :  { %2859 = vst.msk [vmem:[%s4534_s1 + $0xc0] sm:$0xff] %vm2834_vm8, %v2752_v32  ;;  %v2354_v33 = vrot.slane %v1234_v30, %v3183_v27  ;;  %v2350_v34 = vrot.slane %v1233_v31, %v3183_v27 }
 0x224   :  { %v876_v35 = vpop.xlane.xlu1 %875  ;;  %v873_v36 = vpop.xlane.xlu0 %872 }
 0x225   :  { %v1236_v37 = vmul.f32 0.25, %v876_v35  ;;  %v1235_v38 = vmul.f32 0.25, %v873_v36  ;;  %v2753_v40 = vsel %vm2571_vm1, %v2354_v33, %v2350_v34 }
 0x227   :  { %v2358_v39 = vrot.slane %v1235_v38, %v3183_v27  ;;  %v2362_v41 = vrot.slane %v1236_v37, %v3183_v27 }
 0x228   :  { %v882_v42 = vpop.xlane.xlu1 %881  ;;  %v879_v43 = vpop.xlane.xlu0 %878 }
 0x229   :  { %v2754_v44 = vsel %vm2573_vm2, %v2358_v39, %v2753_v40  ;;  %v1238_v45 = vmul.f32 0.25, %v882_v42  ;;  %v1237_v46 = vmul.f32 0.25, %v879_v43 }
 0x22a   :  { %v2755_v49 = vsel %vm2575_vm3, %v2362_v41, %v2754_v44 }
 0x22b   :  { %v2366_v47 = vrot.slane %v1237_v46, %v3183_v27  ;;  %v2370_v48 = vrot.slane %v1238_v45, %v3183_v27 }
 0x22c   :  { %v888_v50 = vpop.xlane.xlu1 %887  ;;  %v885_v51 = vpop.xlane.xlu0 %884 }
 0x22d   :  { %v2756_v52 = vsel %vm2577_vm4, %v2366_v47, %v2755_v49  ;;  %v1240_v53 = vmul.f32 0.25, %v888_v50  ;;  %v1239_v54 = vmul.f32 0.25, %v885_v51 }
 0x22e   :  { %v2757_v57 = vsel %vm2579_vm5, %v2370_v48, %v2756_v52 }
 0x22f   :  { %v2378_v55 = vrot.slane %v1240_v53, %v3183_v27  ;;  %v2374_v56 = vrot.slane %v1239_v54, %v3183_v27 }
 0x230   :  { %v894_v58 = vpop.xlane.xlu1 %893  ;;  %v891_v59 = vpop.xlane.xlu0 %890 }
 0x231   :  { %v2758_v60 = vsel %vm2581_vm6, %v2374_v56, %v2757_v57  ;;  %v1242_v61 = vmul.f32 0.25, %v894_v58  ;;  %v1241_v62 = vmul.f32 0.25, %v891_v59 }
 0x232   :  { %v2759_v63 = vsel %vm2583_vm7, %v2378_v55, %v2758_v60 }
 0x233   :  { %2860 = vst.msk [vmem:[%s4534_s1 + $0xc8] sm:$0xff] %vm2834_vm8, %v2759_v63  ;;  %v2386_v0 = vrot.slane %v1242_v61, %v3183_v27  ;;  %v2382_v1 = vrot.slane %v1241_v62, %v3183_v27 }
 0x234   :  { %v900_v2 = vpop.xlane.xlu1 %899  ;;  %v897_v3 = vpop.xlane.xlu0 %896 }
 0x235   :  { %v2760_v4 = vsel %vm2571_vm1, %v2386_v0, %v2382_v1  ;;  %v1244_v5 = vmul.f32 0.25, %v900_v2  ;;  %v1243_v6 = vmul.f32 0.25, %v897_v3 }
 0x237   :  { %v2394_v7 = vrot.slane %v1244_v5, %v3183_v27  ;;  %v2390_v8 = vrot.slane %v1243_v6, %v3183_v27 }
 0x238   :  { %v906_v9 = vpop.xlane.xlu1 %905  ;;  %v903_v10 = vpop.xlane.xlu0 %902 }
 0x239   :  { %v2761_v11 = vsel %vm2573_vm2, %v2390_v8, %v2760_v4  ;;  %v1246_v12 = vmul.f32 0.25, %v906_v9  ;;  %v1245_v13 = vmul.f32 0.25, %v903_v10 }
 0x23a   :  { %v2762_v14 = vsel %vm2575_vm3, %v2394_v7, %v2761_v11 }
 0x23b   :  { %v2402_v15 = vrot.slane %v1246_v12, %v3183_v27  ;;  %v2398_v16 = vrot.slane %v1245_v13, %v3183_v27 }
 0x23c   :  { %v915_v17 = vpop.xlane.xlu1 %914  ;;  %v909_v18 = vpop.xlane.xlu0 %908 }
 0x23d   :  { %v2763_v19 = vsel %vm2577_vm4, %v2398_v16, %v2762_v14  ;;  %v1247_v20 = vmul.f32 0.25, %v909_v18  ;;  %v1249_v54 = vmul.f32 0.25, %v915_v17 }
 0x23e   :  { %v2764_v21 = vsel %vm2579_vm5, %v2402_v15, %v2763_v19 }
 0x23f   :  { %v2406_v22 = vrot.slane %v1247_v20, %v3183_v27  ;;  %v2414_v0 = vrot.slane %v1249_v54, %v3183_v27 }
 0x240   :  { %v939_v23 = vpop.xlane.xlu1 %938  ;;  %v918_v24 = vpop.xlane.xlu0 %917 }
 0x241   :  { %v4414_v25 = vsel %vm2581_vm6, %v2406_v22, %v2764_v21  ;;  %v1250_v49 = vmul.f32 0.25, %v918_v24  ;;  %v1257_v55 = vmul.f32 0.25, %v939_v23 }
 0x243   :  { %v2418_v57 = vrot.slane %v1250_v49, %v3183_v27  ;;  %v2446_v1 = vrot.slane %v1257_v55, %v3183_v27 }
 0x244   :  { %v963_v26 = vpop.xlane.xlu1 %962  ;;  %v942_v28 = vpop.xlane.xlu0 %941 }
 0x245   :  { %v1258_v50 = vmul.f32 0.25, %v942_v28  ;;  %v1265_v56 = vmul.f32 0.25, %v963_v26  ;;  %v2767_v6 = vsel %vm2571_vm1, %v2418_v57, %v2414_v0 }
 0x247   :  { %v2450_v58 = vrot.slane %v1258_v50, %v3183_v27  ;;  %v2478_v2 = vrot.slane %v1265_v56, %v3183_v27 }
 0x248   :  { %v987_v29 = vpop.xlane.xlu1 %986  ;;  %v966_v30 = vpop.xlane.xlu0 %965 }
 0x249   :  { %v1266_v51 = vmul.f32 0.25, %v966_v30  ;;  %v1273_v60 = vmul.f32 0.25, %v987_v29  ;;  %v2774_v7 = vsel %vm2571_vm1, %v2450_v58, %v2446_v1 }
 0x24b   :  { %v2482_v61 = vrot.slane %v1266_v51, %v3183_v27  ;;  %v2510_v9 = vrot.slane %v1273_v60, %v3183_v27 }
 0x24c   :  { %v1011_v31 = vpop.xlane.xlu1 %1010  ;;  %v990_v32 = vpop.xlane.xlu0 %989 }
 0x24d   :  { %v1274_v59 = vmul.f32 0.25, %v990_v32  ;;  %v1281_v3 = vmul.f32 0.25, %v1011_v31  ;;  %v2781_v10 = vsel %vm2571_vm1, %v2482_v61, %v2478_v2 }
 0x24f   :  { %v2514_v8 = vrot.slane %v1274_v59, %v3183_v27  ;;  %v2542_v19 = vrot.slane %v1281_v3, %v3183_v27 }
 0x250   :  { %v921_v33 = vpop.xlane.xlu1 %920  ;;  %v1014_v34 = vpop.xlane.xlu0 %1013 }
 0x251   :  { %v1251_v4 = vmul.f32 0.25, %v921_v33  ;;  %v1282_v5 = vmul.f32 0.25, %v1014_v34  ;;  %v2788_v23 = vsel %vm2571_vm1, %v2514_v8, %v2510_v9 }
 0x253   :  { %v2422_v20 = vrot.slane %v1251_v4, %v3183_v27  ;;  %v2546_v21 = vrot.slane %v1282_v5, %v3183_v27 }
 0x254   :  { %v969_v35 = vpop.xlane.xlu1 %968  ;;  %v945_v36 = vpop.xlane.xlu0 %944 }
 0x255   :  { %v1267_v11 = vmul.f32 0.25, %v969_v35  ;;  %v1259_v12 = vmul.f32 0.25, %v945_v36 }
 0x257   :  { %v2486_v29 = vrot.slane %v1267_v11, %v3183_v27  ;;  %v2454_v30 = vrot.slane %v1259_v12, %v3183_v27 }
 0x258   :  { %v1017_v37 = vpop.xlane.xlu1 %1016  ;;  %v993_v38 = vpop.xlane.xlu0 %992 }
 0x259   :  { %v1283_v15 = vmul.f32 0.25, %v1017_v37  ;;  %v1275_v16 = vmul.f32 0.25, %v993_v38  ;;  %v2782_v49 = vsel %vm2573_vm2, %v2486_v29, %v2781_v10  ;;  %v2775_v50 = vsel %vm2573_vm2, %v2454_v30, %v2774_v7 }
 0x25b   :  { %v2550_v35 = vrot.slane %v1283_v15, %v3183_v27  ;;  %v2518_v36 = vrot.slane %v1275_v16, %v3183_v27 }
 0x25c   :  { %v948_v39 = vpop.xlane.xlu1 %947  ;;  %v924_v40 = vpop.xlane.xlu0 %923 }
 0x25d   :  { %v1260_v17 = vmul.f32 0.25, %v948_v39  ;;  %v1252_v18 = vmul.f32 0.25, %v924_v40  ;;  %v2768_v39 = vsel %vm2573_vm2, %v2422_v20, %v2767_v6  ;;  %v2795_v40 = vsel %vm2571_vm1, %v2546_v21, %v2542_v19 }
 0x25e   :  { %v2796_v57 = vsel %vm2573_vm2, %v2550_v35, %v2795_v40 }
 0x25f   :  { %v2458_v37 = vrot.slane %v1260_v17, %v3183_v27  ;;  %v2426_v38 = vrot.slane %v1252_v18, %v3183_v27 }
 0x260   :  { %v996_v41 = vpop.xlane.xlu1 %995  ;;  %v972_v42 = vpop.xlane.xlu0 %971 }
 0x261   :  { %v1276_v22 = vmul.f32 0.25, %v996_v41  ;;  %v1268_v24 = vmul.f32 0.25, %v972_v42  ;;  %v2776_v58 = vsel %vm2575_vm3, %v2458_v37, %v2775_v50  ;;  %v2769_v59 = vsel %vm2575_vm3, %v2426_v38, %v2768_v39 }
 0x263   :  { %v2522_v41 = vrot.slane %v1276_v22, %v3183_v27 }
 0x264   :  { %v927_v43 = vpop.xlane.xlu1 %926  ;;  %v1020_v44 = vpop.xlane.xlu0 %1019 }
 0x265   :  { %v1253_v26 = vmul.f32 0.25, %v927_v43  ;;  %v1284_v28 = vmul.f32 0.25, %v1020_v44  ;;  %v2490_v43 = vrot.slane %v1268_v24, %v3183_v27 }
 0x267   :  { %v2430_v44 = vrot.slane %v1253_v26, %v3183_v27  ;;  %v2783_v2 = vsel %vm2575_vm3, %v2490_v43, %v2782_v49 }
 0x268   :  { %v975_v45 = vpop.xlane.xlu1 %974  ;;  %v951_v46 = vpop.xlane.xlu0 %950 }
 0x269   :  { %v1269_v31 = vmul.f32 0.25, %v975_v45  ;;  %v1261_v32 = vmul.f32 0.25, %v951_v46  ;;  %v2554_v45 = vrot.slane %v1284_v28, %v3183_v27  ;;  %v2770_v3 = vsel %vm2577_vm4, %v2430_v44, %v2769_v59 }
 0x26b   :  { %v2494_v51 = vrot.slane %v1269_v31, %v3183_v27  ;;  %v2462_v54 = vrot.slane %v1261_v32, %v3183_v27  ;;  %v2797_v4 = vsel %vm2575_vm3, %v2554_v45, %v2796_v57 }
 0x26c   :  { %v4416_v47 = vpop.xlane.xlu1 %1022  ;;  %v4418_v48 = vpop.xlane.xlu0 %998 }
 0x26d   :  { %v2784_v6 = vsel %vm2577_vm4, %v2494_v51, %v2783_v2  ;;  %v2777_v7 = vsel %vm2577_vm4, %v2462_v54, %v2776_v58 }
 0x270   :  { %v4420_v52 = vpop.xlane.xlu1 %953  ;;  %v930_v53 = vpop.xlane.xlu0 %929 }
 0x271   :  { %v1254_v42 = vmul.f32 0.25, %v930_v53  ;;  %v2789_v53 = vsel %vm2573_vm2, %v2518_v36, %v2788_v23  ;;  %v1262_v61 = vmul.f32 0.25, %v4420_v52  ;;  %v1285_v52 = vmul.f32 0.25, %v4416_v47 }
 0x272   :  { %v2790_v60 = vsel %vm2575_vm3, %v2522_v41, %v2789_v53 }
 0x273   :  { %v2434_v0 = vrot.slane %v1254_v42, %v3183_v27  ;;  %v2466_v15 = vrot.slane %v1262_v61, %v3183_v27 }
 0x274   :  { %v4425_v62 = vpop.xlane.xlu1 %1001  ;;  %v978_v63 = vpop.xlane.xlu0 %977 }
 0x275   :  { %v1270_v1 = vmul.f32 0.25, %v978_v63  ;;  %v1277_v63 = vmul.f32 0.25, %v4418_v48  ;;  %v2771_v16 = vsel %vm2579_vm5, %v2434_v0, %v2770_v3  ;;  %v1278_v17 = vmul.f32 0.25, %v4425_v62 }
 0x277   :  { %v2498_v18 = vrot.slane %v1270_v1, %v3183_v27  ;;  %v2526_v32 = vrot.slane %v1277_v63, %v3183_v27 }
 0x278   :  { %v933_v13 = vpop.xlane.xlu1 %932  ;;  %v4435_v14 = vpop.xlane.xlu0 %1025 }
 0x279   :  { %v1255_v46 = vmul.f32 0.25, %v933_v13  ;;  %v1286_v20 = vmul.f32 0.25, %v4435_v14  ;;  %v2558_v14 = vrot.slane %v1285_v52, %v3183_v27  ;;  %v2791_v51 = vsel %vm2577_vm4, %v2526_v32, %v2790_v60 }
 0x27b   :  { %v2438_v5 = vrot.slane %v1255_v46, %v3183_v27  ;;  %v2562_v35 = vrot.slane %v1286_v20, %v3183_v27  ;;  %v2798_v50 = vsel %vm2577_vm4, %v2558_v14, %v2797_v4 }
 0x27c   :  { %v981_v33 = vpop.xlane.xlu1 %980  ;;  %v957_v34 = vpop.xlane.xlu0 %956 }
 0x27d   :  { %v1271_v8 = vmul.f32 0.25, %v981_v33  ;;  %v1263_v9 = vmul.f32 0.25, %v957_v34  ;;  %v2772_v19 = vsel %vm2581_vm6, %v2438_v5, %v2771_v16  ;;  %v2778_v33 = vsel %vm2579_vm5, %v2466_v15, %v2777_v7 }
 0x27e   :  { %v2530_v34 = vrot.slane %v1278_v17, %v3183_v27 }
 0x27f   :  { %v2502_v48 = vrot.slane %v1271_v8, %v3183_v27  ;;  %v2470_v22 = vrot.slane %v1263_v9, %v3183_v27 }
 0x280   :  { %v1029_v55 = vpop.xlane.xlu1 %1028  ;;  %v1005_v56 = vpop.xlane.xlu0 %1004  ;;  %v2792_v54 = vsel %vm2579_vm5, %v2530_v34, %v2791_v51 }
 0x281   :  { %v1287_v23 = vmul.f32 0.25, %v1029_v55  ;;  %v1279_v24 = vmul.f32 0.25, %v1005_v56  ;;  %v2779_v39 = vsel %vm2581_vm6, %v2470_v22, %v2778_v33  ;;  %v2799_v55 = vsel %vm2579_vm5, %v2562_v35, %v2798_v50 }
 0x283   :  { %v2566_v40 = vrot.slane %v1287_v23, %v3183_v27  ;;  %v2534_v41 = vrot.slane %v1279_v24, %v3183_v27 }
 0x284   :  { %v936_v10 = vpop.xlane.xlu1 %935  ;;  %v912_v11 = vpop.xlane.xlu0 %911 }
 0x285   :  { %v1256_v12 = vmul.f32 0.25, %v936_v10  ;;  %v1248_v13 = vmul.f32 0.25, %v912_v11  ;;  %v2800_v53 = vsel %vm2581_vm6, %v2566_v40, %v2799_v55  ;;  %v2793_v58 = vsel %vm2581_vm6, %v2534_v41, %v2792_v54 }
 0x287   :  { %v2442_v21 = vrot.slane %v1256_v12, %v3183_v27  ;;  %v2410_v47 = vrot.slane %v1248_v13, %v3183_v27 }
 0x288   :  { %v984_v26 = vpop.xlane.xlu1 %983  ;;  %v960_v28 = vpop.xlane.xlu0 %959 }
 0x289   :  { %v2773_v62 = vsel %vm2583_vm7, %v2442_v21, %v2772_v19  ;;  %v2766_v29 = vsel %vm2583_vm7, %v2410_v47, %v4414_v25  ;;  %v1272_v30 = vmul.f32 0.25, %v984_v26  ;;  %v1264_v31 = vmul.f32 0.25, %v960_v28 }
 0x28a   :  { %2862 = vst.msk [vmem:[%s4534_s1 + $0xd8] sm:$0xff] %vm2834_vm8, %v2773_v62  ;;  %2861 = vst.msk [vmem:[%s4534_s1 + $0xd0] sm:$0xff] %vm2834_vm8, %v2766_v29  ;;  %v2785_v25 = vsel %vm2579_vm5, %v2498_v18, %v2784_v6 }
 0x28b   :  { %v2506_v36 = vrot.slane %v1272_v30, %v3183_v27  ;;  %v2474_v37 = vrot.slane %v1264_v31, %v3183_v27  ;;  %v2786_v38 = vsel %vm2581_vm6, %v2502_v48, %v2785_v25 }
 0x28c   :  { %v1032_v42 = vpop.xlane.xlu1 %1031  ;;  %v1008_v43 = vpop.xlane.xlu0 %1007 }
 0x28d   :  { %v2787_v44 = vsel %vm2583_vm7, %v2506_v36, %v2786_v38  ;;  %v2780_v45 = vsel %vm2583_vm7, %v2474_v37, %v2779_v39  ;;  %v1288_v46 = vmul.f32 0.25, %v1032_v42  ;;  %v1280_v49 = vmul.f32 0.25, %v1008_v43 }
 0x28e   :  { %2864 = vst.msk [vmem:[%s4534_s1 + $0xe8] sm:$0xff] %vm2834_vm8, %v2787_v44  ;;  %2863 = vst.msk [vmem:[%s4534_s1 + $0xe0] sm:$0xff] %vm2834_vm8, %v2780_v45 }
 0x28f   :  { %v2570_v56 = vrot.slane %v1288_v46, %v3183_v27  ;;  %v2538_v57 = vrot.slane %v1280_v49, %v3183_v27 }
 0x291   :  { %v2801_v59 = vsel %vm2583_vm7, %v2570_v56, %v2800_v53  ;;  %v2794_v60 = vsel %vm2583_vm7, %v2538_v57, %v2793_v58 }
 0x292   :  { %2866 = vst.msk [vmem:[%s4534_s1 + $0xf8] sm:$0xff] %vm2834_vm8, %v2801_v59  ;;  %2865 = vst.msk [vmem:[%s4534_s1 + $0xf0] sm:$0xff] %vm2834_vm8, %v2794_v60 }

</bundles_post_ra>
